<compile_context>
chip_gen: v5e
topology: v5e:2x2
jax: 0.10.0
libtpu: 0.0.40
codegen_flags: <defaults>
</compile_context>

<pallas_src>
import functools
import math

import jax
import jax.numpy as jnp
from jax.experimental import pallas as pl
from jax.experimental.pallas import tpu as pltpu

LANES = 128          # every channel-like dim is zero-padded to this lane width
KSIZE = 5
PAD = 2
BN_EPS = 1e-5        # PyTorch BatchNorm2d default
MAX_IMG_BLOCK = 16   # images per grid step (peak VMEM ~14 MB at 16)


def _round_up(x, m):
    return ((x + m - 1) // m) * m


def _pick_image_block(n, p_rows, cap=MAX_IMG_BLOCK):
    """Largest image block B such that either the whole batch is one grid step
    (full-dim BlockSpec exception) or B divides n and B*p_rows is a multiple
    of 8 (sublane tile), so the (B*P, 128) blocks are tile-aligned."""
    if n <= cap:
        return n
    step = 8 // math.gcd(p_rows, 8)
    start = (cap // step) * step
    for b in range(start, 0, -step):
        if b > 0 and n % b == 0:
            return b
    return n  # fallback: whole batch in one step (always legal)


# ---------------------------------------------------------------------------
# Host-side (XLA) pool-grouped im2col.
# Output: (4, N*P, K_pad) bf16 where
#   axis 0 : 2x2 pool position (py, px)
#   axis 1 : (image, y_out, x_out) row-major   (P = (H/2)*(W/2))
#   axis 2 : (dy, dx, cin) flattened, zero-padded to K_pad (multiple of 128)
# All four pool planes share the same row <-> (image, pooled pixel) mapping,
# so the kernel max-pools with plain elementwise maxes (no in-kernel reshapes).
# ---------------------------------------------------------------------------
def _pool_grouped_patches(x_nhwc, k_pad):
    n, h, w, c = x_nhwc.shape
    assert h % 2 == 0 and w % 2 == 0, "2x2 max-pool requires even H and W"
    k = KSIZE * KSIZE * c
    x_bf = x_nhwc.astype(jnp.bfloat16)
    xp = jnp.pad(x_bf, ((0, 0), (PAD, PAD), (PAD, PAD), (0, 0)))
    taps = jnp.stack([xp[:, dy:dy + h, dx:dx + w, :]
                      for dy in range(KSIZE) for dx in range(KSIZE)],
                     axis=3)                                  # (n, h, w, 25, c)
    taps = taps.reshape(n, h // 2, 2, w // 2, 2, k)           # (n, y', py, x', px, k)
    taps = taps.transpose(2, 4, 0, 1, 3, 5)                   # (py, px, n, y', x', k)
    rows = taps.reshape(4, n * (h // 2) * (w // 2), k)
    rows = jnp.pad(rows, ((0, 0), (0, 0), (0, k_pad - k)))
    return rows                                               # bf16


# ---------------------------------------------------------------------------
# Fused conv + BatchNorm(train) + ReLU + 2x2 max-pool kernel.
# grid = (phase, image_block):
#   phase 0 : accumulate per-channel sum / sum-of-squares of the conv output
#   phase 1 : recompute conv, normalize (hoisted scale/shift), pool, ReLU, store
# ---------------------------------------------------------------------------
def _conv_bn_relu_pool_kernel(x_ref, w_ref, g_ref, b_ref, o_ref,
                              sum_ref, sq_ref, ss_ref, *, inv_m, eps):
    phase = pl.program_id(0)
    blk = pl.program_id(1)

    w = w_ref[...]                                            # (K_pad, 128) bf16

    @pl.when(jnp.logical_and(phase == 0, blk == 0))
    def _init():
        sum_ref[...] = jnp.zeros_like(sum_ref)
        sq_ref[...] = jnp.zeros_like(sq_ref)

    @pl.when(phase == 0)
    def _stats():
        s = jnp.zeros((1, LANES), jnp.float32)
        q = jnp.zeros((1, LANES), jnp.float32)
        # One plane at a time keeps only ~1 f32 (B*P,128) temporary live.
        for j in range(4):
            a = jnp.dot(x_ref[j], w, preferred_element_type=jnp.float32)
            s = s + jnp.sum(a, axis=0, keepdims=True)
            q = q + jnp.sum(a * a, axis=0, keepdims=True)
        sum_ref[...] += s
        sq_ref[...] += q

    @pl.when(jnp.logical_and(phase == 1, blk == 0))
    def _finalize_stats():
        mean = sum_ref[...] * inv_m
        var = sq_ref[...] * inv_m - mean * mean               # biased (train BN)
        scale = jax.lax.rsqrt(var + eps) * g_ref[...]
        ss_ref[0:1, :] = scale
        ss_ref[1:2, :] = b_ref[...] - mean * scale

    @pl.when(phase == 1)
    def _emit():
        scale = ss_ref[0:1, :]
        shift = ss_ref[1:2, :]
        pooled = None
        for j in range(4):
            a = jnp.dot(x_ref[j], w, preferred_element_type=jnp.float32)
            y = a * scale + shift
            pooled = y if pooled is None else jnp.maximum(pooled, y)
        o_ref[...] = jnp.maximum(pooled, 0.0).astype(o_ref.dtype)


def conv_bn_relu_pool(x_nhwc, conv_w, bn_gamma, bn_beta):
    """One fused layer.  x_nhwc: (N,H,W,Cin); conv_w: (Cout,Cin,5,5) torch
    layout.  Returns (N*(H/2)*(W/2), 128) bf16 with rows ordered
    (image, y_out, x_out) and real channels in lanes [:Cout].  The conv bias
    is dropped: it cancels exactly under train-mode BatchNorm."""
    n, h, w, cin = x_nhwc.shape
    cout = conv_w.shape[0]
    k = KSIZE * KSIZE * cin
    k_pad = _round_up(k, LANES)           # 128-lane K pad only (never toward 256)
    p_rows = (h // 2) * (w // 2)
    bimg = _pick_image_block(n, p_rows)
    nblk = n // bimg

    patches = _pool_grouped_patches(x_nhwc, k_pad)            # (4, N*P, K_pad) bf16
    wmat = conv_w.transpose(2, 3, 1, 0).reshape(k, cout)      # rows = (dy, dx, ci)
    wmat = jnp.pad(wmat, ((0, k_pad - k), (0, LANES - cout))).astype(jnp.bfloat16)
    gamma = jnp.pad(bn_gamma, (0, LANES - cout)).reshape(1, LANES).astype(jnp.float32)
    beta = jnp.pad(bn_beta, (0, LANES - cout)).reshape(1, LANES).astype(jnp.float32)

    kernel = functools.partial(_conv_bn_relu_pool_kernel,
                               inv_m=1.0 / float(n * h * w), eps=BN_EPS)

    return pl.pallas_call(
        kernel,
        grid=(2, nblk),   # (phase, image block); stats before emit -> arbitrary
        out_shape=jax.ShapeDtypeStruct((n * p_rows, LANES), jnp.bfloat16),
        in_specs=[
            pl.BlockSpec((4, bimg * p_rows, k_pad), lambda p, i: (0, i, 0)),
            pl.BlockSpec((k_pad, LANES), lambda p, i: (0, 0)),   # resident weights
            pl.BlockSpec((1, LANES), lambda p, i: (0, 0)),
            pl.BlockSpec((1, LANES), lambda p, i: (0, 0)),
        ],
        # Phase 0 writes nothing: park every phase-0 step on output block 0
        # (i*p == 0), which phase-1 step 0 fully overwrites before the first
        # block-index change; phase 1 then walks the real blocks.
        out_specs=pl.BlockSpec((bimg * p_rows, LANES), lambda p, i: (i * p, 0)),
        scratch_shapes=[
            pltpu.VMEM((1, LANES), jnp.float32),   # per-channel sum
            pltpu.VMEM((1, LANES), jnp.float32),   # per-channel sum of squares
            pltpu.VMEM((2, LANES), jnp.float32),   # hoisted BN [scale; shift]
        ],
        compiler_params=pltpu.CompilerParams(
            dimension_semantics=("arbitrary", "arbitrary"),
            vmem_limit_bytes=32 * 1024 * 1024),
    )(patches, wmat, gamma, beta)


# ---------------------------------------------------------------------------
# Final Linear layer: (N, K) x (K, 128-padded) + bias, lane-dense output.
# ---------------------------------------------------------------------------
def _linear_kernel(x_ref, w_ref, b_ref, o_ref):
    acc = jnp.dot(x_ref[...], w_ref[...], preferred_element_type=jnp.float32)
    o_ref[...] = (acc + b_ref[...]).astype(o_ref.dtype)


def linear(x, fc_w, fc_b):
    """x: (N, K) bf16; fc_w: (n_out, K); returns (N, 128) f32."""
    n, k = x.shape
    n_out = fc_w.shape[0]
    wmat = jnp.pad(fc_w.T, ((0, 0), (0, LANES - n_out))).astype(jnp.bfloat16)
    bias = jnp.pad(fc_b, (0, LANES - n_out)).reshape(1, LANES).astype(jnp.float32)
    return pl.pallas_call(
        _linear_kernel,
        grid=(1,),
        out_shape=jax.ShapeDtypeStruct((n, LANES), jnp.float32),
        in_specs=[pl.BlockSpec((n, k), lambda i: (0, 0)),
                  pl.BlockSpec((k, LANES), lambda i: (0, 0)),
                  pl.BlockSpec((1, LANES), lambda i: (0, 0))],
        out_specs=pl.BlockSpec((n, LANES), lambda i: (0, 0)),
        compiler_params=pltpu.CompilerParams(
            dimension_semantics=("arbitrary",)),
    )(x.astype(jnp.bfloat16), wmat, bias)


# ---------------------------------------------------------------------------
# Full forward pass (matches CNN.forward; BN uses training-mode batch
# statistics, i.e. a freshly constructed PyTorch module's forward).
# ---------------------------------------------------------------------------
@jax.jit
def cnn_forward(x_nchw, params):
    n = x_nchw.shape[0]
    x = jnp.transpose(x_nchw, (0, 2, 3, 1))          # one-time NCHW -> NHWC
    h, w = x.shape[1], x.shape[2]

    c1 = params["w1"].shape[0]
    h1 = conv_bn_relu_pool(x, params["w1"], params["g1"], params["bt1"])
    hh, ww = h // 2, w // 2
    # (N*P,128) -> (N,14,14,128) is a free row-major split; slice real channels
    # only for the next im2col (keeps layer-2 K at 400, not 3200).
    h1 = h1.reshape(n, hh, ww, LANES)[:, :, :, :c1]   # (N,14,14,16) bf16 NHWC

    c2 = params["w2"].shape[0]
    h2 = conv_bn_relu_pool(h1, params["w2"], params["g2"], params["bt2"])
    hh2, ww2 = hh // 2, ww // 2
    # Free collapse reshape: rows already (image, y, x), lanes = padded channels.
    h2 = h2.reshape(n, hh2 * ww2 * LANES)             # (N, 49*128) bf16

    # PyTorch's out.view(N,-1) flattens (c, y, x); permute the FC weight to the
    # activation's (y, x, c_pad128) order and zero the padded-channel rows, so
    # the FC consumes the lane-padded activation directly.
    n_out = params["fcw"].shape[0]
    fcw = params["fcw"].reshape(n_out, c2, hh2, ww2).transpose(0, 2, 3, 1)
    fcw = jnp.pad(fcw, ((0, 0), (0, 0), (0, 0), (0, LANES - c2)))
    fcw = fcw.reshape(n_out, hh2 * ww2 * LANES)
    logits = linear(h2, fcw, params["fcb"])
    return logits[:, :n_out]


def init_params(key):
    ks = jax.random.split(key, 10)
    f32 = jnp.float32
    return {
        "w1": jax.random.normal(ks[0], (16, 1, 5, 5), f32) * 0.2,
        # conv biases kept for parameter fidelity; they cancel under train-mode
        # BatchNorm and are therefore not fed to the kernels.
        "b1": jax.random.normal(ks[1], (16,), f32) * 0.1,
        "g1": jnp.ones((16,), f32) + 0.1 * jax.random.normal(ks[2], (16,), f32),
        "bt1": 0.1 * jax.random.normal(ks[3], (16,), f32),
        "w2": jax.random.normal(ks[4], (32, 16, 5, 5), f32) * 0.05,
        "b2": jax.random.normal(ks[5], (32,), f32) * 0.1,
        "g2": jnp.ones((32,), f32) + 0.1 * jax.random.normal(ks[6], (32,), f32),
        "bt2": 0.1 * jax.random.normal(ks[7], (32,), f32),
        "fcw": jax.random.normal(ks[8], (10, 7 * 7 * 32), f32) * 0.02,
        "fcb": jax.random.normal(ks[9], (10,), f32) * 0.1,
    }


if __name__ == "__main__":
    key = jax.random.PRNGKey(0)
    pkey, xkey = jax.random.split(key)
    params = init_params(pkey)
    # The FC layer hard-codes 7*7*32, so spatial must be 28x28 and Cin=1 (MNIST).
    x = jax.random.normal(xkey, (2, 1, 28, 28), jnp.float32)
    out = cnn_forward(x, params)
    jax.block_until_ready(out)
    assert out.shape == (2, 10) and out.dtype == jnp.float32
    print("KERNEL_OK")
</pallas_src>

<mosaic_0001>
module attributes {stable_mosaic.version = 11 : i64} {
  func.func @_conv_bn_relu_pool_kernel(%arg0: i32, %arg1: i32, %arg2: memref<4x392x128xbf16, #tpu.memory_space<vmem>>, %arg3: memref<128x128xbf16, #tpu.memory_space<vmem>>, %arg4: memref<1x128xf32, #tpu.memory_space<vmem>>, %arg5: memref<1x128xf32, #tpu.memory_space<vmem>>, %arg6: memref<392x128xbf16, #tpu.memory_space<vmem>>, %arg7: memref<1x128xf32, #tpu.memory_space<vmem>>, %arg8: memref<1x128xf32, #tpu.memory_space<vmem>>, %arg9: memref<2x128xf32, #tpu.memory_space<vmem>>) attributes {dimension_semantics = [#tpu.dimension_semantics<arbitrary>, #tpu.dimension_semantics<arbitrary>], iteration_bounds = array<i64: 2, 1>, scalar_prefetch = 0 : i64, scratch_operands = 3 : i64, tpu.core_type = #tpu.core_type<tc>, window_params = [{transform_indices = @transform_0, window_bounds = array<i64: 4, 392, 128>}, {pipeline_mode = #tpu.pipeline_mode<synchronous>, transform_indices = @transform_1, window_bounds = array<i64: 128, 128>}, {pipeline_mode = #tpu.pipeline_mode<synchronous>, transform_indices = @transform_2, window_bounds = array<i64: 1, 128>}, {pipeline_mode = #tpu.pipeline_mode<synchronous>, transform_indices = @transform_3, window_bounds = array<i64: 1, 128>}, {transform_indices = @transform_4, window_bounds = array<i64: 392, 128>}]} {
    %c0 = arith.constant 0 : index
    %c0_0 = arith.constant 0 : index
    %0 = vector.load %arg3[%c0, %c0_0] : memref<128x128xbf16, #tpu.memory_space<vmem>>, vector<128x128xbf16>
    %c0_i32 = arith.constant 0 : i32
    %1 = arith.cmpi eq, %arg0, %c0_i32 : i32
    %c0_i32_1 = arith.constant 0 : i32
    %2 = arith.cmpi eq, %arg1, %c0_i32_1 : i32
    %3 = arith.andi %1, %2 : i1
    %4 = arith.extui %3 : i1 to i32
    %c0_i32_2 = arith.constant 0 : i32
    %5 = arith.cmpi ne, %4, %c0_i32_2 : i32
    scf.if %5 {
      %cst = arith.constant 0.000000e+00 : f32
      %17 = vector.broadcast %cst : f32 to vector<1x128xf32>
      %c0_9 = arith.constant 0 : index
      %c0_10 = arith.constant 0 : index
      %18 = vector.load %arg7[%c0_9, %c0_10] : memref<1x128xf32, #tpu.memory_space<vmem>>, vector<1x128xf32>
      tpu.vector_store %arg7[%c0_9, %c0_10], %17 {strides = array<i32>} : memref<1x128xf32, #tpu.memory_space<vmem>>, vector<1x128xf32>,
      %cst_11 = arith.constant 0.000000e+00 : f32
      %19 = vector.broadcast %cst_11 : f32 to vector<1x128xf32>
      %c0_12 = arith.constant 0 : index
      %c0_13 = arith.constant 0 : index
      %20 = vector.load %arg8[%c0_12, %c0_13] : memref<1x128xf32, #tpu.memory_space<vmem>>, vector<1x128xf32>
      tpu.vector_store %arg8[%c0_12, %c0_13], %19 {strides = array<i32>} : memref<1x128xf32, #tpu.memory_space<vmem>>, vector<1x128xf32>,
    } else {
    }
    %c0_i32_3 = arith.constant 0 : i32
    %6 = arith.cmpi eq, %arg0, %c0_i32_3 : i32
    %7 = arith.extui %6 : i1 to i32
    %c0_i32_4 = arith.constant 0 : i32
    %8 = arith.cmpi ne, %7, %c0_i32_4 : i32
    scf.if %8 {
      %cst = arith.constant 0.000000e+00 : f32
      %17 = vector.broadcast %cst : f32 to vector<1x128xf32>
      %cst_9 = arith.constant 0.000000e+00 : f32
      %18 = vector.broadcast %cst_9 : f32 to vector<1x128xf32>
      %c0_10 = arith.constant 0 : index
      %c0_11 = arith.constant 0 : index
      %c0_12 = arith.constant 0 : index
      %19 = vector.load %arg2[%c0_10, %c0_11, %c0_12] : memref<4x392x128xbf16, #tpu.memory_space<vmem>>, vector<1x392x128xbf16>
      %20 = vector.shape_cast %19 : vector<1x392x128xbf16> to vector<392x128xbf16>
      %cst_13 = arith.constant dense<0.000000e+00> : vector<392x128xf32>
      %21 = tpu.matmul %20, %0, %cst_13 {dimension_numbers = #tpu.dot_dimension_numbers<[1], [0], [0], [1], [0, 0, 1, 1], [], []>} : vector<392x128xbf16>, vector<128x128xbf16>, vector<392x128xf32> -> vector<392x128xf32>
      %cst_14 = arith.constant dense<0.000000e+00> : vector<128xf32>
      %22 = vector.multi_reduction <add>, %21, %cst_14 [0] : vector<392x128xf32> to vector<128xf32>
      %23 = vector.shape_cast %22 : vector<128xf32> to vector<1x128xf32>
      %24 = arith.addf %17, %23 : vector<1x128xf32>
      %25 = arith.mulf %21, %21 : vector<392x128xf32>
      %cst_15 = arith.constant dense<0.000000e+00> : vector<128xf32>
      %26 = vector.multi_reduction <add>, %25, %cst_15 [0] : vector<392x128xf32> to vector<128xf32>
      %27 = vector.shape_cast %26 : vector<128xf32> to vector<1x128xf32>
      %28 = arith.addf %18, %27 : vector<1x128xf32>
      %c1 = arith.constant 1 : index
      %c0_16 = arith.constant 0 : index
      %c0_17 = arith.constant 0 : index
      %29 = vector.load %arg2[%c1, %c0_16, %c0_17] : memref<4x392x128xbf16, #tpu.memory_space<vmem>>, vector<1x392x128xbf16>
      %30 = vector.shape_cast %29 : vector<1x392x128xbf16> to vector<392x128xbf16>
      %cst_18 = arith.constant dense<0.000000e+00> : vector<392x128xf32>
      %31 = tpu.matmul %30, %0, %cst_18 {dimension_numbers = #tpu.dot_dimension_numbers<[1], [0], [0], [1], [0, 0, 1, 1], [], []>} : vector<392x128xbf16>, vector<128x128xbf16>, vector<392x128xf32> -> vector<392x128xf32>
      %cst_19 = arith.constant dense<0.000000e+00> : vector<128xf32>
      %32 = vector.multi_reduction <add>, %31, %cst_19 [0] : vector<392x128xf32> to vector<128xf32>
      %33 = vector.shape_cast %32 : vector<128xf32> to vector<1x128xf32>
      %34 = arith.addf %24, %33 : vector<1x128xf32>
      %35 = arith.mulf %31, %31 : vector<392x128xf32>
      %cst_20 = arith.constant dense<0.000000e+00> : vector<128xf32>
      %36 = vector.multi_reduction <add>, %35, %cst_20 [0] : vector<392x128xf32> to vector<128xf32>
      %37 = vector.shape_cast %36 : vector<128xf32> to vector<1x128xf32>
      %38 = arith.addf %28, %37 : vector<1x128xf32>
      %c2 = arith.constant 2 : index
      %c0_21 = arith.constant 0 : index
      %c0_22 = arith.constant 0 : index
      %39 = vector.load %arg2[%c2, %c0_21, %c0_22] : memref<4x392x128xbf16, #tpu.memory_space<vmem>>, vector<1x392x128xbf16>
      %40 = vector.shape_cast %39 : vector<1x392x128xbf16> to vector<392x128xbf16>
      %cst_23 = arith.constant dense<0.000000e+00> : vector<392x128xf32>
      %41 = tpu.matmul %40, %0, %cst_23 {dimension_numbers = #tpu.dot_dimension_numbers<[1], [0], [0], [1], [0, 0, 1, 1], [], []>} : vector<392x128xbf16>, vector<128x128xbf16>, vector<392x128xf32> -> vector<392x128xf32>
      %cst_24 = arith.constant dense<0.000000e+00> : vector<128xf32>
      %42 = vector.multi_reduction <add>, %41, %cst_24 [0] : vector<392x128xf32> to vector<128xf32>
      %43 = vector.shape_cast %42 : vector<128xf32> to vector<1x128xf32>
      %44 = arith.addf %34, %43 : vector<1x128xf32>
      %45 = arith.mulf %41, %41 : vector<392x128xf32>
      %cst_25 = arith.constant dense<0.000000e+00> : vector<128xf32>
      %46 = vector.multi_reduction <add>, %45, %cst_25 [0] : vector<392x128xf32> to vector<128xf32>
      %47 = vector.shape_cast %46 : vector<128xf32> to vector<1x128xf32>
      %48 = arith.addf %38, %47 : vector<1x128xf32>
      %c3 = arith.constant 3 : index
      %c0_26 = arith.constant 0 : index
      %c0_27 = arith.constant 0 : index
      %49 = vector.load %arg2[%c3, %c0_26, %c0_27] : memref<4x392x128xbf16, #tpu.memory_space<vmem>>, vector<1x392x128xbf16>
      %50 = vector.shape_cast %49 : vector<1x392x128xbf16> to vector<392x128xbf16>
      %cst_28 = arith.constant dense<0.000000e+00> : vector<392x128xf32>
      %51 = tpu.matmul %50, %0, %cst_28 {dimension_numbers = #tpu.dot_dimension_numbers<[1], [0], [0], [1], [0, 0, 1, 1], [], []>} : vector<392x128xbf16>, vector<128x128xbf16>, vector<392x128xf32> -> vector<392x128xf32>
      %cst_29 = arith.constant dense<0.000000e+00> : vector<128xf32>
      %52 = vector.multi_reduction <add>, %51, %cst_29 [0] : vector<392x128xf32> to vector<128xf32>
      %53 = vector.shape_cast %52 : vector<128xf32> to vector<1x128xf32>
      %54 = arith.addf %44, %53 : vector<1x128xf32>
      %55 = arith.mulf %51, %51 : vector<392x128xf32>
      %cst_30 = arith.constant dense<0.000000e+00> : vector<128xf32>
      %56 = vector.multi_reduction <add>, %55, %cst_30 [0] : vector<392x128xf32> to vector<128xf32>
      %57 = vector.shape_cast %56 : vector<128xf32> to vector<1x128xf32>
      %58 = arith.addf %48, %57 : vector<1x128xf32>
      %c0_31 = arith.constant 0 : index
      %c0_32 = arith.constant 0 : index
      %59 = vector.load %arg7[%c0_31, %c0_32] : memref<1x128xf32, #tpu.memory_space<vmem>>, vector<1x128xf32>
      %60 = arith.addf %59, %54 : vector<1x128xf32>
      %c0_33 = arith.constant 0 : index
      %c0_34 = arith.constant 0 : index
      %61 = vector.load %arg7[%c0_33, %c0_34] : memref<1x128xf32, #tpu.memory_space<vmem>>, vector<1x128xf32>
      tpu.vector_store %arg7[%c0_33, %c0_34], %60 {strides = array<i32>} : memref<1x128xf32, #tpu.memory_space<vmem>>, vector<1x128xf32>,
      %c0_35 = arith.constant 0 : index
      %c0_36 = arith.constant 0 : index
      %62 = vector.load %arg8[%c0_35, %c0_36] : memref<1x128xf32, #tpu.memory_space<vmem>>, vector<1x128xf32>
      %63 = arith.addf %62, %58 : vector<1x128xf32>
      %c0_37 = arith.constant 0 : index
      %c0_38 = arith.constant 0 : index
      %64 = vector.load %arg8[%c0_37, %c0_38] : memref<1x128xf32, #tpu.memory_space<vmem>>, vector<1x128xf32>
      tpu.vector_store %arg8[%c0_37, %c0_38], %63 {strides = array<i32>} : memref<1x128xf32, #tpu.memory_space<vmem>>, vector<1x128xf32>,
    } else {
    }
    %c1_i32 = arith.constant 1 : i32
    %9 = arith.cmpi eq, %arg0, %c1_i32 : i32
    %c0_i32_5 = arith.constant 0 : i32
    %10 = arith.cmpi eq, %arg1, %c0_i32_5 : i32
    %11 = arith.andi %9, %10 : i1
    %12 = arith.extui %11 : i1 to i32
    %c0_i32_6 = arith.constant 0 : i32
    %13 = arith.cmpi ne, %12, %c0_i32_6 : i32
    scf.if %13 {
      %c0_9 = arith.constant 0 : index
      %c0_10 = arith.constant 0 : index
      %17 = vector.load %arg7[%c0_9, %c0_10] : memref<1x128xf32, #tpu.memory_space<vmem>>, vector<1x128xf32>
      %cst = arith.constant 6.37755089E-4 : f32
      %18 = vector.broadcast %cst : f32 to vector<1x128xf32>
      %19 = arith.mulf %17, %18 : vector<1x128xf32>
      %c0_11 = arith.constant 0 : index
      %c0_12 = arith.constant 0 : index
      %20 = vector.load %arg8[%c0_11, %c0_12] : memref<1x128xf32, #tpu.memory_space<vmem>>, vector<1x128xf32>
      %cst_13 = arith.constant 6.37755089E-4 : f32
      %21 = vector.broadcast %cst_13 : f32 to vector<1x128xf32>
      %22 = arith.mulf %20, %21 : vector<1x128xf32>
      %23 = arith.mulf %19, %19 : vector<1x128xf32>
      %24 = arith.subf %22, %23 : vector<1x128xf32>
      %cst_14 = arith.constant 9.99999974E-6 : f32
      %25 = vector.broadcast %cst_14 : f32 to vector<1x128xf32>
      %26 = arith.addf %24, %25 : vector<1x128xf32>
      %27 = math.rsqrt %26 : vector<1x128xf32>
      %c0_15 = arith.constant 0 : index
      %c0_16 = arith.constant 0 : index
      %28 = vector.load %arg4[%c0_15, %c0_16] : memref<1x128xf32, #tpu.memory_space<vmem>>, vector<1x128xf32>
      %29 = arith.mulf %27, %28 : vector<1x128xf32>
      %c0_17 = arith.constant 0 : index
      %c0_18 = arith.constant 0 : index
      %30 = vector.load %arg9[%c0_17, %c0_18] : memref<2x128xf32, #tpu.memory_space<vmem>>, vector<1x128xf32>
      tpu.vector_store %arg9[%c0_17, %c0_18], %29 {strides = array<i32>} : memref<2x128xf32, #tpu.memory_space<vmem>>, vector<1x128xf32>,
      %c0_19 = arith.constant 0 : index
      %c0_20 = arith.constant 0 : index
      %31 = vector.load %arg5[%c0_19, %c0_20] : memref<1x128xf32, #tpu.memory_space<vmem>>, vector<1x128xf32>
      %32 = arith.mulf %19, %29 : vector<1x128xf32>
      %33 = arith.subf %31, %32 : vector<1x128xf32>
      %c1 = arith.constant 1 : index
      %c0_21 = arith.constant 0 : index
      %34 = vector.load %arg9[%c1, %c0_21] : memref<2x128xf32, #tpu.memory_space<vmem>>, vector<1x128xf32>
      tpu.vector_store %arg9[%c1, %c0_21], %33 {strides = array<i32>} : memref<2x128xf32, #tpu.memory_space<vmem>>, vector<1x128xf32>,
    } else {
    }
    %c1_i32_7 = arith.constant 1 : i32
    %14 = arith.cmpi eq, %arg0, %c1_i32_7 : i32
    %15 = arith.extui %14 : i1 to i32
    %c0_i32_8 = arith.constant 0 : i32
    %16 = arith.cmpi ne, %15, %c0_i32_8 : i32
    scf.if %16 {
      %c0_9 = arith.constant 0 : index
      %c0_10 = arith.constant 0 : index
      %17 = vector.load %arg9[%c0_9, %c0_10] : memref<2x128xf32, #tpu.memory_space<vmem>>, vector<1x128xf32>
      %c1 = arith.constant 1 : index
      %c0_11 = arith.constant 0 : index
      %18 = vector.load %arg9[%c1, %c0_11] : memref<2x128xf32, #tpu.memory_space<vmem>>, vector<1x128xf32>
      %c0_12 = arith.constant 0 : index
      %c0_13 = arith.constant 0 : index
      %c0_14 = arith.constant 0 : index
      %19 = vector.load %arg2[%c0_12, %c0_13, %c0_14] : memref<4x392x128xbf16, #tpu.memory_space<vmem>>, vector<1x392x128xbf16>
      %20 = vector.shape_cast %19 : vector<1x392x128xbf16> to vector<392x128xbf16>
      %cst = arith.constant dense<0.000000e+00> : vector<392x128xf32>
      %21 = tpu.matmul %20, %0, %cst {dimension_numbers = #tpu.dot_dimension_numbers<[1], [0], [0], [1], [0, 0, 1, 1], [], []>} : vector<392x128xbf16>, vector<128x128xbf16>, vector<392x128xf32> -> vector<392x128xf32>
      %22 = vector.broadcast %17 : vector<1x128xf32> to vector<392x128xf32>
      %23 = arith.mulf %21, %22 : vector<392x128xf32>
      %24 = vector.broadcast %18 : vector<1x128xf32> to vector<392x128xf32>
      %25 = arith.addf %23, %24 : vector<392x128xf32>
      %c1_15 = arith.constant 1 : index
      %c0_16 = arith.constant 0 : index
      %c0_17 = arith.constant 0 : index
      %26 = vector.load %arg2[%c1_15, %c0_16, %c0_17] : memref<4x392x128xbf16, #tpu.memory_space<vmem>>, vector<1x392x128xbf16>
      %27 = vector.shape_cast %26 : vector<1x392x128xbf16> to vector<392x128xbf16>
      %cst_18 = arith.constant dense<0.000000e+00> : vector<392x128xf32>
      %28 = tpu.matmul %27, %0, %cst_18 {dimension_numbers = #tpu.dot_dimension_numbers<[1], [0], [0], [1], [0, 0, 1, 1], [], []>} : vector<392x128xbf16>, vector<128x128xbf16>, vector<392x128xf32> -> vector<392x128xf32>
      %29 = vector.broadcast %17 : vector<1x128xf32> to vector<392x128xf32>
      %30 = arith.mulf %28, %29 : vector<392x128xf32>
      %31 = vector.broadcast %18 : vector<1x128xf32> to vector<392x128xf32>
      %32 = arith.addf %30, %31 : vector<392x128xf32>
      %33 = arith.maximumf %25, %32 : vector<392x128xf32>
      %c2 = arith.constant 2 : index
      %c0_19 = arith.constant 0 : index
      %c0_20 = arith.constant 0 : index
      %34 = vector.load %arg2[%c2, %c0_19, %c0_20] : memref<4x392x128xbf16, #tpu.memory_space<vmem>>, vector<1x392x128xbf16>
      %35 = vector.shape_cast %34 : vector<1x392x128xbf16> to vector<392x128xbf16>
      %cst_21 = arith.constant dense<0.000000e+00> : vector<392x128xf32>
      %36 = tpu.matmul %35, %0, %cst_21 {dimension_numbers = #tpu.dot_dimension_numbers<[1], [0], [0], [1], [0, 0, 1, 1], [], []>} : vector<392x128xbf16>, vector<128x128xbf16>, vector<392x128xf32> -> vector<392x128xf32>
      %37 = vector.broadcast %17 : vector<1x128xf32> to vector<392x128xf32>
      %38 = arith.mulf %36, %37 : vector<392x128xf32>
      %39 = vector.broadcast %18 : vector<1x128xf32> to vector<392x128xf32>
      %40 = arith.addf %38, %39 : vector<392x128xf32>
      %41 = arith.maximumf %33, %40 : vector<392x128xf32>
      %c3 = arith.constant 3 : index
      %c0_22 = arith.constant 0 : index
      %c0_23 = arith.constant 0 : index
      %42 = vector.load %arg2[%c3, %c0_22, %c0_23] : memref<4x392x128xbf16, #tpu.memory_space<vmem>>, vector<1x392x128xbf16>
      %43 = vector.shape_cast %42 : vector<1x392x128xbf16> to vector<392x128xbf16>
      %cst_24 = arith.constant dense<0.000000e+00> : vector<392x128xf32>
      %44 = tpu.matmul %43, %0, %cst_24 {dimension_numbers = #tpu.dot_dimension_numbers<[1], [0], [0], [1], [0, 0, 1, 1], [], []>} : vector<392x128xbf16>, vector<128x128xbf16>, vector<392x128xf32> -> vector<392x128xf32>
      %45 = vector.broadcast %17 : vector<1x128xf32> to vector<392x128xf32>
      %46 = arith.mulf %44, %45 : vector<392x128xf32>
      %47 = vector.broadcast %18 : vector<1x128xf32> to vector<392x128xf32>
      %48 = arith.addf %46, %47 : vector<392x128xf32>
      %49 = arith.maximumf %41, %48 : vector<392x128xf32>
      %cst_25 = arith.constant 0.000000e+00 : f32
      %50 = vector.broadcast %cst_25 : f32 to vector<392x128xf32>
      %51 = arith.maximumf %49, %50 : vector<392x128xf32>
      %52 = arith.truncf %51 : vector<392x128xf32> to vector<392x128xbf16>
      %c0_26 = arith.constant 0 : index
      %c0_27 = arith.constant 0 : index
      %53 = vector.load %arg6[%c0_26, %c0_27] : memref<392x128xbf16, #tpu.memory_space<vmem>>, vector<392x128xbf16>
      tpu.vector_store %arg6[%c0_26, %c0_27], %52 {strides = array<i32>} : memref<392x128xbf16, #tpu.memory_space<vmem>>, vector<392x128xbf16>,
    } else {
    }
    return
  }
  func.func @transform_0(%arg0: i32, %arg1: i32) -> (i32, i32, i32) {
    %c0_i32 = arith.constant 0 : i32
    %c0_i32_0 = arith.constant 0 : i32
    %c0_i32_1 = arith.constant 0 : i32
    return %c0_i32, %arg1, %c0_i32_0 : i32, i32, i32
  }
  func.func @transform_1(%arg0: i32, %arg1: i32) -> (i32, i32) {
    %c0_i32 = arith.constant 0 : i32
    %c0_i32_0 = arith.constant 0 : i32
    %c0_i32_1 = arith.constant 0 : i32
    return %c0_i32, %c0_i32_0 : i32, i32
  }
  func.func @transform_2(%arg0: i32, %arg1: i32) -> (i32, i32) {
    %c0_i32 = arith.constant 0 : i32
    %c0_i32_0 = arith.constant 0 : i32
    %c0_i32_1 = arith.constant 0 : i32
    return %c0_i32, %c0_i32_0 : i32, i32
  }
  func.func @transform_3(%arg0: i32, %arg1: i32) -> (i32, i32) {
    %c0_i32 = arith.constant 0 : i32
    %c0_i32_0 = arith.constant 0 : i32
    %c0_i32_1 = arith.constant 0 : i32
    return %c0_i32, %c0_i32_0 : i32, i32
  }
  func.func @transform_4(%arg0: i32, %arg1: i32) -> (i32, i32) {
    %0 = arith.muli %arg1, %arg0 : i32
    %c0_i32 = arith.constant 0 : i32
    %c0_i32_0 = arith.constant 0 : i32
    return %0, %c0_i32 : i32, i32
  }
}

module attributes {stable_mosaic.version = 11 : i64} {
  func.func @_conv_bn_relu_pool_kernel(%arg0: i32, %arg1: i32, %arg2: memref<4x98x512xbf16, #tpu.memory_space<vmem>>, %arg3: memref<512x128xbf16, #tpu.memory_space<vmem>>, %arg4: memref<1x128xf32, #tpu.memory_space<vmem>>, %arg5: memref<1x128xf32, #tpu.memory_space<vmem>>, %arg6: memref<98x128xbf16, #tpu.memory_space<vmem>>, %arg7: memref<1x128xf32, #tpu.memory_space<vmem>>, %arg8: memref<1x128xf32, #tpu.memory_space<vmem>>, %arg9: memref<2x128xf32, #tpu.memory_space<vmem>>) attributes {dimension_semantics = [#tpu.dimension_semantics<arbitrary>, #tpu.dimension_semantics<arbitrary>], iteration_bounds = array<i64: 2, 1>, scalar_prefetch = 0 : i64, scratch_operands = 3 : i64, tpu.core_type = #tpu.core_type<tc>, window_params = [{transform_indices = @transform_0, window_bounds = array<i64: 4, 98, 512>}, {pipeline_mode = #tpu.pipeline_mode<synchronous>, transform_indices = @transform_1, window_bounds = array<i64: 512, 128>}, {pipeline_mode = #tpu.pipeline_mode<synchronous>, transform_indices = @transform_2, window_bounds = array<i64: 1, 128>}, {pipeline_mode = #tpu.pipeline_mode<synchronous>, transform_indices = @transform_3, window_bounds = array<i64: 1, 128>}, {transform_indices = @transform_4, window_bounds = array<i64: 98, 128>}]} {
    %c0 = arith.constant 0 : index
    %c0_0 = arith.constant 0 : index
    %0 = vector.load %arg3[%c0, %c0_0] : memref<512x128xbf16, #tpu.memory_space<vmem>>, vector<512x128xbf16>
    %c0_i32 = arith.constant 0 : i32
    %1 = arith.cmpi eq, %arg0, %c0_i32 : i32
    %c0_i32_1 = arith.constant 0 : i32
    %2 = arith.cmpi eq, %arg1, %c0_i32_1 : i32
    %3 = arith.andi %1, %2 : i1
    %4 = arith.extui %3 : i1 to i32
    %c0_i32_2 = arith.constant 0 : i32
    %5 = arith.cmpi ne, %4, %c0_i32_2 : i32
    scf.if %5 {
      %cst = arith.constant 0.000000e+00 : f32
      %17 = vector.broadcast %cst : f32 to vector<1x128xf32>
      %c0_9 = arith.constant 0 : index
      %c0_10 = arith.constant 0 : index
      %18 = vector.load %arg7[%c0_9, %c0_10] : memref<1x128xf32, #tpu.memory_space<vmem>>, vector<1x128xf32>
      tpu.vector_store %arg7[%c0_9, %c0_10], %17 {strides = array<i32>} : memref<1x128xf32, #tpu.memory_space<vmem>>, vector<1x128xf32>,
      %cst_11 = arith.constant 0.000000e+00 : f32
      %19 = vector.broadcast %cst_11 : f32 to vector<1x128xf32>
      %c0_12 = arith.constant 0 : index
      %c0_13 = arith.constant 0 : index
      %20 = vector.load %arg8[%c0_12, %c0_13] : memref<1x128xf32, #tpu.memory_space<vmem>>, vector<1x128xf32>
      tpu.vector_store %arg8[%c0_12, %c0_13], %19 {strides = array<i32>} : memref<1x128xf32, #tpu.memory_space<vmem>>, vector<1x128xf32>,
    } else {
    }
    %c0_i32_3 = arith.constant 0 : i32
    %6 = arith.cmpi eq, %arg0, %c0_i32_3 : i32
    %7 = arith.extui %6 : i1 to i32
    %c0_i32_4 = arith.constant 0 : i32
    %8 = arith.cmpi ne, %7, %c0_i32_4 : i32
    scf.if %8 {
      %cst = arith.constant 0.000000e+00 : f32
      %17 = vector.broadcast %cst : f32 to vector<1x128xf32>
      %cst_9 = arith.constant 0.000000e+00 : f32
      %18 = vector.broadcast %cst_9 : f32 to vector<1x128xf32>
      %c0_10 = arith.constant 0 : index
      %c0_11 = arith.constant 0 : index
      %c0_12 = arith.constant 0 : index
      %19 = vector.load %arg2[%c0_10, %c0_11, %c0_12] : memref<4x98x512xbf16, #tpu.memory_space<vmem>>, vector<1x98x512xbf16>
      %20 = vector.shape_cast %19 : vector<1x98x512xbf16> to vector<98x512xbf16>
      %cst_13 = arith.constant dense<0.000000e+00> : vector<98x128xf32>
      %21 = tpu.matmul %20, %0, %cst_13 {dimension_numbers = #tpu.dot_dimension_numbers<[1], [0], [0], [1], [0, 0, 1, 1], [], []>} : vector<98x512xbf16>, vector<512x128xbf16>, vector<98x128xf32> -> vector<98x128xf32>
      %cst_14 = arith.constant dense<0.000000e+00> : vector<128xf32>
      %22 = vector.multi_reduction <add>, %21, %cst_14 [0] : vector<98x128xf32> to vector<128xf32>
      %23 = vector.shape_cast %22 : vector<128xf32> to vector<1x128xf32>
      %24 = arith.addf %17, %23 : vector<1x128xf32>
      %25 = arith.mulf %21, %21 : vector<98x128xf32>
      %cst_15 = arith.constant dense<0.000000e+00> : vector<128xf32>
      %26 = vector.multi_reduction <add>, %25, %cst_15 [0] : vector<98x128xf32> to vector<128xf32>
      %27 = vector.shape_cast %26 : vector<128xf32> to vector<1x128xf32>
      %28 = arith.addf %18, %27 : vector<1x128xf32>
      %c1 = arith.constant 1 : index
      %c0_16 = arith.constant 0 : index
      %c0_17 = arith.constant 0 : index
      %29 = vector.load %arg2[%c1, %c0_16, %c0_17] : memref<4x98x512xbf16, #tpu.memory_space<vmem>>, vector<1x98x512xbf16>
      %30 = vector.shape_cast %29 : vector<1x98x512xbf16> to vector<98x512xbf16>
      %cst_18 = arith.constant dense<0.000000e+00> : vector<98x128xf32>
      %31 = tpu.matmul %30, %0, %cst_18 {dimension_numbers = #tpu.dot_dimension_numbers<[1], [0], [0], [1], [0, 0, 1, 1], [], []>} : vector<98x512xbf16>, vector<512x128xbf16>, vector<98x128xf32> -> vector<98x128xf32>
      %cst_19 = arith.constant dense<0.000000e+00> : vector<128xf32>
      %32 = vector.multi_reduction <add>, %31, %cst_19 [0] : vector<98x128xf32> to vector<128xf32>
      %33 = vector.shape_cast %32 : vector<128xf32> to vector<1x128xf32>
      %34 = arith.addf %24, %33 : vector<1x128xf32>
      %35 = arith.mulf %31, %31 : vector<98x128xf32>
      %cst_20 = arith.constant dense<0.000000e+00> : vector<128xf32>
      %36 = vector.multi_reduction <add>, %35, %cst_20 [0] : vector<98x128xf32> to vector<128xf32>
      %37 = vector.shape_cast %36 : vector<128xf32> to vector<1x128xf32>
      %38 = arith.addf %28, %37 : vector<1x128xf32>
      %c2 = arith.constant 2 : index
      %c0_21 = arith.constant 0 : index
      %c0_22 = arith.constant 0 : index
      %39 = vector.load %arg2[%c2, %c0_21, %c0_22] : memref<4x98x512xbf16, #tpu.memory_space<vmem>>, vector<1x98x512xbf16>
      %40 = vector.shape_cast %39 : vector<1x98x512xbf16> to vector<98x512xbf16>
      %cst_23 = arith.constant dense<0.000000e+00> : vector<98x128xf32>
      %41 = tpu.matmul %40, %0, %cst_23 {dimension_numbers = #tpu.dot_dimension_numbers<[1], [0], [0], [1], [0, 0, 1, 1], [], []>} : vector<98x512xbf16>, vector<512x128xbf16>, vector<98x128xf32> -> vector<98x128xf32>
      %cst_24 = arith.constant dense<0.000000e+00> : vector<128xf32>
      %42 = vector.multi_reduction <add>, %41, %cst_24 [0] : vector<98x128xf32> to vector<128xf32>
      %43 = vector.shape_cast %42 : vector<128xf32> to vector<1x128xf32>
      %44 = arith.addf %34, %43 : vector<1x128xf32>
      %45 = arith.mulf %41, %41 : vector<98x128xf32>
      %cst_25 = arith.constant dense<0.000000e+00> : vector<128xf32>
      %46 = vector.multi_reduction <add>, %45, %cst_25 [0] : vector<98x128xf32> to vector<128xf32>
      %47 = vector.shape_cast %46 : vector<128xf32> to vector<1x128xf32>
      %48 = arith.addf %38, %47 : vector<1x128xf32>
      %c3 = arith.constant 3 : index
      %c0_26 = arith.constant 0 : index
      %c0_27 = arith.constant 0 : index
      %49 = vector.load %arg2[%c3, %c0_26, %c0_27] : memref<4x98x512xbf16, #tpu.memory_space<vmem>>, vector<1x98x512xbf16>
      %50 = vector.shape_cast %49 : vector<1x98x512xbf16> to vector<98x512xbf16>
      %cst_28 = arith.constant dense<0.000000e+00> : vector<98x128xf32>
      %51 = tpu.matmul %50, %0, %cst_28 {dimension_numbers = #tpu.dot_dimension_numbers<[1], [0], [0], [1], [0, 0, 1, 1], [], []>} : vector<98x512xbf16>, vector<512x128xbf16>, vector<98x128xf32> -> vector<98x128xf32>
      %cst_29 = arith.constant dense<0.000000e+00> : vector<128xf32>
      %52 = vector.multi_reduction <add>, %51, %cst_29 [0] : vector<98x128xf32> to vector<128xf32>
      %53 = vector.shape_cast %52 : vector<128xf32> to vector<1x128xf32>
      %54 = arith.addf %44, %53 : vector<1x128xf32>
      %55 = arith.mulf %51, %51 : vector<98x128xf32>
      %cst_30 = arith.constant dense<0.000000e+00> : vector<128xf32>
      %56 = vector.multi_reduction <add>, %55, %cst_30 [0] : vector<98x128xf32> to vector<128xf32>
      %57 = vector.shape_cast %56 : vector<128xf32> to vector<1x128xf32>
      %58 = arith.addf %48, %57 : vector<1x128xf32>
      %c0_31 = arith.constant 0 : index
      %c0_32 = arith.constant 0 : index
      %59 = vector.load %arg7[%c0_31, %c0_32] : memref<1x128xf32, #tpu.memory_space<vmem>>, vector<1x128xf32>
      %60 = arith.addf %59, %54 : vector<1x128xf32>
      %c0_33 = arith.constant 0 : index
      %c0_34 = arith.constant 0 : index
      %61 = vector.load %arg7[%c0_33, %c0_34] : memref<1x128xf32, #tpu.memory_space<vmem>>, vector<1x128xf32>
      tpu.vector_store %arg7[%c0_33, %c0_34], %60 {strides = array<i32>} : memref<1x128xf32, #tpu.memory_space<vmem>>, vector<1x128xf32>,
      %c0_35 = arith.constant 0 : index
      %c0_36 = arith.constant 0 : index
      %62 = vector.load %arg8[%c0_35, %c0_36] : memref<1x128xf32, #tpu.memory_space<vmem>>, vector<1x128xf32>
      %63 = arith.addf %62, %58 : vector<1x128xf32>
      %c0_37 = arith.constant 0 : index
      %c0_38 = arith.constant 0 : index
      %64 = vector.load %arg8[%c0_37, %c0_38] : memref<1x128xf32, #tpu.memory_space<vmem>>, vector<1x128xf32>
      tpu.vector_store %arg8[%c0_37, %c0_38], %63 {strides = array<i32>} : memref<1x128xf32, #tpu.memory_space<vmem>>, vector<1x128xf32>,
    } else {
    }
    %c1_i32 = arith.constant 1 : i32
    %9 = arith.cmpi eq, %arg0, %c1_i32 : i32
    %c0_i32_5 = arith.constant 0 : i32
    %10 = arith.cmpi eq, %arg1, %c0_i32_5 : i32
    %11 = arith.andi %9, %10 : i1
    %12 = arith.extui %11 : i1 to i32
    %c0_i32_6 = arith.constant 0 : i32
    %13 = arith.cmpi ne, %12, %c0_i32_6 : i32
    scf.if %13 {
      %c0_9 = arith.constant 0 : index
      %c0_10 = arith.constant 0 : index
      %17 = vector.load %arg7[%c0_9, %c0_10] : memref<1x128xf32, #tpu.memory_space<vmem>>, vector<1x128xf32>
      %cst = arith.constant 0.00255102036 : f32
      %18 = vector.broadcast %cst : f32 to vector<1x128xf32>
      %19 = arith.mulf %17, %18 : vector<1x128xf32>
      %c0_11 = arith.constant 0 : index
      %c0_12 = arith.constant 0 : index
      %20 = vector.load %arg8[%c0_11, %c0_12] : memref<1x128xf32, #tpu.memory_space<vmem>>, vector<1x128xf32>
      %cst_13 = arith.constant 0.00255102036 : f32
      %21 = vector.broadcast %cst_13 : f32 to vector<1x128xf32>
      %22 = arith.mulf %20, %21 : vector<1x128xf32>
      %23 = arith.mulf %19, %19 : vector<1x128xf32>
      %24 = arith.subf %22, %23 : vector<1x128xf32>
      %cst_14 = arith.constant 9.99999974E-6 : f32
      %25 = vector.broadcast %cst_14 : f32 to vector<1x128xf32>
      %26 = arith.addf %24, %25 : vector<1x128xf32>
      %27 = math.rsqrt %26 : vector<1x128xf32>
      %c0_15 = arith.constant 0 : index
      %c0_16 = arith.constant 0 : index
      %28 = vector.load %arg4[%c0_15, %c0_16] : memref<1x128xf32, #tpu.memory_space<vmem>>, vector<1x128xf32>
      %29 = arith.mulf %27, %28 : vector<1x128xf32>
      %c0_17 = arith.constant 0 : index
      %c0_18 = arith.constant 0 : index
      %30 = vector.load %arg9[%c0_17, %c0_18] : memref<2x128xf32, #tpu.memory_space<vmem>>, vector<1x128xf32>
      tpu.vector_store %arg9[%c0_17, %c0_18], %29 {strides = array<i32>} : memref<2x128xf32, #tpu.memory_space<vmem>>, vector<1x128xf32>,
      %c0_19 = arith.constant 0 : index
      %c0_20 = arith.constant 0 : index
      %31 = vector.load %arg5[%c0_19, %c0_20] : memref<1x128xf32, #tpu.memory_space<vmem>>, vector<1x128xf32>
      %32 = arith.mulf %19, %29 : vector<1x128xf32>
      %33 = arith.subf %31, %32 : vector<1x128xf32>
      %c1 = arith.constant 1 : index
      %c0_21 = arith.constant 0 : index
      %34 = vector.load %arg9[%c1, %c0_21] : memref<2x128xf32, #tpu.memory_space<vmem>>, vector<1x128xf32>
      tpu.vector_store %arg9[%c1, %c0_21], %33 {strides = array<i32>} : memref<2x128xf32, #tpu.memory_space<vmem>>, vector<1x128xf32>,
    } else {
    }
    %c1_i32_7 = arith.constant 1 : i32
    %14 = arith.cmpi eq, %arg0, %c1_i32_7 : i32
    %15 = arith.extui %14 : i1 to i32
    %c0_i32_8 = arith.constant 0 : i32
    %16 = arith.cmpi ne, %15, %c0_i32_8 : i32
    scf.if %16 {
      %c0_9 = arith.constant 0 : index
      %c0_10 = arith.constant 0 : index
      %17 = vector.load %arg9[%c0_9, %c0_10] : memref<2x128xf32, #tpu.memory_space<vmem>>, vector<1x128xf32>
      %c1 = arith.constant 1 : index
      %c0_11 = arith.constant 0 : index
      %18 = vector.load %arg9[%c1, %c0_11] : memref<2x128xf32, #tpu.memory_space<vmem>>, vector<1x128xf32>
      %c0_12 = arith.constant 0 : index
      %c0_13 = arith.constant 0 : index
      %c0_14 = arith.constant 0 : index
      %19 = vector.load %arg2[%c0_12, %c0_13, %c0_14] : memref<4x98x512xbf16, #tpu.memory_space<vmem>>, vector<1x98x512xbf16>
      %20 = vector.shape_cast %19 : vector<1x98x512xbf16> to vector<98x512xbf16>
      %cst = arith.constant dense<0.000000e+00> : vector<98x128xf32>
      %21 = tpu.matmul %20, %0, %cst {dimension_numbers = #tpu.dot_dimension_numbers<[1], [0], [0], [1], [0, 0, 1, 1], [], []>} : vector<98x512xbf16>, vector<512x128xbf16>, vector<98x128xf32> -> vector<98x128xf32>
      %22 = vector.broadcast %17 : vector<1x128xf32> to vector<98x128xf32>
      %23 = arith.mulf %21, %22 : vector<98x128xf32>
      %24 = vector.broadcast %18 : vector<1x128xf32> to vector<98x128xf32>
      %25 = arith.addf %23, %24 : vector<98x128xf32>
      %c1_15 = arith.constant 1 : index
      %c0_16 = arith.constant 0 : index
      %c0_17 = arith.constant 0 : index
      %26 = vector.load %arg2[%c1_15, %c0_16, %c0_17] : memref<4x98x512xbf16, #tpu.memory_space<vmem>>, vector<1x98x512xbf16>
      %27 = vector.shape_cast %26 : vector<1x98x512xbf16> to vector<98x512xbf16>
      %cst_18 = arith.constant dense<0.000000e+00> : vector<98x128xf32>
      %28 = tpu.matmul %27, %0, %cst_18 {dimension_numbers = #tpu.dot_dimension_numbers<[1], [0], [0], [1], [0, 0, 1, 1], [], []>} : vector<98x512xbf16>, vector<512x128xbf16>, vector<98x128xf32> -> vector<98x128xf32>
      %29 = vector.broadcast %17 : vector<1x128xf32> to vector<98x128xf32>
      %30 = arith.mulf %28, %29 : vector<98x128xf32>
      %31 = vector.broadcast %18 : vector<1x128xf32> to vector<98x128xf32>
      %32 = arith.addf %30, %31 : vector<98x128xf32>
      %33 = arith.maximumf %25, %32 : vector<98x128xf32>
      %c2 = arith.constant 2 : index
      %c0_19 = arith.constant 0 : index
      %c0_20 = arith.constant 0 : index
      %34 = vector.load %arg2[%c2, %c0_19, %c0_20] : memref<4x98x512xbf16, #tpu.memory_space<vmem>>, vector<1x98x512xbf16>
      %35 = vector.shape_cast %34 : vector<1x98x512xbf16> to vector<98x512xbf16>
      %cst_21 = arith.constant dense<0.000000e+00> : vector<98x128xf32>
      %36 = tpu.matmul %35, %0, %cst_21 {dimension_numbers = #tpu.dot_dimension_numbers<[1], [0], [0], [1], [0, 0, 1, 1], [], []>} : vector<98x512xbf16>, vector<512x128xbf16>, vector<98x128xf32> -> vector<98x128xf32>
      %37 = vector.broadcast %17 : vector<1x128xf32> to vector<98x128xf32>
      %38 = arith.mulf %36, %37 : vector<98x128xf32>
      %39 = vector.broadcast %18 : vector<1x128xf32> to vector<98x128xf32>
      %40 = arith.addf %38, %39 : vector<98x128xf32>
      %41 = arith.maximumf %33, %40 : vector<98x128xf32>
      %c3 = arith.constant 3 : index
      %c0_22 = arith.constant 0 : index
      %c0_23 = arith.constant 0 : index
      %42 = vector.load %arg2[%c3, %c0_22, %c0_23] : memref<4x98x512xbf16, #tpu.memory_space<vmem>>, vector<1x98x512xbf16>
      %43 = vector.shape_cast %42 : vector<1x98x512xbf16> to vector<98x512xbf16>
      %cst_24 = arith.constant dense<0.000000e+00> : vector<98x128xf32>
      %44 = tpu.matmul %43, %0, %cst_24 {dimension_numbers = #tpu.dot_dimension_numbers<[1], [0], [0], [1], [0, 0, 1, 1], [], []>} : vector<98x512xbf16>, vector<512x128xbf16>, vector<98x128xf32> -> vector<98x128xf32>
      %45 = vector.broadcast %17 : vector<1x128xf32> to vector<98x128xf32>
      %46 = arith.mulf %44, %45 : vector<98x128xf32>
      %47 = vector.broadcast %18 : vector<1x128xf32> to vector<98x128xf32>
      %48 = arith.addf %46, %47 : vector<98x128xf32>
      %49 = arith.maximumf %41, %48 : vector<98x128xf32>
      %cst_25 = arith.constant 0.000000e+00 : f32
      %50 = vector.broadcast %cst_25 : f32 to vector<98x128xf32>
      %51 = arith.maximumf %49, %50 : vector<98x128xf32>
      %52 = arith.truncf %51 : vector<98x128xf32> to vector<98x128xbf16>
      %c0_26 = arith.constant 0 : index
      %c0_27 = arith.constant 0 : index
      %53 = vector.load %arg6[%c0_26, %c0_27] : memref<98x128xbf16, #tpu.memory_space<vmem>>, vector<98x128xbf16>
      tpu.vector_store %arg6[%c0_26, %c0_27], %52 {strides = array<i32>} : memref<98x128xbf16, #tpu.memory_space<vmem>>, vector<98x128xbf16>,
    } else {
    }
    return
  }
  func.func @transform_0(%arg0: i32, %arg1: i32) -> (i32, i32, i32) {
    %c0_i32 = arith.constant 0 : i32
    %c0_i32_0 = arith.constant 0 : i32
    %c0_i32_1 = arith.constant 0 : i32
    return %c0_i32, %arg1, %c0_i32_0 : i32, i32, i32
  }
  func.func @transform_1(%arg0: i32, %arg1: i32) -> (i32, i32) {
    %c0_i32 = arith.constant 0 : i32
    %c0_i32_0 = arith.constant 0 : i32
    %c0_i32_1 = arith.constant 0 : i32
    return %c0_i32, %c0_i32_0 : i32, i32
  }
  func.func @transform_2(%arg0: i32, %arg1: i32) -> (i32, i32) {
    %c0_i32 = arith.constant 0 : i32
    %c0_i32_0 = arith.constant 0 : i32
    %c0_i32_1 = arith.constant 0 : i32
    return %c0_i32, %c0_i32_0 : i32, i32
  }
  func.func @transform_3(%arg0: i32, %arg1: i32) -> (i32, i32) {
    %c0_i32 = arith.constant 0 : i32
    %c0_i32_0 = arith.constant 0 : i32
    %c0_i32_1 = arith.constant 0 : i32
    return %c0_i32, %c0_i32_0 : i32, i32
  }
  func.func @transform_4(%arg0: i32, %arg1: i32) -> (i32, i32) {
    %0 = arith.muli %arg1, %arg0 : i32
    %c0_i32 = arith.constant 0 : i32
    %c0_i32_0 = arith.constant 0 : i32
    return %0, %c0_i32 : i32, i32
  }
}

module attributes {stable_mosaic.version = 11 : i64} {
  func.func @_linear_kernel(%arg0: i32, %arg1: memref<2x6272xbf16, #tpu.memory_space<vmem>>, %arg2: memref<6272x128xbf16, #tpu.memory_space<vmem>>, %arg3: memref<1x128xf32, #tpu.memory_space<vmem>>, %arg4: memref<2x128xf32, #tpu.memory_space<vmem>>) attributes {dimension_semantics = [#tpu.dimension_semantics<arbitrary>], iteration_bounds = array<i64: 1>, scalar_prefetch = 0 : i64, scratch_operands = 0 : i64, tpu.core_type = #tpu.core_type<tc>, window_params = [{pipeline_mode = #tpu.pipeline_mode<synchronous>, transform_indices = @transform_0, window_bounds = array<i64: 2, 6272>}, {pipeline_mode = #tpu.pipeline_mode<synchronous>, transform_indices = @transform_1, window_bounds = array<i64: 6272, 128>}, {pipeline_mode = #tpu.pipeline_mode<synchronous>, transform_indices = @transform_2, window_bounds = array<i64: 1, 128>}, {pipeline_mode = #tpu.pipeline_mode<synchronous>, transform_indices = @transform_3, window_bounds = array<i64: 2, 128>}]} {
    %c0 = arith.constant 0 : index
    %c0_0 = arith.constant 0 : index
    %0 = vector.load %arg1[%c0, %c0_0] : memref<2x6272xbf16, #tpu.memory_space<vmem>>, vector<2x6272xbf16>
    %c0_1 = arith.constant 0 : index
    %c0_2 = arith.constant 0 : index
    %1 = vector.load %arg2[%c0_1, %c0_2] : memref<6272x128xbf16, #tpu.memory_space<vmem>>, vector<6272x128xbf16>
    %cst = arith.constant dense<0.000000e+00> : vector<2x128xf32>
    %2 = tpu.matmul %0, %1, %cst {dimension_numbers = #tpu.dot_dimension_numbers<[1], [0], [0], [1], [0, 0, 1, 1], [], []>} : vector<2x6272xbf16>, vector<6272x128xbf16>, vector<2x128xf32> -> vector<2x128xf32>
    %c0_3 = arith.constant 0 : index
    %c0_4 = arith.constant 0 : index
    %3 = vector.load %arg3[%c0_3, %c0_4] : memref<1x128xf32, #tpu.memory_space<vmem>>, vector<1x128xf32>
    %4 = vector.broadcast %3 : vector<1x128xf32> to vector<2x128xf32>
    %5 = arith.addf %2, %4 : vector<2x128xf32>
    %c0_5 = arith.constant 0 : index
    %c0_6 = arith.constant 0 : index
    %6 = vector.load %arg4[%c0_5, %c0_6] : memref<2x128xf32, #tpu.memory_space<vmem>>, vector<2x128xf32>
    tpu.vector_store %arg4[%c0_5, %c0_6], %5 {strides = array<i32>} : memref<2x128xf32, #tpu.memory_space<vmem>>, vector<2x128xf32>,
    return
  }
  func.func @transform_0(%arg0: i32) -> (i32, i32) {
    %c0_i32 = arith.constant 0 : i32
    %c0_i32_0 = arith.constant 0 : i32
    %c0_i32_1 = arith.constant 0 : i32
    return %c0_i32, %c0_i32_0 : i32, i32
  }
  func.func @transform_1(%arg0: i32) -> (i32, i32) {
    %c0_i32 = arith.constant 0 : i32
    %c0_i32_0 = arith.constant 0 : i32
    %c0_i32_1 = arith.constant 0 : i32
    return %c0_i32, %c0_i32_0 : i32, i32
  }
  func.func @transform_2(%arg0: i32) -> (i32, i32) {
    %c0_i32 = arith.constant 0 : i32
    %c0_i32_0 = arith.constant 0 : i32
    %c0_i32_1 = arith.constant 0 : i32
    return %c0_i32, %c0_i32_0 : i32, i32
  }
  func.func @transform_3(%arg0: i32) -> (i32, i32) {
    %c0_i32 = arith.constant 0 : i32
    %c0_i32_0 = arith.constant 0 : i32
    %c0_i32_1 = arith.constant 0 : i32
    return %c0_i32, %c0_i32_0 : i32, i32
  }
}

</mosaic_0001>

<bundles_post_ra>
// kernel: cnn_forward.3
= control target key start
LH: loop header
LB: loop body
LE: loop exit
PB: predicated region body
PF: predicated region fallthrough
CT: control target
= control target key end

     0   :  { %s5995_s15 = smov 0   ;;  %s5997_s16 = smov 0   ;;  %s7332_s0 = inlined_call_operand.vmem [shape: bf16[4,392,128], index: 0, kind: input, shape index: {}]   ;;  %s7333_s1 = inlined_call_operand.vmem [shape: bf16[128,128], index: 1, kind: input, shape index: {}]   ;;  %s7334_s2 = inlined_call_operand.vmem [shape: f32[1,128], index: 2, kind: input, shape index: {}]   ;;  %s7335_s3 = inlined_call_operand.vmem [shape: f32[1,128], index: 3, kind: input, shape index: {}]   ;;  %s7336_s4 = inlined_call_operand.vmem [shape: bf16[392,128], index: 4, kind: output, shape index: {}]  }
   0x1   :  { %s5999_s17 = smov 0  }
   0x2 LB: > { %s26_s18 = sadd.s32 1, %s5963_s16  ;;  %p4426_p0 = scmp.ge.s32.totalorder %s5967_s17, 1  ;;  %s5967_s17 = sphi %s5999_s17, %s14_s17   ;;  %s5963_s16 = sphi %s5997_s16, %s7358_s16   ;;  %s5959_s15 = sphi %s5995_s15, %s7357_s15  }
   0x3   : > { %p28_p1 = scmp.ge.s32.totalorder %s26_s18, 2  ;;  %p177_p2 = scmp.lt.s32.totalorder %s5967_s17, 3 }
   0x5   : > { %s7360_s18 = smov (%p28_p1, %s26_s18), 0  ;;  %p178_p3 = pnand %p4426_p0, %p177_p2 }
   0x7   : > { %181 = sbr.rel (%p178_p3) target bundleno = 1215 (0x4bf), region = 36 }
   0xc   : > { %v6018_v0 = vld [vmem:[%s7333_s1] sm:$0xf]  ;;  %v6028_v2 = vld [vmem:[%s7333_s1] sm:$0xf0]  ;;  %v6038_v4 = vld [vmem:[%s7333_s1 + $0x8] sm:$0xf] }
   0xd   : > { %7337 = vst [vmem:[#allocation5_spill] sm:$0xff] %v6018_v0  ;;  %v6023_v1 = vld [vmem:[%s7333_s1] sm:$0xf]  ;;  %v6033_v3 = vld [vmem:[%s7333_s1] sm:$0xf0]  ;;  %p234_p4 = scmp.eq.s32.totalorder %s5959_s15, 0 }
   0xe   : > { %7338 = vst [vmem:[#allocation6_spill] sm:$0xff] %v6028_v2  ;;  %v6043_v5 = vld [vmem:[%s7333_s1 + $0x8] sm:$0xf]  ;;  %v6048_v6 = vld [vmem:[%s7333_s1 + $0x8] sm:$0xf0]  ;;  %v5969_v32 = vmov (%p234_p4), 0.0  }
   0xf   : > { %7339 = vst [vmem:[#allocation7_spill] sm:$0xff] %v6038_v4  ;;  %v5564_v7 = vld [vmem:[%s7333_s1 + $0x8] sm:$0xf0]  ;;  %v6056_v8 = vld [vmem:[%s7333_s1 + $0x10] sm:$0xf] }
  0x10   : > { %7340 = vst [vmem:[#allocation8_spill] sm:$0xff] %v6048_v6  ;;  %v4535_v9 = vld [vmem:[%s7333_s1 + $0x10] sm:$0xf]  ;;  %v6064_v10 = vld [vmem:[%s7333_s1 + $0x10] sm:$0xf0] }
  0x11   : > { %7341 = vst [vmem:[#allocation9_spill] sm:$0xff] %v6056_v8  ;;  %v5566_v11 = vld [vmem:[%s7333_s1 + $0x10] sm:$0xf0]  ;;  %v6072_v12 = vld [vmem:[%s7333_s1 + $0x18] sm:$0xf] }
  0x12   : > { %7342 = vst [vmem:[#allocation10_spill] sm:$0xff] %v6064_v10  ;;  %v4539_v13 = vld [vmem:[%s7333_s1 + $0x18] sm:$0xf]  ;;  %v6080_v14 = vld [vmem:[%s7333_s1 + $0x18] sm:$0xf0] }
  0x13   : > { %7343 = vst [vmem:[#allocation11_spill] sm:$0xff] %v6072_v12  ;;  %v5568_v15 = vld [vmem:[%s7333_s1 + $0x18] sm:$0xf0]  ;;  %v6088_v16 = vld [vmem:[%s7333_s1 + $0x20] sm:$0xf] }
  0x14   : > { %7344 = vst [vmem:[#allocation12_spill] sm:$0xff] %v6080_v14  ;;  %v4543_v17 = vld [vmem:[%s7333_s1 + $0x20] sm:$0xf]  ;;  %v6096_v18 = vld [vmem:[%s7333_s1 + $0x20] sm:$0xf0] }
  0x15   : > { %7345 = vst [vmem:[#allocation13_spill] sm:$0xff] %v6088_v16  ;;  %v5570_v19 = vld [vmem:[%s7333_s1 + $0x20] sm:$0xf0]  ;;  %v6104_v20 = vld [vmem:[%s7333_s1 + $0x28] sm:$0xf] }
  0x16   : > { %7346 = vst [vmem:[#allocation14_spill] sm:$0xff] %v6096_v18  ;;  %v4547_v21 = vld [vmem:[%s7333_s1 + $0x28] sm:$0xf]  ;;  %v6112_v22 = vld [vmem:[%s7333_s1 + $0x28] sm:$0xf0]  ;;  %239 = sbr.rel (!%p234_p4) target bundleno = 27 (0x1b), region = 40 }
  0x17   : > { %v5572_v23 = vld [vmem:[%s7333_s1 + $0x28] sm:$0xf0]  ;;  %v6120_v24 = vld [vmem:[%s7333_s1 + $0x30] sm:$0xf]  ;;  %v6128_v26 = vld [vmem:[%s7333_s1 + $0x30] sm:$0xf0] }
  0x18   : > { %v4551_v25 = vld [vmem:[%s7333_s1 + $0x30] sm:$0xf]  ;;  %v5574_v27 = vld [vmem:[%s7333_s1 + $0x30] sm:$0xf0]  ;;  %v6136_v28 = vld [vmem:[%s7333_s1 + $0x38] sm:$0xf] }
  0x19   : > { %v4555_v29 = vld [vmem:[%s7333_s1 + $0x38] sm:$0xf]  ;;  %v6144_v30 = vld [vmem:[%s7333_s1 + $0x38] sm:$0xf0]  ;;  %240 = vst [vmem:[#allocation2] sm:$0x1] (%p234_p4), %v5969_v32 }
  0x1a   : > { %v5576_v31 = vld [vmem:[%s7333_s1 + $0x38] sm:$0xf0]  ;;  %241 = vst [vmem:[#allocation3] sm:$0x1] (%p234_p4), %v5969_v32 }
  0x1b PF: > { %p4428_p5 = scmp.ne.s32.totalorder %s5959_s15, 0 }
  0x1d   : > { %244 = sbr.rel (%p4428_p5) target bundleno = 607 (0x25f), region = 44 }
  0x22   : > { %v4556_v33 = vor.u32 %v5576_v31, %v4555_v29  ;;  %v4552_v34 = vor.u32 %v5574_v27, %v4551_v25  ;;  %v4548_v35 = vor.u32 %v5572_v23, %v4547_v21  ;;  %v4544_v36 = vor.u32 %v5570_v19, %v4543_v17  ;;  %v5578_v41 = vld [vmem:[%s7332_s0] sm:$0xff]  ;;  %v5626_v43 = vld [vmem:[%s7332_s0 + $0x188] sm:$0xff]  ;;  %v5627_v47 = vld [vmem:[%s7332_s0 + $0x190] sm:$0xff] }
  0x23   : > { %v4540_v37 = vor.u32 %v5568_v15, %v4539_v13  ;;  %v4536_v38 = vor.u32 %v5566_v11, %v4535_v9  ;;  %v4532_v39 = vor.u32 %v5564_v7, %v6043_v5  ;;  %v4528_v40 = vor.u32 %v6033_v3, %v6023_v1  ;;  %v5602_v42 = vld [vmem:[%s7332_s0 + $0xc4] sm:$0xff]  ;;  %v5650_v44 = vld [vmem:[%s7332_s0 + $0x24c] sm:$0xff]  ;;  %v5651_v48 = vld [vmem:[%s7332_s0 + $0x254] sm:$0xff] }
  0x24   : > { %490 = vmatpush.bf16.msra.mxu0 %v4556_v33  ;;  %980 = vmatpush.bf16.msra.mxu1 %v4556_v33  ;;  %v5579_v45 = vld [vmem:[%s7332_s0 + $0x8] sm:$0xff]  ;;  %v5580_v49 = vld [vmem:[%s7332_s0 + $0x10] sm:$0xff]  ;;  %v5628_v51 = vld [vmem:[%s7332_s0 + $0x198] sm:$0xff] }
  0x25   : > { %1470 = vmatpush.bf16.msra.mxu2 %v4556_v33  ;;  %1960 = vmatpush.bf16.msra.mxu3 %v4556_v33  ;;  %v5603_v46 = vld [vmem:[%s7332_s0 + $0xcc] sm:$0xff]  ;;  %v5604_v50 = vld [vmem:[%s7332_s0 + $0xd4] sm:$0xff]  ;;  %v5652_v52 = vld [vmem:[%s7332_s0 + $0x25c] sm:$0xff] }
  0x26   : > { %v5581_v53 = vld [vmem:[%s7332_s0 + $0x18] sm:$0xff]  ;;  %v5629_v55 = vld [vmem:[%s7332_s0 + $0x1a0] sm:$0xff]  ;;  %v5630_v59 = vld [vmem:[%s7332_s0 + $0x1a8] sm:$0xff] }
  0x27   : > { %v5605_v54 = vld [vmem:[%s7332_s0 + $0xdc] sm:$0xff]  ;;  %v5653_v56 = vld [vmem:[%s7332_s0 + $0x264] sm:$0xff]  ;;  %v5654_v60 = vld [vmem:[%s7332_s0 + $0x26c] sm:$0xff] }
  0x28   : > { %491 = vmatpush.bf16.msra.mxu0 %v4552_v34  ;;  %981 = vmatpush.bf16.msra.mxu1 %v4552_v34  ;;  %v5582_v57 = vld [vmem:[%s7332_s0 + $0x20] sm:$0xff]  ;;  %v5583_v61 = vld [vmem:[%s7332_s0 + $0x28] sm:$0xff]  ;;  %v5631_v63 = vld [vmem:[%s7332_s0 + $0x1b0] sm:$0xff] }
  0x29   : > { %1471 = vmatpush.bf16.msra.mxu2 %v4552_v34  ;;  %1961 = vmatpush.bf16.msra.mxu3 %v4552_v34  ;;  %v5606_v58 = vld [vmem:[%s7332_s0 + $0xe4] sm:$0xff]  ;;  %v5607_v62 = vld [vmem:[%s7332_s0 + $0xec] sm:$0xff]  ;;  %v5655_v1 = vld [vmem:[%s7332_s0 + $0x274] sm:$0xff] }
  0x2a   : > { %v5584_v3 = vld [vmem:[%s7332_s0 + $0x30] sm:$0xff]  ;;  %v5632_v7 = vld [vmem:[%s7332_s0 + $0x1b8] sm:$0xff]  ;;  %v5633_v15 = vld [vmem:[%s7332_s0 + $0x1c0] sm:$0xff] }
  0x2b   : > { %v5608_v5 = vld [vmem:[%s7332_s0 + $0xf4] sm:$0xff]  ;;  %v5656_v9 = vld [vmem:[%s7332_s0 + $0x27c] sm:$0xff]  ;;  %v5657_v17 = vld [vmem:[%s7332_s0 + $0x284] sm:$0xff] }
  0x2c   : > { %492 = vmatpush.bf16.msra.mxu0 %v4548_v35  ;;  %982 = vmatpush.bf16.msra.mxu1 %v4548_v35  ;;  %v5585_v11 = vld [vmem:[%s7332_s0 + $0x38] sm:$0xff]  ;;  %v5586_v19 = vld [vmem:[%s7332_s0 + $0x40] sm:$0xff]  ;;  %v5634_v27 = vld [vmem:[%s7332_s0 + $0x1c8] sm:$0xff] }
  0x2d   : > { %1472 = vmatpush.bf16.msra.mxu2 %v4548_v35  ;;  %1962 = vmatpush.bf16.msra.mxu3 %v4548_v35  ;;  %v5609_v13 = vld [vmem:[%s7332_s0 + $0xfc] sm:$0xff]  ;;  %v5610_v21 = vld [vmem:[%s7332_s0 + $0x104] sm:$0xff]  ;;  %v5658_v29 = vld [vmem:[%s7332_s0 + $0x28c] sm:$0xff] }
  0x30   : > { %493 = vmatpush.bf16.msra.mxu0 %v4544_v36  ;;  %983 = vmatpush.bf16.msra.mxu1 %v4544_v36 }
  0x31   : > { %1473 = vmatpush.bf16.msra.mxu2 %v4544_v36  ;;  %1963 = vmatpush.bf16.msra.mxu3 %v4544_v36 }
  0x34   : > { %494 = vmatpush.bf16.msra.mxu0 %v4540_v37  ;;  %984 = vmatpush.bf16.msra.mxu1 %v4540_v37 }
  0x35   : > { %1474 = vmatpush.bf16.msra.mxu2 %v4540_v37  ;;  %1964 = vmatpush.bf16.msra.mxu3 %v4540_v37 }
  0x38   : > { %495 = vmatpush.bf16.msra.mxu0 %v4536_v38  ;;  %985 = vmatpush.bf16.msra.mxu1 %v4536_v38 }
  0x39   : > { %1475 = vmatpush.bf16.msra.mxu2 %v4536_v38  ;;  %1965 = vmatpush.bf16.msra.mxu3 %v4536_v38 }
  0x3c   : > { %496 = vmatpush.bf16.msra.mxu0 %v4532_v39  ;;  %986 = vmatpush.bf16.msra.mxu1 %v4532_v39 }
  0x3d   : > { %1476 = vmatpush.bf16.msra.mxu2 %v4532_v39  ;;  %1966 = vmatpush.bf16.msra.mxu3 %v4532_v39 }
  0x40   : > { %497 = vmatpush.bf16.msra.mxu0 %v4528_v40  ;;  %987 = vmatpush.bf16.msra.mxu1 %v4528_v40 }
  0x41   : > { %1477 = vmatpush.bf16.msra.mxu2 %v4528_v40  ;;  %1967 = vmatpush.bf16.msra.mxu3 %v4528_v40 }
  0x43   : > { %498 = vmatmul.bf16.vlgmr.msra.gmra.mxu0 %v5578_v41  ;;  %988 = vmatmul.bf16.vlgmr.msra.gmra.mxu1 %v5602_v42 }
  0x44   : > { %1478 = vmatmul.bf16.vlgmr.msra.gmra.mxu2 %v5626_v43  ;;  %1968 = vmatmul.bf16.vlgmr.msra.gmra.mxu3 %v5650_v44 }
  0x53   : > { %503 = vmatmul.bf16.gmra.mxu0 %v5579_v45  ;;  %993 = vmatmul.bf16.gmra.mxu1 %v5603_v46 }
  0x54   : > { %1483 = vmatmul.bf16.gmra.mxu2 %v5627_v47  ;;  %1973 = vmatmul.bf16.gmra.mxu3 %v5651_v48  ;;  %v5587_v47 = vld [vmem:[%s7332_s0 + $0x48] sm:$0xff] }
  0x55   : > { %v5611_v48 = vld [vmem:[%s7332_s0 + $0x10c] sm:$0xff] }
  0x63   : > { %508 = vmatmul.bf16.gmra.mxu0 %v5580_v49  ;;  %998 = vmatmul.bf16.gmra.mxu1 %v5604_v50 }
  0x64   : > { %1488 = vmatmul.bf16.gmra.mxu2 %v5628_v51  ;;  %1978 = vmatmul.bf16.gmra.mxu3 %v5652_v52 }
  0x73   : > { %513 = vmatmul.bf16.gmra.mxu0 %v5581_v53  ;;  %1003 = vmatmul.bf16.gmra.mxu1 %v5605_v54 }
  0x74   : > { %1493 = vmatmul.bf16.gmra.mxu2 %v5629_v55  ;;  %1983 = vmatmul.bf16.gmra.mxu3 %v5653_v56  ;;  %v5635_v55 = vld [vmem:[%s7332_s0 + $0x1d0] sm:$0xff] }
  0x75   : > { %v5659_v56 = vld [vmem:[%s7332_s0 + $0x294] sm:$0xff] }
  0x83   : > { %518 = vmatmul.bf16.gmra.mxu0 %v5582_v57  ;;  %1008 = vmatmul.bf16.gmra.mxu1 %v5606_v58 }
  0x84   : > { %1498 = vmatmul.bf16.gmra.mxu2 %v5630_v59  ;;  %1988 = vmatmul.bf16.gmra.mxu3 %v5654_v60 }
  0x93   : > { %523 = vmatmul.bf16.gmra.mxu0 %v5583_v61  ;;  %1013 = vmatmul.bf16.gmra.mxu1 %v5607_v62 }
  0x94   : > { %1503 = vmatmul.bf16.gmra.mxu2 %v5631_v63  ;;  %1993 = vmatmul.bf16.gmra.mxu3 %v5655_v1 }
  0xa3   : > { %528 = vmatmul.bf16.gmra.mxu0 %v5584_v3  ;;  %1018 = vmatmul.bf16.gmra.mxu1 %v5608_v5 }
  0xa4   : > { %1508 = vmatmul.bf16.gmra.mxu2 %v5632_v7  ;;  %1998 = vmatmul.bf16.gmra.mxu3 %v5656_v9 }
  0xb3   : > { %533 = vmatmul.bf16.gmra.mxu0 %v5585_v11  ;;  %1023 = vmatmul.bf16.gmra.mxu1 %v5609_v13 }
  0xb4   : > { %1513 = vmatmul.bf16.gmra.mxu2 %v5633_v15  ;;  %2003 = vmatmul.bf16.gmra.mxu3 %v5657_v17 }
  0xc0   : > { %v499_v23 = vpop.f32.mrf.mxu0  ;;  %v989_v25 = vpop.f32.mrf.mxu1 }
  0xc1   : > { %v678_v33 = vmul.f32 %v499_v23, %v499_v23  ;;  %v1168_v34 = vmul.f32 %v989_v25, %v989_v25 }
  0xc3   : > { %538 = vmatmul.bf16.gmra.mxu0 %v5586_v19  ;;  %1028 = vmatmul.bf16.gmra.mxu1 %v5610_v21 }
  0xc4   : > { %1518 = vmatmul.bf16.gmra.mxu2 %v5634_v27  ;;  %2008 = vmatmul.bf16.gmra.mxu3 %v5658_v29 }
  0xc7   : > { %v1479_v31 = vpop.f32.mrf.mxu2  ;;  %v1969_v32 = vpop.f32.mrf.mxu3 }
  0xc8   : > { %v501_v35 = vpop.f32.mrf.mxu0  ;;  %v991_v36 = vpop.f32.mrf.mxu1  ;;  %v1658_v43 = vmul.f32 %v1479_v31, %v1479_v31  ;;  %v2148_v44 = vmul.f32 %v1969_v32, %v1969_v32 }
  0xc9   : > { %v623_v37 = vadd.f32 %v501_v35, %v499_v23  ;;  %v679_v38 = vmul.f32 %v501_v35, %v501_v35  ;;  %v1113_v39 = vadd.f32 %v991_v36, %v989_v25  ;;  %v1169_v40 = vmul.f32 %v991_v36, %v991_v36  ;;  %v5588_v35 = vld [vmem:[%s7332_s0 + $0x50] sm:$0xff] }
  0xca   : > { %v5612_v36 = vld [vmem:[%s7332_s0 + $0x114] sm:$0xff] }
  0xcb   : > { %v727_v41 = vadd.f32 %v679_v38, %v678_v33  ;;  %v1217_v42 = vadd.f32 %v1169_v40, %v1168_v34 }
  0xcf   : > { %v1481_v45 = vpop.f32.mrf.mxu2  ;;  %v1971_v46 = vpop.f32.mrf.mxu3 }
  0xd0   : > { %v1603_v49 = vadd.f32 %v1481_v45, %v1479_v31  ;;  %v1659_v50 = vmul.f32 %v1481_v45, %v1481_v45  ;;  %v2093_v51 = vadd.f32 %v1971_v46, %v1969_v32  ;;  %v2149_v52 = vmul.f32 %v1971_v46, %v1971_v46  ;;  %v504_v53 = vpop.f32.mrf.mxu0  ;;  %v994_v54 = vpop.f32.mrf.mxu1 }
  0xd1   : > { %v624_v57 = vadd.f32 %v623_v37, %v504_v53  ;;  %v680_v58 = vmul.f32 %v504_v53, %v504_v53  ;;  %v1114_v59 = vadd.f32 %v1113_v39, %v994_v54  ;;  %v1170_v60 = vmul.f32 %v994_v54, %v994_v54 }
  0xd2   : > { %v1707_v61 = vadd.f32 %v1659_v50, %v1658_v43  ;;  %v2197_v62 = vadd.f32 %v2149_v52, %v2148_v44  ;;  %v5636_v43 = vld [vmem:[%s7332_s0 + $0x1d8] sm:$0xff] }
  0xd3   : > { %v728_v63 = vadd.f32 %v727_v41, %v680_v58  ;;  %v1218_v1 = vadd.f32 %v1217_v42, %v1170_v60  ;;  %543 = vmatmul.bf16.gmra.mxu0 %v5587_v47  ;;  %1033 = vmatmul.bf16.gmra.mxu1 %v5611_v48  ;;  %v5660_v44 = vld [vmem:[%s7332_s0 + $0x29c] sm:$0xff] }
  0xd4   : > { %1523 = vmatmul.bf16.gmra.mxu2 %v5635_v55  ;;  %2013 = vmatmul.bf16.gmra.mxu3 %v5659_v56 }
  0xd7   : > { %v1484_v3 = vpop.f32.mrf.mxu2  ;;  %v1974_v5 = vpop.f32.mrf.mxu3 }
  0xd8   : > { %v1604_v7 = vadd.f32 %v1603_v49, %v1484_v3  ;;  %v1660_v9 = vmul.f32 %v1484_v3, %v1484_v3  ;;  %v2094_v11 = vadd.f32 %v2093_v51, %v1974_v5  ;;  %v2150_v13 = vmul.f32 %v1974_v5, %v1974_v5  ;;  %v506_v15 = vpop.f32.mrf.mxu0  ;;  %v996_v17 = vpop.f32.mrf.mxu1 }
  0xd9   : > { %v625_v19 = vadd.f32 %v624_v57, %v506_v15  ;;  %v681_v21 = vmul.f32 %v506_v15, %v506_v15  ;;  %v1115_v23 = vadd.f32 %v1114_v59, %v996_v17  ;;  %v1171_v25 = vmul.f32 %v996_v17, %v996_v17  ;;  %v5589_v15 = vld [vmem:[%s7332_s0 + $0x58] sm:$0xff] }
  0xda   : > { %v1708_v27 = vadd.f32 %v1707_v61, %v1660_v9  ;;  %v2198_v29 = vadd.f32 %v2197_v62, %v2150_v13  ;;  %v5613_v17 = vld [vmem:[%s7332_s0 + $0x11c] sm:$0xff] }
  0xdb   : > { %v729_v31 = vadd.f32 %v728_v63, %v681_v21  ;;  %v1219_v32 = vadd.f32 %v1218_v1, %v1171_v25 }
  0xdf   : > { %v1486_v33 = vpop.f32.mrf.mxu2  ;;  %v1976_v34 = vpop.f32.mrf.mxu3 }
  0xe0   : > { %v1605_v37 = vadd.f32 %v1604_v7, %v1486_v33  ;;  %v1661_v38 = vmul.f32 %v1486_v33, %v1486_v33  ;;  %v2095_v39 = vadd.f32 %v2094_v11, %v1976_v34  ;;  %v2151_v40 = vmul.f32 %v1976_v34, %v1976_v34  ;;  %v509_v41 = vpop.f32.mrf.mxu0  ;;  %v999_v42 = vpop.f32.mrf.mxu1 }
  0xe1   : > { %v626_v45 = vadd.f32 %v625_v19, %v509_v41  ;;  %v682_v46 = vmul.f32 %v509_v41, %v509_v41  ;;  %v1116_v47 = vadd.f32 %v1115_v23, %v999_v42  ;;  %v1172_v48 = vmul.f32 %v999_v42, %v999_v42 }
  0xe2   : > { %v1709_v49 = vadd.f32 %v1708_v27, %v1661_v38  ;;  %v2199_v50 = vadd.f32 %v2198_v29, %v2151_v40 }
  0xe3   : > { %v730_v51 = vadd.f32 %v729_v31, %v682_v46  ;;  %v1220_v52 = vadd.f32 %v1219_v32, %v1172_v48  ;;  %548 = vmatmul.bf16.gmra.mxu0 %v5588_v35  ;;  %1038 = vmatmul.bf16.gmra.mxu1 %v5612_v36  ;;  %v5637_v31 = vld [vmem:[%s7332_s0 + $0x1e0] sm:$0xff] }
  0xe4   : > { %1528 = vmatmul.bf16.gmra.mxu2 %v5636_v43  ;;  %2018 = vmatmul.bf16.gmra.mxu3 %v5660_v44  ;;  %v5661_v32 = vld [vmem:[%s7332_s0 + $0x2a4] sm:$0xff] }
  0xe7   : > { %v1489_v53 = vpop.f32.mrf.mxu2  ;;  %v1979_v54 = vpop.f32.mrf.mxu3 }
  0xe8   : > { %v1606_v55 = vadd.f32 %v1605_v37, %v1489_v53  ;;  %v1662_v56 = vmul.f32 %v1489_v53, %v1489_v53  ;;  %v2096_v57 = vadd.f32 %v2095_v39, %v1979_v54  ;;  %v2152_v58 = vmul.f32 %v1979_v54, %v1979_v54  ;;  %v511_v59 = vpop.f32.mrf.mxu0  ;;  %v1001_v60 = vpop.f32.mrf.mxu1 }
  0xe9   : > { %v627_v61 = vadd.f32 %v626_v45, %v511_v59  ;;  %v683_v62 = vmul.f32 %v511_v59, %v511_v59  ;;  %v1117_v63 = vadd.f32 %v1116_v47, %v1001_v60  ;;  %v1173_v1 = vmul.f32 %v1001_v60, %v1001_v60  ;;  %v5590_v59 = vld [vmem:[%s7332_s0 + $0x60] sm:$0xff] }
  0xea   : > { %v1710_v3 = vadd.f32 %v1709_v49, %v1662_v56  ;;  %v2200_v5 = vadd.f32 %v2199_v50, %v2152_v58  ;;  %v5614_v60 = vld [vmem:[%s7332_s0 + $0x124] sm:$0xff] }
  0xeb   : > { %v731_v7 = vadd.f32 %v730_v51, %v683_v62  ;;  %v1221_v9 = vadd.f32 %v1220_v52, %v1173_v1 }
  0xef   : > { %v1491_v11 = vpop.f32.mrf.mxu2  ;;  %v1981_v13 = vpop.f32.mrf.mxu3 }
  0xf0   : > { %v1607_v19 = vadd.f32 %v1606_v55, %v1491_v11  ;;  %v1663_v21 = vmul.f32 %v1491_v11, %v1491_v11  ;;  %v2097_v23 = vadd.f32 %v2096_v57, %v1981_v13  ;;  %v2153_v25 = vmul.f32 %v1981_v13, %v1981_v13  ;;  %v514_v27 = vpop.f32.mrf.mxu0  ;;  %v1004_v29 = vpop.f32.mrf.mxu1 }
  0xf1   : > { %v628_v33 = vadd.f32 %v627_v61, %v514_v27  ;;  %v684_v34 = vmul.f32 %v514_v27, %v514_v27  ;;  %v1118_v35 = vadd.f32 %v1117_v63, %v1004_v29  ;;  %v1174_v36 = vmul.f32 %v1004_v29, %v1004_v29 }
  0xf2   : > { %v1711_v37 = vadd.f32 %v1710_v3, %v1663_v21  ;;  %v2201_v38 = vadd.f32 %v2200_v5, %v2153_v25 }
  0xf3   : > { %v732_v39 = vadd.f32 %v731_v7, %v684_v34  ;;  %v1222_v40 = vadd.f32 %v1221_v9, %v1174_v36  ;;  %553 = vmatmul.bf16.gmra.mxu0 %v5589_v15  ;;  %1043 = vmatmul.bf16.gmra.mxu1 %v5613_v17  ;;  %v5638_v7 = vld [vmem:[%s7332_s0 + $0x1e8] sm:$0xff] }
  0xf4   : > { %1533 = vmatmul.bf16.gmra.mxu2 %v5637_v31  ;;  %2023 = vmatmul.bf16.gmra.mxu3 %v5661_v32  ;;  %v5662_v9 = vld [vmem:[%s7332_s0 + $0x2ac] sm:$0xff] }
  0xf7   : > { %v1494_v41 = vpop.f32.mrf.mxu2  ;;  %v1984_v42 = vpop.f32.mrf.mxu3 }
  0xf8   : > { %v1608_v43 = vadd.f32 %v1607_v19, %v1494_v41  ;;  %v1664_v44 = vmul.f32 %v1494_v41, %v1494_v41  ;;  %v2098_v45 = vadd.f32 %v2097_v23, %v1984_v42  ;;  %v2154_v46 = vmul.f32 %v1984_v42, %v1984_v42  ;;  %v516_v47 = vpop.f32.mrf.mxu0  ;;  %v1006_v48 = vpop.f32.mrf.mxu1 }
  0xf9   : > { %v629_v49 = vadd.f32 %v628_v33, %v516_v47  ;;  %v685_v50 = vmul.f32 %v516_v47, %v516_v47  ;;  %v1119_v51 = vadd.f32 %v1118_v35, %v1006_v48  ;;  %v1175_v52 = vmul.f32 %v1006_v48, %v1006_v48  ;;  %v5591_v47 = vld [vmem:[%s7332_s0 + $0x68] sm:$0xff] }
  0xfa   : > { %v1712_v53 = vadd.f32 %v1711_v37, %v1664_v44  ;;  %v2202_v54 = vadd.f32 %v2201_v38, %v2154_v46  ;;  %v5615_v48 = vld [vmem:[%s7332_s0 + $0x12c] sm:$0xff] }
  0xfb   : > { %v733_v55 = vadd.f32 %v732_v39, %v685_v50  ;;  %v1223_v56 = vadd.f32 %v1222_v40, %v1175_v52 }
  0xff   : > { %v1496_v57 = vpop.f32.mrf.mxu2  ;;  %v1986_v58 = vpop.f32.mrf.mxu3 }
 0x100   : > { %v1609_v61 = vadd.f32 %v1608_v43, %v1496_v57  ;;  %v1665_v62 = vmul.f32 %v1496_v57, %v1496_v57  ;;  %v2099_v63 = vadd.f32 %v2098_v45, %v1986_v58  ;;  %v2155_v1 = vmul.f32 %v1986_v58, %v1986_v58  ;;  %v519_v3 = vpop.f32.mrf.mxu0  ;;  %v1009_v5 = vpop.f32.mrf.mxu1 }
 0x101   : > { %v630_v11 = vadd.f32 %v629_v49, %v519_v3  ;;  %v686_v13 = vmul.f32 %v519_v3, %v519_v3  ;;  %v1120_v15 = vadd.f32 %v1119_v51, %v1009_v5  ;;  %v1176_v17 = vmul.f32 %v1009_v5, %v1009_v5 }
 0x102   : > { %v1713_v19 = vadd.f32 %v1712_v53, %v1665_v62  ;;  %v2203_v21 = vadd.f32 %v2202_v54, %v2155_v1 }
 0x103   : > { %v734_v23 = vadd.f32 %v733_v55, %v686_v13  ;;  %v1224_v25 = vadd.f32 %v1223_v56, %v1176_v17  ;;  %558 = vmatmul.bf16.gmra.mxu0 %v5590_v59  ;;  %1048 = vmatmul.bf16.gmra.mxu1 %v5614_v60  ;;  %v5639_v55 = vld [vmem:[%s7332_s0 + $0x1f0] sm:$0xff] }
 0x104   : > { %1538 = vmatmul.bf16.gmra.mxu2 %v5638_v7  ;;  %2028 = vmatmul.bf16.gmra.mxu3 %v5662_v9  ;;  %v5663_v56 = vld [vmem:[%s7332_s0 + $0x2b4] sm:$0xff] }
 0x107   : > { %v1499_v27 = vpop.f32.mrf.mxu2  ;;  %v1989_v29 = vpop.f32.mrf.mxu3 }
 0x108   : > { %v1610_v31 = vadd.f32 %v1609_v61, %v1499_v27  ;;  %v1666_v32 = vmul.f32 %v1499_v27, %v1499_v27  ;;  %v2100_v33 = vadd.f32 %v2099_v63, %v1989_v29  ;;  %v2156_v34 = vmul.f32 %v1989_v29, %v1989_v29  ;;  %v521_v35 = vpop.f32.mrf.mxu0  ;;  %v1011_v36 = vpop.f32.mrf.mxu1 }
 0x109   : > { %v631_v37 = vadd.f32 %v630_v11, %v521_v35  ;;  %v687_v38 = vmul.f32 %v521_v35, %v521_v35  ;;  %v1121_v39 = vadd.f32 %v1120_v15, %v1011_v36  ;;  %v1177_v40 = vmul.f32 %v1011_v36, %v1011_v36  ;;  %v5592_v35 = vld [vmem:[%s7332_s0 + $0x70] sm:$0xff] }
 0x10a   : > { %v1714_v41 = vadd.f32 %v1713_v19, %v1666_v32  ;;  %v2204_v42 = vadd.f32 %v2203_v21, %v2156_v34  ;;  %v5616_v36 = vld [vmem:[%s7332_s0 + $0x134] sm:$0xff] }
 0x10b   : > { %v735_v43 = vadd.f32 %v734_v23, %v687_v38  ;;  %v1225_v44 = vadd.f32 %v1224_v25, %v1177_v40 }
 0x10f   : > { %v1501_v45 = vpop.f32.mrf.mxu2  ;;  %v1991_v46 = vpop.f32.mrf.mxu3 }
 0x110   : > { %v1611_v49 = vadd.f32 %v1610_v31, %v1501_v45  ;;  %v1667_v50 = vmul.f32 %v1501_v45, %v1501_v45  ;;  %v2101_v51 = vadd.f32 %v2100_v33, %v1991_v46  ;;  %v2157_v52 = vmul.f32 %v1991_v46, %v1991_v46  ;;  %v524_v53 = vpop.f32.mrf.mxu0  ;;  %v1014_v54 = vpop.f32.mrf.mxu1 }
 0x111   : > { %v632_v57 = vadd.f32 %v631_v37, %v524_v53  ;;  %v688_v58 = vmul.f32 %v524_v53, %v524_v53  ;;  %v1122_v59 = vadd.f32 %v1121_v39, %v1014_v54  ;;  %v1178_v60 = vmul.f32 %v1014_v54, %v1014_v54 }
 0x112   : > { %v1715_v61 = vadd.f32 %v1714_v41, %v1667_v50  ;;  %v2205_v62 = vadd.f32 %v2204_v42, %v2157_v52 }
 0x113   : > { %v736_v63 = vadd.f32 %v735_v43, %v688_v58  ;;  %v1226_v1 = vadd.f32 %v1225_v44, %v1178_v60  ;;  %563 = vmatmul.bf16.gmra.mxu0 %v5591_v47  ;;  %1053 = vmatmul.bf16.gmra.mxu1 %v5615_v48  ;;  %v5640_v43 = vld [vmem:[%s7332_s0 + $0x1f8] sm:$0xff] }
 0x114   : > { %1543 = vmatmul.bf16.gmra.mxu2 %v5639_v55  ;;  %2033 = vmatmul.bf16.gmra.mxu3 %v5663_v56  ;;  %v5664_v44 = vld [vmem:[%s7332_s0 + $0x2bc] sm:$0xff] }
 0x117   : > { %v1504_v3 = vpop.f32.mrf.mxu2  ;;  %v1994_v5 = vpop.f32.mrf.mxu3 }
 0x118   : > { %v1612_v7 = vadd.f32 %v1611_v49, %v1504_v3  ;;  %v1668_v9 = vmul.f32 %v1504_v3, %v1504_v3  ;;  %v2102_v11 = vadd.f32 %v2101_v51, %v1994_v5  ;;  %v2158_v13 = vmul.f32 %v1994_v5, %v1994_v5  ;;  %v526_v15 = vpop.f32.mrf.mxu0  ;;  %v1016_v17 = vpop.f32.mrf.mxu1 }
 0x119   : > { %v633_v19 = vadd.f32 %v632_v57, %v526_v15  ;;  %v689_v21 = vmul.f32 %v526_v15, %v526_v15  ;;  %v1123_v23 = vadd.f32 %v1122_v59, %v1016_v17  ;;  %v1179_v25 = vmul.f32 %v1016_v17, %v1016_v17  ;;  %v5593_v15 = vld [vmem:[%s7332_s0 + $0x78] sm:$0xff] }
 0x11a   : > { %v1716_v27 = vadd.f32 %v1715_v61, %v1668_v9  ;;  %v2206_v29 = vadd.f32 %v2205_v62, %v2158_v13  ;;  %v5617_v17 = vld [vmem:[%s7332_s0 + $0x13c] sm:$0xff] }
 0x11b   : > { %v737_v31 = vadd.f32 %v736_v63, %v689_v21  ;;  %v1227_v32 = vadd.f32 %v1226_v1, %v1179_v25 }
 0x11f   : > { %v1506_v33 = vpop.f32.mrf.mxu2  ;;  %v1996_v34 = vpop.f32.mrf.mxu3 }
 0x120   : > { %v1613_v37 = vadd.f32 %v1612_v7, %v1506_v33  ;;  %v1669_v38 = vmul.f32 %v1506_v33, %v1506_v33  ;;  %v2103_v39 = vadd.f32 %v2102_v11, %v1996_v34  ;;  %v2159_v40 = vmul.f32 %v1996_v34, %v1996_v34  ;;  %v529_v41 = vpop.f32.mrf.mxu0  ;;  %v1019_v42 = vpop.f32.mrf.mxu1 }
 0x121   : > { %v634_v45 = vadd.f32 %v633_v19, %v529_v41  ;;  %v690_v46 = vmul.f32 %v529_v41, %v529_v41  ;;  %v1124_v47 = vadd.f32 %v1123_v23, %v1019_v42  ;;  %v1180_v48 = vmul.f32 %v1019_v42, %v1019_v42 }
 0x122   : > { %v1717_v49 = vadd.f32 %v1716_v27, %v1669_v38  ;;  %v2207_v50 = vadd.f32 %v2206_v29, %v2159_v40 }
 0x123   : > { %v738_v51 = vadd.f32 %v737_v31, %v690_v46  ;;  %v1228_v52 = vadd.f32 %v1227_v32, %v1180_v48  ;;  %568 = vmatmul.bf16.gmra.mxu0 %v5592_v35  ;;  %1058 = vmatmul.bf16.gmra.mxu1 %v5616_v36  ;;  %v5641_v31 = vld [vmem:[%s7332_s0 + $0x200] sm:$0xff] }
 0x124   : > { %1548 = vmatmul.bf16.gmra.mxu2 %v5640_v43  ;;  %2038 = vmatmul.bf16.gmra.mxu3 %v5664_v44  ;;  %v5665_v32 = vld [vmem:[%s7332_s0 + $0x2c4] sm:$0xff] }
 0x127   : > { %v1509_v53 = vpop.f32.mrf.mxu2  ;;  %v1999_v54 = vpop.f32.mrf.mxu3 }
 0x128   : > { %v1614_v55 = vadd.f32 %v1613_v37, %v1509_v53  ;;  %v1670_v56 = vmul.f32 %v1509_v53, %v1509_v53  ;;  %v2104_v57 = vadd.f32 %v2103_v39, %v1999_v54  ;;  %v2160_v58 = vmul.f32 %v1999_v54, %v1999_v54  ;;  %v531_v59 = vpop.f32.mrf.mxu0  ;;  %v1021_v60 = vpop.f32.mrf.mxu1 }
 0x129   : > { %v635_v61 = vadd.f32 %v634_v45, %v531_v59  ;;  %v691_v62 = vmul.f32 %v531_v59, %v531_v59  ;;  %v1125_v63 = vadd.f32 %v1124_v47, %v1021_v60  ;;  %v1181_v1 = vmul.f32 %v1021_v60, %v1021_v60  ;;  %v5594_v59 = vld [vmem:[%s7332_s0 + $0x80] sm:$0xff] }
 0x12a   : > { %v1718_v3 = vadd.f32 %v1717_v49, %v1670_v56  ;;  %v2208_v5 = vadd.f32 %v2207_v50, %v2160_v58  ;;  %v5618_v60 = vld [vmem:[%s7332_s0 + $0x144] sm:$0xff] }
 0x12b   : > { %v739_v7 = vadd.f32 %v738_v51, %v691_v62  ;;  %v1229_v9 = vadd.f32 %v1228_v52, %v1181_v1 }
 0x12f   : > { %v1511_v11 = vpop.f32.mrf.mxu2  ;;  %v2001_v13 = vpop.f32.mrf.mxu3 }
 0x130   : > { %v1615_v19 = vadd.f32 %v1614_v55, %v1511_v11  ;;  %v1671_v21 = vmul.f32 %v1511_v11, %v1511_v11  ;;  %v2105_v23 = vadd.f32 %v2104_v57, %v2001_v13  ;;  %v2161_v25 = vmul.f32 %v2001_v13, %v2001_v13  ;;  %v534_v27 = vpop.f32.mrf.mxu0  ;;  %v1024_v29 = vpop.f32.mrf.mxu1 }
 0x131   : > { %v636_v33 = vadd.f32 %v635_v61, %v534_v27  ;;  %v692_v34 = vmul.f32 %v534_v27, %v534_v27  ;;  %v1126_v35 = vadd.f32 %v1125_v63, %v1024_v29  ;;  %v1182_v36 = vmul.f32 %v1024_v29, %v1024_v29 }
 0x132   : > { %v1719_v37 = vadd.f32 %v1718_v3, %v1671_v21  ;;  %v2209_v38 = vadd.f32 %v2208_v5, %v2161_v25 }
 0x133   : > { %v740_v39 = vadd.f32 %v739_v7, %v692_v34  ;;  %v1230_v40 = vadd.f32 %v1229_v9, %v1182_v36  ;;  %573 = vmatmul.bf16.gmra.mxu0 %v5593_v15  ;;  %1063 = vmatmul.bf16.gmra.mxu1 %v5617_v17  ;;  %v5642_v7 = vld [vmem:[%s7332_s0 + $0x208] sm:$0xff] }
 0x134   : > { %1553 = vmatmul.bf16.gmra.mxu2 %v5641_v31  ;;  %2043 = vmatmul.bf16.gmra.mxu3 %v5665_v32  ;;  %v5666_v9 = vld [vmem:[%s7332_s0 + $0x2cc] sm:$0xff] }
 0x137   : > { %v1514_v41 = vpop.f32.mrf.mxu2  ;;  %v2004_v42 = vpop.f32.mrf.mxu3 }
 0x138   : > { %v1616_v43 = vadd.f32 %v1615_v19, %v1514_v41  ;;  %v1672_v44 = vmul.f32 %v1514_v41, %v1514_v41  ;;  %v2106_v45 = vadd.f32 %v2105_v23, %v2004_v42  ;;  %v2162_v46 = vmul.f32 %v2004_v42, %v2004_v42  ;;  %v536_v47 = vpop.f32.mrf.mxu0  ;;  %v1026_v48 = vpop.f32.mrf.mxu1 }
 0x139   : > { %v637_v49 = vadd.f32 %v636_v33, %v536_v47  ;;  %v693_v50 = vmul.f32 %v536_v47, %v536_v47  ;;  %v1127_v51 = vadd.f32 %v1126_v35, %v1026_v48  ;;  %v1183_v52 = vmul.f32 %v1026_v48, %v1026_v48  ;;  %v5595_v47 = vld [vmem:[%s7332_s0 + $0x88] sm:$0xff] }
 0x13a   : > { %v1720_v53 = vadd.f32 %v1719_v37, %v1672_v44  ;;  %v2210_v54 = vadd.f32 %v2209_v38, %v2162_v46  ;;  %v5619_v48 = vld [vmem:[%s7332_s0 + $0x14c] sm:$0xff] }
 0x13b   : > { %v741_v55 = vadd.f32 %v740_v39, %v693_v50  ;;  %v1231_v56 = vadd.f32 %v1230_v40, %v1183_v52 }
 0x13f   : > { %v1516_v57 = vpop.f32.mrf.mxu2  ;;  %v2006_v58 = vpop.f32.mrf.mxu3 }
 0x140   : > { %v1617_v61 = vadd.f32 %v1616_v43, %v1516_v57  ;;  %v1673_v62 = vmul.f32 %v1516_v57, %v1516_v57  ;;  %v2107_v63 = vadd.f32 %v2106_v45, %v2006_v58  ;;  %v2163_v1 = vmul.f32 %v2006_v58, %v2006_v58  ;;  %v539_v3 = vpop.f32.mrf.mxu0  ;;  %v1029_v5 = vpop.f32.mrf.mxu1 }
 0x141   : > { %v638_v11 = vadd.f32 %v637_v49, %v539_v3  ;;  %v694_v13 = vmul.f32 %v539_v3, %v539_v3  ;;  %v1128_v15 = vadd.f32 %v1127_v51, %v1029_v5  ;;  %v1184_v17 = vmul.f32 %v1029_v5, %v1029_v5 }
 0x142   : > { %v1721_v19 = vadd.f32 %v1720_v53, %v1673_v62  ;;  %v2211_v21 = vadd.f32 %v2210_v54, %v2163_v1 }
 0x143   : > { %v742_v23 = vadd.f32 %v741_v55, %v694_v13  ;;  %v1232_v25 = vadd.f32 %v1231_v56, %v1184_v17  ;;  %578 = vmatmul.bf16.gmra.mxu0 %v5594_v59  ;;  %1068 = vmatmul.bf16.gmra.mxu1 %v5618_v60  ;;  %v5643_v55 = vld [vmem:[%s7332_s0 + $0x210] sm:$0xff] }
 0x144   : > { %1558 = vmatmul.bf16.gmra.mxu2 %v5642_v7  ;;  %2048 = vmatmul.bf16.gmra.mxu3 %v5666_v9  ;;  %v5667_v56 = vld [vmem:[%s7332_s0 + $0x2d4] sm:$0xff] }
 0x147   : > { %v1519_v27 = vpop.f32.mrf.mxu2  ;;  %v2009_v29 = vpop.f32.mrf.mxu3 }
 0x148   : > { %v1618_v31 = vadd.f32 %v1617_v61, %v1519_v27  ;;  %v1674_v32 = vmul.f32 %v1519_v27, %v1519_v27  ;;  %v2108_v33 = vadd.f32 %v2107_v63, %v2009_v29  ;;  %v2164_v34 = vmul.f32 %v2009_v29, %v2009_v29  ;;  %v541_v35 = vpop.f32.mrf.mxu0  ;;  %v1031_v36 = vpop.f32.mrf.mxu1 }
 0x149   : > { %v639_v37 = vadd.f32 %v638_v11, %v541_v35  ;;  %v695_v38 = vmul.f32 %v541_v35, %v541_v35  ;;  %v1129_v39 = vadd.f32 %v1128_v15, %v1031_v36  ;;  %v1185_v40 = vmul.f32 %v1031_v36, %v1031_v36  ;;  %v5596_v35 = vld [vmem:[%s7332_s0 + $0x90] sm:$0xff] }
 0x14a   : > { %v1722_v41 = vadd.f32 %v1721_v19, %v1674_v32  ;;  %v2212_v42 = vadd.f32 %v2211_v21, %v2164_v34  ;;  %v5620_v36 = vld [vmem:[%s7332_s0 + $0x154] sm:$0xff] }
 0x14b   : > { %v743_v43 = vadd.f32 %v742_v23, %v695_v38  ;;  %v1233_v44 = vadd.f32 %v1232_v25, %v1185_v40 }
 0x14f   : > { %v1521_v45 = vpop.f32.mrf.mxu2  ;;  %v2011_v46 = vpop.f32.mrf.mxu3 }
 0x150   : > { %v1619_v49 = vadd.f32 %v1618_v31, %v1521_v45  ;;  %v1675_v50 = vmul.f32 %v1521_v45, %v1521_v45  ;;  %v2109_v51 = vadd.f32 %v2108_v33, %v2011_v46  ;;  %v2165_v52 = vmul.f32 %v2011_v46, %v2011_v46  ;;  %v544_v53 = vpop.f32.mrf.mxu0  ;;  %v1034_v54 = vpop.f32.mrf.mxu1 }
 0x151   : > { %v640_v57 = vadd.f32 %v639_v37, %v544_v53  ;;  %v696_v58 = vmul.f32 %v544_v53, %v544_v53  ;;  %v1130_v59 = vadd.f32 %v1129_v39, %v1034_v54  ;;  %v1186_v60 = vmul.f32 %v1034_v54, %v1034_v54 }
 0x152   : > { %v1723_v61 = vadd.f32 %v1722_v41, %v1675_v50  ;;  %v2213_v62 = vadd.f32 %v2212_v42, %v2165_v52 }
 0x153   : > { %v744_v63 = vadd.f32 %v743_v43, %v696_v58  ;;  %v1234_v1 = vadd.f32 %v1233_v44, %v1186_v60  ;;  %583 = vmatmul.bf16.gmra.mxu0 %v5595_v47  ;;  %1073 = vmatmul.bf16.gmra.mxu1 %v5619_v48  ;;  %v5644_v43 = vld [vmem:[%s7332_s0 + $0x218] sm:$0xff] }
 0x154   : > { %1563 = vmatmul.bf16.gmra.mxu2 %v5643_v55  ;;  %2053 = vmatmul.bf16.gmra.mxu3 %v5667_v56  ;;  %v5668_v44 = vld [vmem:[%s7332_s0 + $0x2dc] sm:$0xff] }
 0x157   : > { %v1524_v3 = vpop.f32.mrf.mxu2  ;;  %v2014_v5 = vpop.f32.mrf.mxu3 }
 0x158   : > { %v1620_v7 = vadd.f32 %v1619_v49, %v1524_v3  ;;  %v1676_v9 = vmul.f32 %v1524_v3, %v1524_v3  ;;  %v2110_v11 = vadd.f32 %v2109_v51, %v2014_v5  ;;  %v2166_v13 = vmul.f32 %v2014_v5, %v2014_v5  ;;  %v546_v15 = vpop.f32.mrf.mxu0  ;;  %v1036_v17 = vpop.f32.mrf.mxu1 }
 0x159   : > { %v641_v19 = vadd.f32 %v640_v57, %v546_v15  ;;  %v697_v21 = vmul.f32 %v546_v15, %v546_v15  ;;  %v1131_v23 = vadd.f32 %v1130_v59, %v1036_v17  ;;  %v1187_v25 = vmul.f32 %v1036_v17, %v1036_v17  ;;  %v5597_v15 = vld [vmem:[%s7332_s0 + $0x98] sm:$0xff] }
 0x15a   : > { %v1724_v27 = vadd.f32 %v1723_v61, %v1676_v9  ;;  %v2214_v29 = vadd.f32 %v2213_v62, %v2166_v13  ;;  %v5621_v17 = vld [vmem:[%s7332_s0 + $0x15c] sm:$0xff] }
 0x15b   : > { %v745_v31 = vadd.f32 %v744_v63, %v697_v21  ;;  %v1235_v32 = vadd.f32 %v1234_v1, %v1187_v25 }
 0x15f   : > { %v1526_v33 = vpop.f32.mrf.mxu2  ;;  %v2016_v34 = vpop.f32.mrf.mxu3 }
 0x160   : > { %v1621_v37 = vadd.f32 %v1620_v7, %v1526_v33  ;;  %v1677_v38 = vmul.f32 %v1526_v33, %v1526_v33  ;;  %v2111_v39 = vadd.f32 %v2110_v11, %v2016_v34  ;;  %v2167_v40 = vmul.f32 %v2016_v34, %v2016_v34  ;;  %v549_v41 = vpop.f32.mrf.mxu0  ;;  %v1039_v42 = vpop.f32.mrf.mxu1 }
 0x161   : > { %v642_v45 = vadd.f32 %v641_v19, %v549_v41  ;;  %v698_v46 = vmul.f32 %v549_v41, %v549_v41  ;;  %v1132_v47 = vadd.f32 %v1131_v23, %v1039_v42  ;;  %v1188_v48 = vmul.f32 %v1039_v42, %v1039_v42 }
 0x162   : > { %v1725_v49 = vadd.f32 %v1724_v27, %v1677_v38  ;;  %v2215_v50 = vadd.f32 %v2214_v29, %v2167_v40 }
 0x163   : > { %v746_v51 = vadd.f32 %v745_v31, %v698_v46  ;;  %v1236_v52 = vadd.f32 %v1235_v32, %v1188_v48  ;;  %588 = vmatmul.bf16.gmra.mxu0 %v5596_v35  ;;  %1078 = vmatmul.bf16.gmra.mxu1 %v5620_v36  ;;  %v5645_v31 = vld [vmem:[%s7332_s0 + $0x220] sm:$0xff] }
 0x164   : > { %1568 = vmatmul.bf16.gmra.mxu2 %v5644_v43  ;;  %2058 = vmatmul.bf16.gmra.mxu3 %v5668_v44  ;;  %v5669_v32 = vld [vmem:[%s7332_s0 + $0x2e4] sm:$0xff] }
 0x167   : > { %v1529_v53 = vpop.f32.mrf.mxu2  ;;  %v2019_v54 = vpop.f32.mrf.mxu3 }
 0x168   : > { %v1622_v55 = vadd.f32 %v1621_v37, %v1529_v53  ;;  %v1678_v56 = vmul.f32 %v1529_v53, %v1529_v53  ;;  %v2112_v57 = vadd.f32 %v2111_v39, %v2019_v54  ;;  %v2168_v58 = vmul.f32 %v2019_v54, %v2019_v54  ;;  %v551_v59 = vpop.f32.mrf.mxu0  ;;  %v1041_v60 = vpop.f32.mrf.mxu1 }
 0x169   : > { %v643_v61 = vadd.f32 %v642_v45, %v551_v59  ;;  %v699_v62 = vmul.f32 %v551_v59, %v551_v59  ;;  %v1133_v63 = vadd.f32 %v1132_v47, %v1041_v60  ;;  %v1189_v1 = vmul.f32 %v1041_v60, %v1041_v60  ;;  %v5598_v59 = vld [vmem:[%s7332_s0 + $0xa0] sm:$0xff] }
 0x16a   : > { %v1726_v3 = vadd.f32 %v1725_v49, %v1678_v56  ;;  %v2216_v5 = vadd.f32 %v2215_v50, %v2168_v58  ;;  %v5622_v60 = vld [vmem:[%s7332_s0 + $0x164] sm:$0xff] }
 0x16b   : > { %v747_v7 = vadd.f32 %v746_v51, %v699_v62  ;;  %v1237_v9 = vadd.f32 %v1236_v52, %v1189_v1 }
 0x16f   : > { %v1531_v11 = vpop.f32.mrf.mxu2  ;;  %v2021_v13 = vpop.f32.mrf.mxu3 }
 0x170   : > { %v1623_v19 = vadd.f32 %v1622_v55, %v1531_v11  ;;  %v1679_v21 = vmul.f32 %v1531_v11, %v1531_v11  ;;  %v2113_v23 = vadd.f32 %v2112_v57, %v2021_v13  ;;  %v2169_v25 = vmul.f32 %v2021_v13, %v2021_v13  ;;  %v554_v27 = vpop.f32.mrf.mxu0  ;;  %v1044_v29 = vpop.f32.mrf.mxu1 }
 0x171   : > { %v644_v33 = vadd.f32 %v643_v61, %v554_v27  ;;  %v700_v34 = vmul.f32 %v554_v27, %v554_v27  ;;  %v1134_v35 = vadd.f32 %v1133_v63, %v1044_v29  ;;  %v1190_v36 = vmul.f32 %v1044_v29, %v1044_v29 }
 0x172   : > { %v1727_v37 = vadd.f32 %v1726_v3, %v1679_v21  ;;  %v2217_v38 = vadd.f32 %v2216_v5, %v2169_v25 }
 0x173   : > { %v748_v39 = vadd.f32 %v747_v7, %v700_v34  ;;  %v1238_v40 = vadd.f32 %v1237_v9, %v1190_v36  ;;  %593 = vmatmul.bf16.gmra.mxu0 %v5597_v15  ;;  %1083 = vmatmul.bf16.gmra.mxu1 %v5621_v17  ;;  %v5646_v7 = vld [vmem:[%s7332_s0 + $0x228] sm:$0xff] }
 0x174   : > { %1573 = vmatmul.bf16.gmra.mxu2 %v5645_v31  ;;  %2063 = vmatmul.bf16.gmra.mxu3 %v5669_v32  ;;  %v5670_v9 = vld [vmem:[%s7332_s0 + $0x2ec] sm:$0xff] }
 0x177   : > { %v1534_v41 = vpop.f32.mrf.mxu2  ;;  %v2024_v42 = vpop.f32.mrf.mxu3 }
 0x178   : > { %v1624_v43 = vadd.f32 %v1623_v19, %v1534_v41  ;;  %v1680_v44 = vmul.f32 %v1534_v41, %v1534_v41  ;;  %v2114_v45 = vadd.f32 %v2113_v23, %v2024_v42  ;;  %v2170_v46 = vmul.f32 %v2024_v42, %v2024_v42  ;;  %v556_v47 = vpop.f32.mrf.mxu0  ;;  %v1046_v48 = vpop.f32.mrf.mxu1 }
 0x179   : > { %v645_v49 = vadd.f32 %v644_v33, %v556_v47  ;;  %v701_v50 = vmul.f32 %v556_v47, %v556_v47  ;;  %v1135_v51 = vadd.f32 %v1134_v35, %v1046_v48  ;;  %v1191_v52 = vmul.f32 %v1046_v48, %v1046_v48  ;;  %v5599_v47 = vld [vmem:[%s7332_s0 + $0xa8] sm:$0xff] }
 0x17a   : > { %v1728_v53 = vadd.f32 %v1727_v37, %v1680_v44  ;;  %v2218_v54 = vadd.f32 %v2217_v38, %v2170_v46  ;;  %v5623_v48 = vld [vmem:[%s7332_s0 + $0x16c] sm:$0xff] }
 0x17b   : > { %v749_v55 = vadd.f32 %v748_v39, %v701_v50  ;;  %v1239_v56 = vadd.f32 %v1238_v40, %v1191_v52 }
 0x17f   : > { %v1536_v57 = vpop.f32.mrf.mxu2  ;;  %v2026_v58 = vpop.f32.mrf.mxu3 }
 0x180   : > { %v1625_v61 = vadd.f32 %v1624_v43, %v1536_v57  ;;  %v1681_v62 = vmul.f32 %v1536_v57, %v1536_v57  ;;  %v2115_v63 = vadd.f32 %v2114_v45, %v2026_v58  ;;  %v2171_v1 = vmul.f32 %v2026_v58, %v2026_v58  ;;  %v559_v3 = vpop.f32.mrf.mxu0  ;;  %v1049_v5 = vpop.f32.mrf.mxu1 }
 0x181   : > { %v646_v11 = vadd.f32 %v645_v49, %v559_v3  ;;  %v702_v13 = vmul.f32 %v559_v3, %v559_v3  ;;  %v1136_v15 = vadd.f32 %v1135_v51, %v1049_v5  ;;  %v1192_v17 = vmul.f32 %v1049_v5, %v1049_v5 }
 0x182   : > { %v1729_v19 = vadd.f32 %v1728_v53, %v1681_v62  ;;  %v2219_v21 = vadd.f32 %v2218_v54, %v2171_v1 }
 0x183   : > { %v750_v23 = vadd.f32 %v749_v55, %v702_v13  ;;  %v1240_v25 = vadd.f32 %v1239_v56, %v1192_v17  ;;  %598 = vmatmul.bf16.gmra.mxu0 %v5598_v59  ;;  %1088 = vmatmul.bf16.gmra.mxu1 %v5622_v60  ;;  %v5647_v55 = vld [vmem:[%s7332_s0 + $0x230] sm:$0xff] }
 0x184   : > { %1578 = vmatmul.bf16.gmra.mxu2 %v5646_v7  ;;  %2068 = vmatmul.bf16.gmra.mxu3 %v5670_v9  ;;  %v5671_v56 = vld [vmem:[%s7332_s0 + $0x2f4] sm:$0xff] }
 0x187   : > { %v1539_v27 = vpop.f32.mrf.mxu2  ;;  %v2029_v29 = vpop.f32.mrf.mxu3 }
 0x188   : > { %v1626_v31 = vadd.f32 %v1625_v61, %v1539_v27  ;;  %v1682_v32 = vmul.f32 %v1539_v27, %v1539_v27  ;;  %v2116_v33 = vadd.f32 %v2115_v63, %v2029_v29  ;;  %v2172_v34 = vmul.f32 %v2029_v29, %v2029_v29  ;;  %v561_v35 = vpop.f32.mrf.mxu0  ;;  %v1051_v36 = vpop.f32.mrf.mxu1 }
 0x189   : > { %v647_v37 = vadd.f32 %v646_v11, %v561_v35  ;;  %v703_v38 = vmul.f32 %v561_v35, %v561_v35  ;;  %v1137_v39 = vadd.f32 %v1136_v15, %v1051_v36  ;;  %v1193_v40 = vmul.f32 %v1051_v36, %v1051_v36  ;;  %v5600_v35 = vld [vmem:[%s7332_s0 + $0xb0] sm:$0xff] }
 0x18a   : > { %v1730_v41 = vadd.f32 %v1729_v19, %v1682_v32  ;;  %v2220_v42 = vadd.f32 %v2219_v21, %v2172_v34  ;;  %v5624_v36 = vld [vmem:[%s7332_s0 + $0x174] sm:$0xff] }
 0x18b   : > { %v751_v43 = vadd.f32 %v750_v23, %v703_v38  ;;  %v1241_v44 = vadd.f32 %v1240_v25, %v1193_v40 }
 0x18f   : > { %v1541_v45 = vpop.f32.mrf.mxu2  ;;  %v2031_v46 = vpop.f32.mrf.mxu3 }
 0x190   : > { %v1627_v49 = vadd.f32 %v1626_v31, %v1541_v45  ;;  %v1683_v50 = vmul.f32 %v1541_v45, %v1541_v45  ;;  %v2117_v51 = vadd.f32 %v2116_v33, %v2031_v46  ;;  %v2173_v52 = vmul.f32 %v2031_v46, %v2031_v46  ;;  %v564_v53 = vpop.f32.mrf.mxu0  ;;  %v1054_v54 = vpop.f32.mrf.mxu1 }
 0x191   : > { %v648_v57 = vadd.f32 %v647_v37, %v564_v53  ;;  %v704_v58 = vmul.f32 %v564_v53, %v564_v53  ;;  %v1138_v59 = vadd.f32 %v1137_v39, %v1054_v54  ;;  %v1194_v60 = vmul.f32 %v1054_v54, %v1054_v54 }
 0x192   : > { %v1731_v61 = vadd.f32 %v1730_v41, %v1683_v50  ;;  %v2221_v62 = vadd.f32 %v2220_v42, %v2173_v52 }
 0x193   : > { %v752_v63 = vadd.f32 %v751_v43, %v704_v58  ;;  %v1242_v1 = vadd.f32 %v1241_v44, %v1194_v60  ;;  %603 = vmatmul.bf16.gmra.mxu0 %v5599_v47  ;;  %1093 = vmatmul.bf16.gmra.mxu1 %v5623_v48  ;;  %v5648_v43 = vld [vmem:[%s7332_s0 + $0x238] sm:$0xff] }
 0x194   : > { %1583 = vmatmul.bf16.gmra.mxu2 %v5647_v55  ;;  %2073 = vmatmul.bf16.gmra.mxu3 %v5671_v56  ;;  %v5672_v44 = vld [vmem:[%s7332_s0 + $0x2fc] sm:$0xff] }
 0x197   : > { %v1544_v3 = vpop.f32.mrf.mxu2  ;;  %v2034_v5 = vpop.f32.mrf.mxu3 }
 0x198   : > { %v1628_v7 = vadd.f32 %v1627_v49, %v1544_v3  ;;  %v1684_v9 = vmul.f32 %v1544_v3, %v1544_v3  ;;  %v2118_v11 = vadd.f32 %v2117_v51, %v2034_v5  ;;  %v2174_v13 = vmul.f32 %v2034_v5, %v2034_v5  ;;  %v566_v15 = vpop.f32.mrf.mxu0  ;;  %v1056_v17 = vpop.f32.mrf.mxu1 }
 0x199   : > { %v649_v19 = vadd.f32 %v648_v57, %v566_v15  ;;  %v705_v21 = vmul.f32 %v566_v15, %v566_v15  ;;  %v1139_v23 = vadd.f32 %v1138_v59, %v1056_v17  ;;  %v1195_v25 = vmul.f32 %v1056_v17, %v1056_v17  ;;  %v5601_v15 = vld [vmem:[%s7332_s0 + $0xb8] sm:$0xff] }
 0x19a   : > { %v1732_v27 = vadd.f32 %v1731_v61, %v1684_v9  ;;  %v2222_v29 = vadd.f32 %v2221_v62, %v2174_v13  ;;  %v5625_v17 = vld [vmem:[%s7332_s0 + $0x17c] sm:$0xff] }
 0x19b   : > { %v753_v31 = vadd.f32 %v752_v63, %v705_v21  ;;  %v1243_v32 = vadd.f32 %v1242_v1, %v1195_v25 }
 0x19f   : > { %v1546_v33 = vpop.f32.mrf.mxu2  ;;  %v2036_v34 = vpop.f32.mrf.mxu3 }
 0x1a0   : > { %v1629_v37 = vadd.f32 %v1628_v7, %v1546_v33  ;;  %v1685_v38 = vmul.f32 %v1546_v33, %v1546_v33  ;;  %v2119_v39 = vadd.f32 %v2118_v11, %v2036_v34  ;;  %v2175_v40 = vmul.f32 %v2036_v34, %v2036_v34  ;;  %v569_v41 = vpop.f32.mrf.mxu0  ;;  %v1059_v42 = vpop.f32.mrf.mxu1 }
 0x1a1   : > { %v650_v45 = vadd.f32 %v649_v19, %v569_v41  ;;  %v706_v46 = vmul.f32 %v569_v41, %v569_v41  ;;  %v1140_v47 = vadd.f32 %v1139_v23, %v1059_v42  ;;  %v1196_v48 = vmul.f32 %v1059_v42, %v1059_v42 }
 0x1a2   : > { %v1733_v49 = vadd.f32 %v1732_v27, %v1685_v38  ;;  %v2223_v50 = vadd.f32 %v2222_v29, %v2175_v40 }
 0x1a3   : > { %v754_v51 = vadd.f32 %v753_v31, %v706_v46  ;;  %v1244_v52 = vadd.f32 %v1243_v32, %v1196_v48  ;;  %608 = vmatmul.bf16.gmra.mxu0 %v5600_v35  ;;  %1098 = vmatmul.bf16.gmra.mxu1 %v5624_v36  ;;  %v5649_v31 = vld [vmem:[%s7332_s0 + $0x240] sm:$0xff] }
 0x1a4   : > { %1588 = vmatmul.bf16.gmra.mxu2 %v5648_v43  ;;  %2078 = vmatmul.bf16.gmra.mxu3 %v5672_v44  ;;  %v5673_v32 = vld [vmem:[%s7332_s0 + $0x304] sm:$0xff]  ;;  %v293_v43 = vld [vmem:[%s7332_s0 + $0xc0] sm:$0xf] }
 0x1a5   : > { %v4605_v44 = vld [vmem:[%s7332_s0 + $0x184] sm:$0xf] }
 0x1a7   : > { %v1549_v53 = vpop.f32.mrf.mxu2  ;;  %v2039_v54 = vpop.f32.mrf.mxu3 }
 0x1a8   : > { %v1630_v55 = vadd.f32 %v1629_v37, %v1549_v53  ;;  %v1686_v56 = vmul.f32 %v1549_v53, %v1549_v53  ;;  %v2120_v57 = vadd.f32 %v2119_v39, %v2039_v54  ;;  %v2176_v58 = vmul.f32 %v2039_v54, %v2039_v54  ;;  %v571_v59 = vpop.f32.mrf.mxu0  ;;  %v1061_v60 = vpop.f32.mrf.mxu1 }
 0x1a9   : > { %v651_v61 = vadd.f32 %v650_v45, %v571_v59  ;;  %v707_v62 = vmul.f32 %v571_v59, %v571_v59  ;;  %v1141_v63 = vadd.f32 %v1140_v47, %v1061_v60  ;;  %v1197_v1 = vmul.f32 %v1061_v60, %v1061_v60 }
 0x1aa   : > { %v1734_v3 = vadd.f32 %v1733_v49, %v1686_v56  ;;  %v2224_v5 = vadd.f32 %v2223_v50, %v2176_v58  ;;  %v391_v59 = vunpack.c.l.b16 %v293_v43  ;;  %v929_v60 = vunpack.c.l.b16 %v4605_v44 }
 0x1ab   : > { %v755_v7 = vadd.f32 %v754_v51, %v707_v62  ;;  %v1245_v9 = vadd.f32 %v1244_v52, %v1197_v1  ;;  %v4750_v51 = vld [vmem:[%s7332_s0 + $0x248] sm:$0xf]  ;;  %v4895_v52 = vld [vmem:[%s7332_s0 + $0x30c] sm:$0xf] }
 0x1ac   : > { %v1909_v1 = vunpack.c.l.b16 %v4895_v52 }
 0x1af   : > { %v1551_v11 = vpop.f32.mrf.mxu2  ;;  %v2041_v13 = vpop.f32.mrf.mxu3 }
 0x1b0   : > { %v1631_v19 = vadd.f32 %v1630_v55, %v1551_v11  ;;  %v1687_v21 = vmul.f32 %v1551_v11, %v1551_v11  ;;  %v2121_v23 = vadd.f32 %v2120_v57, %v2041_v13  ;;  %v2177_v25 = vmul.f32 %v2041_v13, %v2041_v13  ;;  %v574_v27 = vpop.f32.mrf.mxu0  ;;  %v1064_v29 = vpop.f32.mrf.mxu1 }
 0x1b1   : > { %v652_v33 = vadd.f32 %v651_v61, %v574_v27  ;;  %v708_v34 = vmul.f32 %v574_v27, %v574_v27  ;;  %v1142_v35 = vadd.f32 %v1141_v63, %v1064_v29  ;;  %v1198_v36 = vmul.f32 %v1064_v29, %v1064_v29 }
 0x1b2   : > { %v1735_v37 = vadd.f32 %v1734_v3, %v1687_v21  ;;  %v2225_v38 = vadd.f32 %v2224_v5, %v2177_v25  ;;  %v1419_v63 = vunpack.c.l.b16 %v4750_v51  ;;  %v1934_v13 = vpack.c.b16 %v1909_v1, %v1909_v1 }
 0x1b3   : > { %v756_v39 = vadd.f32 %v755_v7, %v708_v34  ;;  %v1246_v40 = vadd.f32 %v1245_v9, %v1198_v36  ;;  %613 = vmatmul.bf16.gmra.mxu0 %v5601_v15  ;;  %1103 = vmatmul.bf16.gmra.mxu1 %v5625_v17  ;;  %v416_v7 = vpack.c.b16 %v391_v59, %v391_v59 }
 0x1b4   : > { %1593 = vmatmul.bf16.gmra.mxu2 %v5649_v31  ;;  %2083 = vmatmul.bf16.gmra.mxu3 %v5673_v32  ;;  %v954_v9 = vpack.c.b16 %v929_v60, %v929_v60  ;;  %v1444_v11 = vpack.c.b16 %v1419_v63, %v1419_v63 }
 0x1b7   : > { %v1554_v41 = vpop.f32.mrf.mxu2  ;;  %v2044_v42 = vpop.f32.mrf.mxu3 }
 0x1b8   : > { %v1632_v45 = vadd.f32 %v1631_v19, %v1554_v41  ;;  %v1688_v46 = vmul.f32 %v1554_v41, %v1554_v41  ;;  %v2122_v47 = vadd.f32 %v2121_v23, %v2044_v42  ;;  %v2178_v48 = vmul.f32 %v2044_v42, %v2044_v42  ;;  %v576_v49 = vpop.f32.mrf.mxu0  ;;  %v1066_v50 = vpop.f32.mrf.mxu1 }
 0x1b9   : > { %v653_v53 = vadd.f32 %v652_v33, %v576_v49  ;;  %v709_v54 = vmul.f32 %v576_v49, %v576_v49  ;;  %v1143_v55 = vadd.f32 %v1142_v35, %v1066_v50  ;;  %v1199_v56 = vmul.f32 %v1066_v50, %v1066_v50 }
 0x1ba   : > { %v1736_v57 = vadd.f32 %v1735_v37, %v1688_v46  ;;  %v2226_v58 = vadd.f32 %v2225_v38, %v2178_v48 }
 0x1bb   : > { %v757_v61 = vadd.f32 %v756_v39, %v709_v54  ;;  %v1247_v62 = vadd.f32 %v1246_v40, %v1199_v56 }
 0x1bf   : > { %v1556_v3 = vpop.f32.mrf.mxu2  ;;  %v2046_v5 = vpop.f32.mrf.mxu3 }
 0x1c0   : > { %v1633_v15 = vadd.f32 %v1632_v45, %v1556_v3  ;;  %v1689_v17 = vmul.f32 %v1556_v3, %v1556_v3  ;;  %v2123_v19 = vadd.f32 %v2122_v47, %v2046_v5  ;;  %v2179_v21 = vmul.f32 %v2046_v5, %v2046_v5  ;;  %v579_v23 = vpop.f32.mrf.mxu0  ;;  %v1069_v25 = vpop.f32.mrf.mxu1 }
 0x1c1   : > { %v654_v27 = vadd.f32 %v653_v53, %v579_v23  ;;  %v710_v29 = vmul.f32 %v579_v23, %v579_v23  ;;  %v1144_v31 = vadd.f32 %v1143_v55, %v1069_v25  ;;  %v1200_v32 = vmul.f32 %v1069_v25, %v1069_v25 }
 0x1c2   : > { %v1737_v33 = vadd.f32 %v1736_v57, %v1689_v17  ;;  %v2227_v34 = vadd.f32 %v2226_v58, %v2179_v21 }
 0x1c3   : > { %v758_v35 = vadd.f32 %v757_v61, %v710_v29  ;;  %v1248_v36 = vadd.f32 %v1247_v62, %v1200_v32  ;;  %618 = vmatmul.bf16.gmra.mxu0 %v416_v7  ;;  %1108 = vmatmul.bf16.gmra.mxu1 %v954_v9 }
 0x1c4   : > { %1598 = vmatmul.bf16.gmra.mxu2 %v1444_v11  ;;  %2088 = vmatmul.bf16.gmra.mxu3 %v1934_v13 }
 0x1c7   : > { %v1559_v37 = vpop.f32.mrf.mxu2  ;;  %v2049_v38 = vpop.f32.mrf.mxu3 }
 0x1c8   : > { %v1634_v39 = vadd.f32 %v1633_v15, %v1559_v37  ;;  %v1690_v40 = vmul.f32 %v1559_v37, %v1559_v37  ;;  %v2124_v41 = vadd.f32 %v2123_v19, %v2049_v38  ;;  %v2180_v42 = vmul.f32 %v2049_v38, %v2049_v38  ;;  %v581_v43 = vpop.f32.mrf.mxu0  ;;  %v1071_v44 = vpop.f32.mrf.mxu1 }
 0x1c9   : > { %v655_v45 = vadd.f32 %v654_v27, %v581_v43  ;;  %v711_v46 = vmul.f32 %v581_v43, %v581_v43  ;;  %v1145_v47 = vadd.f32 %v1144_v31, %v1071_v44  ;;  %v1201_v48 = vmul.f32 %v1071_v44, %v1071_v44 }
 0x1ca   : > { %v1738_v49 = vadd.f32 %v1737_v33, %v1690_v40  ;;  %v2228_v50 = vadd.f32 %v2227_v34, %v2180_v42 }
 0x1cb   : > { %v759_v51 = vadd.f32 %v758_v35, %v711_v46  ;;  %v1249_v52 = vadd.f32 %v1248_v36, %v1201_v48 }
 0x1cf   : > { %v1561_v53 = vpop.f32.mrf.mxu2  ;;  %v2051_v54 = vpop.f32.mrf.mxu3 }
 0x1d0   : > { %v1635_v55 = vadd.f32 %v1634_v39, %v1561_v53  ;;  %v1691_v56 = vmul.f32 %v1561_v53, %v1561_v53  ;;  %v2125_v57 = vadd.f32 %v2124_v41, %v2051_v54  ;;  %v2181_v58 = vmul.f32 %v2051_v54, %v2051_v54  ;;  %v584_v59 = vpop.f32.mrf.mxu0  ;;  %v1074_v60 = vpop.f32.mrf.mxu1 }
 0x1d1   : > { %v656_v61 = vadd.f32 %v655_v45, %v584_v59  ;;  %v712_v62 = vmul.f32 %v584_v59, %v584_v59  ;;  %v1146_v63 = vadd.f32 %v1145_v47, %v1074_v60  ;;  %v1202_v1 = vmul.f32 %v1074_v60, %v1074_v60 }
 0x1d2   : > { %v1739_v3 = vadd.f32 %v1738_v49, %v1691_v56  ;;  %v2229_v5 = vadd.f32 %v2228_v50, %v2181_v58 }
 0x1d3   : > { %v760_v7 = vadd.f32 %v759_v51, %v712_v62  ;;  %v1250_v9 = vadd.f32 %v1249_v52, %v1202_v1 }
 0x1d7   : > { %v1564_v11 = vpop.f32.mrf.mxu2  ;;  %v2054_v13 = vpop.f32.mrf.mxu3 }
 0x1d8   : > { %v1636_v15 = vadd.f32 %v1635_v55, %v1564_v11  ;;  %v1692_v17 = vmul.f32 %v1564_v11, %v1564_v11  ;;  %v2126_v19 = vadd.f32 %v2125_v57, %v2054_v13  ;;  %v2182_v21 = vmul.f32 %v2054_v13, %v2054_v13  ;;  %v586_v23 = vpop.f32.mrf.mxu0  ;;  %v1076_v25 = vpop.f32.mrf.mxu1 }
 0x1d9   : > { %v657_v27 = vadd.f32 %v656_v61, %v586_v23  ;;  %v713_v29 = vmul.f32 %v586_v23, %v586_v23  ;;  %v1147_v31 = vadd.f32 %v1146_v63, %v1076_v25  ;;  %v1203_v32 = vmul.f32 %v1076_v25, %v1076_v25 }
 0x1da   : > { %v1740_v33 = vadd.f32 %v1739_v3, %v1692_v17  ;;  %v2230_v34 = vadd.f32 %v2229_v5, %v2182_v21 }
 0x1db   : > { %v761_v35 = vadd.f32 %v760_v7, %v713_v29  ;;  %v1251_v36 = vadd.f32 %v1250_v9, %v1203_v32 }
 0x1df   : > { %v1566_v37 = vpop.f32.mrf.mxu2  ;;  %v2056_v38 = vpop.f32.mrf.mxu3 }
 0x1e0   : > { %v1637_v39 = vadd.f32 %v1636_v15, %v1566_v37  ;;  %v1693_v40 = vmul.f32 %v1566_v37, %v1566_v37  ;;  %v2127_v41 = vadd.f32 %v2126_v19, %v2056_v38  ;;  %v2183_v42 = vmul.f32 %v2056_v38, %v2056_v38  ;;  %v589_v43 = vpop.f32.mrf.mxu0  ;;  %v1079_v44 = vpop.f32.mrf.mxu1 }
 0x1e1   : > { %v658_v45 = vadd.f32 %v657_v27, %v589_v43  ;;  %v714_v46 = vmul.f32 %v589_v43, %v589_v43  ;;  %v1148_v47 = vadd.f32 %v1147_v31, %v1079_v44  ;;  %v1204_v48 = vmul.f32 %v1079_v44, %v1079_v44 }
 0x1e2   : > { %v1741_v49 = vadd.f32 %v1740_v33, %v1693_v40  ;;  %v2231_v50 = vadd.f32 %v2230_v34, %v2183_v42 }
 0x1e3   : > { %v762_v51 = vadd.f32 %v761_v35, %v714_v46  ;;  %v1252_v52 = vadd.f32 %v1251_v36, %v1204_v48 }
 0x1e7   : > { %v1569_v53 = vpop.f32.mrf.mxu2  ;;  %v2059_v54 = vpop.f32.mrf.mxu3 }
 0x1e8   : > { %v1638_v55 = vadd.f32 %v1637_v39, %v1569_v53  ;;  %v1694_v56 = vmul.f32 %v1569_v53, %v1569_v53  ;;  %v2128_v57 = vadd.f32 %v2127_v41, %v2059_v54  ;;  %v2184_v58 = vmul.f32 %v2059_v54, %v2059_v54  ;;  %v591_v59 = vpop.f32.mrf.mxu0  ;;  %v1081_v60 = vpop.f32.mrf.mxu1 }
 0x1e9   : > { %v659_v61 = vadd.f32 %v658_v45, %v591_v59  ;;  %v715_v62 = vmul.f32 %v591_v59, %v591_v59  ;;  %v1149_v63 = vadd.f32 %v1148_v47, %v1081_v60  ;;  %v1205_v1 = vmul.f32 %v1081_v60, %v1081_v60 }
 0x1ea   : > { %v1742_v3 = vadd.f32 %v1741_v49, %v1694_v56  ;;  %v2232_v5 = vadd.f32 %v2231_v50, %v2184_v58 }
 0x1eb   : > { %v763_v7 = vadd.f32 %v762_v51, %v715_v62  ;;  %v1253_v9 = vadd.f32 %v1252_v52, %v1205_v1 }
 0x1ef   : > { %v1571_v11 = vpop.f32.mrf.mxu2  ;;  %v2061_v13 = vpop.f32.mrf.mxu3 }
 0x1f0   : > { %v1639_v15 = vadd.f32 %v1638_v55, %v1571_v11  ;;  %v1695_v17 = vmul.f32 %v1571_v11, %v1571_v11  ;;  %v2129_v19 = vadd.f32 %v2128_v57, %v2061_v13  ;;  %v2185_v21 = vmul.f32 %v2061_v13, %v2061_v13  ;;  %v594_v23 = vpop.f32.mrf.mxu0  ;;  %v1084_v25 = vpop.f32.mrf.mxu1 }
 0x1f1   : > { %v660_v27 = vadd.f32 %v659_v61, %v594_v23  ;;  %v716_v29 = vmul.f32 %v594_v23, %v594_v23  ;;  %v1150_v31 = vadd.f32 %v1149_v63, %v1084_v25  ;;  %v1206_v32 = vmul.f32 %v1084_v25, %v1084_v25 }
 0x1f2   : > { %v1743_v33 = vadd.f32 %v1742_v3, %v1695_v17  ;;  %v2233_v34 = vadd.f32 %v2232_v5, %v2185_v21 }
 0x1f3   : > { %v764_v35 = vadd.f32 %v763_v7, %v716_v29  ;;  %v1254_v36 = vadd.f32 %v1253_v9, %v1206_v32 }
 0x1f7   : > { %v1574_v37 = vpop.f32.mrf.mxu2  ;;  %v2064_v38 = vpop.f32.mrf.mxu3 }
 0x1f8   : > { %v596_v39 = vpop.f32.mrf.mxu0  ;;  %v1086_v40 = vpop.f32.mrf.mxu1  ;;  %v1696_v61 = vmul.f32 %v1574_v37, %v1574_v37  ;;  %v2186_v62 = vmul.f32 %v2064_v38, %v2064_v38  ;;  %v1640_v7 = vadd.f32 %v1639_v15, %v1574_v37  ;;  %v2130_v9 = vadd.f32 %v2129_v19, %v2064_v38 }
 0x1f9   : > { %v717_v63 = vmul.f32 %v596_v39, %v596_v39  ;;  %v1207_v1 = vmul.f32 %v1086_v40, %v1086_v40  ;;  %v661_v17 = vadd.f32 %v660_v27, %v596_v39  ;;  %v1151_v21 = vadd.f32 %v1150_v31, %v1086_v40 }
 0x1fa   : > { %v1744_v29 = vadd.f32 %v1743_v33, %v1696_v61  ;;  %v2234_v32 = vadd.f32 %v2233_v34, %v2186_v62 }
 0x1fb   : > { %v765_v6 = vadd.f32 %v764_v35, %v717_v63  ;;  %v1255_v4 = vadd.f32 %v1254_v36, %v1207_v1 }
 0x1ff   : > { %v1576_v41 = vpop.f32.mrf.mxu2  ;;  %v2066_v42 = vpop.f32.mrf.mxu3 }
 0x200   : > { %v599_v43 = vpop.f32.mrf.mxu0  ;;  %v1089_v44 = vpop.f32.mrf.mxu1  ;;  %v1697_v23 = vmul.f32 %v1576_v41, %v1576_v41  ;;  %v2187_v25 = vmul.f32 %v2066_v42, %v2066_v42  ;;  %v1641_v10 = vadd.f32 %v1640_v7, %v1576_v41  ;;  %v2131_v8 = vadd.f32 %v2130_v9, %v2066_v42 }
 0x201   : > { %v718_v2 = vmul.f32 %v599_v43, %v599_v43  ;;  %v1208_v0 = vmul.f32 %v1089_v44, %v1089_v44  ;;  %v662_v14 = vadd.f32 %v661_v17, %v599_v43  ;;  %v1152_v12 = vadd.f32 %v1151_v21, %v1089_v44 }
 0x202   : > { %v1745_v37 = vadd.f32 %v1744_v29, %v1697_v23  ;;  %v2235_v38 = vadd.f32 %v2234_v32, %v2187_v25 }
 0x203   : > { %v766_v27 = vadd.f32 %v765_v6, %v718_v2  ;;  %v1256_v31 = vadd.f32 %v1255_v4, %v1208_v0 }
 0x207   : > { %v1579_v45 = vpop.f32.mrf.mxu2  ;;  %v2069_v46 = vpop.f32.mrf.mxu3 }
 0x208   : > { %v601_v47 = vpop.f32.mrf.mxu0  ;;  %v1091_v48 = vpop.f32.mrf.mxu1  ;;  %v1698_v15 = vmul.f32 %v1579_v45, %v1579_v45  ;;  %v2188_v19 = vmul.f32 %v2069_v46, %v2069_v46  ;;  %v1642_v39 = vadd.f32 %v1641_v10, %v1579_v45  ;;  %v2132_v40 = vadd.f32 %v2131_v8, %v2069_v46 }
 0x209   : > { %v719_v18 = vmul.f32 %v601_v47, %v601_v47  ;;  %v1209_v16 = vmul.f32 %v1091_v48, %v1091_v48  ;;  %v663_v33 = vadd.f32 %v662_v14, %v601_v47  ;;  %v1153_v34 = vadd.f32 %v1152_v12, %v1091_v48 }
 0x20a   : > { %v1746_v41 = vadd.f32 %v1745_v37, %v1698_v15  ;;  %v2236_v42 = vadd.f32 %v2235_v38, %v2188_v19 }
 0x20b   : > { %v767_v7 = vadd.f32 %v766_v27, %v719_v18  ;;  %v1257_v9 = vadd.f32 %v1256_v31, %v1209_v16 }
 0x20f   : > { %v1581_v49 = vpop.f32.mrf.mxu2  ;;  %v2071_v50 = vpop.f32.mrf.mxu3 }
 0x210   : > { %v604_v51 = vpop.f32.mrf.mxu0  ;;  %v1094_v52 = vpop.f32.mrf.mxu1  ;;  %v1699_v61 = vmul.f32 %v1581_v49, %v1581_v49  ;;  %v2189_v62 = vmul.f32 %v2071_v50, %v2071_v50  ;;  %v1643_v2 = vadd.f32 %v1642_v39, %v1581_v49  ;;  %v2133_v0 = vadd.f32 %v2132_v40, %v2071_v50 }
 0x211   : > { %v720_v43 = vmul.f32 %v604_v51, %v604_v51  ;;  %v1210_v44 = vmul.f32 %v1094_v52, %v1094_v52  ;;  %v664_v4 = vadd.f32 %v663_v33, %v604_v51  ;;  %v1154_v6 = vadd.f32 %v1153_v34, %v1094_v52 }
 0x212   : > { %v1747_v12 = vadd.f32 %v1746_v41, %v1699_v61  ;;  %v2237_v14 = vadd.f32 %v2236_v42, %v2189_v62 }
 0x213   : > { %v768_v18 = vadd.f32 %v767_v7, %v720_v43  ;;  %v1258_v16 = vadd.f32 %v1257_v9, %v1210_v44 }
 0x217   : > { %v6454_v53 = vpop.f32.mrf.mxu2  ;;  %v6456_v54 = vpop.f32.mrf.mxu3 }
 0x218   : > { %v6458_v55 = vpop.f32.mrf.mxu0  ;;  %v6460_v56 = vpop.f32.mrf.mxu1  ;;  %v1700_v8 = vmul.f32 %v6454_v53, %v6454_v53  ;;  %v2190_v10 = vmul.f32 %v6456_v54, %v6456_v54  ;;  %v1644_v47 = vadd.f32 %v1643_v2, %v6454_v53  ;;  %v2134_v48 = vadd.f32 %v2133_v0, %v6456_v54 }
 0x219   : > { %v721_v45 = vmul.f32 %v6458_v55, %v6458_v55  ;;  %v1211_v46 = vmul.f32 %v6460_v56, %v6460_v56  ;;  %v665_v49 = vadd.f32 %v664_v4, %v6458_v55  ;;  %v1155_v50 = vadd.f32 %v1154_v6, %v6460_v56 }
 0x21a   : > { %v1748_v17 = vadd.f32 %v1747_v12, %v1700_v8  ;;  %v2238_v21 = vadd.f32 %v2237_v14, %v2190_v10 }
 0x21b   : > { %v769_v25 = vadd.f32 %v768_v18, %v721_v45  ;;  %v1259_v54 = vadd.f32 %v1258_v16, %v1211_v46 }
 0x21f   : > { %v6462_v57 = vpop.f32.mrf.mxu2  ;;  %v6464_v58 = vpop.f32.mrf.mxu3 }
 0x220   : > { %v6466_v59 = vpop.f32.mrf.mxu0  ;;  %v6468_v60 = vpop.f32.mrf.mxu1  ;;  %v1701_v51 = vmul.f32 %v6462_v57, %v6462_v57  ;;  %v2191_v52 = vmul.f32 %v6464_v58, %v6464_v58  ;;  %v1645_v55 = vadd.f32 %v1644_v47, %v6462_v57  ;;  %v2135_v56 = vadd.f32 %v2134_v48, %v6464_v58 }
 0x221   : > { %v722_v23 = vmul.f32 %v6466_v59, %v6466_v59  ;;  %v1212_v53 = vmul.f32 %v6468_v60, %v6468_v60  ;;  %v666_v15 = vadd.f32 %v665_v49, %v6466_v59  ;;  %v1156_v19 = vadd.f32 %v1155_v50, %v6468_v60 }
 0x222   : > { %v1749_v39 = vadd.f32 %v1748_v17, %v1701_v51  ;;  %v2239_v40 = vadd.f32 %v2238_v21, %v2191_v52 }
 0x223   : > { %v770_v33 = vadd.f32 %v769_v25, %v722_v23  ;;  %v1260_v59 = vadd.f32 %v1259_v54, %v1212_v53 }
 0x227   : > { %v6470_v3 = vpop.f32.mrf.mxu2  ;;  %v6472_v5 = vpop.f32.mrf.mxu3 }
 0x228   : > { %v6474_v11 = vpop.f32.mrf.mxu0  ;;  %v6476_v13 = vpop.f32.mrf.mxu1  ;;  %v1702_v57 = vmul.f32 %v6470_v3, %v6470_v3  ;;  %v2192_v58 = vmul.f32 %v6472_v5, %v6472_v5  ;;  %v1646_v61 = vadd.f32 %v1645_v55, %v6470_v3  ;;  %v2136_v62 = vadd.f32 %v2135_v56, %v6472_v5 }
 0x229   : > { %v723_v37 = vmul.f32 %v6474_v11, %v6474_v11  ;;  %v1213_v38 = vmul.f32 %v6476_v13, %v6476_v13  ;;  %v667_v41 = vadd.f32 %v666_v15, %v6474_v11  ;;  %v1157_v42 = vadd.f32 %v1156_v19, %v6476_v13 }
 0x22a   : > { %v1750_v2 = vadd.f32 %v1749_v39, %v1702_v57  ;;  %v2240_v0 = vadd.f32 %v2239_v40, %v2192_v58 }
 0x22b   : > { %v771_v43 = vadd.f32 %v770_v33, %v723_v37  ;;  %v1261_v44 = vadd.f32 %v1260_v59, %v1213_v38 }
 0x22f   : > { %v6478_v35 = vpop.f32.mrf.mxu2  ;;  %v6480_v36 = vpop.f32.mrf.mxu3 }
 0x230   : > { %v614_v63 = vpop.f32.mrf.mxu0  ;;  %v1104_v1 = vpop.f32.mrf.mxu1  ;;  %v1703_v8 = vmul.f32 %v6478_v35, %v6478_v35  ;;  %v2193_v3 = vmul.f32 %v6480_v36, %v6480_v36  ;;  %v1647_v11 = vadd.f32 %v1646_v61, %v6478_v35  ;;  %v2137_v13 = vadd.f32 %v2136_v62, %v6480_v36 }
 0x231   : > { %v724_v34 = vmul.f32 %v614_v63, %v614_v63  ;;  %v1214_v60 = vmul.f32 %v1104_v1, %v1104_v1  ;;  %v668_v4 = vadd.f32 %v667_v41, %v614_v63  ;;  %v1158_v6 = vadd.f32 %v1157_v42, %v1104_v1 }
 0x232   : > { %v1751_v17 = vadd.f32 %v1750_v2, %v1703_v8  ;;  %v2241_v21 = vadd.f32 %v2240_v0, %v2193_v3 }
 0x233   : > { %v772_v10 = vadd.f32 %v771_v43, %v724_v34  ;;  %v1262_v5 = vadd.f32 %v1261_v44, %v1214_v60 }
 0x237   : > { %v1594_v29 = vpop.f32.mrf.mxu2  ;;  %v2084_v32 = vpop.f32.mrf.mxu3 }
 0x238   : > { %v616_v27 = vpop.f32.mrf.mxu0  ;;  %v1106_v31 = vpop.f32.mrf.mxu1  ;;  %v1704_v18 = vmul.f32 %v1594_v29, %v1594_v29  ;;  %v2194_v16 = vmul.f32 %v2084_v32, %v2084_v32  ;;  %v1648_v55 = vadd.f32 %v1647_v11, %v1594_v29  ;;  %v2138_v15 = vadd.f32 %v2137_v13, %v2084_v32 }
 0x239   : > { %v725_v7 = vmul.f32 %v616_v27, %v616_v27  ;;  %v1215_v9 = vmul.f32 %v1106_v31, %v1106_v31  ;;  %v669_v12 = vadd.f32 %v668_v4, %v616_v27  ;;  %v1159_v14 = vadd.f32 %v1158_v6, %v1106_v31 }
 0x23a   : > { %v1752_v56 = vadd.f32 %v1751_v17, %v1704_v18  ;;  %v2242_v19 = vadd.f32 %v2241_v21, %v2194_v16 }
 0x23b   : > { %v773_v63 = vadd.f32 %v772_v10, %v725_v7  ;;  %v1263_v1 = vadd.f32 %v1262_v5, %v1215_v9 }
 0x23f   : > { %v1596_v45 = vpop.f32.mrf.mxu2  ;;  %v2086_v46 = vpop.f32.mrf.mxu3 }
 0x240   : > { %v619_v47 = vpop.f32.mrf.mxu0  ;;  %v1109_v48 = vpop.f32.mrf.mxu1  ;;  %v1705_v23 = vmul.f32 %v1596_v45, %v1596_v45  ;;  %v2195_v35 = vmul.f32 %v2086_v46, %v2086_v46  ;;  %v1649_v39 = vadd.f32 %v1648_v55, %v1596_v45  ;;  %v2139_v57 = vadd.f32 %v2138_v15, %v2086_v46 }
 0x241   : > { %v670_v49 = vadd.f32 %v669_v12, %v619_v47  ;;  %v726_v50 = vmul.f32 %v619_v47, %v619_v47  ;;  %v1160_v51 = vadd.f32 %v1159_v14, %v1109_v48  ;;  %v1216_v52 = vmul.f32 %v1109_v48, %v1109_v48 }
 0x242   : > { %v1753_v40 = vadd.f32 %v1752_v56, %v1705_v23  ;;  %v2243_v58 = vadd.f32 %v2242_v19, %v2195_v35 }
 0x243   : > { %v671_v53 = vrot.slane %v670_v49, 4  ;;  %v774_v36 = vadd.f32 %v773_v63, %v726_v50  ;;  %v1161_v25 = vrot.slane %v1160_v51, 4  ;;  %v1264_v54 = vadd.f32 %v1263_v1, %v1216_v52 }
 0x245   : > { %v672_v37 = vadd.f32 %v671_v53, %v670_v49  ;;  %v775_v38 = vrot.slane %v774_v36, 4  ;;  %v1162_v27 = vadd.f32 %v1161_v25, %v1160_v51  ;;  %v1265_v31 = vrot.slane %v1264_v54, 4 }
 0x247   : > { %v673_v33 = vrot.slane %v672_v37, 2  ;;  %v776_v59 = vadd.f32 %v775_v38, %v774_v36  ;;  %v1163_v34 = vrot.slane %v1162_v27, 2  ;;  %v1266_v60 = vadd.f32 %v1265_v31, %v1264_v54  ;;  %v1599_v61 = vpop.f32.mrf.mxu2  ;;  %v2089_v62 = vpop.f32.mrf.mxu3 }
 0x248   : > { %v1650_v41 = vadd.f32 %v1649_v39, %v1599_v61  ;;  %v1706_v42 = vmul.f32 %v1599_v61, %v1599_v61  ;;  %v2140_v29 = vadd.f32 %v2139_v57, %v2089_v62  ;;  %v2196_v43 = vmul.f32 %v2089_v62, %v2089_v62  ;;  %v621_v32 = vpop.f32.mrf.mxu0  ;;  %v1111_v44 = vpop.f32.mrf.mxu1  ;;  %v2252_v57 = vld [vmem:[#allocation2] sm:$0x1] }
 0x249   : > { %v674_v7 = vadd.f32 %v673_v33, %v672_v37  ;;  %v777_v9 = vrot.slane %v776_v59, 2  ;;  %v1164_v2 = vadd.f32 %v1163_v34, %v1162_v27  ;;  %v1267_v0 = vrot.slane %v1266_v60, 2  ;;  %v2255_v34 = vld [vmem:[#allocation3] sm:$0x1] }
 0x24a   : > { %v1651_v4 = vrot.slane %v1650_v41, 4  ;;  %v1754_v6 = vadd.f32 %v1753_v40, %v1706_v42  ;;  %v2141_v8 = vrot.slane %v2140_v29, 4  ;;  %v2244_v3 = vadd.f32 %v2243_v58, %v2196_v43 }
 0x24b   : > { %v675_v10 = vrot.slane %v674_v7, 1  ;;  %v778_v5 = vadd.f32 %v777_v9, %v776_v59  ;;  %v1165_v11 = vrot.slane %v1164_v2, 1  ;;  %v1268_v13 = vadd.f32 %v1267_v0, %v1266_v60 }
 0x24c   : > { %v1652_v12 = vadd.f32 %v1651_v4, %v1650_v41  ;;  %v1755_v14 = vrot.slane %v1754_v6, 4  ;;  %v2142_v45 = vadd.f32 %v2141_v8, %v2140_v29  ;;  %v2245_v46 = vrot.slane %v2244_v3, 4 }
 0x24d   : > { %v676_v18 = vadd.f32 %v675_v10, %v674_v7  ;;  %v779_v16 = vrot.slane %v778_v5, 1  ;;  %v1166_v63 = vadd.f32 %v1165_v11, %v1164_v2  ;;  %v1269_v1 = vrot.slane %v1268_v13, 1 }
 0x24e   : > { %v1653_v47 = vrot.slane %v1652_v12, 2  ;;  %v1756_v48 = vadd.f32 %v1755_v14, %v1754_v6  ;;  %v2143_v49 = vrot.slane %v2142_v45, 2  ;;  %v2246_v50 = vadd.f32 %v2245_v46, %v2244_v3 }
 0x24f   : > { %v780_v51 = vadd.f32 %v779_v16, %v778_v5  ;;  %v1167_v52 = vadd.f32 %v1166_v63, %v676_v18  ;;  %v1270_v17 = vadd.f32 %v1269_v1, %v1268_v13  ;;  %v1601_v21 = vpop.f32.mrf.mxu2  ;;  %v2091_v23 = vpop.f32.mrf.mxu3 }
 0x250   : > { %v1654_v35 = vadd.f32 %v1653_v47, %v1652_v12  ;;  %v1757_v53 = vrot.slane %v1756_v48, 2  ;;  %v2144_v36 = vadd.f32 %v2143_v49, %v2142_v45  ;;  %v2247_v25 = vrot.slane %v2246_v50, 2 }
 0x251   : > { %v1271_v54 = vadd.f32 %v1270_v17, %v780_v51 }
 0x252   : > { %v1655_v55 = vrot.slane %v1654_v35, 1  ;;  %v1758_v56 = vadd.f32 %v1757_v53, %v1756_v48  ;;  %v2145_v15 = vrot.slane %v2144_v36, 1  ;;  %v2248_v19 = vadd.f32 %v2247_v25, %v2246_v50 }
 0x254   : > { %v1656_v37 = vadd.f32 %v1655_v55, %v1654_v35  ;;  %v1759_v38 = vrot.slane %v1758_v56, 1  ;;  %v2249_v27 = vrot.slane %v2248_v19, 1  ;;  %v2146_v40 = vadd.f32 %v2145_v15, %v2144_v36 }
 0x256   : > { %v1657_v31 = vadd.f32 %v1656_v37, %v1167_v52  ;;  %v1760_v39 = vadd.f32 %v1759_v38, %v1758_v56  ;;  %v2250_v59 = vadd.f32 %v2249_v27, %v2248_v19 }
 0x258   : > { %v1761_v58 = vadd.f32 %v1760_v39, %v1271_v54  ;;  %v2147_v33 = vadd.f32 %v2146_v40, %v1657_v31 }
 0x25a   : > { %v2251_v60 = vadd.f32 %v2250_v59, %v1761_v58  ;;  %v2253_v61 = vadd.f32 %v2252_v57, %v2147_v33 }
 0x25c   : > { %2254 = vst [vmem:[#allocation2] sm:$0x1] %v2253_v61  ;;  %v2256_v62 = vadd.f32 %v2255_v34, %v2251_v60 }
 0x25e   : > { %2257 = vst [vmem:[#allocation3] sm:$0x1] %v2256_v62 }
 0x25f PF: > { %p2258_p6 = scmp.eq.s32.totalorder %s5959_s15, 1 }
 0x260   : > { %v2280_v3 = vld [vmem:[%s7334_s2] sm:$0x1] (%p2258_p6) }
 0x261   : > { %2262 = sbr.rel (!%p2258_p6) target bundleno = 645 (0x285), region = 48  ;;  %v2283_v11 = vld [vmem:[%s7335_s3] sm:$0x1] (%p2258_p6) }
 0x263   : > { %v2263_v41 = vld [vmem:[#allocation2] sm:$0x1] (%p2258_p6) }
 0x264   : > { %v2264_v29 = vmul.f32 (%p2258_p6), 0.0006377551, %v2263_v41 }
 0x265   : > { %v2265_v42 = vld [vmem:[#allocation3] sm:$0x1] (%p2258_p6) }
 0x266   : > { %v2266_v43 = vmul.f32 0.0006377551, %v2265_v42  ;;  %v2267_v32 = vmul.f32 %v2264_v29, %v2264_v29 }
 0x268   : > { %v2268_v44 = vsub.f32 %v2266_v43, %v2267_v32 }
 0x26a   : > { %v2269_v7 = vadd.f32 1e-05, %v2268_v44 }
 0x26c   : > { %5939 = vrsqrt.f32 %v2269_v7  ;;  %vm2276_vm0 = vweird.f32 %v2269_v7 }
 0x272   : > { %v5940_v9 = vpop.eup %5939 }
 0x273   : > { %v2271_v2 = vmul.f32 %v5940_v9, %v2269_v7  ;;  %vm2277_vm1 = vweird.f32 %v5940_v9 }
 0x274   : > { %vm2278_vm2 = vmor %vm2276_vm0, %vm2277_vm1 }
 0x275   : > { %v2272_v0 = vmul.f32 %v5940_v9, %v2271_v2 }
 0x277   : > { %v2273_v4 = vmul.f32 0.5, %v2272_v0 }
 0x279   : > { %v2274_v6 = vsub.f32 1.5, %v2273_v4 }
 0x27b   : > { %v2275_v8 = vmul.f32 %v5940_v9, %v2274_v6 }
 0x27d   : > { %v2279_v10 = vsel %vm2278_vm2, %v5940_v9, %v2275_v8 }
 0x27e   : > { %v2281_v5 = vmul.f32 %v2280_v3, %v2279_v10 }
 0x280   : > { %2282 = vst [vmem:[#allocation4] sm:$0x1] %v2281_v5  ;;  %v2284_v13 = vmul.f32 %v2281_v5, %v2264_v29 }
 0x282   : > { %v2285_v12 = vsub.f32 %v2283_v11, %v2284_v13 }
 0x284   : > { %2286 = vst [vmem:[#allocation4 + $0x1] sm:$0x1] %v2285_v12 }
 0x285 PF: > { %p4993_p7 = scmp.ne.s32.totalorder %s5959_s15, 1 }
 0x287   : > { %2289 = sbr.rel (%p4993_p7) target bundleno = 1215 (0x4bf), region = 52 }
 0x28c   : > { %v5121_v14 = vor.u32 %v6144_v30, %v6136_v28  ;;  %v5117_v45 = vor.u32 %v6128_v26, %v6120_v24  ;;  %v5113_v46 = vor.u32 %v6112_v22, %v6104_v20  ;;  %v7347_v18 = vld [vmem:[#allocation13_spill] sm:$0xff]  ;;  %v7348_v16 = vld [vmem:[#allocation14_spill] sm:$0xff]  ;;  %v7349_v28 = vld [vmem:[#allocation11_spill] sm:$0xff] }
 0x28d   : > { %v5109_v63 = vor.u32 %v7348_v16, %v7347_v18  ;;  %v7350_v24 = vld [vmem:[#allocation12_spill] sm:$0xff]  ;;  %v7351_v30 = vld [vmem:[#allocation9_spill] sm:$0xff]  ;;  %v7352_v20 = vld [vmem:[#allocation10_spill] sm:$0xff] }
 0x28e   : > { %2537 = vmatpush.bf16.msra.mxu0 %v5121_v14  ;;  %2968 = vmatpush.bf16.msra.mxu1 %v5121_v14  ;;  %v5105_v26 = vor.u32 %v7350_v24, %v7349_v28  ;;  %v5101_v22 = vor.u32 %v7352_v20, %v7351_v30  ;;  %v7353_v1 = vld [vmem:[#allocation7_spill] sm:$0xff]  ;;  %v7354_v47 = vld [vmem:[#allocation8_spill] sm:$0xff]  ;;  %v7355_v49 = vld [vmem:[#allocation5_spill] sm:$0xff] }
 0x28f   : > { %3446 = vmatpush.bf16.msra.mxu2 %v5121_v14  ;;  %3924 = vmatpush.bf16.msra.mxu3 %v5121_v14  ;;  %v5097_v48 = vor.u32 %v7354_v47, %v7353_v1  ;;  %v7356_v50 = vld [vmem:[#allocation6_spill] sm:$0xff]  ;;  %v5675_v52 = vld [vmem:[%s7332_s0] sm:$0xff]  ;;  %v5748_v25 = vld [vmem:[%s7332_s0 + $0x254] sm:$0xff] }
 0x290   : > { %v5093_v51 = vor.u32 %v7356_v50, %v7355_v49  ;;  %v5699_v17 = vld [vmem:[%s7332_s0 + $0xc4] sm:$0xff]  ;;  %v5747_v23 = vld [vmem:[%s7332_s0 + $0x24c] sm:$0xff]  ;;  %v5701_v55 = vld [vmem:[%s7332_s0 + $0xd4] sm:$0xff] }
 0x291   : > { %v5723_v21 = vld [vmem:[%s7332_s0 + $0x188] sm:$0xff]  ;;  %v5724_v36 = vld [vmem:[%s7332_s0 + $0x190] sm:$0xff]  ;;  %v5725_v56 = vld [vmem:[%s7332_s0 + $0x198] sm:$0xff] }
 0x292   : > { %2538 = vmatpush.bf16.msra.mxu0 %v5117_v45  ;;  %2969 = vmatpush.bf16.msra.mxu1 %v5117_v45  ;;  %v5676_v35 = vld [vmem:[%s7332_s0 + $0x8] sm:$0xff]  ;;  %v5677_v54 = vld [vmem:[%s7332_s0 + $0x10] sm:$0xff]  ;;  %v5749_v15 = vld [vmem:[%s7332_s0 + $0x25c] sm:$0xff] }
 0x293   : > { %3447 = vmatpush.bf16.msra.mxu2 %v5117_v45  ;;  %3925 = vmatpush.bf16.msra.mxu3 %v5117_v45  ;;  %v5700_v53 = vld [vmem:[%s7332_s0 + $0xcc] sm:$0xff]  ;;  %v5678_v19 = vld [vmem:[%s7332_s0 + $0x18] sm:$0xff]  ;;  %v5726_v38 = vld [vmem:[%s7332_s0 + $0x1a0] sm:$0xff] }
 0x294   : > { %v5702_v37 = vld [vmem:[%s7332_s0 + $0xdc] sm:$0xff]  ;;  %v5750_v27 = vld [vmem:[%s7332_s0 + $0x264] sm:$0xff]  ;;  %v5751_v57 = vld [vmem:[%s7332_s0 + $0x26c] sm:$0xff] }
 0x295   : > { %v5679_v31 = vld [vmem:[%s7332_s0 + $0x20] sm:$0xff]  ;;  %v5727_v40 = vld [vmem:[%s7332_s0 + $0x1a8] sm:$0xff]  ;;  %v5728_v59 = vld [vmem:[%s7332_s0 + $0x1b0] sm:$0xff] }
 0x296   : > { %2539 = vmatpush.bf16.msra.mxu0 %v5113_v46  ;;  %2970 = vmatpush.bf16.msra.mxu1 %v5113_v46  ;;  %v5703_v39 = vld [vmem:[%s7332_s0 + $0xe4] sm:$0xff]  ;;  %v5704_v33 = vld [vmem:[%s7332_s0 + $0xec] sm:$0xff]  ;;  %v5752_v34 = vld [vmem:[%s7332_s0 + $0x274] sm:$0xff] }
 0x297   : > { %3448 = vmatpush.bf16.msra.mxu2 %v5113_v46  ;;  %3926 = vmatpush.bf16.msra.mxu3 %v5113_v46  ;;  %v5680_v58 = vld [vmem:[%s7332_s0 + $0x28] sm:$0xff]  ;;  %v5681_v60 = vld [vmem:[%s7332_s0 + $0x30] sm:$0xff]  ;;  %v5729_v62 = vld [vmem:[%s7332_s0 + $0x1b8] sm:$0xff] }
 0x298   : > { %v5705_v61 = vld [vmem:[%s7332_s0 + $0xf4] sm:$0xff]  ;;  %v5753_v41 = vld [vmem:[%s7332_s0 + $0x27c] sm:$0xff]  ;;  %v5754_v32 = vld [vmem:[%s7332_s0 + $0x284] sm:$0xff] }
 0x299   : > { %v5682_v42 = vld [vmem:[%s7332_s0 + $0x38] sm:$0xff]  ;;  %v5730_v43 = vld [vmem:[%s7332_s0 + $0x1c0] sm:$0xff]  ;;  %v5731_v4 = vld [vmem:[%s7332_s0 + $0x1c8] sm:$0xff] }
 0x29a   : > { %2540 = vmatpush.bf16.msra.mxu0 %v5109_v63  ;;  %2971 = vmatpush.bf16.msra.mxu1 %v5109_v63  ;;  %v5706_v29 = vld [vmem:[%s7332_s0 + $0xfc] sm:$0xff]  ;;  %v5707_v7 = vld [vmem:[%s7332_s0 + $0x104] sm:$0xff]  ;;  %v5755_v6 = vld [vmem:[%s7332_s0 + $0x28c] sm:$0xff] }
 0x29b   : > { %3449 = vmatpush.bf16.msra.mxu2 %v5109_v63  ;;  %3927 = vmatpush.bf16.msra.mxu3 %v5109_v63  ;;  %v5683_v44 = vld [vmem:[%s7332_s0 + $0x40] sm:$0xff]  ;;  %v5684_v1 = vld [vmem:[%s7332_s0 + $0x48] sm:$0xff] }
 0x29c   : > { %v6650_v2 = vld [vmem:[#allocation4] ss:$0 sm:$0xff]  ;;  %v6659_v3 = vld [vmem:[#allocation4 + $0x1] ss:$0 sm:$0xff]  ;;  %v5708_v47 = vld [vmem:[%s7332_s0 + $0x10c] sm:$0xff] }
 0x29e   : > { %2541 = vmatpush.bf16.msra.mxu0 %v5105_v26  ;;  %2972 = vmatpush.bf16.msra.mxu1 %v5105_v26 }
 0x29f   : > { %3450 = vmatpush.bf16.msra.mxu2 %v5105_v26  ;;  %3928 = vmatpush.bf16.msra.mxu3 %v5105_v26 }
 0x2a2   : > { %2542 = vmatpush.bf16.msra.mxu0 %v5101_v22  ;;  %2973 = vmatpush.bf16.msra.mxu1 %v5101_v22 }
 0x2a3   : > { %3451 = vmatpush.bf16.msra.mxu2 %v5101_v22  ;;  %3929 = vmatpush.bf16.msra.mxu3 %v5101_v22 }
 0x2a6   : > { %2543 = vmatpush.bf16.msra.mxu0 %v5097_v48  ;;  %2974 = vmatpush.bf16.msra.mxu1 %v5097_v48 }
 0x2a7   : > { %3452 = vmatpush.bf16.msra.mxu2 %v5097_v48  ;;  %3930 = vmatpush.bf16.msra.mxu3 %v5097_v48 }
 0x2aa   : > { %2544 = vmatpush.bf16.msra.mxu0 %v5093_v51  ;;  %2975 = vmatpush.bf16.msra.mxu1 %v5093_v51 }
 0x2ab   : > { %3453 = vmatpush.bf16.msra.mxu2 %v5093_v51  ;;  %3931 = vmatpush.bf16.msra.mxu3 %v5093_v51 }
 0x2ad   : > { %2545 = vmatmul.bf16.vlgmr.msra.gmra.mxu0 %v5675_v52  ;;  %2976 = vmatmul.bf16.vlgmr.msra.gmra.mxu1 %v5699_v17 }
 0x2ae   : > { %3454 = vmatmul.bf16.vlgmr.msra.gmra.mxu2 %v5723_v21  ;;  %3932 = vmatmul.bf16.vlgmr.msra.gmra.mxu3 %v5747_v23  ;;  %v5732_v21 = vld [vmem:[%s7332_s0 + $0x1d0] sm:$0xff] }
 0x2af   : > { %v5756_v23 = vld [vmem:[%s7332_s0 + $0x294] sm:$0xff] }
 0x2bd   : > { %2550 = vmatmul.bf16.gmra.mxu0 %v5676_v35  ;;  %2981 = vmatmul.bf16.gmra.mxu1 %v5700_v53 }
 0x2be   : > { %3459 = vmatmul.bf16.gmra.mxu2 %v5724_v36  ;;  %3937 = vmatmul.bf16.gmra.mxu3 %v5748_v25 }
 0x2cd   : > { %2555 = vmatmul.bf16.gmra.mxu0 %v5677_v54  ;;  %2986 = vmatmul.bf16.gmra.mxu1 %v5701_v55 }
 0x2ce   : > { %3464 = vmatmul.bf16.gmra.mxu2 %v5725_v56  ;;  %3942 = vmatmul.bf16.gmra.mxu3 %v5749_v15 }
 0x2dd   : > { %2560 = vmatmul.bf16.gmra.mxu0 %v5678_v19  ;;  %2991 = vmatmul.bf16.gmra.mxu1 %v5702_v37 }
 0x2de   : > { %3469 = vmatmul.bf16.gmra.mxu2 %v5726_v38  ;;  %3947 = vmatmul.bf16.gmra.mxu3 %v5750_v27 }
 0x2ed   : > { %2565 = vmatmul.bf16.gmra.mxu0 %v5679_v31  ;;  %2996 = vmatmul.bf16.gmra.mxu1 %v5703_v39 }
 0x2ee   : > { %3474 = vmatmul.bf16.gmra.mxu2 %v5727_v40  ;;  %3952 = vmatmul.bf16.gmra.mxu3 %v5751_v57 }
 0x2fd   : > { %2570 = vmatmul.bf16.gmra.mxu0 %v5680_v58  ;;  %3001 = vmatmul.bf16.gmra.mxu1 %v5704_v33 }
 0x2fe   : > { %3479 = vmatmul.bf16.gmra.mxu2 %v5728_v59  ;;  %3957 = vmatmul.bf16.gmra.mxu3 %v5752_v34 }
 0x30d   : > { %2575 = vmatmul.bf16.gmra.mxu0 %v5681_v60  ;;  %3006 = vmatmul.bf16.gmra.mxu1 %v5705_v61 }
 0x30e   : > { %3484 = vmatmul.bf16.gmra.mxu2 %v5729_v62  ;;  %3962 = vmatmul.bf16.gmra.mxu3 %v5753_v41 }
 0x31d   : > { %2580 = vmatmul.bf16.gmra.mxu0 %v5682_v42  ;;  %3011 = vmatmul.bf16.gmra.mxu1 %v5706_v29 }
 0x31e   : > { %3489 = vmatmul.bf16.gmra.mxu2 %v5730_v43  ;;  %3967 = vmatmul.bf16.gmra.mxu3 %v5754_v32 }
 0x32a   : > { %v2546_v9 = vpop.f32.mrf.mxu0  ;;  %v2977_v0 = vpop.f32.mrf.mxu1 }
 0x32b   : > { %v2671_v8 = vmul.f32 %v6650_v2, %v2546_v9  ;;  %v3101_v10 = vmul.f32 %v6650_v2, %v2977_v0  ;;  %v5709_v9 = vld [vmem:[%s7332_s0 + $0x114] sm:$0xff] }
 0x32d   : > { %2585 = vmatmul.bf16.gmra.mxu0 %v5683_v44  ;;  %3016 = vmatmul.bf16.gmra.mxu1 %v5707_v7  ;;  %v2721_v13 = vadd.f32 %v6659_v3, %v2671_v8  ;;  %v3150_v12 = vadd.f32 %v6659_v3, %v3101_v10  ;;  %v5685_v7 = vld [vmem:[%s7332_s0 + $0x50] sm:$0xff]  ;;  %v5733_v10 = vld [vmem:[%s7332_s0 + $0x1d8] sm:$0xff] }
 0x32e   : > { %3494 = vmatmul.bf16.gmra.mxu2 %v5731_v4  ;;  %3972 = vmatmul.bf16.gmra.mxu3 %v5755_v6 }
 0x32f   : > { %v3199_v63 = vmax.f32 %v2721_v13, %v3150_v12 }
 0x331   : > { %v3455_v5 = vpop.f32.mrf.mxu2  ;;  %v3933_v11 = vpop.f32.mrf.mxu3 }
 0x332   : > { %v3579_v14 = vmul.f32 %v6650_v2, %v3455_v5  ;;  %v2548_v45 = vpop.f32.mrf.mxu0  ;;  %v2979_v46 = vpop.f32.mrf.mxu1  ;;  %v4057_v24 = vmul.f32 %v6650_v2, %v3933_v11  ;;  %v5757_v5 = vld [vmem:[%s7332_s0 + $0x29c] sm:$0xff] }
 0x333   : > { %v2672_v18 = vmul.f32 %v6650_v2, %v2548_v45  ;;  %v3102_v16 = vmul.f32 %v6650_v2, %v2979_v46 }
 0x334   : > { %v3628_v28 = vadd.f32 %v6659_v3, %v3579_v14  ;;  %v4106_v49 = vadd.f32 %v6659_v3, %v4057_v24 }
 0x335   : > { %v2722_v26 = vadd.f32 %v6659_v3, %v2672_v18  ;;  %v3151_v30 = vadd.f32 %v6659_v3, %v3102_v16 }
 0x336   : > { %v3677_v48 = vmax.f32 %v3199_v63, %v3628_v28 }
 0x337   : > { %v3200_v35 = vmax.f32 %v2722_v26, %v3151_v30 }
 0x338   : > { %v4155_v54 = vmax.f32 %v3677_v48, %v4106_v49 }
 0x339   : > { %v3457_v20 = vpop.f32.mrf.mxu2  ;;  %v3935_v22 = vpop.f32.mrf.mxu3 }
 0x33a   : > { %v3580_v50 = vmul.f32 %v6650_v2, %v3457_v20  ;;  %v4058_v51 = vmul.f32 %v6650_v2, %v3935_v22  ;;  %v2551_v52 = vpop.f32.mrf.mxu0  ;;  %v2982_v17 = vpop.f32.mrf.mxu1  ;;  %v4204_v31 = vmax.f32 %v4155_v54, 0.0 }
 0x33b   : > { %v2673_v36 = vmul.f32 %v6650_v2, %v2551_v52  ;;  %v3103_v25 = vmul.f32 %v6650_v2, %v2982_v17 }
 0x33c   : > { %v3629_v53 = vadd.f32 %v6659_v3, %v3580_v50  ;;  %v4107_v56 = vadd.f32 %v6659_v3, %v4058_v51 }
 0x33d   : > { %2590 = vmatmul.bf16.gmra.mxu0 %v5684_v1  ;;  %3021 = vmatmul.bf16.gmra.mxu1 %v5708_v47  ;;  %v2723_v19 = vadd.f32 %v6659_v3, %v2673_v36  ;;  %v3152_v37 = vadd.f32 %v6659_v3, %v3103_v25  ;;  %v5686_v36 = vld [vmem:[%s7332_s0 + $0x58] sm:$0xff] }
 0x33e   : > { %v3678_v55 = vmax.f32 %v3200_v35, %v3629_v53  ;;  %3499 = vmatmul.bf16.gmra.mxu2 %v5732_v21  ;;  %3977 = vmatmul.bf16.gmra.mxu3 %v5756_v23  ;;  %v5710_v25 = vld [vmem:[%s7332_s0 + $0x11c] sm:$0xff] }
 0x33f   : > { %v3201_v60 = vmax.f32 %v2723_v19, %v3152_v37 }
 0x340   : > { %v4156_v15 = vmax.f32 %v3678_v55, %v4107_v56 }
 0x341   : > { %v3460_v38 = vpop.f32.mrf.mxu2  ;;  %v3938_v27 = vpop.f32.mrf.mxu3 }
 0x342   : > { %v4205_v39 = vmax.f32 %v4156_v15, 0.0  ;;  %v3581_v40 = vmul.f32 %v6650_v2, %v3460_v38  ;;  %v2553_v57 = vpop.f32.mrf.mxu0  ;;  %v2984_v58 = vpop.f32.mrf.mxu1  ;;  %v4059_v62 = vmul.f32 %v6650_v2, %v3938_v27  ;;  %v5734_v38 = vld [vmem:[%s7332_s0 + $0x1e0] sm:$0xff] }
 0x343   : > { %v2674_v59 = vmul.f32 %v6650_v2, %v2553_v57  ;;  %v3104_v34 = vmul.f32 %v6650_v2, %v2984_v58  ;;  %v5758_v27 = vld [vmem:[%s7332_s0 + $0x2a4] sm:$0xff] }
 0x344   : > { %v5774_v33 = vpack.c.bf16 %v4205_v39, %v4204_v31  ;;  %v3630_v61 = vadd.f32 %v6659_v3, %v3581_v40  ;;  %v4108_v43 = vadd.f32 %v6659_v3, %v4059_v62 }
 0x345   : > { %v2724_v41 = vadd.f32 %v6659_v3, %v2674_v59  ;;  %v3153_v42 = vadd.f32 %v6659_v3, %v3104_v34 }
 0x346   : > { %5775 = vst [vmem:[%s7336_s4] sm:$0xff] %v5774_v33   ;;  %v3679_v29 = vmax.f32 %v3201_v60, %v3630_v61 }
 0x347   : > { %v3202_v11 = vmax.f32 %v2724_v41, %v3153_v42 }
 0x348   : > { %v4157_v12 = vmax.f32 %v3679_v29, %v4108_v43 }
 0x349   : > { %v3462_v32 = vpop.f32.mrf.mxu2  ;;  %v3940_v44 = vpop.f32.mrf.mxu3 }
 0x34a   : > { %v3582_v0 = vmul.f32 %v6650_v2, %v3462_v32  ;;  %v4060_v4 = vmul.f32 %v6650_v2, %v3940_v44  ;;  %v2556_v6 = vpop.f32.mrf.mxu0  ;;  %v2987_v8 = vpop.f32.mrf.mxu1  ;;  %v4206_v63 = vmax.f32 %v4157_v12, 0.0 }
 0x34b   : > { %v2675_v14 = vmul.f32 %v6650_v2, %v2556_v6  ;;  %v3105_v18 = vmul.f32 %v6650_v2, %v2987_v8 }
 0x34c   : > { %v3631_v13 = vadd.f32 %v6659_v3, %v3582_v0  ;;  %v4109_v46 = vadd.f32 %v6659_v3, %v4060_v4 }
 0x34d   : > { %2595 = vmatmul.bf16.gmra.mxu0 %v5685_v7  ;;  %3026 = vmatmul.bf16.gmra.mxu1 %v5709_v9  ;;  %v2725_v30 = vadd.f32 %v6659_v3, %v2675_v14  ;;  %v3154_v20 = vadd.f32 %v6659_v3, %v3105_v18 }
 0x34e   : > { %v3680_v45 = vmax.f32 %v3202_v11, %v3631_v13  ;;  %3504 = vmatmul.bf16.gmra.mxu2 %v5733_v10  ;;  %3982 = vmatmul.bf16.gmra.mxu3 %v5757_v5 }
 0x34f   : > { %v3203_v51 = vmax.f32 %v2725_v30, %v3154_v20 }
 0x350   : > { %v4158_v16 = vmax.f32 %v3680_v45, %v4109_v46  ;;  %v5687_v45 = vld [vmem:[%s7332_s0 + $0x60] sm:$0xff] }
 0x351   : > { %v3465_v28 = vpop.f32.mrf.mxu2  ;;  %v3943_v24 = vpop.f32.mrf.mxu3  ;;  %v5711_v46 = vld [vmem:[%s7332_s0 + $0x124] sm:$0xff] }
 0x352   : > { %v4207_v26 = vmax.f32 %v4158_v16, 0.0  ;;  %v3583_v22 = vmul.f32 %v6650_v2, %v3465_v28  ;;  %v2558_v1 = vpop.f32.mrf.mxu0  ;;  %v2989_v47 = vpop.f32.mrf.mxu1  ;;  %v4061_v17 = vmul.f32 %v6650_v2, %v3943_v24  ;;  %v5735_v24 = vld [vmem:[%s7332_s0 + $0x1e8] sm:$0xff] }
 0x353   : > { %v2676_v49 = vmul.f32 %v6650_v2, %v2558_v1  ;;  %v3106_v50 = vmul.f32 %v6650_v2, %v2989_v47 }
 0x354   : > { %v5779_v48 = vpack.c.bf16 %v4207_v26, %v4206_v63  ;;  %v3632_v52 = vadd.f32 %v6659_v3, %v3583_v22  ;;  %v4110_v55 = vadd.f32 %v6659_v3, %v4061_v17  ;;  %v5759_v26 = vld [vmem:[%s7332_s0 + $0x2ac] sm:$0xff] }
 0x355   : > { %v2726_v21 = vadd.f32 %v6659_v3, %v2676_v49  ;;  %v3155_v23 = vadd.f32 %v6659_v3, %v3106_v50 }
 0x356   : > { %5891 = vst [vmem:[%s7336_s4 + $0x8] sm:$0xff] %v5779_v48   ;;  %v3681_v54 = vmax.f32 %v3203_v51, %v3632_v52 }
 0x357   : > { %v3204_v31 = vmax.f32 %v2726_v21, %v3155_v23 }
 0x358   : > { %v4159_v58 = vmax.f32 %v3681_v54, %v4110_v55 }
 0x359   : > { %v3467_v35 = vpop.f32.mrf.mxu2  ;;  %v3945_v53 = vpop.f32.mrf.mxu3 }
 0x35a   : > { %v3584_v56 = vmul.f32 %v6650_v2, %v3467_v35  ;;  %v4062_v15 = vmul.f32 %v6650_v2, %v3945_v53  ;;  %v2561_v19 = vpop.f32.mrf.mxu0  ;;  %v2992_v37 = vpop.f32.mrf.mxu1  ;;  %v4208_v42 = vmax.f32 %v4159_v58, 0.0 }
 0x35b   : > { %v2677_v40 = vmul.f32 %v6650_v2, %v2561_v19  ;;  %v3107_v57 = vmul.f32 %v6650_v2, %v2992_v37 }
 0x35c   : > { %v3633_v39 = vadd.f32 %v6659_v3, %v3584_v56  ;;  %v4111_v59 = vadd.f32 %v6659_v3, %v4062_v15 }
 0x35d   : > { %2600 = vmatmul.bf16.gmra.mxu0 %v5686_v36  ;;  %3031 = vmatmul.bf16.gmra.mxu1 %v5710_v25  ;;  %v2727_v60 = vadd.f32 %v6659_v3, %v2677_v40  ;;  %v3156_v61 = vadd.f32 %v6659_v3, %v3107_v57  ;;  %v5688_v40 = vld [vmem:[%s7332_s0 + $0x68] sm:$0xff] }
 0x35e   : > { %v3682_v33 = vmax.f32 %v3204_v31, %v3633_v39  ;;  %3509 = vmatmul.bf16.gmra.mxu2 %v5734_v38  ;;  %3987 = vmatmul.bf16.gmra.mxu3 %v5758_v27  ;;  %v5712_v57 = vld [vmem:[%s7332_s0 + $0x12c] sm:$0xff] }
 0x35f   : > { %v3205_v4 = vmax.f32 %v2727_v60, %v3156_v61 }
 0x360   : > { %v4160_v34 = vmax.f32 %v3682_v33, %v4111_v59 }
 0x361   : > { %v3470_v62 = vpop.f32.mrf.mxu2  ;;  %v3948_v41 = vpop.f32.mrf.mxu3 }
 0x362   : > { %v4209_v29 = vmax.f32 %v4160_v34, 0.0  ;;  %v3585_v43 = vmul.f32 %v6650_v2, %v3470_v62  ;;  %v2563_v32 = vpop.f32.mrf.mxu0  ;;  %v2994_v44 = vpop.f32.mrf.mxu1  ;;  %v4063_v8 = vmul.f32 %v6650_v2, %v3948_v41  ;;  %v5736_v62 = vld [vmem:[%s7332_s0 + $0x1f0] sm:$0xff] }
 0x363   : > { %v2678_v9 = vmul.f32 %v6650_v2, %v2563_v32  ;;  %v3108_v0 = vmul.f32 %v6650_v2, %v2994_v44  ;;  %v5760_v41 = vld [vmem:[%s7332_s0 + $0x2b4] sm:$0xff] }
 0x364   : > { %v5784_v7 = vpack.c.bf16 %v4209_v29, %v4208_v42  ;;  %v3634_v6 = vadd.f32 %v6659_v3, %v3585_v43  ;;  %v4112_v13 = vadd.f32 %v6659_v3, %v4063_v8 }
 0x365   : > { %v2728_v10 = vadd.f32 %v6659_v3, %v2678_v9  ;;  %v3157_v5 = vadd.f32 %v6659_v3, %v3108_v0 }
 0x366   : > { %5892 = vst [vmem:[%s7336_s4 + $0x10] sm:$0xff] %v5784_v7   ;;  %v3683_v11 = vmax.f32 %v3205_v4, %v3634_v6 }
 0x367   : > { %v3206_v30 = vmax.f32 %v2728_v10, %v3157_v5 }
 0x368   : > { %v4161_v22 = vmax.f32 %v3683_v11, %v4112_v13 }
 0x369   : > { %v3472_v12 = vpop.f32.mrf.mxu2  ;;  %v3950_v14 = vpop.f32.mrf.mxu3 }
 0x36a   : > { %v3586_v18 = vmul.f32 %v6650_v2, %v3472_v12  ;;  %v4064_v16 = vmul.f32 %v6650_v2, %v3950_v14  ;;  %v2566_v63 = vpop.f32.mrf.mxu0  ;;  %v2997_v28 = vpop.f32.mrf.mxu1  ;;  %v4210_v51 = vmax.f32 %v4161_v22, 0.0 }
 0x36b   : > { %v2679_v1 = vmul.f32 %v6650_v2, %v2566_v63  ;;  %v3109_v49 = vmul.f32 %v6650_v2, %v2997_v28 }
 0x36c   : > { %v3635_v20 = vadd.f32 %v6659_v3, %v3586_v18  ;;  %v4113_v48 = vadd.f32 %v6659_v3, %v4064_v16 }
 0x36d   : > { %2605 = vmatmul.bf16.gmra.mxu0 %v5687_v45  ;;  %3036 = vmatmul.bf16.gmra.mxu1 %v5711_v46  ;;  %v2729_v23 = vadd.f32 %v6659_v3, %v2679_v1  ;;  %v3158_v35 = vadd.f32 %v6659_v3, %v3109_v49 }
 0x36e   : > { %v3684_v47 = vmax.f32 %v3206_v30, %v3635_v20  ;;  %3514 = vmatmul.bf16.gmra.mxu2 %v5735_v24  ;;  %3992 = vmatmul.bf16.gmra.mxu3 %v5759_v26 }
 0x36f   : > { %v3207_v15 = vmax.f32 %v2729_v23, %v3158_v35 }
 0x370   : > { %v4162_v50 = vmax.f32 %v3684_v47, %v4113_v48  ;;  %v5689_v47 = vld [vmem:[%s7332_s0 + $0x70] sm:$0xff] }
 0x371   : > { %v3475_v52 = vpop.f32.mrf.mxu2  ;;  %v3953_v17 = vpop.f32.mrf.mxu3  ;;  %v5713_v48 = vld [vmem:[%s7332_s0 + $0x134] sm:$0xff] }
 0x372   : > { %v4211_v21 = vmax.f32 %v4162_v50, 0.0  ;;  %v3587_v53 = vmul.f32 %v6650_v2, %v3475_v52  ;;  %v2568_v36 = vpop.f32.mrf.mxu0  ;;  %v2999_v25 = vpop.f32.mrf.mxu1  ;;  %v4065_v37 = vmul.f32 %v6650_v2, %v3953_v17  ;;  %v5737_v17 = vld [vmem:[%s7332_s0 + $0x1f8] sm:$0xff] }
 0x373   : > { %v2680_v55 = vmul.f32 %v6650_v2, %v2568_v36  ;;  %v3110_v56 = vmul.f32 %v6650_v2, %v2999_v25 }
 0x374   : > { %v5789_v54 = vpack.c.bf16 %v4211_v21, %v4210_v51  ;;  %v3636_v19 = vadd.f32 %v6659_v3, %v3587_v53  ;;  %v4114_v33 = vadd.f32 %v6659_v3, %v4065_v37  ;;  %v5761_v21 = vld [vmem:[%s7332_s0 + $0x2bc] sm:$0xff] }
 0x375   : > { %v2730_v38 = vadd.f32 %v6659_v3, %v2680_v55  ;;  %v3159_v27 = vadd.f32 %v6659_v3, %v3110_v56 }
 0x376   : > { %5893 = vst [vmem:[%s7336_s4 + $0x18] sm:$0xff] %v5789_v54   ;;  %v3685_v58 = vmax.f32 %v3207_v15, %v3636_v19 }
 0x377   : > { %v3208_v42 = vmax.f32 %v2730_v38, %v3159_v27 }
 0x378   : > { %v4163_v44 = vmax.f32 %v3685_v58, %v4114_v33 }
 0x379   : > { %v3477_v31 = vpop.f32.mrf.mxu2  ;;  %v3955_v39 = vpop.f32.mrf.mxu3 }
 0x37a   : > { %v3588_v59 = vmul.f32 %v6650_v2, %v3477_v31  ;;  %v4066_v34 = vmul.f32 %v6650_v2, %v3955_v39  ;;  %v2571_v60 = vpop.f32.mrf.mxu0  ;;  %v3002_v61 = vpop.f32.mrf.mxu1  ;;  %v4212_v5 = vmax.f32 %v4163_v44, 0.0 }
 0x37b   : > { %v2681_v43 = vmul.f32 %v6650_v2, %v2571_v60  ;;  %v3111_v32 = vmul.f32 %v6650_v2, %v3002_v61 }
 0x37c   : > { %v3637_v29 = vadd.f32 %v6659_v3, %v3588_v59  ;;  %v4115_v9 = vadd.f32 %v6659_v3, %v4066_v34 }
 0x37d   : > { %2610 = vmatmul.bf16.gmra.mxu0 %v5688_v40  ;;  %3041 = vmatmul.bf16.gmra.mxu1 %v5712_v57  ;;  %v2731_v4 = vadd.f32 %v6659_v3, %v2681_v43  ;;  %v3160_v6 = vadd.f32 %v6659_v3, %v3111_v32  ;;  %v5690_v43 = vld [vmem:[%s7332_s0 + $0x78] sm:$0xff] }
 0x37e   : > { %v3686_v7 = vmax.f32 %v3208_v42, %v3637_v29  ;;  %3519 = vmatmul.bf16.gmra.mxu2 %v5736_v62  ;;  %3997 = vmatmul.bf16.gmra.mxu3 %v5760_v41  ;;  %v5714_v32 = vld [vmem:[%s7332_s0 + $0x13c] sm:$0xff] }
 0x37f   : > { %v3209_v16 = vmax.f32 %v2731_v4, %v3160_v6 }
 0x380   : > { %v4164_v0 = vmax.f32 %v3686_v7, %v4115_v9 }
 0x381   : > { %v3480_v8 = vpop.f32.mrf.mxu2  ;;  %v3958_v10 = vpop.f32.mrf.mxu3 }
 0x382   : > { %v4213_v11 = vmax.f32 %v4164_v0, 0.0  ;;  %v3589_v13 = vmul.f32 %v6650_v2, %v3480_v8  ;;  %v2573_v12 = vpop.f32.mrf.mxu0  ;;  %v3004_v14 = vpop.f32.mrf.mxu1  ;;  %v4067_v28 = vmul.f32 %v6650_v2, %v3958_v10  ;;  %v5738_v8 = vld [vmem:[%s7332_s0 + $0x200] sm:$0xff] }
 0x383   : > { %v2682_v46 = vmul.f32 %v6650_v2, %v2573_v12  ;;  %v3112_v18 = vmul.f32 %v6650_v2, %v3004_v14  ;;  %v5762_v10 = vld [vmem:[%s7332_s0 + $0x2c4] sm:$0xff] }
 0x384   : > { %v5794_v45 = vpack.c.bf16 %v4213_v11, %v4212_v5  ;;  %v3638_v63 = vadd.f32 %v6659_v3, %v3589_v13  ;;  %v4116_v20 = vadd.f32 %v6659_v3, %v4067_v28 }
 0x385   : > { %v2732_v24 = vadd.f32 %v6659_v3, %v2682_v46  ;;  %v3161_v26 = vadd.f32 %v6659_v3, %v3112_v18 }
 0x386   : > { %5894 = vst [vmem:[%s7336_s4 + $0x20] sm:$0xff] %v5794_v45   ;;  %v3687_v30 = vmax.f32 %v3209_v16, %v3638_v63 }
 0x387   : > { %v3210_v23 = vmax.f32 %v2732_v24, %v3161_v26 }
 0x388   : > { %v4165_v53 = vmax.f32 %v3687_v30, %v4116_v20 }
 0x389   : > { %v3482_v22 = vpop.f32.mrf.mxu2  ;;  %v3960_v1 = vpop.f32.mrf.mxu3 }
 0x38a   : > { %v3590_v49 = vmul.f32 %v6650_v2, %v3482_v22  ;;  %v4068_v50 = vmul.f32 %v6650_v2, %v3960_v1  ;;  %v2576_v51 = vpop.f32.mrf.mxu0  ;;  %v3007_v52 = vpop.f32.mrf.mxu1  ;;  %v4214_v15 = vmax.f32 %v4165_v53, 0.0 }
 0x38b   : > { %v2683_v36 = vmul.f32 %v6650_v2, %v2576_v51  ;;  %v3113_v55 = vmul.f32 %v6650_v2, %v3007_v52 }
 0x38c   : > { %v3639_v35 = vadd.f32 %v6659_v3, %v3590_v49  ;;  %v4117_v54 = vadd.f32 %v6659_v3, %v4068_v50 }
 0x38d   : > { %2615 = vmatmul.bf16.gmra.mxu0 %v5689_v47  ;;  %3046 = vmatmul.bf16.gmra.mxu1 %v5713_v48  ;;  %v2733_v27 = vadd.f32 %v6659_v3, %v2683_v36  ;;  %v3162_v31 = vadd.f32 %v6659_v3, %v3113_v55 }
 0x38e   : > { %v3688_v25 = vmax.f32 %v3210_v23, %v3639_v35  ;;  %3524 = vmatmul.bf16.gmra.mxu2 %v5737_v17  ;;  %4002 = vmatmul.bf16.gmra.mxu3 %v5761_v21 }
 0x38f   : > { %v3211_v34 = vmax.f32 %v2733_v27, %v3162_v31 }
 0x390   : > { %v4166_v56 = vmax.f32 %v3688_v25, %v4117_v54  ;;  %v5691_v25 = vld [vmem:[%s7332_s0 + $0x80] sm:$0xff] }
 0x391   : > { %v3485_v19 = vpop.f32.mrf.mxu2  ;;  %v3963_v37 = vpop.f32.mrf.mxu3  ;;  %v5715_v54 = vld [vmem:[%s7332_s0 + $0x144] sm:$0xff] }
 0x392   : > { %v4215_v38 = vmax.f32 %v4166_v56, 0.0  ;;  %v3591_v39 = vmul.f32 %v6650_v2, %v3485_v19  ;;  %v2578_v40 = vpop.f32.mrf.mxu0  ;;  %v3009_v57 = vpop.f32.mrf.mxu1  ;;  %v4069_v61 = vmul.f32 %v6650_v2, %v3963_v37  ;;  %v5739_v37 = vld [vmem:[%s7332_s0 + $0x208] sm:$0xff] }
 0x393   : > { %v2684_v33 = vmul.f32 %v6650_v2, %v2578_v40  ;;  %v3114_v59 = vmul.f32 %v6650_v2, %v3009_v57 }
 0x394   : > { %v5799_v58 = vpack.c.bf16 %v4215_v38, %v4214_v15  ;;  %v3640_v60 = vadd.f32 %v6659_v3, %v3591_v39  ;;  %v4118_v7 = vadd.f32 %v6659_v3, %v4069_v61  ;;  %v5763_v38 = vld [vmem:[%s7332_s0 + $0x2cc] sm:$0xff] }
 0x395   : > { %v2734_v62 = vadd.f32 %v6659_v3, %v2684_v33  ;;  %v3163_v41 = vadd.f32 %v6659_v3, %v3114_v59 }
 0x396   : > { %5895 = vst [vmem:[%s7336_s4 + $0x28] sm:$0xff] %v5799_v58   ;;  %v3689_v44 = vmax.f32 %v3211_v34, %v3640_v60 }
 0x397   : > { %v3212_v5 = vmax.f32 %v2734_v62, %v3163_v41 }
 0x398   : > { %v4167_v14 = vmax.f32 %v3689_v44, %v4118_v7 }
 0x399   : > { %v3487_v42 = vpop.f32.mrf.mxu2  ;;  %v3965_v29 = vpop.f32.mrf.mxu3 }
 0x39a   : > { %v3592_v9 = vmul.f32 %v6650_v2, %v3487_v42  ;;  %v4070_v0 = vmul.f32 %v6650_v2, %v3965_v29  ;;  %v2581_v4 = vpop.f32.mrf.mxu0  ;;  %v3012_v6 = vpop.f32.mrf.mxu1  ;;  %v4216_v26 = vmax.f32 %v4167_v14, 0.0 }
 0x39b   : > { %v2685_v13 = vmul.f32 %v6650_v2, %v2581_v4  ;;  %v3115_v12 = vmul.f32 %v6650_v2, %v3012_v6 }
 0x39c   : > { %v3641_v11 = vadd.f32 %v6659_v3, %v3592_v9  ;;  %v4119_v46 = vadd.f32 %v6659_v3, %v4070_v0 }
 0x39d   : > { %2620 = vmatmul.bf16.gmra.mxu0 %v5690_v43  ;;  %3051 = vmatmul.bf16.gmra.mxu1 %v5714_v32  ;;  %v2735_v16 = vadd.f32 %v6659_v3, %v2685_v13  ;;  %v3164_v63 = vadd.f32 %v6659_v3, %v3115_v12  ;;  %v5692_v13 = vld [vmem:[%s7332_s0 + $0x88] sm:$0xff] }
 0x39e   : > { %v3690_v45 = vmax.f32 %v3212_v5, %v3641_v11  ;;  %3529 = vmatmul.bf16.gmra.mxu2 %v5738_v8  ;;  %4007 = vmatmul.bf16.gmra.mxu3 %v5762_v10  ;;  %v5716_v12 = vld [vmem:[%s7332_s0 + $0x14c] sm:$0xff] }
 0x39f   : > { %v3213_v50 = vmax.f32 %v2735_v16, %v3164_v63 }
 0x3a0   : > { %v4168_v18 = vmax.f32 %v3690_v45, %v4119_v46 }
 0x3a1   : > { %v3490_v28 = vpop.f32.mrf.mxu2  ;;  %v3968_v24 = vpop.f32.mrf.mxu3 }
 0x3a2   : > { %v4217_v30 = vmax.f32 %v4168_v18, 0.0  ;;  %v3593_v20 = vmul.f32 %v6650_v2, %v3490_v28  ;;  %v2583_v22 = vpop.f32.mrf.mxu0  ;;  %v3014_v1 = vpop.f32.mrf.mxu1  ;;  %v4071_v52 = vmul.f32 %v6650_v2, %v3968_v24  ;;  %v5740_v28 = vld [vmem:[%s7332_s0 + $0x210] sm:$0xff] }
 0x3a3   : > { %v2686_v48 = vmul.f32 %v6650_v2, %v2583_v22  ;;  %v3116_v49 = vmul.f32 %v6650_v2, %v3014_v1  ;;  %v5764_v24 = vld [vmem:[%s7332_s0 + $0x2d4] sm:$0xff] }
 0x3a4   : > { %v5804_v47 = vpack.c.bf16 %v4217_v30, %v4216_v26  ;;  %v3642_v51 = vadd.f32 %v6659_v3, %v3593_v20  ;;  %v4120_v35 = vadd.f32 %v6659_v3, %v4071_v52 }
 0x3a5   : > { %v2736_v17 = vadd.f32 %v6659_v3, %v2686_v48  ;;  %v3165_v21 = vadd.f32 %v6659_v3, %v3116_v49 }
 0x3a6   : > { %5896 = vst [vmem:[%s7336_s4 + $0x30] sm:$0xff] %v5804_v47   ;;  %v3691_v23 = vmax.f32 %v3213_v50, %v3642_v51 }
 0x3a7   : > { %v3214_v27 = vmax.f32 %v2736_v17, %v3165_v21 }
 0x3a8   : > { %v4169_v39 = vmax.f32 %v3691_v23, %v4120_v35 }
 0x3a9   : > { %v3492_v53 = vpop.f32.mrf.mxu2  ;;  %v3970_v36 = vpop.f32.mrf.mxu3 }
 0x3aa   : > { %v3594_v55 = vmul.f32 %v6650_v2, %v3492_v53  ;;  %v4072_v56 = vmul.f32 %v6650_v2, %v3970_v36  ;;  %v2586_v15 = vpop.f32.mrf.mxu0  ;;  %v3017_v19 = vpop.f32.mrf.mxu1  ;;  %v4218_v34 = vmax.f32 %v4169_v39, 0.0 }
 0x3ab   : > { %v2687_v40 = vmul.f32 %v6650_v2, %v2586_v15  ;;  %v3117_v33 = vmul.f32 %v6650_v2, %v3017_v19 }
 0x3ac   : > { %v3643_v31 = vadd.f32 %v6659_v3, %v3594_v55  ;;  %v4121_v58 = vadd.f32 %v6659_v3, %v4072_v56 }
 0x3ad   : > { %2625 = vmatmul.bf16.gmra.mxu0 %v5691_v25  ;;  %3056 = vmatmul.bf16.gmra.mxu1 %v5715_v54  ;;  %v2737_v41 = vadd.f32 %v6659_v3, %v2687_v40  ;;  %v3166_v42 = vadd.f32 %v6659_v3, %v3117_v33 }
 0x3ae   : > { %v3692_v57 = vmax.f32 %v3214_v27, %v3643_v31  ;;  %3534 = vmatmul.bf16.gmra.mxu2 %v5739_v37  ;;  %4012 = vmatmul.bf16.gmra.mxu3 %v5763_v38 }
 0x3af   : > { %v3215_v0 = vmax.f32 %v2737_v41, %v3166_v42 }
 0x3b0   : > { %v4170_v59 = vmax.f32 %v3692_v57, %v4121_v58  ;;  %v5693_v57 = vld [vmem:[%s7332_s0 + $0x90] sm:$0xff] }
 0x3b1   : > { %v3495_v60 = vpop.f32.mrf.mxu2  ;;  %v3973_v61 = vpop.f32.mrf.mxu3  ;;  %v5717_v58 = vld [vmem:[%s7332_s0 + $0x154] sm:$0xff] }
 0x3b2   : > { %v4219_v62 = vmax.f32 %v4170_v59, 0.0  ;;  %v3595_v29 = vmul.f32 %v6650_v2, %v3495_v60  ;;  %v2588_v43 = vpop.f32.mrf.mxu0  ;;  %v3019_v32 = vpop.f32.mrf.mxu1  ;;  %v4073_v6 = vmul.f32 %v6650_v2, %v3973_v61  ;;  %v5741_v61 = vld [vmem:[%s7332_s0 + $0x218] sm:$0xff] }
 0x3b3   : > { %v2688_v7 = vmul.f32 %v6650_v2, %v2588_v43  ;;  %v3118_v9 = vmul.f32 %v6650_v2, %v3019_v32 }
 0x3b4   : > { %v5809_v44 = vpack.c.bf16 %v4219_v62, %v4218_v34  ;;  %v3644_v4 = vadd.f32 %v6659_v3, %v3595_v29  ;;  %v4122_v45 = vadd.f32 %v6659_v3, %v4073_v6  ;;  %v5765_v62 = vld [vmem:[%s7332_s0 + $0x2dc] sm:$0xff] }
 0x3b5   : > { %v2738_v8 = vadd.f32 %v6659_v3, %v2688_v7  ;;  %v3167_v10 = vadd.f32 %v6659_v3, %v3118_v9 }
 0x3b6   : > { %5897 = vst [vmem:[%s7336_s4 + $0x38] sm:$0xff] %v5809_v44   ;;  %v3693_v14 = vmax.f32 %v3215_v0, %v3644_v4 }
 0x3b7   : > { %v3216_v26 = vmax.f32 %v2738_v8, %v3167_v10 }
 0x3b8   : > { %v4171_v1 = vmax.f32 %v3693_v14, %v4122_v45 }
 0x3b9   : > { %v3497_v5 = vpop.f32.mrf.mxu2  ;;  %v3975_v11 = vpop.f32.mrf.mxu3 }
 0x3ba   : > { %v3596_v46 = vmul.f32 %v6650_v2, %v3497_v5  ;;  %v4074_v18 = vmul.f32 %v6650_v2, %v3975_v11  ;;  %v2591_v16 = vpop.f32.mrf.mxu0  ;;  %v3022_v63 = vpop.f32.mrf.mxu1  ;;  %v4220_v21 = vmax.f32 %v4171_v1, 0.0 }
 0x3bb   : > { %v2689_v20 = vmul.f32 %v6650_v2, %v2591_v16  ;;  %v3119_v22 = vmul.f32 %v6650_v2, %v3022_v63 }
 0x3bc   : > { %v3645_v30 = vadd.f32 %v6659_v3, %v3596_v46  ;;  %v4123_v48 = vadd.f32 %v6659_v3, %v4074_v18 }
 0x3bd   : > { %2630 = vmatmul.bf16.gmra.mxu0 %v5692_v13  ;;  %3061 = vmatmul.bf16.gmra.mxu1 %v5716_v12  ;;  %v2739_v50 = vadd.f32 %v6659_v3, %v2689_v20  ;;  %v3168_v51 = vadd.f32 %v6659_v3, %v3119_v22  ;;  %v5694_v20 = vld [vmem:[%s7332_s0 + $0x98] sm:$0xff] }
 0x3be   : > { %v3694_v47 = vmax.f32 %v3216_v26, %v3645_v30  ;;  %3539 = vmatmul.bf16.gmra.mxu2 %v5740_v28  ;;  %4017 = vmatmul.bf16.gmra.mxu3 %v5764_v24  ;;  %v5718_v22 = vld [vmem:[%s7332_s0 + $0x15c] sm:$0xff] }
 0x3bf   : > { %v3217_v56 = vmax.f32 %v2739_v50, %v3168_v51 }
 0x3c0   : > { %v4172_v49 = vmax.f32 %v3694_v47, %v4123_v48 }
 0x3c1   : > { %v3500_v52 = vpop.f32.mrf.mxu2  ;;  %v3978_v17 = vpop.f32.mrf.mxu3 }
 0x3c2   : > { %v4221_v23 = vmax.f32 %v4172_v49, 0.0  ;;  %v3597_v35 = vmul.f32 %v6650_v2, %v3500_v52  ;;  %v2593_v53 = vpop.f32.mrf.mxu0  ;;  %v3024_v36 = vpop.f32.mrf.mxu1  ;;  %v4075_v19 = vmul.f32 %v6650_v2, %v3978_v17  ;;  %v5742_v52 = vld [vmem:[%s7332_s0 + $0x220] sm:$0xff] }
 0x3c3   : > { %v2690_v54 = vmul.f32 %v6650_v2, %v2593_v53  ;;  %v3120_v55 = vmul.f32 %v6650_v2, %v3024_v36  ;;  %v5766_v17 = vld [vmem:[%s7332_s0 + $0x2e4] sm:$0xff] }
 0x3c4   : > { %v5814_v25 = vpack.c.bf16 %v4221_v23, %v4220_v21  ;;  %v3646_v15 = vadd.f32 %v6659_v3, %v3597_v35  ;;  %v4124_v31 = vadd.f32 %v6659_v3, %v4075_v19 }
 0x3c5   : > { %v2740_v37 = vadd.f32 %v6659_v3, %v2690_v54  ;;  %v3169_v38 = vadd.f32 %v6659_v3, %v3120_v55 }
 0x3c6   : > { %5898 = vst [vmem:[%s7336_s4 + $0x40] sm:$0xff] %v5814_v25   ;;  %v3695_v27 = vmax.f32 %v3217_v56, %v3646_v15 }
 0x3c7   : > { %v3218_v41 = vmax.f32 %v2740_v37, %v3169_v38 }
 0x3c8   : > { %v4173_v29 = vmax.f32 %v3695_v27, %v4124_v31 }
 0x3c9   : > { %v3502_v39 = vpop.f32.mrf.mxu2  ;;  %v3980_v40 = vpop.f32.mrf.mxu3 }
 0x3ca   : > { %v3598_v33 = vmul.f32 %v6650_v2, %v3502_v39  ;;  %v4076_v59 = vmul.f32 %v6650_v2, %v3980_v40  ;;  %v2596_v34 = vpop.f32.mrf.mxu0  ;;  %v3027_v60 = vpop.f32.mrf.mxu1  ;;  %v4222_v0 = vmax.f32 %v4173_v29, 0.0 }
 0x3cb   : > { %v2691_v43 = vmul.f32 %v6650_v2, %v2596_v34  ;;  %v3121_v7 = vmul.f32 %v6650_v2, %v3027_v60 }
 0x3cc   : > { %v3647_v42 = vadd.f32 %v6659_v3, %v3598_v33  ;;  %v4125_v44 = vadd.f32 %v6659_v3, %v4076_v59 }
 0x3cd   : > { %2635 = vmatmul.bf16.gmra.mxu0 %v5693_v57  ;;  %3066 = vmatmul.bf16.gmra.mxu1 %v5717_v58  ;;  %v2741_v10 = vadd.f32 %v6659_v3, %v2691_v43  ;;  %v3170_v5 = vadd.f32 %v6659_v3, %v3121_v7 }
 0x3ce   : > { %v3696_v32 = vmax.f32 %v3218_v41, %v3647_v42  ;;  %3544 = vmatmul.bf16.gmra.mxu2 %v5741_v61  ;;  %4022 = vmatmul.bf16.gmra.mxu3 %v5765_v62 }
 0x3cf   : > { %v3219_v18 = vmax.f32 %v2741_v10, %v3170_v5 }
 0x3d0   : > { %v4174_v9 = vmax.f32 %v3696_v32, %v4125_v44  ;;  %v5695_v32 = vld [vmem:[%s7332_s0 + $0xa0] sm:$0xff] }
 0x3d1   : > { %v3505_v4 = vpop.f32.mrf.mxu2  ;;  %v3983_v6 = vpop.f32.mrf.mxu3  ;;  %v5719_v44 = vld [vmem:[%s7332_s0 + $0x164] sm:$0xff] }
 0x3d2   : > { %v4223_v8 = vmax.f32 %v4174_v9, 0.0  ;;  %v3599_v11 = vmul.f32 %v6650_v2, %v3505_v4  ;;  %v2598_v13 = vpop.f32.mrf.mxu0  ;;  %v3029_v12 = vpop.f32.mrf.mxu1  ;;  %v4077_v63 = vmul.f32 %v6650_v2, %v3983_v6  ;;  %v5743_v6 = vld [vmem:[%s7332_s0 + $0x228] sm:$0xff] }
 0x3d3   : > { %v2692_v45 = vmul.f32 %v6650_v2, %v2598_v13  ;;  %v3122_v46 = vmul.f32 %v6650_v2, %v3029_v12 }
 0x3d4   : > { %v5819_v14 = vpack.c.bf16 %v4223_v8, %v4222_v0  ;;  %v3648_v16 = vadd.f32 %v6659_v3, %v3599_v11  ;;  %v4126_v47 = vadd.f32 %v6659_v3, %v4077_v63  ;;  %v5767_v8 = vld [vmem:[%s7332_s0 + $0x2ec] sm:$0xff] }
 0x3d5   : > { %v2742_v28 = vadd.f32 %v6659_v3, %v2692_v45  ;;  %v3171_v24 = vadd.f32 %v6659_v3, %v3122_v46 }
 0x3d6   : > { %5899 = vst [vmem:[%s7336_s4 + $0x48] sm:$0xff] %v5819_v14   ;;  %v3697_v1 = vmax.f32 %v3219_v18, %v3648_v16 }
 0x3d7   : > { %v3220_v21 = vmax.f32 %v2742_v28, %v3171_v24 }
 0x3d8   : > { %v4175_v36 = vmax.f32 %v3697_v1, %v4126_v47 }
 0x3d9   : > { %v3507_v26 = vpop.f32.mrf.mxu2  ;;  %v3985_v30 = vpop.f32.mrf.mxu3 }
 0x3da   : > { %v3600_v48 = vmul.f32 %v6650_v2, %v3507_v26  ;;  %v4078_v49 = vmul.f32 %v6650_v2, %v3985_v30  ;;  %v2601_v50 = vpop.f32.mrf.mxu0  ;;  %v3032_v51 = vpop.f32.mrf.mxu1  ;;  %v4224_v38 = vmax.f32 %v4175_v36, 0.0  ;;  %v7033_v30 = vld [vmem:[#allocation4] ss:$0 sm:$0xff] }
 0x3db   : > { %v2693_v35 = vmul.f32 %v6650_v2, %v2601_v50  ;;  %v3123_v53 = vmul.f32 %v6650_v2, %v3032_v51  ;;  %v7041_v50 = vld [vmem:[#allocation4 + $0x1] ss:$0 sm:$0xff] }
 0x3dc   : > { %v3649_v23 = vadd.f32 %v6659_v3, %v3600_v48  ;;  %v4127_v54 = vadd.f32 %v6659_v3, %v4078_v49 }
 0x3dd   : > { %2640 = vmatmul.bf16.gmra.mxu0 %v5694_v20  ;;  %3071 = vmatmul.bf16.gmra.mxu1 %v5718_v22  ;;  %v2743_v56 = vadd.f32 %v6659_v3, %v2693_v35  ;;  %v3172_v15 = vadd.f32 %v6659_v3, %v3123_v53  ;;  %v5696_v35 = vld [vmem:[%s7332_s0 + $0xa8] sm:$0xff] }
 0x3de   : > { %v3698_v25 = vmax.f32 %v3220_v21, %v3649_v23  ;;  %3549 = vmatmul.bf16.gmra.mxu2 %v5742_v52  ;;  %4027 = vmatmul.bf16.gmra.mxu3 %v5766_v17  ;;  %v5720_v53 = vld [vmem:[%s7332_s0 + $0x16c] sm:$0xff] }
 0x3df   : > { %v3221_v59 = vmax.f32 %v2743_v56, %v3172_v15 }
 0x3e0   : > { %v4176_v55 = vmax.f32 %v3698_v25, %v4127_v54 }
 0x3e1   : > { %v3510_v19 = vpop.f32.mrf.mxu2  ;;  %v3988_v37 = vpop.f32.mrf.mxu3 }
 0x3e2   : > { %v4225_v27 = vmax.f32 %v4176_v55, 0.0  ;;  %v3601_v31 = vmul.f32 %v6650_v2, %v3510_v19  ;;  %v2603_v39 = vpop.f32.mrf.mxu0  ;;  %v3034_v40 = vpop.f32.mrf.mxu1  ;;  %v4079_v60 = vmul.f32 %v6650_v2, %v3988_v37  ;;  %v5744_v19 = vld [vmem:[%s7332_s0 + $0x230] sm:$0xff] }
 0x3e3   : > { %v2694_v58 = vmul.f32 %v6650_v2, %v2603_v39  ;;  %v3124_v33 = vmul.f32 %v6650_v2, %v3034_v40  ;;  %v5768_v37 = vld [vmem:[%s7332_s0 + $0x2f4] sm:$0xff] }
 0x3e4   : > { %v5824_v57 = vpack.c.bf16 %v4225_v27, %v4224_v38  ;;  %v3650_v34 = vadd.f32 %v6659_v3, %v3601_v31  ;;  %v4128_v42 = vadd.f32 %v6659_v3, %v4079_v60 }
 0x3e5   : > { %v2744_v61 = vadd.f32 %v6659_v3, %v2694_v58  ;;  %v3173_v62 = vadd.f32 %v6659_v3, %v3124_v33 }
 0x3e6   : > { %5900 = vst [vmem:[%s7336_s4 + $0x50] sm:$0xff] %v5824_v57   ;;  %v3699_v41 = vmax.f32 %v3221_v59, %v3650_v34 }
 0x3e7   : > { %v3222_v10 = vmax.f32 %v2744_v61, %v3173_v62 }
 0x3e8   : > { %v4177_v11 = vmax.f32 %v3699_v41, %v4128_v42 }
 0x3e9   : > { %v3512_v29 = vpop.f32.mrf.mxu2  ;;  %v3990_v43 = vpop.f32.mrf.mxu3 }
 0x3ea   : > { %v3602_v7 = vmul.f32 %v6650_v2, %v3512_v29  ;;  %v4080_v9 = vmul.f32 %v6650_v2, %v3990_v43  ;;  %v2606_v0 = vpop.f32.mrf.mxu0  ;;  %v3037_v4 = vpop.f32.mrf.mxu1  ;;  %v4226_v18 = vmax.f32 %v4177_v11, 0.0 }
 0x3eb   : > { %v2695_v13 = vmul.f32 %v6650_v2, %v2606_v0  ;;  %v3125_v45 = vmul.f32 %v6650_v2, %v3037_v4 }
 0x3ec   : > { %v3651_v5 = vadd.f32 %v6659_v3, %v3602_v7  ;;  %v4129_v14 = vadd.f32 %v6659_v3, %v4080_v9 }
 0x3ed   : > { %2645 = vmatmul.bf16.gmra.mxu0 %v5695_v32  ;;  %3076 = vmatmul.bf16.gmra.mxu1 %v5719_v44  ;;  %v2745_v24 = vadd.f32 %v6659_v3, %v2695_v13  ;;  %v3174_v26 = vadd.f32 %v6659_v3, %v3125_v45 }
 0x3ee   : > { %v3700_v12 = vmax.f32 %v3222_v10, %v3651_v5  ;;  %3554 = vmatmul.bf16.gmra.mxu2 %v5743_v6  ;;  %4032 = vmatmul.bf16.gmra.mxu3 %v5767_v8 }
 0x3ef   : > { %v3223_v49 = vmax.f32 %v2745_v24, %v3174_v26 }
 0x3f0   : > { %v4178_v46 = vmax.f32 %v3700_v12, %v4129_v14  ;;  %v5697_v12 = vld [vmem:[%s7332_s0 + $0xb0] sm:$0xff] }
 0x3f1   : > { %v3515_v16 = vpop.f32.mrf.mxu2  ;;  %v3993_v63 = vpop.f32.mrf.mxu3  ;;  %v5721_v14 = vld [vmem:[%s7332_s0 + $0x174] sm:$0xff] }
 0x3f2   : > { %v4227_v28 = vmax.f32 %v4178_v46, 0.0  ;;  %v3603_v20 = vmul.f32 %v7033_v30, %v3515_v16  ;;  %v2608_v22 = vpop.f32.mrf.mxu0  ;;  %v3039_v1 = vpop.f32.mrf.mxu1  ;;  %v4081_v51 = vmul.f32 %v7033_v30, %v3993_v63  ;;  %v5745_v63 = vld [vmem:[%s7332_s0 + $0x238] sm:$0xff] }
 0x3f3   : > { %v2696_v2 = vmul.f32 %v7033_v30, %v2608_v22  ;;  %v3126_v48 = vmul.f32 %v7033_v30, %v3039_v1 }
 0x3f4   : > { %v5829_v47 = vpack.c.bf16 %v4227_v28, %v4226_v18  ;;  %v3652_v3 = vadd.f32 %v7041_v50, %v3603_v20  ;;  %v4130_v25 = vadd.f32 %v7041_v50, %v4081_v51  ;;  %v5769_v28 = vld [vmem:[%s7332_s0 + $0x2fc] sm:$0xff] }
 0x3f5   : > { %v2746_v52 = vadd.f32 %v7041_v50, %v2696_v2  ;;  %v3175_v17 = vadd.f32 %v7041_v50, %v3126_v48 }
 0x3f6   : > { %5901 = vst [vmem:[%s7336_s4 + $0x58] sm:$0xff] %v5829_v47   ;;  %v3701_v36 = vmax.f32 %v3223_v49, %v3652_v3 }
 0x3f7   : > { %v3224_v38 = vmax.f32 %v2746_v52, %v3175_v17 }
 0x3f8   : > { %v4179_v40 = vmax.f32 %v3701_v36, %v4130_v25 }
 0x3f9   : > { %v3517_v21 = vpop.f32.mrf.mxu2  ;;  %v3995_v23 = vpop.f32.mrf.mxu3 }
 0x3fa   : > { %v3604_v54 = vmul.f32 %v7033_v30, %v3517_v21  ;;  %v4082_v55 = vmul.f32 %v7033_v30, %v3995_v23  ;;  %v2611_v56 = vpop.f32.mrf.mxu0  ;;  %v3042_v15 = vpop.f32.mrf.mxu1  ;;  %v4228_v62 = vmax.f32 %v4179_v40, 0.0 }
 0x3fb   : > { %v2697_v31 = vmul.f32 %v7033_v30, %v2611_v56  ;;  %v3127_v39 = vmul.f32 %v7033_v30, %v3042_v15 }
 0x3fc   : > { %v3653_v27 = vadd.f32 %v7041_v50, %v3604_v54  ;;  %v4131_v58 = vadd.f32 %v7041_v50, %v4082_v55 }
 0x3fd   : > { %2650 = vmatmul.bf16.gmra.mxu0 %v5696_v35  ;;  %3081 = vmatmul.bf16.gmra.mxu1 %v5720_v53  ;;  %v2747_v59 = vadd.f32 %v7041_v50, %v2697_v31  ;;  %v3176_v34 = vadd.f32 %v7041_v50, %v3127_v39  ;;  %v5698_v31 = vld [vmem:[%s7332_s0 + $0xb8] sm:$0xff] }
 0x3fe   : > { %v3702_v57 = vmax.f32 %v3224_v38, %v3653_v27  ;;  %3559 = vmatmul.bf16.gmra.mxu2 %v5744_v19  ;;  %4037 = vmatmul.bf16.gmra.mxu3 %v5768_v37  ;;  %v5722_v39 = vld [vmem:[%s7332_s0 + $0x17c] sm:$0xff] }
 0x3ff   : > { %v3225_v9 = vmax.f32 %v2747_v59, %v3176_v34 }
 0x400   : > { %v4180_v33 = vmax.f32 %v3702_v57, %v4131_v58 }
 0x401   : > { %v3520_v60 = vpop.f32.mrf.mxu2  ;;  %v3998_v61 = vpop.f32.mrf.mxu3 }
 0x402   : > { %v4229_v41 = vmax.f32 %v4180_v33, 0.0  ;;  %v3605_v42 = vmul.f32 %v7033_v30, %v3520_v60  ;;  %v2613_v29 = vpop.f32.mrf.mxu0  ;;  %v3044_v43 = vpop.f32.mrf.mxu1  ;;  %v4083_v4 = vmul.f32 %v7033_v30, %v3998_v61  ;;  %v5746_v60 = vld [vmem:[%s7332_s0 + $0x240] sm:$0xff] }
 0x403   : > { %v2698_v44 = vmul.f32 %v7033_v30, %v2613_v29  ;;  %v3128_v7 = vmul.f32 %v7033_v30, %v3044_v43  ;;  %v5770_v61 = vld [vmem:[%s7332_s0 + $0x304] sm:$0xff] }
 0x404   : > { %v5834_v32 = vpack.c.bf16 %v4229_v41, %v4228_v62  ;;  %v3654_v0 = vadd.f32 %v7041_v50, %v3605_v42  ;;  %v4132_v5 = vadd.f32 %v7041_v50, %v4083_v4 }
 0x405   : > { %v2748_v6 = vadd.f32 %v7041_v50, %v2698_v44  ;;  %v3177_v8 = vadd.f32 %v7041_v50, %v3128_v7 }
 0x406   : > { %5902 = vst [vmem:[%s7336_s4 + $0x60] sm:$0xff] %v5834_v32   ;;  %v3703_v10 = vmax.f32 %v3225_v9, %v3654_v0 }
 0x407   : > { %v3226_v24 = vmax.f32 %v2748_v6, %v3177_v8  ;;  %v2340_v8 = vld [vmem:[%s7332_s0 + $0xc0] sm:$0xf] }
 0x408   : > { %v4181_v20 = vmax.f32 %v3703_v10, %v4132_v5 }
 0x409   : > { %v3522_v11 = vpop.f32.mrf.mxu2  ;;  %v4000_v13 = vpop.f32.mrf.mxu3 }
 0x40a   : > { %v3606_v45 = vmul.f32 %v7033_v30, %v3522_v11  ;;  %v4084_v46 = vmul.f32 %v7033_v30, %v4000_v13  ;;  %v2616_v18 = vpop.f32.mrf.mxu0  ;;  %v3047_v16 = vpop.f32.mrf.mxu1  ;;  %v4230_v49 = vmax.f32 %v4181_v20, 0.0 }
 0x40b   : > { %v2699_v22 = vmul.f32 %v7033_v30, %v2616_v18  ;;  %v3129_v2 = vmul.f32 %v7033_v30, %v3047_v16 }
 0x40c   : > { %v3655_v26 = vadd.f32 %v7041_v50, %v3606_v45  ;;  %v4133_v47 = vadd.f32 %v7041_v50, %v4084_v46  ;;  %v5315_v45 = vld [vmem:[%s7332_s0 + $0x248] sm:$0xf]  ;;  %v5460_v46 = vld [vmem:[%s7332_s0 + $0x30c] sm:$0xf] }
 0x40d   : > { %2655 = vmatmul.bf16.gmra.mxu0 %v5697_v12  ;;  %3086 = vmatmul.bf16.gmra.mxu1 %v5721_v14  ;;  %v2749_v17 = vadd.f32 %v7041_v50, %v2699_v22  ;;  %v3178_v21 = vadd.f32 %v7041_v50, %v3129_v2  ;;  %v5170_v14 = vld [vmem:[%s7332_s0 + $0x184] sm:$0xf] }
 0x40e   : > { %v3704_v1 = vmax.f32 %v3226_v24, %v3655_v26  ;;  %3564 = vmatmul.bf16.gmra.mxu2 %v5745_v63  ;;  %4042 = vmatmul.bf16.gmra.mxu3 %v5769_v28  ;;  %v2438_v28 = vunpack.c.l.b16 %v2340_v8  ;;  %v2917_v22 = vunpack.c.l.b16 %v5170_v14 }
 0x40f   : > { %v3227_v55 = vmax.f32 %v2749_v17, %v3178_v21 }
 0x410   : > { %v4182_v48 = vmax.f32 %v3704_v1, %v4133_v47  ;;  %v3395_v1 = vunpack.c.l.b16 %v5315_v45  ;;  %v3873_v47 = vunpack.c.l.b16 %v5460_v46  ;;  %v2463_v17 = vpack.c.b16 %v2438_v28, %v2438_v28 }
 0x411   : > { %v3525_v3 = vpop.f32.mrf.mxu2  ;;  %v4003_v51 = vpop.f32.mrf.mxu3  ;;  %v2942_v21 = vpack.c.b16 %v2917_v22, %v2917_v22 }
 0x412   : > { %v4231_v52 = vmax.f32 %v4182_v48, 0.0  ;;  %v3607_v23 = vmul.f32 %v7033_v30, %v3525_v3  ;;  %v2618_v35 = vpop.f32.mrf.mxu0  ;;  %v3049_v53 = vpop.f32.mrf.mxu1  ;;  %v4085_v15 = vmul.f32 %v7033_v30, %v4003_v51 }
 0x413   : > { %v2700_v25 = vmul.f32 %v7033_v30, %v2618_v35  ;;  %v3130_v54 = vmul.f32 %v7033_v30, %v3049_v53 }
 0x414   : > { %v5839_v36 = vpack.c.bf16 %v4231_v52, %v4230_v49  ;;  %v3656_v56 = vadd.f32 %v7041_v50, %v3607_v23  ;;  %v4134_v57 = vadd.f32 %v7041_v50, %v4085_v15 }
 0x415   : > { %v2750_v19 = vadd.f32 %v7041_v50, %v2700_v25  ;;  %v3179_v37 = vadd.f32 %v7041_v50, %v3130_v54  ;;  %v3420_v25 = vpack.c.b16 %v3395_v1, %v3395_v1  ;;  %v3898_v54 = vpack.c.b16 %v3873_v47, %v3873_v47 }
 0x416   : > { %5903 = vst [vmem:[%s7336_s4 + $0x68] sm:$0xff] %v5839_v36   ;;  %v3705_v40 = vmax.f32 %v3227_v55, %v3656_v56 }
 0x417   : > { %v3228_v62 = vmax.f32 %v2750_v19, %v3179_v37 }
 0x418   : > { %v4183_v43 = vmax.f32 %v3705_v40, %v4134_v57 }
 0x419   : > { %v3527_v38 = vpop.f32.mrf.mxu2  ;;  %v4005_v27 = vpop.f32.mrf.mxu3 }
 0x41a   : > { %v3608_v58 = vmul.f32 %v7033_v30, %v3527_v38  ;;  %v4086_v33 = vmul.f32 %v7033_v30, %v4005_v27  ;;  %v2621_v59 = vpop.f32.mrf.mxu0  ;;  %v3052_v34 = vpop.f32.mrf.mxu1  ;;  %v4232_v10 = vmax.f32 %v4183_v43, 0.0 }
 0x41b   : > { %v2701_v42 = vmul.f32 %v7033_v30, %v2621_v59  ;;  %v3131_v29 = vmul.f32 %v7033_v30, %v3052_v34 }
 0x41c   : > { %v3657_v41 = vadd.f32 %v7041_v50, %v3608_v58  ;;  %v4135_v44 = vadd.f32 %v7041_v50, %v4086_v33 }
 0x41d   : > { %2660 = vmatmul.bf16.gmra.mxu0 %v5698_v31  ;;  %3091 = vmatmul.bf16.gmra.mxu1 %v5722_v39  ;;  %v2751_v9 = vadd.f32 %v7041_v50, %v2701_v42  ;;  %v3180_v0 = vadd.f32 %v7041_v50, %v3131_v29 }
 0x41e   : > { %v3706_v32 = vmax.f32 %v3228_v62, %v3657_v41  ;;  %3569 = vmatmul.bf16.gmra.mxu2 %v5746_v60  ;;  %4047 = vmatmul.bf16.gmra.mxu3 %v5770_v61 }
 0x41f   : > { %v3229_v24 = vmax.f32 %v2751_v9, %v3180_v0 }
 0x420   : > { %v4184_v7 = vmax.f32 %v3706_v32, %v4135_v44 }
 0x421   : > { %v3530_v4 = vpop.f32.mrf.mxu2  ;;  %v4008_v6 = vpop.f32.mrf.mxu3 }
 0x422   : > { %v4233_v5 = vmax.f32 %v4184_v7, 0.0  ;;  %v3609_v11 = vmul.f32 %v7033_v30, %v3530_v4  ;;  %v2623_v13 = vpop.f32.mrf.mxu0  ;;  %v3054_v12 = vpop.f32.mrf.mxu1  ;;  %v4087_v20 = vmul.f32 %v7033_v30, %v4008_v6 }
 0x423   : > { %v2702_v16 = vmul.f32 %v7033_v30, %v2623_v13  ;;  %v3132_v63 = vmul.f32 %v7033_v30, %v3054_v12 }
 0x424   : > { %v5844_v18 = vpack.c.bf16 %v4233_v5, %v4232_v10  ;;  %v3658_v26 = vadd.f32 %v7041_v50, %v3609_v11  ;;  %v4136_v3 = vadd.f32 %v7041_v50, %v4087_v20 }
 0x425   : > { %v2752_v2 = vadd.f32 %v7041_v50, %v2702_v16  ;;  %v3181_v48 = vadd.f32 %v7041_v50, %v3132_v63 }
 0x426   : > { %5904 = vst [vmem:[%s7336_s4 + $0x70] sm:$0xff] %v5844_v18   ;;  %v3707_v49 = vmax.f32 %v3229_v24, %v3658_v26 }
 0x427   : > { %v3230_v55 = vmax.f32 %v2752_v2, %v3181_v48 }
 0x428   : > { %v4185_v15 = vmax.f32 %v3707_v49, %v4136_v3 }
 0x429   : > { %v3532_v51 = vpop.f32.mrf.mxu2  ;;  %v4010_v52 = vpop.f32.mrf.mxu3 }
 0x42a   : > { %v3610_v23 = vmul.f32 %v7033_v30, %v3532_v51  ;;  %v4088_v35 = vmul.f32 %v7033_v30, %v4010_v52  ;;  %v2626_v53 = vpop.f32.mrf.mxu0  ;;  %v3057_v36 = vpop.f32.mrf.mxu1  ;;  %v4234_v39 = vmax.f32 %v4185_v15, 0.0 }
 0x42b   : > { %v2703_v19 = vmul.f32 %v7033_v30, %v2626_v53  ;;  %v3133_v27 = vmul.f32 %v7033_v30, %v3057_v36 }
 0x42c   : > { %v3659_v56 = vadd.f32 %v7041_v50, %v3610_v23  ;;  %v4137_v38 = vadd.f32 %v7041_v50, %v4088_v35 }
 0x42d   : > { %2665 = vmatmul.bf16.gmra.mxu0 %v2463_v17  ;;  %3096 = vmatmul.bf16.gmra.mxu1 %v2942_v21  ;;  %v2753_v33 = vadd.f32 %v7041_v50, %v2703_v19  ;;  %v3182_v59 = vadd.f32 %v7041_v50, %v3133_v27 }
 0x42e   : > { %v3708_v37 = vmax.f32 %v3230_v55, %v3659_v56  ;;  %3574 = vmatmul.bf16.gmra.mxu2 %v3420_v25  ;;  %4052 = vmatmul.bf16.gmra.mxu3 %v3898_v54 }
 0x42f   : > { %v3231_v29 = vmax.f32 %v2753_v33, %v3182_v59 }
 0x430   : > { %v4186_v31 = vmax.f32 %v3708_v37, %v4137_v38 }
 0x431   : > { %v3535_v40 = vpop.f32.mrf.mxu2  ;;  %v4013_v57 = vpop.f32.mrf.mxu3 }
 0x432   : > { %v4235_v58 = vmax.f32 %v4186_v31, 0.0  ;;  %v3611_v34 = vmul.f32 %v7033_v30, %v3535_v40  ;;  %v2628_v60 = vpop.f32.mrf.mxu0  ;;  %v3059_v61 = vpop.f32.mrf.mxu1  ;;  %v4089_v32 = vmul.f32 %v7033_v30, %v4013_v57 }
 0x433   : > { %v2704_v41 = vmul.f32 %v7033_v30, %v2628_v60  ;;  %v3134_v42 = vmul.f32 %v7033_v30, %v3059_v61 }
 0x434   : > { %v5849_v62 = vpack.c.bf16 %v4235_v58, %v4234_v39  ;;  %v3660_v43 = vadd.f32 %v7041_v50, %v3611_v34  ;;  %v4138_v6 = vadd.f32 %v7041_v50, %v4089_v32 }
 0x435   : > { %v2754_v44 = vadd.f32 %v7041_v50, %v2704_v41  ;;  %v3183_v7 = vadd.f32 %v7041_v50, %v3134_v42 }
 0x436   : > { %5905 = vst [vmem:[%s7336_s4 + $0x78] sm:$0xff] %v5849_v62   ;;  %v3709_v4 = vmax.f32 %v3231_v29, %v3660_v43 }
 0x437   : > { %v3232_v13 = vmax.f32 %v2754_v44, %v3183_v7 }
 0x438   : > { %v4187_v46 = vmax.f32 %v3709_v4, %v4138_v6 }
 0x439   : > { %v3537_v9 = vpop.f32.mrf.mxu2  ;;  %v4015_v0 = vpop.f32.mrf.mxu3 }
 0x43a   : > { %v3612_v8 = vmul.f32 %v7033_v30, %v3537_v9  ;;  %v4090_v10 = vmul.f32 %v7033_v30, %v4015_v0  ;;  %v2631_v5 = vpop.f32.mrf.mxu0  ;;  %v3062_v11 = vpop.f32.mrf.mxu1  ;;  %v4236_v22 = vmax.f32 %v4187_v46, 0.0 }
 0x43b   : > { %v2705_v14 = vmul.f32 %v7033_v30, %v2631_v5  ;;  %v3135_v45 = vmul.f32 %v7033_v30, %v3062_v11 }
 0x43c   : > { %v3661_v12 = vadd.f32 %v7041_v50, %v3612_v8  ;;  %v4139_v16 = vadd.f32 %v7041_v50, %v4090_v10 }
 0x43d   : > { %v2755_v28 = vadd.f32 %v7041_v50, %v2705_v14  ;;  %v3184_v24 = vadd.f32 %v7041_v50, %v3135_v45 }
 0x43e   : > { %v3710_v18 = vmax.f32 %v3232_v13, %v3661_v12 }
 0x43f   : > { %v3233_v52 = vmax.f32 %v2755_v28, %v3184_v24 }
 0x440   : > { %v4188_v63 = vmax.f32 %v3710_v18, %v4139_v16 }
 0x441   : > { %v3540_v26 = vpop.f32.mrf.mxu2  ;;  %v4018_v20 = vpop.f32.mrf.mxu3 }
 0x442   : > { %v4237_v1 = vmax.f32 %v4188_v63, 0.0  ;;  %v3613_v47 = vmul.f32 %v7033_v30, %v3540_v26  ;;  %v2633_v2 = vpop.f32.mrf.mxu0  ;;  %v3064_v48 = vpop.f32.mrf.mxu1  ;;  %v4091_v21 = vmul.f32 %v7033_v30, %v4018_v20 }
 0x443   : > { %v2706_v3 = vmul.f32 %v7033_v30, %v2633_v2  ;;  %v3136_v51 = vmul.f32 %v7033_v30, %v3064_v48 }
 0x444   : > { %v5854_v49 = vpack.c.bf16 %v4237_v1, %v4236_v22  ;;  %v3662_v17 = vadd.f32 %v7041_v50, %v3613_v47  ;;  %v4140_v36 = vadd.f32 %v7041_v50, %v4091_v21 }
 0x445   : > { %v2756_v23 = vadd.f32 %v7041_v50, %v2706_v3  ;;  %v3185_v35 = vadd.f32 %v7041_v50, %v3136_v51 }
 0x446   : > { %5906 = vst [vmem:[%s7336_s4 + $0x80] sm:$0xff] %v5854_v49   ;;  %v3711_v53 = vmax.f32 %v3233_v52, %v3662_v17 }
 0x447   : > { %v3234_v37 = vmax.f32 %v2756_v23, %v3185_v35 }
 0x448   : > { %v4189_v27 = vmax.f32 %v3711_v53, %v4140_v36 }
 0x449   : > { %v3542_v25 = vpop.f32.mrf.mxu2  ;;  %v4020_v54 = vpop.f32.mrf.mxu3 }
 0x44a   : > { %v3614_v55 = vmul.f32 %v7033_v30, %v3542_v25  ;;  %v4092_v56 = vmul.f32 %v7033_v30, %v4020_v54  ;;  %v2636_v15 = vpop.f32.mrf.mxu0  ;;  %v3067_v19 = vpop.f32.mrf.mxu1  ;;  %v4238_v33 = vmax.f32 %v4189_v27, 0.0 }
 0x44b   : > { %v2707_v40 = vmul.f32 %v7033_v30, %v2636_v15  ;;  %v3137_v57 = vmul.f32 %v7033_v30, %v3067_v19 }
 0x44c   : > { %v3663_v38 = vadd.f32 %v7041_v50, %v3614_v55  ;;  %v4141_v39 = vadd.f32 %v7041_v50, %v4092_v56 }
 0x44d   : > { %v2757_v61 = vadd.f32 %v7041_v50, %v2707_v40  ;;  %v3186_v62 = vadd.f32 %v7041_v50, %v3137_v57 }
 0x44e   : > { %v3712_v31 = vmax.f32 %v3234_v37, %v3663_v38 }
 0x44f   : > { %v3235_v7 = vmax.f32 %v2757_v61, %v3186_v62 }
 0x450   : > { %v4190_v58 = vmax.f32 %v3712_v31, %v4141_v39 }
 0x451   : > { %v3545_v59 = vpop.f32.mrf.mxu2  ;;  %v4023_v34 = vpop.f32.mrf.mxu3 }
 0x452   : > { %v4239_v60 = vmax.f32 %v4190_v58, 0.0  ;;  %v3615_v41 = vmul.f32 %v7033_v30, %v3545_v59  ;;  %v2638_v42 = vpop.f32.mrf.mxu0  ;;  %v3069_v29 = vpop.f32.mrf.mxu1  ;;  %v4093_v0 = vmul.f32 %v7033_v30, %v4023_v34 }
 0x453   : > { %v2708_v32 = vmul.f32 %v7033_v30, %v2638_v42  ;;  %v3138_v44 = vmul.f32 %v7033_v30, %v3069_v29 }
 0x454   : > { %v5859_v43 = vpack.c.bf16 %v4239_v60, %v4238_v33  ;;  %v3664_v9 = vadd.f32 %v7041_v50, %v3615_v41  ;;  %v4142_v11 = vadd.f32 %v7041_v50, %v4093_v0 }
 0x455   : > { %v2758_v4 = vadd.f32 %v7041_v50, %v2708_v32  ;;  %v3187_v6 = vadd.f32 %v7041_v50, %v3138_v44 }
 0x456   : > { %5907 = vst [vmem:[%s7336_s4 + $0x88] sm:$0xff] %v5859_v43   ;;  %v3713_v5 = vmax.f32 %v3235_v7, %v3664_v9 }
 0x457   : > { %v3236_v46 = vmax.f32 %v2758_v4, %v3187_v6 }
 0x458   : > { %v4191_v28 = vmax.f32 %v3713_v5, %v4142_v11 }
 0x459   : > { %v3547_v8 = vpop.f32.mrf.mxu2  ;;  %v4025_v10 = vpop.f32.mrf.mxu3 }
 0x45a   : > { %v3616_v13 = vmul.f32 %v7033_v30, %v3547_v8  ;;  %v4094_v12 = vmul.f32 %v7033_v30, %v4025_v10  ;;  %v2641_v14 = vpop.f32.mrf.mxu0  ;;  %v3072_v45 = vpop.f32.mrf.mxu1  ;;  %v4240_v48 = vmax.f32 %v4191_v28, 0.0 }
 0x45b   : > { %v2709_v16 = vmul.f32 %v7033_v30, %v2641_v14  ;;  %v3139_v63 = vmul.f32 %v7033_v30, %v3072_v45 }
 0x45c   : > { %v3665_v18 = vadd.f32 %v7041_v50, %v3616_v13  ;;  %v4143_v26 = vadd.f32 %v7041_v50, %v4094_v12 }
 0x45d   : > { %v2759_v22 = vadd.f32 %v7041_v50, %v2709_v16  ;;  %v3188_v1 = vadd.f32 %v7041_v50, %v3139_v63 }
 0x45e   : > { %v3714_v24 = vmax.f32 %v3236_v46, %v3665_v18 }
 0x45f   : > { %v3237_v35 = vmax.f32 %v2759_v22, %v3188_v1 }
 0x460   : > { %v4192_v20 = vmax.f32 %v3714_v24, %v4143_v26 }
 0x461   : > { %v3550_v47 = vpop.f32.mrf.mxu2  ;;  %v4028_v2 = vpop.f32.mrf.mxu3 }
 0x462   : > { %v4241_v49 = vmax.f32 %v4192_v20, 0.0  ;;  %v3617_v3 = vmul.f32 %v7033_v30, %v3550_v47  ;;  %v2643_v51 = vpop.f32.mrf.mxu0  ;;  %v3074_v52 = vpop.f32.mrf.mxu1  ;;  %v4095_v36 = vmul.f32 %v7033_v30, %v4028_v2 }
 0x463   : > { %v2710_v21 = vmul.f32 %v7033_v30, %v2643_v51  ;;  %v3140_v23 = vmul.f32 %v7033_v30, %v3074_v52 }
 0x464   : > { %v5864_v17 = vpack.c.bf16 %v4241_v49, %v4240_v48  ;;  %v3666_v53 = vadd.f32 %v7041_v50, %v3617_v3  ;;  %v4144_v56 = vadd.f32 %v7041_v50, %v4095_v36 }
 0x465   : > { %v2760_v25 = vadd.f32 %v7041_v50, %v2710_v21  ;;  %v3189_v54 = vadd.f32 %v7041_v50, %v3140_v23 }
 0x466   : > { %5908 = vst [vmem:[%s7336_s4 + $0x90] sm:$0xff] %v5864_v17   ;;  %v3715_v55 = vmax.f32 %v3237_v35, %v3666_v53 }
 0x467   : > { %v3238_v39 = vmax.f32 %v2760_v25, %v3189_v54 }
 0x468   : > { %v4193_v57 = vmax.f32 %v3715_v55, %v4144_v56 }
 0x469   : > { %v3552_v15 = vpop.f32.mrf.mxu2  ;;  %v4030_v19 = vpop.f32.mrf.mxu3 }
 0x46a   : > { %v3618_v37 = vmul.f32 %v7033_v30, %v3552_v15  ;;  %v4096_v38 = vmul.f32 %v7033_v30, %v4030_v19  ;;  %v2646_v27 = vpop.f32.mrf.mxu0  ;;  %v3077_v31 = vpop.f32.mrf.mxu1  ;;  %v4242_v61 = vmax.f32 %v4193_v57, 0.0 }
 0x46b   : > { %v2711_v59 = vmul.f32 %v7033_v30, %v2646_v27  ;;  %v3141_v34 = vmul.f32 %v7033_v30, %v3077_v31 }
 0x46c   : > { %v3667_v40 = vadd.f32 %v7041_v50, %v3618_v37  ;;  %v4145_v33 = vadd.f32 %v7041_v50, %v4096_v38 }
 0x46d   : > { %v2761_v29 = vadd.f32 %v7041_v50, %v2711_v59  ;;  %v3190_v43 = vadd.f32 %v7041_v50, %v3141_v34 }
 0x46e   : > { %v3716_v58 = vmax.f32 %v3238_v39, %v3667_v40 }
 0x46f   : > { %v3239_v6 = vmax.f32 %v2761_v29, %v3190_v43 }
 0x470   : > { %v4194_v60 = vmax.f32 %v3716_v58, %v4145_v33 }
 0x471   : > { %v3555_v62 = vpop.f32.mrf.mxu2  ;;  %v4033_v41 = vpop.f32.mrf.mxu3 }
 0x472   : > { %v4243_v42 = vmax.f32 %v4194_v60, 0.0  ;;  %v3619_v32 = vmul.f32 %v7033_v30, %v3555_v62  ;;  %v2648_v44 = vpop.f32.mrf.mxu0  ;;  %v3079_v7 = vpop.f32.mrf.mxu1  ;;  %v4097_v10 = vmul.f32 %v7033_v30, %v4033_v41 }
 0x473   : > { %v2712_v0 = vmul.f32 %v7033_v30, %v2648_v44  ;;  %v3142_v4 = vmul.f32 %v7033_v30, %v3079_v7 }
 0x474   : > { %v5869_v9 = vpack.c.bf16 %v4243_v42, %v4242_v61  ;;  %v3668_v8 = vadd.f32 %v7041_v50, %v3619_v32  ;;  %v4146_v45 = vadd.f32 %v7041_v50, %v4097_v10 }
 0x475   : > { %v2762_v5 = vadd.f32 %v7041_v50, %v2712_v0  ;;  %v3191_v11 = vadd.f32 %v7041_v50, %v3142_v4 }
 0x476   : > { %5909 = vst [vmem:[%s7336_s4 + $0x98] sm:$0xff] %v5869_v9   ;;  %v3717_v14 = vmax.f32 %v3239_v6, %v3668_v8 }
 0x477   : > { %v3240_v28 = vmax.f32 %v2762_v5, %v3191_v11 }
 0x478   : > { %v4195_v22 = vmax.f32 %v3717_v14, %v4146_v45 }
 0x479   : > { %v3557_v13 = vpop.f32.mrf.mxu2  ;;  %v4035_v12 = vpop.f32.mrf.mxu3 }
 0x47a   : > { %v3620_v46 = vmul.f32 %v7033_v30, %v3557_v13  ;;  %v4098_v18 = vmul.f32 %v7033_v30, %v4035_v12  ;;  %v2651_v16 = vpop.f32.mrf.mxu0  ;;  %v3082_v63 = vpop.f32.mrf.mxu1  ;;  %v4244_v52 = vmax.f32 %v4195_v22, 0.0 }
 0x47b   : > { %v2713_v26 = vmul.f32 %v7033_v30, %v2651_v16  ;;  %v3143_v20 = vmul.f32 %v7033_v30, %v3082_v63 }
 0x47c   : > { %v3669_v24 = vadd.f32 %v7041_v50, %v3620_v46  ;;  %v4147_v47 = vadd.f32 %v7041_v50, %v4098_v18 }
 0x47d   : > { %v2763_v48 = vadd.f32 %v7041_v50, %v2713_v26  ;;  %v3192_v49 = vadd.f32 %v7041_v50, %v3143_v20 }
 0x47e   : > { %v3718_v1 = vmax.f32 %v3240_v28, %v3669_v24 }
 0x47f   : > { %v3241_v54 = vmax.f32 %v2763_v48, %v3192_v49 }
 0x480   : > { %v4196_v2 = vmax.f32 %v3718_v1, %v4147_v47 }
 0x481   : > { %v3560_v3 = vpop.f32.mrf.mxu2  ;;  %v4038_v51 = vpop.f32.mrf.mxu3 }
 0x482   : > { %v4245_v17 = vmax.f32 %v4196_v2, 0.0  ;;  %v3621_v21 = vmul.f32 %v7033_v30, %v3560_v3  ;;  %v2653_v23 = vpop.f32.mrf.mxu0  ;;  %v3084_v35 = vpop.f32.mrf.mxu1  ;;  %v4099_v56 = vmul.f32 %v7033_v30, %v4038_v51 }
 0x483   : > { %v2714_v36 = vmul.f32 %v7033_v30, %v2653_v23  ;;  %v3144_v25 = vmul.f32 %v7033_v30, %v3084_v35 }
 0x484   : > { %v5874_v53 = vpack.c.bf16 %v4245_v17, %v4244_v52  ;;  %v3670_v55 = vadd.f32 %v7041_v50, %v3621_v21  ;;  %v4148_v38 = vadd.f32 %v7041_v50, %v4099_v56 }
 0x485   : > { %v2764_v15 = vadd.f32 %v7041_v50, %v2714_v36  ;;  %v3193_v19 = vadd.f32 %v7041_v50, %v3144_v25 }
 0x486   : > { %5910 = vst [vmem:[%s7336_s4 + $0xa0] sm:$0xff] %v5874_v53   ;;  %v3719_v37 = vmax.f32 %v3241_v54, %v3670_v55 }
 0x487   : > { %v3242_v33 = vmax.f32 %v2764_v15, %v3193_v19 }
 0x488   : > { %v4197_v34 = vmax.f32 %v3719_v37, %v4148_v38 }
 0x489   : > { %v3562_v27 = vpop.f32.mrf.mxu2  ;;  %v4040_v31 = vpop.f32.mrf.mxu3 }
 0x48a   : > { %v3622_v39 = vmul.f32 %v7033_v30, %v3562_v27  ;;  %v4100_v40 = vmul.f32 %v7033_v30, %v4040_v31  ;;  %v2656_v57 = vpop.f32.mrf.mxu0  ;;  %v3087_v58 = vpop.f32.mrf.mxu1  ;;  %v4246_v29 = vmax.f32 %v4197_v34, 0.0 }
 0x48b   : > { %v2715_v62 = vmul.f32 %v7033_v30, %v2656_v57  ;;  %v3145_v41 = vmul.f32 %v7033_v30, %v3087_v58 }
 0x48c   : > { %v3671_v59 = vadd.f32 %v7041_v50, %v3622_v39  ;;  %v4149_v61 = vadd.f32 %v7041_v50, %v4100_v40 }
 0x48d   : > { %v2765_v7 = vadd.f32 %v7041_v50, %v2715_v62  ;;  %v3194_v9 = vadd.f32 %v7041_v50, %v3145_v41 }
 0x48e   : > { %v3720_v60 = vmax.f32 %v3242_v33, %v3671_v59 }
 0x48f   : > { %v3243_v11 = vmax.f32 %v2765_v7, %v3194_v9 }
 0x490   : > { %v4198_v42 = vmax.f32 %v3720_v60, %v4149_v61 }
 0x491   : > { %v3565_v43 = vpop.f32.mrf.mxu2  ;;  %v4043_v32 = vpop.f32.mrf.mxu3 }
 0x492   : > { %v4247_v44 = vmax.f32 %v4198_v42, 0.0  ;;  %v3623_v0 = vmul.f32 %v7033_v30, %v3565_v43  ;;  %v2658_v4 = vpop.f32.mrf.mxu0  ;;  %v3089_v6 = vpop.f32.mrf.mxu1  ;;  %v4101_v12 = vmul.f32 %v7033_v30, %v4043_v32 }
 0x493   : > { %v2716_v10 = vmul.f32 %v7033_v30, %v2658_v4  ;;  %v3146_v5 = vmul.f32 %v7033_v30, %v3089_v6 }
 0x494   : > { %v5879_v8 = vpack.c.bf16 %v4247_v44, %v4246_v29  ;;  %v3672_v13 = vadd.f32 %v7041_v50, %v3623_v0  ;;  %v4150_v63 = vadd.f32 %v7041_v50, %v4101_v12 }
 0x495   : > { %v2766_v14 = vadd.f32 %v7041_v50, %v2716_v10  ;;  %v3195_v45 = vadd.f32 %v7041_v50, %v3146_v5 }
 0x496   : > { %5911 = vst [vmem:[%s7336_s4 + $0xa8] sm:$0xff] %v5879_v8   ;;  %v3721_v16 = vmax.f32 %v3243_v11, %v3672_v13 }
 0x497   : > { %v3244_v22 = vmax.f32 %v2766_v14, %v3195_v45 }
 0x498   : > { %v4199_v48 = vmax.f32 %v3721_v16, %v4150_v63 }
 0x499   : > { %v3567_v46 = vpop.f32.mrf.mxu2  ;;  %v4045_v18 = vpop.f32.mrf.mxu3 }
 0x49a   : > { %v3624_v28 = vmul.f32 %v7033_v30, %v3567_v46  ;;  %v4102_v24 = vmul.f32 %v7033_v30, %v4045_v18  ;;  %v2661_v26 = vpop.f32.mrf.mxu0  ;;  %v3092_v20 = vpop.f32.mrf.mxu1  ;;  %v4248_v35 = vmax.f32 %v4199_v48, 0.0 }
 0x49b   : > { %v2717_v47 = vmul.f32 %v7033_v30, %v2661_v26  ;;  %v3147_v2 = vmul.f32 %v7033_v30, %v3092_v20 }
 0x49c   : > { %v3673_v1 = vadd.f32 %v7041_v50, %v3624_v28  ;;  %v4151_v3 = vadd.f32 %v7041_v50, %v4102_v24 }
 0x49d   : > { %v2767_v52 = vadd.f32 %v7041_v50, %v2717_v47  ;;  %v3196_v17 = vadd.f32 %v7041_v50, %v3147_v2 }
 0x49e   : > { %v3722_v49 = vmax.f32 %v3244_v22, %v3673_v1 }
 0x49f   : > { %v3245_v19 = vmax.f32 %v2767_v52, %v3196_v17 }
 0x4a0   : > { %v4200_v51 = vmax.f32 %v3722_v49, %v4151_v3 }
 0x4a1   : > { %v3570_v21 = vpop.f32.mrf.mxu2  ;;  %v4048_v23 = vpop.f32.mrf.mxu3 }
 0x4a2   : > { %v4249_v53 = vmax.f32 %v4200_v51, 0.0  ;;  %v3625_v36 = vmul.f32 %v7033_v30, %v3570_v21  ;;  %v2663_v25 = vpop.f32.mrf.mxu0  ;;  %v3094_v54 = vpop.f32.mrf.mxu1  ;;  %v4103_v38 = vmul.f32 %v7033_v30, %v4048_v23 }
 0x4a3   : > { %v2718_v56 = vmul.f32 %v7033_v30, %v2663_v25  ;;  %v3148_v15 = vmul.f32 %v7033_v30, %v3094_v54 }
 0x4a4   : > { %v5884_v55 = vpack.c.bf16 %v4249_v53, %v4248_v35  ;;  %v3674_v37 = vadd.f32 %v7041_v50, %v3625_v36  ;;  %v4152_v40 = vadd.f32 %v7041_v50, %v4103_v38 }
 0x4a5   : > { %v2768_v27 = vadd.f32 %v7041_v50, %v2718_v56  ;;  %v3197_v31 = vadd.f32 %v7041_v50, %v3148_v15 }
 0x4a6   : > { %5912 = vst [vmem:[%s7336_s4 + $0xb0] sm:$0xff] %v5884_v55   ;;  %v3723_v39 = vmax.f32 %v3245_v19, %v3674_v37 }
 0x4a7   : > { %v3246_v41 = vmax.f32 %v2768_v27, %v3197_v31 }
 0x4a8   : > { %v4201_v29 = vmax.f32 %v3723_v39, %v4152_v40 }
 0x4a9   : > { %v3572_v57 = vpop.f32.mrf.mxu2  ;;  %v4050_v58 = vpop.f32.mrf.mxu3 }
 0x4aa   : > { %v3626_v33 = vmul.f32 %v7033_v30, %v3572_v57  ;;  %v4104_v59 = vmul.f32 %v7033_v30, %v4050_v58  ;;  %v2666_v34 = vpop.f32.mrf.mxu0  ;;  %v3097_v60 = vpop.f32.mrf.mxu1  ;;  %v4250_v0 = vmax.f32 %v4201_v29, 0.0 }
 0x4ab   : > { %v2719_v61 = vmul.f32 %v7033_v30, %v2666_v34  ;;  %v3149_v62 = vmul.f32 %v7033_v30, %v3097_v60 }
 0x4ac   : > { %v3675_v42 = vadd.f32 %v7041_v50, %v3626_v33  ;;  %v4153_v32 = vadd.f32 %v7041_v50, %v4104_v59 }
 0x4ad   : > { %v2769_v44 = vadd.f32 %v7041_v50, %v2719_v61  ;;  %v3198_v7 = vadd.f32 %v7041_v50, %v3149_v62 }
 0x4ae   : > { %v3724_v43 = vmax.f32 %v3246_v41, %v3675_v42 }
 0x4af   : > { %v3247_v10 = vmax.f32 %v2769_v44, %v3198_v7 }
 0x4b0   : > { %v4202_v9 = vmax.f32 %v3724_v43, %v4153_v32 }
 0x4b1   : > { %v3575_v4 = vpop.f32.mrf.mxu2  ;;  %v4053_v6 = vpop.f32.mrf.mxu3 }
 0x4b2   : > { %v4251_v8 = vmax.f32 %v4202_v9, 0.0  ;;  %v3627_v5 = vmul.f32 %v7033_v30, %v3575_v4  ;;  %v4105_v11 = vmul.f32 %v7033_v30, %v4053_v6  ;;  %v2668_v13 = vpop.f32.mrf.mxu0  ;;  %v3099_v12 = vpop.f32.mrf.mxu1 }
 0x4b4   : > { %v5889_v14 = vpack.c.bf16 %v4251_v8, %v4250_v0  ;;  %v3676_v45 = vadd.f32 %v7041_v50, %v3627_v5  ;;  %v4154_v46 = vadd.f32 %v7041_v50, %v4105_v11 }
 0x4b6   : > { %5913 = vst [vmem:[%s7336_s4 + $0xb8] sm:$0xff] %v5889_v14   ;;  %v3725_v18 = vmax.f32 %v3247_v10, %v3676_v45 }
 0x4b8   : > { %v4203_v16 = vmax.f32 %v3725_v18, %v4154_v46 }
 0x4b9   : > { %v3577_v63 = vpop.f32.mrf.mxu2  ;;  %v4055_v28 = vpop.f32.mrf.mxu3 }
 0x4ba   : > { %v4252_v24 = vmax.f32 %v4203_v16, 0.0 }
 0x4bc   : > { %v4301_v26 = vpack.c.bf16 %v4252_v24, %v4252_v24 }
 0x4be   : > { %4350 = vst [vmem:[%s7336_s4 + $0xc0] sm:$0xf] %v4301_v26 }
 0x4bf PF: > { %s14_s17 = sadd.s32 1, %s5967_s17   ;;  %s7357_s15 = smov %s5963_s16 }
 0x4c0   : > { %p11_p8 = scmp.ge.s32.totalorder %s14_s17, 4   ;;  %s7358_s16 = smov %s7360_s18 }
 0x4c2   :  { %13 = sbr.rel (!%p11_p8) target bundleno = 2 (0x2), region = 88 }

// kernel: cnn_forward.4
= control target key start
LH: loop header
LB: loop body
LE: loop exit
PB: predicated region body
PF: predicated region fallthrough
CT: control target
= control target key end

     0   :  { %s5417_s15 = smov 0   ;;  %s5419_s16 = smov 0   ;;  %s8122_s0 = inlined_call_operand.vmem [shape: bf16[4,98,512], index: 0, kind: input, shape index: {}]   ;;  %s8123_s1 = inlined_call_operand.vmem [shape: bf16[512,128], index: 1, kind: input, shape index: {}]   ;;  %s8124_s2 = inlined_call_operand.vmem [shape: f32[1,128], index: 2, kind: input, shape index: {}]   ;;  %s8125_s3 = inlined_call_operand.vmem [shape: f32[1,128], index: 3, kind: input, shape index: {}]   ;;  %s8126_s4 = inlined_call_operand.vmem [shape: bf16[98,128], index: 4, kind: output, shape index: {}]  }
   0x1   :  { %s5421_s17 = smov 0  }
   0x2 LB: > { %s26_s18 = sadd.s32 1, %s5385_s16  ;;  %p3854_p0 = scmp.ge.s32.totalorder %s5389_s17, 1  ;;  %s5389_s17 = sphi %s5421_s17, %s14_s17   ;;  %s5385_s16 = sphi %s5419_s16, %s8266_s16   ;;  %s5381_s15 = sphi %s5417_s15, %s8265_s15  }
   0x3   : > { %p28_p1 = scmp.ge.s32.totalorder %s26_s18, 2  ;;  %p178_p2 = scmp.lt.s32.totalorder %s5389_s17, 3 }
   0x5   : > { %s8268_s18 = smov (%p28_p1, %s26_s18), 0  ;;  %p179_p3 = pnand %p3854_p0, %p178_p2 }
   0x7   : > { %182 = sbr.rel (%p179_p3) target bundleno = 1374 (0x55e), region = 36 }
   0xc   : > { %v5440_v0 = vld [vmem:[%s8123_s1] sm:$0xf]  ;;  %v5450_v2 = vld [vmem:[%s8123_s1] sm:$0xf0]  ;;  %v5460_v4 = vld [vmem:[%s8123_s1 + $0x8] sm:$0xf] }
   0xd   : > { %8127 = vst [vmem:[#allocation5_spill] sm:$0xff] %v5440_v0  ;;  %v5445_v1 = vld [vmem:[%s8123_s1] sm:$0xf]  ;;  %v5455_v3 = vld [vmem:[%s8123_s1] sm:$0xf0]  ;;  %p285_p4 = scmp.eq.s32.totalorder %s5381_s15, 0 }
   0xe   : > { %8128 = vst [vmem:[#allocation6_spill] sm:$0xff] %v5450_v2  ;;  %v5465_v5 = vld [vmem:[%s8123_s1 + $0x8] sm:$0xf]  ;;  %v5470_v6 = vld [vmem:[%s8123_s1 + $0x8] sm:$0xf0] }
   0xf   : > { %8129 = vst [vmem:[#allocation7_spill] sm:$0xff] %v5460_v4  ;;  %v5475_v7 = vld [vmem:[%s8123_s1 + $0x8] sm:$0xf0]  ;;  %v5480_v8 = vld [vmem:[%s8123_s1 + $0x10] sm:$0xf] }
  0x10   : > { %8130 = vst [vmem:[#allocation8_spill] sm:$0xff] %v5470_v6  ;;  %v5485_v9 = vld [vmem:[%s8123_s1 + $0x10] sm:$0xf]  ;;  %v5490_v10 = vld [vmem:[%s8123_s1 + $0x10] sm:$0xf0] }
  0x11   : > { %8131 = vst [vmem:[#allocation9_spill] sm:$0xff] %v5480_v8  ;;  %v5495_v11 = vld [vmem:[%s8123_s1 + $0x10] sm:$0xf0]  ;;  %v5500_v12 = vld [vmem:[%s8123_s1 + $0x18] sm:$0xf] }
  0x12   : > { %8132 = vst [vmem:[#allocation10_spill] sm:$0xff] %v5490_v10  ;;  %v5505_v13 = vld [vmem:[%s8123_s1 + $0x18] sm:$0xf]  ;;  %v5510_v14 = vld [vmem:[%s8123_s1 + $0x18] sm:$0xf0] }
  0x13   : > { %8133 = vst [vmem:[#allocation11_spill] sm:$0xff] %v5500_v12  ;;  %v5515_v15 = vld [vmem:[%s8123_s1 + $0x18] sm:$0xf0]  ;;  %v5520_v16 = vld [vmem:[%s8123_s1 + $0x20] sm:$0xf] }
  0x14   : > { %8134 = vst [vmem:[#allocation12_spill] sm:$0xff] %v5510_v14  ;;  %v5525_v17 = vld [vmem:[%s8123_s1 + $0x20] sm:$0xf]  ;;  %v5530_v18 = vld [vmem:[%s8123_s1 + $0x20] sm:$0xf0] }
  0x15   : > { %8135 = vst [vmem:[#allocation13_spill] sm:$0xff] %v5520_v16  ;;  %v5535_v19 = vld [vmem:[%s8123_s1 + $0x20] sm:$0xf0]  ;;  %v5540_v20 = vld [vmem:[%s8123_s1 + $0x28] sm:$0xf] }
  0x16   : > { %8136 = vst [vmem:[#allocation14_spill] sm:$0xff] %v5530_v18  ;;  %v5545_v21 = vld [vmem:[%s8123_s1 + $0x28] sm:$0xf]  ;;  %v5550_v22 = vld [vmem:[%s8123_s1 + $0x28] sm:$0xf0] }
  0x17   : > { %8137 = vst [vmem:[#allocation15_spill] sm:$0xff] %v5540_v20  ;;  %v5555_v23 = vld [vmem:[%s8123_s1 + $0x28] sm:$0xf0]  ;;  %v5560_v24 = vld [vmem:[%s8123_s1 + $0x30] sm:$0xf] }
  0x18   : > { %8138 = vst [vmem:[#allocation16_spill] sm:$0xff] %v5550_v22  ;;  %v5565_v25 = vld [vmem:[%s8123_s1 + $0x30] sm:$0xf]  ;;  %v5570_v26 = vld [vmem:[%s8123_s1 + $0x30] sm:$0xf0] }
  0x19   : > { %8139 = vst [vmem:[#allocation17_spill] sm:$0xff] %v5560_v24  ;;  %v5575_v27 = vld [vmem:[%s8123_s1 + $0x30] sm:$0xf0]  ;;  %v5580_v28 = vld [vmem:[%s8123_s1 + $0x38] sm:$0xf] }
  0x1a   : > { %8140 = vst [vmem:[#allocation18_spill] sm:$0xff] %v5570_v26  ;;  %v5585_v29 = vld [vmem:[%s8123_s1 + $0x38] sm:$0xf]  ;;  %v5590_v30 = vld [vmem:[%s8123_s1 + $0x38] sm:$0xf0] }
  0x1b   : > { %8141 = vst [vmem:[#allocation19_spill] sm:$0xff] %v5580_v28  ;;  %v5595_v31 = vld [vmem:[%s8123_s1 + $0x38] sm:$0xf0]  ;;  %v5600_v32 = vld [vmem:[%s8123_s1 + $0x40] sm:$0xf] }
  0x1c   : > { %8142 = vst [vmem:[#allocation20_spill] sm:$0xff] %v5590_v30  ;;  %v5605_v33 = vld [vmem:[%s8123_s1 + $0x40] sm:$0xf]  ;;  %v5610_v34 = vld [vmem:[%s8123_s1 + $0x40] sm:$0xf0] }
  0x1d   : > { %8143 = vst [vmem:[#allocation21_spill] sm:$0xff] %v5600_v32  ;;  %v5615_v35 = vld [vmem:[%s8123_s1 + $0x40] sm:$0xf0]  ;;  %v5620_v36 = vld [vmem:[%s8123_s1 + $0x48] sm:$0xf] }
  0x1e   : > { %8144 = vst [vmem:[#allocation22_spill] sm:$0xff] %v5610_v34  ;;  %v5625_v37 = vld [vmem:[%s8123_s1 + $0x48] sm:$0xf]  ;;  %v5630_v38 = vld [vmem:[%s8123_s1 + $0x48] sm:$0xf0] }
  0x1f   : > { %8145 = vst [vmem:[#allocation23_spill] sm:$0xff] %v5615_v35  ;;  %v5635_v39 = vld [vmem:[%s8123_s1 + $0x48] sm:$0xf0]  ;;  %v5640_v40 = vld [vmem:[%s8123_s1 + $0x50] sm:$0xf] }
  0x20   : > { %8146 = vst [vmem:[#allocation24_spill] sm:$0xff] %v5620_v36  ;;  %v5645_v41 = vld [vmem:[%s8123_s1 + $0x50] sm:$0xf]  ;;  %v5650_v42 = vld [vmem:[%s8123_s1 + $0x50] sm:$0xf0] }
  0x21   : > { %8147 = vst [vmem:[#allocation25_spill] sm:$0xff] %v5630_v38  ;;  %v5655_v43 = vld [vmem:[%s8123_s1 + $0x50] sm:$0xf0]  ;;  %v5660_v44 = vld [vmem:[%s8123_s1 + $0x58] sm:$0xf] }
  0x22   : > { %8148 = vst [vmem:[#allocation26_spill] sm:$0xff] %v5640_v40  ;;  %v5665_v45 = vld [vmem:[%s8123_s1 + $0x58] sm:$0xf]  ;;  %v5670_v46 = vld [vmem:[%s8123_s1 + $0x58] sm:$0xf0] }
  0x23   : > { %8149 = vst [vmem:[#allocation27_spill] sm:$0xff] %v5650_v42  ;;  %v5675_v47 = vld [vmem:[%s8123_s1 + $0x58] sm:$0xf0]  ;;  %v5680_v48 = vld [vmem:[%s8123_s1 + $0x60] sm:$0xf] }
  0x24   : > { %8150 = vst [vmem:[#allocation28_spill] sm:$0xff] %v5660_v44  ;;  %v5685_v49 = vld [vmem:[%s8123_s1 + $0x60] sm:$0xf]  ;;  %v5690_v50 = vld [vmem:[%s8123_s1 + $0x60] sm:$0xf0] }
  0x25   : > { %8151 = vst [vmem:[#allocation29_spill] sm:$0xff] %v5670_v46  ;;  %v5695_v51 = vld [vmem:[%s8123_s1 + $0x60] sm:$0xf0]  ;;  %v5700_v52 = vld [vmem:[%s8123_s1 + $0x68] sm:$0xf] }
  0x26   : > { %8152 = vst [vmem:[#allocation30_spill] sm:$0xff] %v5680_v48  ;;  %v5705_v53 = vld [vmem:[%s8123_s1 + $0x68] sm:$0xf]  ;;  %v5710_v54 = vld [vmem:[%s8123_s1 + $0x68] sm:$0xf0] }
  0x27   : > { %8153 = vst [vmem:[#allocation31_spill] sm:$0xff] %v5690_v50  ;;  %v5715_v55 = vld [vmem:[%s8123_s1 + $0x68] sm:$0xf0]  ;;  %v5720_v56 = vld [vmem:[%s8123_s1 + $0x70] sm:$0xf] }
  0x28   : > { %8154 = vst [vmem:[#allocation32_spill] sm:$0xff] %v5700_v52  ;;  %v5725_v57 = vld [vmem:[%s8123_s1 + $0x70] sm:$0xf]  ;;  %v5730_v58 = vld [vmem:[%s8123_s1 + $0x70] sm:$0xf0] }
  0x29   : > { %8155 = vst [vmem:[#allocation33_spill] sm:$0xff] %v5710_v54  ;;  %v5735_v59 = vld [vmem:[%s8123_s1 + $0x70] sm:$0xf0]  ;;  %v5740_v60 = vld [vmem:[%s8123_s1 + $0x78] sm:$0xf] }
  0x2a   : > { %8156 = vst [vmem:[#allocation34_spill] sm:$0xff] %v5720_v56  ;;  %v5745_v61 = vld [vmem:[%s8123_s1 + $0x78] sm:$0xf]  ;;  %v5750_v62 = vld [vmem:[%s8123_s1 + $0x78] sm:$0xf0] }
  0x2b   : > { %8157 = vst [vmem:[#allocation35_spill] sm:$0xff] %v5730_v58  ;;  %v5755_v63 = vld [vmem:[%s8123_s1 + $0x78] sm:$0xf0]  ;;  %v5760_v34 = vld [vmem:[%s8123_s1 + $0x80] sm:$0xf] }
  0x2c   : > { %8158 = vst [vmem:[#allocation36_spill] sm:$0xff] %v5740_v60  ;;  %v5765_v32 = vld [vmem:[%s8123_s1 + $0x80] sm:$0xf]  ;;  %v5770_v2 = vld [vmem:[%s8123_s1 + $0x80] sm:$0xf0] }
  0x2d   : > { %8159 = vst [vmem:[#allocation37_spill] sm:$0xff] %v5750_v62  ;;  %v5775_v0 = vld [vmem:[%s8123_s1 + $0x80] sm:$0xf0]  ;;  %v5780_v38 = vld [vmem:[%s8123_s1 + $0x88] sm:$0xf] }
  0x2e   : > { %8160 = vst [vmem:[#allocation38_spill] sm:$0xff] %v5760_v34  ;;  %v5785_v34 = vld [vmem:[%s8123_s1 + $0x88] sm:$0xf]  ;;  %v5790_v36 = vld [vmem:[%s8123_s1 + $0x88] sm:$0xf0] }
  0x2f   : > { %8161 = vst [vmem:[#allocation39_spill] sm:$0xff] %v5765_v32  ;;  %v5800_v6 = vld [vmem:[%s8123_s1 + $0x90] sm:$0xf]  ;;  %v5810_v4 = vld [vmem:[%s8123_s1 + $0x90] sm:$0xf0] }
  0x30   : > { %8162 = vst [vmem:[#allocation40_spill] sm:$0xff] %v5770_v2  ;;  %v5795_v2 = vld [vmem:[%s8123_s1 + $0x88] sm:$0xf0]  ;;  %v5820_v42 = vld [vmem:[%s8123_s1 + $0x98] sm:$0xf] }
  0x31   : > { %8163 = vst [vmem:[#allocation41_spill] sm:$0xff] %v5775_v0  ;;  %v5830_v40 = vld [vmem:[%s8123_s1 + $0x98] sm:$0xf0]  ;;  %v5840_v10 = vld [vmem:[%s8123_s1 + $0xa0] sm:$0xf]  ;;  %v5391_v0 = vmov (%p285_p4), 0.0  }
  0x32   : > { %8164 = vst [vmem:[#allocation42_spill] sm:$0xff] %v5780_v38  ;;  %v5805_v38 = vld [vmem:[%s8123_s1 + $0x90] sm:$0xf]  ;;  %v5845_v8 = vld [vmem:[%s8123_s1 + $0xa0] sm:$0xf] }
  0x33   : > { %8165 = vst [vmem:[#allocation43_spill] sm:$0xff] %v5790_v36  ;;  %v5815_v36 = vld [vmem:[%s8123_s1 + $0x90] sm:$0xf0]  ;;  %v5860_v46 = vld [vmem:[%s8123_s1 + $0xa8] sm:$0xf] }
  0x34   : > { %8166 = vst [vmem:[#allocation44_spill] sm:$0xff] %v5800_v6  ;;  %v5825_v6 = vld [vmem:[%s8123_s1 + $0x98] sm:$0xf]  ;;  %v5865_v44 = vld [vmem:[%s8123_s1 + $0xa8] sm:$0xf] }
  0x35   : > { %8167 = vst [vmem:[#allocation45_spill] sm:$0xff] %v5810_v4  ;;  %v5835_v4 = vld [vmem:[%s8123_s1 + $0x98] sm:$0xf0]  ;;  %v5870_v14 = vld [vmem:[%s8123_s1 + $0xa8] sm:$0xf0] }
  0x36   : > { %8168 = vst [vmem:[#allocation46_spill] sm:$0xff] %v5820_v42  ;;  %v5850_v42 = vld [vmem:[%s8123_s1 + $0xa0] sm:$0xf0]  ;;  %v5875_v12 = vld [vmem:[%s8123_s1 + $0xa8] sm:$0xf0] }
  0x37   : > { %8169 = vst [vmem:[#allocation47_spill] sm:$0xff] %v5830_v40  ;;  %v5855_v40 = vld [vmem:[%s8123_s1 + $0xa0] sm:$0xf0]  ;;  %v5888_v50 = vld [vmem:[%s8123_s1 + $0xb0] sm:$0xf0] }
  0x38   : > { %8170 = vst [vmem:[#allocation48_spill] sm:$0xff] %v5840_v10  ;;  %v4043_v10 = vld [vmem:[%s8123_s1 + $0xb0] sm:$0xf]  ;;  %v5088_v48 = vld [vmem:[%s8123_s1 + $0xb0] sm:$0xf0] }
  0x39   : > { %8171 = vst [vmem:[#allocation49_spill] sm:$0xff] %v5850_v42  ;;  %v5880_v42 = vld [vmem:[%s8123_s1 + $0xb0] sm:$0xf]  ;;  %v5896_v18 = vld [vmem:[%s8123_s1 + $0xb8] sm:$0xf] }
  0x3a   : > { %8172 = vst [vmem:[#allocation50_spill] sm:$0xff] %v5860_v46  ;;  %v4047_v16 = vld [vmem:[%s8123_s1 + $0xb8] sm:$0xf]  ;;  %v5090_v46 = vld [vmem:[%s8123_s1 + $0xb8] sm:$0xf0] }
  0x3b   : > { %8173 = vst [vmem:[#allocation51_spill] sm:$0xff] %v5870_v14  ;;  %v5904_v14 = vld [vmem:[%s8123_s1 + $0xb8] sm:$0xf0]  ;;  %v5912_v54 = vld [vmem:[%s8123_s1 + $0xc0] sm:$0xf] }
  0x3c   : > { %8174 = vst [vmem:[#allocation52_spill] sm:$0xff] %v5880_v42  ;;  %v5917_v52 = vld [vmem:[%s8123_s1 + $0xc0] sm:$0xf]  ;;  %v5922_v22 = vld [vmem:[%s8123_s1 + $0xc0] sm:$0xf0] }
  0x3d   : > { %8175 = vst [vmem:[#allocation53_spill] sm:$0xff] %v5888_v50  ;;  %v5927_v20 = vld [vmem:[%s8123_s1 + $0xc0] sm:$0xf0]  ;;  %v5932_v50 = vld [vmem:[%s8123_s1 + $0xc8] sm:$0xf] }
  0x3e   : > { %8176 = vst [vmem:[#allocation54_spill] sm:$0xff] %v5896_v18  ;;  %v5942_v42 = vld [vmem:[%s8123_s1 + $0xc8] sm:$0xf0]  ;;  %v5952_v58 = vld [vmem:[%s8123_s1 + $0xd0] sm:$0xf] }
  0x3f   : > { %8177 = vst [vmem:[#allocation55_spill] sm:$0xff] %v5904_v14  ;;  %v5962_v56 = vld [vmem:[%s8123_s1 + $0xd0] sm:$0xf0]  ;;  %v5972_v26 = vld [vmem:[%s8123_s1 + $0xd8] sm:$0xf] }
  0x40   : > { %8178 = vst [vmem:[#allocation56_spill] sm:$0xff] %v5912_v54  ;;  %v5937_v54 = vld [vmem:[%s8123_s1 + $0xc8] sm:$0xf]  ;;  %v5980_v24 = vld [vmem:[%s8123_s1 + $0xd8] sm:$0xf0] }
  0x41   : > { %8179 = vst [vmem:[#allocation57_spill] sm:$0xff] %v5917_v52  ;;  %v5988_v14 = vld [vmem:[%s8123_s1 + $0xe0] sm:$0xf]  ;;  %v5996_v18 = vld [vmem:[%s8123_s1 + $0xe0] sm:$0xf0] }
  0x42   : > { %8180 = vst [vmem:[#allocation58_spill] sm:$0xff] %v5922_v22  ;;  %v5947_v22 = vld [vmem:[%s8123_s1 + $0xc8] sm:$0xf0]  ;;  %v6004_v62 = vld [vmem:[%s8123_s1 + $0xe8] sm:$0xf] }
  0x43   : > { %8181 = vst [vmem:[#allocation59_spill] sm:$0xff] %v5927_v20  ;;  %v6012_v60 = vld [vmem:[%s8123_s1 + $0xe8] sm:$0xf0]  ;;  %v6020_v30 = vld [vmem:[%s8123_s1 + $0xf0] sm:$0xf] }
  0x44   : > { %8182 = vst [vmem:[#allocation60_spill] sm:$0xff] %v5932_v50  ;;  %v5957_v50 = vld [vmem:[%s8123_s1 + $0xd0] sm:$0xf]  ;;  %v6028_v28 = vld [vmem:[%s8123_s1 + $0xf0] sm:$0xf0] }
  0x45   : > { %8183 = vst [vmem:[#allocation61_spill] sm:$0xff] %v5942_v42  ;;  %v5967_v42 = vld [vmem:[%s8123_s1 + $0xd0] sm:$0xf0]  ;;  %v6036_v20 = vld [vmem:[%s8123_s1 + $0xf8] sm:$0xf] }
  0x46   : > { %8184 = vst [vmem:[#allocation62_spill] sm:$0xff] %v5952_v58  ;;  %v4063_v58 = vld [vmem:[%s8123_s1 + $0xd8] sm:$0xf]  ;;  %v6044_v52 = vld [vmem:[%s8123_s1 + $0xf8] sm:$0xf0] }
  0x47   : > { %8185 = vst [vmem:[#allocation63_spill] sm:$0xff] %v5962_v56  ;;  %v5098_v56 = vld [vmem:[%s8123_s1 + $0xd8] sm:$0xf0] }
  0x48   : > { %8186 = vst [vmem:[#allocation64_spill] sm:$0xff] %v5972_v26  ;;  %v4067_v26 = vld [vmem:[%s8123_s1 + $0xe0] sm:$0xf] }
  0x49   : > { %8187 = vst [vmem:[#allocation65_spill] sm:$0xff] %v5980_v24  ;;  %v5100_v24 = vld [vmem:[%s8123_s1 + $0xe0] sm:$0xf0] }
  0x4a   : > { %8188 = vst [vmem:[#allocation66_spill] sm:$0xff] %v5988_v14  ;;  %v4071_v14 = vld [vmem:[%s8123_s1 + $0xe8] sm:$0xf] }
  0x4b   : > { %8189 = vst [vmem:[#allocation67_spill] sm:$0xff] %v5996_v18  ;;  %v5102_v18 = vld [vmem:[%s8123_s1 + $0xe8] sm:$0xf0] }
  0x4c   : > { %8190 = vst [vmem:[#allocation68_spill] sm:$0xff] %v6004_v62  ;;  %v4075_v62 = vld [vmem:[%s8123_s1 + $0xf0] sm:$0xf] }
  0x4d   : > { %8191 = vst [vmem:[#allocation69_spill] sm:$0xff] %v6012_v60  ;;  %v5104_v60 = vld [vmem:[%s8123_s1 + $0xf0] sm:$0xf0]  ;;  %290 = sbr.rel (!%p285_p4) target bundleno = 84 (0x54), region = 40 }
  0x4e   : > { %8192 = vst [vmem:[#allocation70_spill] sm:$0xff] %v6020_v30  ;;  %v4079_v30 = vld [vmem:[%s8123_s1 + $0xf8] sm:$0xf] }
  0x4f   : > { %8193 = vst [vmem:[#allocation71_spill] sm:$0xff] %v6028_v28  ;;  %v5106_v28 = vld [vmem:[%s8123_s1 + $0xf8] sm:$0xf0] }
  0x50   : > { %8194 = vst [vmem:[#allocation72_spill] sm:$0xff] %v6036_v20 }
  0x51   : > { %8195 = vst [vmem:[#allocation73_spill] sm:$0xff] %v6044_v52 }
  0x52   : > { %291 = vst [vmem:[#allocation2] sm:$0x1] %v5391_v0 }
  0x53   : > { %292 = vst [vmem:[#allocation3] sm:$0x1] %v5391_v0 }
  0x54 PF: > { %p3856_p5 = scmp.ne.s32.totalorder %s5381_s15, 0 }
  0x56   : > { %295 = sbr.rel (%p3856_p5) target bundleno = 715 (0x2cb), region = 44 }
  0x5b   : > { %v6053_v20 = vor.u32 %v5595_v31, %v5585_v29  ;;  %v6057_v52 = vor.u32 %v5755_v63, %v5745_v61  ;;  %v6059_v32 = vor.u32 %v5090_v46, %v4047_v16  ;;  %v6061_v35 = vor.u32 %v5106_v28, %v4079_v30  ;;  %v8196_v31 = vld [vmem:[#allocation23_spill] sm:$0xff]  ;;  %v3891_v61 = vld [vmem:[%s8122_s0 + $0x40] sm:$0xf]  ;;  %v5116_v63 = vld [vmem:[%s8122_s0 + $0x44] sm:$0xf] }
  0x5c   : > { %v6067_v0 = vor.u32 %v5575_v27, %v5565_v25  ;;  %v6071_v29 = vor.u32 %v5735_v59, %v5725_v57  ;;  %v6075_v16 = vor.u32 %v5088_v48, %v4043_v10  ;;  %v6077_v28 = vor.u32 %v5104_v60, %v4075_v62  ;;  %v3875_v48 = vld [vmem:[%s8122_s0 + $0x20] sm:$0xf]  ;;  %v5118_v62 = vld [vmem:[%s8122_s0 + $0x4c] sm:$0xf0] }
  0x5d   : > { %648 = vmatpush.bf16.msra.mxu0 %v6053_v20  ;;  %691 = vmatpush.bf16.msra.mxu1 %v6057_v52  ;;  %v6083_v25 = vor.u32 %v5555_v23, %v5545_v21  ;;  %v6087_v27 = vor.u32 %v5715_v55, %v5705_v53  ;;  %v6093_v10 = vor.u32 %v5875_v12, %v5865_v44  ;;  %v3883_v53 = vld [vmem:[%s8122_s0 + $0x28] sm:$0xf]  ;;  %v5113_v55 = vld [vmem:[%s8122_s0 + $0x2c] sm:$0xf]  ;;  %vm831_vm0 = vcmask 1041408  }
  0x5e   : > { %734 = vmatpush.bf16.msra.mxu2 %v6059_v32  ;;  %777 = vmatpush.bf16.msra.mxu3 %v6061_v35  ;;  %v6095_v30 = vor.u32 %v5102_v18, %v4071_v14  ;;  %v6101_v21 = vor.u32 %v5535_v19, %v5525_v17  ;;  %v6105_v23 = vor.u32 %v5695_v51, %v5685_v49  ;;  %v5114_v49 = vld [vmem:[%s8122_s0 + $0x2c] sm:$0xf0]  ;;  %v3877_v51 = vld [vmem:[%s8122_s0 + $0x30] sm:$0xf0] }
  0x5f   : > { %v6111_v12 = vor.u32 %v5855_v40, %v5845_v8  ;;  %v6113_v14 = vor.u32 %v5100_v24, %v4067_v26  ;;  %v6119_v17 = vor.u32 %v5515_v15, %v5505_v13  ;;  %v6123_v18 = vor.u32 %v5675_v47, %v5665_v45 }
  0x60   : > { %v6129_v8 = vor.u32 %v5835_v4, %v5825_v6  ;;  %v6131_v19 = vor.u32 %v5098_v56, %v4063_v58  ;;  %v6137_v13 = vor.u32 %v5495_v11, %v5485_v9  ;;  %v6141_v15 = vor.u32 %v5655_v43, %v5645_v41  ;;  %v5111_v41 = vld [vmem:[%s8122_s0 + $0x14] sm:$0xf0]  ;;  %v3869_v43 = vld [vmem:[%s8122_s0 + $0x18] sm:$0xf0] }
  0x61   : > { %649 = vmatpush.bf16.msra.mxu0 %v6067_v0  ;;  %692 = vmatpush.bf16.msra.mxu1 %v6071_v29  ;;  %v6147_v4 = vor.u32 %v5815_v36, %v5805_v38  ;;  %v6151_v6 = vor.u32 %v5967_v42, %v5957_v50  ;;  %v6157_v9 = vor.u32 %v5475_v7, %v5465_v5  ;;  %v3859_v5 = vld [vmem:[%s8122_s0] sm:$0xf]  ;;  %v5110_v7 = vld [vmem:[%s8122_s0 + $0xc] sm:$0xf0]  ;;  %v3861_v36 = vld [vmem:[%s8122_s0 + $0x10] sm:$0xf0] }
  0x62   : > { %735 = vmatpush.bf16.msra.mxu2 %v6075_v16  ;;  %778 = vmatpush.bf16.msra.mxu3 %v6077_v28  ;;  %v6161_v11 = vor.u32 %v5635_v39, %v5625_v37  ;;  %v6167_v24 = vor.u32 %v5795_v2, %v5785_v34  ;;  %v6171_v26 = vor.u32 %v5947_v22, %v5937_v54  ;;  %v5108_v34 = vld [vmem:[%s8122_s0 + $0x4] sm:$0xf]  ;;  %v3867_v37 = vld [vmem:[%s8122_s0 + $0x8] sm:$0xf]  ;;  %v8200_v39 = vld [vmem:[#allocation59_spill] sm:$0xff] }
  0x63   : > { %v6183_v2 = vor.u32 %v5455_v3, %v5445_v1  ;;  %v6187_v22 = vor.u32 %v8196_v31, %v5605_v33  ;;  %v8197_v1 = vld [vmem:[#allocation39_spill] sm:$0xff]  ;;  %v8198_v3 = vld [vmem:[#allocation41_spill] sm:$0xff]  ;;  %v5109_v42 = vld [vmem:[%s8122_s0 + $0xc] sm:$0xf]  ;;  %v3860_v44 = vor.u32 %v5110_v7, %v3859_v5  ;;  %v3864_v45 = vor.u32 %v5108_v34, %v3861_v36 }
  0x64   : > { %v6202_v33 = vor.u32 %v8198_v3, %v8197_v1  ;;  %v8199_v38 = vld [vmem:[#allocation57_spill] sm:$0xff]  ;;  %v3868_v46 = vor.u32 %v5111_v41, %v3867_v37  ;;  %v3872_v47 = vor.u32 %v5109_v42, %v3869_v43  ;;  %v5115_v54 = vld [vmem:[%s8122_s0 + $0x34] sm:$0xf0]  ;;  %v3885_v56 = vld [vmem:[%s8122_s0 + $0x38] sm:$0xf0]  ;;  %v3876_v57 = vor.u32 %v5114_v49, %v3875_v48 }
  0x65   : > { %650 = vmatpush.bf16.msra.mxu0 %v6083_v25  ;;  %693 = vmatpush.bf16.msra.mxu1 %v6087_v27  ;;  %v6206_v40 = vor.u32 %v8200_v39, %v8199_v38  ;;  %v5112_v50 = vld [vmem:[%s8122_s0 + $0x24] sm:$0xf]  ;;  %v3884_v59 = vor.u32 %v5115_v54, %v3883_v53  ;;  %v3888_v60 = vor.u32 %v5113_v55, %v3885_v56  ;;  %v3893_v5 = vld [vmem:[%s8122_s0 + $0x50] sm:$0xf0]  ;;  %v3899_v7 = vld [vmem:[%s8122_s0 + $0x48] sm:$0xf] }
  0x66   : > { %736 = vmatpush.bf16.msra.mxu2 %v6093_v10  ;;  %779 = vmatpush.bf16.msra.mxu3 %v6095_v30  ;;  %v3880_v58 = vor.u32 %v5112_v50, %v3877_v51  ;;  %v5119_v31 = vld [vmem:[%s8122_s0 + $0x54] sm:$0xf0]  ;;  %v5117_v34 = vld [vmem:[%s8122_s0 + $0x4c] sm:$0xf]  ;;  %v3901_v36 = vld [vmem:[%s8122_s0 + $0x58] sm:$0xf0]  ;;  %v3892_v37 = vor.u32 %v5118_v62, %v3891_v61  ;;  %v3896_v1 = vor.u32 %v5116_v63, %v3893_v5 }
  0x67   : > { %v3900_v3 = vor.u32 %v5119_v31, %v3899_v7  ;;  %v3904_v38 = vor.u32 %v5117_v34, %v3901_v36  ;;  %v3907_v39 = vld [vmem:[%s8122_s0 + $0x60] sm:$0xf]  ;;  %v5122_v41 = vld [vmem:[%s8122_s0 + $0x6c] sm:$0xf0]  ;;  %v5120_v42 = vld [vmem:[%s8122_s0 + $0x64] sm:$0xf] }
  0x68   : > { %v3909_v43 = vld [vmem:[%s8122_s0 + $0x70] sm:$0xf0]  ;;  %v3908_v48 = vor.u32 %v5122_v41, %v3907_v39  ;;  %v3923_v53 = vld [vmem:[%s8122_s0 + $0x80] sm:$0xf]  ;;  %v5126_v54 = vld [vmem:[%s8122_s0 + $0x8c] sm:$0xf0] }
  0x69   : > { %651 = vmatpush.bf16.msra.mxu0 %v6101_v21  ;;  %694 = vmatpush.bf16.msra.mxu1 %v6105_v23  ;;  %v3912_v49 = vor.u32 %v5120_v42, %v3909_v43  ;;  %v5124_v55 = vld [vmem:[%s8122_s0 + $0x84] sm:$0xf]  ;;  %v3925_v56 = vld [vmem:[%s8122_s0 + $0x90] sm:$0xf0]  ;;  %v3924_v61 = vor.u32 %v5126_v54, %v3923_v53  ;;  %v3939_v7 = vld [vmem:[%s8122_s0 + $0xa0] sm:$0xf] }
  0x6a   : > { %737 = vmatpush.bf16.msra.mxu2 %v6111_v12  ;;  %780 = vmatpush.bf16.msra.mxu3 %v6113_v14  ;;  %v3928_v62 = vor.u32 %v5124_v55, %v3925_v56  ;;  %v5130_v31 = vld [vmem:[%s8122_s0 + $0xac] sm:$0xf0]  ;;  %v5128_v34 = vld [vmem:[%s8122_s0 + $0xa4] sm:$0xf]  ;;  %v3941_v36 = vld [vmem:[%s8122_s0 + $0xb0] sm:$0xf0] }
  0x6b   : > { %v3940_v39 = vor.u32 %v5130_v31, %v3939_v7  ;;  %v3944_v41 = vor.u32 %v5128_v34, %v3941_v36  ;;  %v4109_v55 = vld [vmem:[%s8122_s0 + $0xd0] sm:$0xf]  ;;  %v5134_v56 = vld [vmem:[%s8122_s0 + $0xdc] sm:$0xf0] }
  0x6c   : > { %v4125_v34 = vld [vmem:[%s8122_s0 + $0xf0] sm:$0xf] }
  0x6d   : > { %652 = vmatpush.bf16.msra.mxu0 %v6119_v17  ;;  %695 = vmatpush.bf16.msra.mxu1 %v6123_v18 }
  0x6e   : > { %738 = vmatpush.bf16.msra.mxu2 %v6129_v8  ;;  %781 = vmatpush.bf16.msra.mxu3 %v6131_v19 }
  0x71   : > { %653 = vmatpush.bf16.msra.mxu0 %v6137_v13  ;;  %696 = vmatpush.bf16.msra.mxu1 %v6141_v15 }
  0x72   : > { %739 = vmatpush.bf16.msra.mxu2 %v6147_v4  ;;  %782 = vmatpush.bf16.msra.mxu3 %v6151_v6 }
  0x75   : > { %654 = vmatpush.bf16.msra.mxu0 %v6157_v9  ;;  %697 = vmatpush.bf16.msra.mxu1 %v6161_v11 }
  0x76   : > { %740 = vmatpush.bf16.msra.mxu2 %v6167_v24  ;;  %783 = vmatpush.bf16.msra.mxu3 %v6171_v26 }
  0x79   : > { %655 = vmatpush.bf16.msra.mxu0 %v6183_v2  ;;  %698 = vmatpush.bf16.msra.mxu1 %v6187_v22 }
  0x7a   : > { %741 = vmatpush.bf16.msra.mxu2 %v6202_v33  ;;  %784 = vmatpush.bf16.msra.mxu3 %v6206_v40 }
  0x7c   : > { %656 = vmatmul.bf16.vlgmr.msra.gmra.mxu0 %v3860_v44  ;;  %699 = vmatmul.bf16.vlgmr.msra.gmra.mxu1 %v3864_v45  ;;  %v3915_v44 = vld [vmem:[%s8122_s0 + $0x68] sm:$0xf]  ;;  %v5123_v45 = vld [vmem:[%s8122_s0 + $0x74] sm:$0xf0] }
  0x7d   : > { %742 = vmatmul.bf16.vlgmr.msra.gmra.mxu2 %v3868_v46  ;;  %785 = vmatmul.bf16.vlgmr.msra.gmra.mxu3 %v3872_v47  ;;  %v5121_v46 = vld [vmem:[%s8122_s0 + $0x6c] sm:$0xf]  ;;  %v3917_v47 = vld [vmem:[%s8122_s0 + $0x78] sm:$0xf0]  ;;  %v3916_v50 = vor.u32 %v5123_v45, %v3915_v44  ;;  %v320_v44 = vld [vmem:[%s8122_s0 + $0xc0] sm:$0x11] }
  0x7e   : > { %1121 = vmatpush.bf16.msrb.mxu2 %v6059_v32  ;;  %1164 = vmatpush.bf16.msrb.mxu3 %v6061_v35  ;;  %v3920_v51 = vor.u32 %v5121_v46, %v3917_v47  ;;  %v321_v45 = vld [vmem:[%s8122_s0 + $0xc8] sm:$0x11]  ;;  %v396_v46 = vunpack.c.l.b16 %v320_v44  ;;  %v397_v47 = vunpack.c.h.b16 %v320_v44 }
  0x7f   : > { %1035 = vmatpush.bf16.msrb.mxu0 %v6053_v20  ;;  %1078 = vmatpush.bf16.msrb.mxu1 %v6057_v52 }
  0x82   : > { %1122 = vmatpush.bf16.msrb.mxu2 %v6075_v16  ;;  %1165 = vmatpush.bf16.msrb.mxu3 %v6077_v28 }
  0x83   : > { %1036 = vmatpush.bf16.msrb.mxu0 %v6067_v0  ;;  %1079 = vmatpush.bf16.msrb.mxu1 %v6071_v29 }
  0x86   : > { %1123 = vmatpush.bf16.msrb.mxu2 %v6093_v10  ;;  %1166 = vmatpush.bf16.msrb.mxu3 %v6095_v30 }
  0x87   : > { %1037 = vmatpush.bf16.msrb.mxu0 %v6083_v25  ;;  %1080 = vmatpush.bf16.msrb.mxu1 %v6087_v27 }
  0x8a   : > { %1124 = vmatpush.bf16.msrb.mxu2 %v6111_v12  ;;  %1167 = vmatpush.bf16.msrb.mxu3 %v6113_v14 }
  0x8b   : > { %1038 = vmatpush.bf16.msrb.mxu0 %v6101_v21  ;;  %1081 = vmatpush.bf16.msrb.mxu1 %v6105_v23 }
  0x8c   : > { %661 = vmatmul.bf16.gmra.mxu0 %v3876_v57  ;;  %704 = vmatmul.bf16.gmra.mxu1 %v3880_v58  ;;  %v3931_v57 = vld [vmem:[%s8122_s0 + $0x88] sm:$0xf]  ;;  %v5127_v58 = vld [vmem:[%s8122_s0 + $0x94] sm:$0xf0] }
  0x8d   : > { %747 = vmatmul.bf16.gmra.mxu2 %v3884_v59  ;;  %790 = vmatmul.bf16.gmra.mxu3 %v3888_v60  ;;  %v5125_v59 = vld [vmem:[%s8122_s0 + $0x8c] sm:$0xf]  ;;  %v3933_v60 = vld [vmem:[%s8122_s0 + $0x98] sm:$0xf0]  ;;  %v3932_v63 = vor.u32 %v5127_v58, %v3931_v57  ;;  %v5132_v57 = vld [vmem:[%s8122_s0 + $0xd4] sm:$0xf] }
  0x8e   : > { %1125 = vmatpush.bf16.msrb.mxu2 %v6129_v8  ;;  %1168 = vmatpush.bf16.msrb.mxu3 %v6131_v19  ;;  %v3936_v5 = vor.u32 %v5125_v59, %v3933_v60  ;;  %v4111_v58 = vld [vmem:[%s8122_s0 + $0xe0] sm:$0xf0]  ;;  %v4117_v59 = vld [vmem:[%s8122_s0 + $0xd8] sm:$0xf]  ;;  %v5135_v60 = vld [vmem:[%s8122_s0 + $0xe4] sm:$0xf0] }
  0x8f   : > { %1039 = vmatpush.bf16.msrb.mxu0 %v6119_v17  ;;  %1082 = vmatpush.bf16.msrb.mxu1 %v6123_v18  ;;  %v4118_v7 = vor.u32 %v5135_v60, %v4117_v59  ;;  %v5144_v59 = vld [vmem:[%s8122_s0 + $0x134] sm:$0xf]  ;;  %v4159_v60 = vld [vmem:[%s8122_s0 + $0x140] sm:$0xf0] }
  0x92   : > { %1126 = vmatpush.bf16.msrb.mxu2 %v6147_v4  ;;  %1169 = vmatpush.bf16.msrb.mxu3 %v6151_v6 }
  0x93   : > { %1040 = vmatpush.bf16.msrb.mxu0 %v6137_v13  ;;  %1083 = vmatpush.bf16.msrb.mxu1 %v6141_v15 }
  0x96   : > { %1127 = vmatpush.bf16.msrb.mxu2 %v6167_v24  ;;  %1170 = vmatpush.bf16.msrb.mxu3 %v6171_v26 }
  0x97   : > { %1041 = vmatpush.bf16.msrb.mxu0 %v6157_v9  ;;  %1084 = vmatpush.bf16.msrb.mxu1 %v6161_v11 }
  0x9a   : > { %1128 = vmatpush.bf16.msrb.mxu2 %v6202_v33  ;;  %1171 = vmatpush.bf16.msrb.mxu3 %v6206_v40 }
  0x9b   : > { %1042 = vmatpush.bf16.msrb.mxu0 %v6183_v2  ;;  %1085 = vmatpush.bf16.msrb.mxu1 %v6187_v22 }
  0x9c   : > { %666 = vmatmul.bf16.gmra.mxu0 %v3892_v37  ;;  %709 = vmatmul.bf16.gmra.mxu1 %v3896_v1  ;;  %v3947_v37 = vld [vmem:[%s8122_s0 + $0xa8] sm:$0xf]  ;;  %v5131_v1 = vld [vmem:[%s8122_s0 + $0xb4] sm:$0xf0] }
  0x9d   : > { %752 = vmatmul.bf16.gmra.mxu2 %v3900_v3  ;;  %795 = vmatmul.bf16.gmra.mxu3 %v3904_v38  ;;  %v5129_v3 = vld [vmem:[%s8122_s0 + $0xac] sm:$0xf]  ;;  %v3949_v38 = vld [vmem:[%s8122_s0 + $0xb8] sm:$0xf0]  ;;  %v3948_v42 = vor.u32 %v5131_v1, %v3947_v37 }
  0x9e   : > { %1507 = vmatpush.bf16.msra.mxu2 %v6059_v32  ;;  %1550 = vmatpush.bf16.msra.mxu3 %v6061_v35  ;;  %v3952_v43 = vor.u32 %v5129_v3, %v3949_v38 }
  0x9f   : > { %1421 = vmatpush.bf16.msra.mxu0 %v6053_v20  ;;  %1464 = vmatpush.bf16.msra.mxu1 %v6057_v52 }
  0xa2   : > { %1508 = vmatpush.bf16.msra.mxu2 %v6075_v16  ;;  %1551 = vmatpush.bf16.msra.mxu3 %v6077_v28 }
  0xa3   : > { %1422 = vmatpush.bf16.msra.mxu0 %v6067_v0  ;;  %1465 = vmatpush.bf16.msra.mxu1 %v6071_v29 }
  0xa6   : > { %1509 = vmatpush.bf16.msra.mxu2 %v6093_v10  ;;  %1552 = vmatpush.bf16.msra.mxu3 %v6095_v30 }
  0xa7   : > { %1423 = vmatpush.bf16.msra.mxu0 %v6083_v25  ;;  %1466 = vmatpush.bf16.msra.mxu1 %v6087_v27 }
  0xaa   : > { %1510 = vmatpush.bf16.msra.mxu2 %v6111_v12  ;;  %1553 = vmatpush.bf16.msra.mxu3 %v6113_v14 }
  0xab   : > { %1424 = vmatpush.bf16.msra.mxu0 %v6101_v21  ;;  %1467 = vmatpush.bf16.msra.mxu1 %v6105_v23 }
  0xac   : > { %671 = vmatmul.bf16.gmra.mxu0 %v3908_v48  ;;  %714 = vmatmul.bf16.gmra.mxu1 %v3912_v49  ;;  %v398_v48 = vunpack.c.l.b16 %v321_v45  ;;  %v399_v49 = vunpack.c.h.b16 %v321_v45 }
  0xad   : > { %757 = vmatmul.bf16.gmra.mxu2 %v3916_v50  ;;  %800 = vmatmul.bf16.gmra.mxu3 %v3920_v51  ;;  %v424_v50 = vpack.c.b16 %v396_v46, %v396_v46  ;;  %v425_v51 = vpack.c.b16 %v397_v47, %v397_v47 }
  0xae   : > { %1511 = vmatpush.bf16.msra.mxu2 %v6129_v8  ;;  %1554 = vmatpush.bf16.msra.mxu3 %v6131_v19  ;;  %v426_v53 = vpack.c.b16 %v398_v48, %v398_v48  ;;  %v427_v54 = vpack.c.b16 %v399_v49, %v399_v49 }
  0xaf   : > { %1425 = vmatpush.bf16.msra.mxu0 %v6119_v17  ;;  %1468 = vmatpush.bf16.msra.mxu1 %v6123_v18 }
  0xb2   : > { %1512 = vmatpush.bf16.msra.mxu2 %v6147_v4  ;;  %1555 = vmatpush.bf16.msra.mxu3 %v6151_v6 }
  0xb3   : > { %1426 = vmatpush.bf16.msra.mxu0 %v6137_v13  ;;  %1469 = vmatpush.bf16.msra.mxu1 %v6141_v15 }
  0xb6   : > { %1513 = vmatpush.bf16.msra.mxu2 %v6167_v24  ;;  %1556 = vmatpush.bf16.msra.mxu3 %v6171_v26 }
  0xb7   : > { %1427 = vmatpush.bf16.msra.mxu0 %v6157_v9  ;;  %1470 = vmatpush.bf16.msra.mxu1 %v6161_v11 }
  0xba   : > { %1514 = vmatpush.bf16.msra.mxu2 %v6202_v33  ;;  %1557 = vmatpush.bf16.msra.mxu3 %v6206_v40 }
  0xbb   : > { %1428 = vmatpush.bf16.msra.mxu0 %v6183_v2  ;;  %1471 = vmatpush.bf16.msra.mxu1 %v6187_v22 }
  0xbc   : > { %676 = vmatmul.bf16.gmra.mxu0 %v3924_v61  ;;  %719 = vmatmul.bf16.gmra.mxu1 %v3928_v62  ;;  %v5133_v61 = vld [vmem:[%s8122_s0 + $0xdc] sm:$0xf]  ;;  %v4119_v62 = vld [vmem:[%s8122_s0 + $0xe8] sm:$0xf0] }
  0xbd   : > { %762 = vmatmul.bf16.gmra.mxu2 %v3932_v63  ;;  %805 = vmatmul.bf16.gmra.mxu3 %v3936_v5  ;;  %v4110_v63 = vor.u32 %v5134_v56, %v4109_v55  ;;  %v4114_v5 = vor.u32 %v5132_v57, %v4111_v58  ;;  %v4122_v31 = vor.u32 %v5133_v61, %v4119_v62  ;;  %v4165_v61 = vld [vmem:[%s8122_s0 + $0x138] sm:$0xf]  ;;  %v5147_v62 = vld [vmem:[%s8122_s0 + $0x144] sm:$0xf0] }
  0xcc   : > { %681 = vmatmul.bf16.gmra.mxu0 %v3940_v39  ;;  %724 = vmatmul.bf16.gmra.mxu1 %v3944_v41 }
  0xcd   : > { %767 = vmatmul.bf16.gmra.mxu2 %v3948_v42  ;;  %810 = vmatmul.bf16.gmra.mxu3 %v3952_v43 }
  0xdc   : > { %686 = vmatmul.bf16.gmra.mxu0 %v424_v50  ;;  %729 = vmatmul.bf16.gmra.mxu1 %v425_v51 }
  0xdd   : > { %772 = vmatmul.bf16.gmra.mxu2 %v426_v53  ;;  %815 = vmatmul.bf16.gmra.mxu3 %v427_v54 }
  0xec   : > { %1043 = vmatmul.bf16.vlgmr.msrb.gmra.mxu0 %v4110_v63  ;;  %1086 = vmatmul.bf16.vlgmr.msrb.gmra.mxu1 %v4114_v5  ;;  %v5145_v63 = vld [vmem:[%s8122_s0 + $0x13c] sm:$0xf]  ;;  %v4167_v5 = vld [vmem:[%s8122_s0 + $0x148] sm:$0xf0] }
  0xed   : > { %1129 = vmatmul.bf16.vlgmr.msrb.gmra.mxu2 %v4118_v7  ;;  %1172 = vmatmul.bf16.vlgmr.msrb.gmra.mxu3 %v4122_v31 }
  0xee   : > { %1893 = vmatpush.bf16.msrb.mxu2 %v6059_v32  ;;  %1936 = vmatpush.bf16.msrb.mxu3 %v6061_v35  ;;  %v5138_v32 = vld [vmem:[%s8122_s0 + $0xfc] sm:$0xf0]  ;;  %v4127_v35 = vld [vmem:[%s8122_s0 + $0x100] sm:$0xf0] }
  0xef   : > { %1807 = vmatpush.bf16.msrb.mxu0 %v6053_v20  ;;  %1850 = vmatpush.bf16.msrb.mxu1 %v6057_v52  ;;  %v5136_v20 = vld [vmem:[%s8122_s0 + $0xf4] sm:$0xf]  ;;  %v4133_v52 = vld [vmem:[%s8122_s0 + $0xf8] sm:$0xf] }
  0xf0   : > { %v4130_v36 = vor.u32 %v5136_v20, %v4127_v35  ;;  %v4162_v20 = vor.u32 %v5144_v59, %v4159_v60  ;;  %v5152_v59 = vld [vmem:[%s8122_s0 + $0x174] sm:$0xf]  ;;  %v4191_v60 = vld [vmem:[%s8122_s0 + $0x180] sm:$0xf0] }
  0xf2   : > { %1894 = vmatpush.bf16.msrb.mxu2 %v6075_v16  ;;  %1937 = vmatpush.bf16.msrb.mxu3 %v6077_v28  ;;  %v4135_v16 = vld [vmem:[%s8122_s0 + $0x108] sm:$0xf0]  ;;  %v4126_v28 = vor.u32 %v5138_v32, %v4125_v34 }
  0xf3   : > { %1808 = vmatpush.bf16.msrb.mxu0 %v6067_v0  ;;  %1851 = vmatpush.bf16.msrb.mxu1 %v6071_v29  ;;  %v5139_v0 = vld [vmem:[%s8122_s0 + $0x104] sm:$0xf0]  ;;  %v5137_v29 = vld [vmem:[%s8122_s0 + $0xfc] sm:$0xf] }
  0xf4   : > { %v4134_v3 = vor.u32 %v5139_v0, %v4133_v52  ;;  %v4138_v38 = vor.u32 %v5137_v29, %v4135_v16  ;;  %v4166_v29 = vor.u32 %v5147_v62, %v4165_v61  ;;  %v4170_v16 = vor.u32 %v5145_v63, %v4167_v5  ;;  %v4197_v61 = vld [vmem:[%s8122_s0 + $0x178] sm:$0xf]  ;;  %v5155_v62 = vld [vmem:[%s8122_s0 + $0x184] sm:$0xf0]  ;;  %v5153_v63 = vld [vmem:[%s8122_s0 + $0x17c] sm:$0xf] }
  0xf5   : > { %v4199_v5 = vld [vmem:[%s8122_s0 + $0x188] sm:$0xf0] }
  0xf6   : > { %1895 = vmatpush.bf16.msrb.mxu2 %v6093_v10  ;;  %1938 = vmatpush.bf16.msrb.mxu3 %v6095_v30 }
  0xf7   : > { %1809 = vmatpush.bf16.msrb.mxu0 %v6083_v25  ;;  %1852 = vmatpush.bf16.msrb.mxu1 %v6087_v27 }
  0xf9   : > { %v657_v37 = vpop.f32.mrf.mxu0  ;;  %v700_v1 = vpop.f32.mrf.mxu1 }
  0xfa   : > { %v701_v39 = vadd.f32 %v700_v1, %v657_v37  ;;  %1896 = vmatpush.bf16.msrb.mxu2 %v6111_v12  ;;  %1939 = vmatpush.bf16.msrb.mxu3 %v6113_v14  ;;  %v4141_v14 = vld [vmem:[%s8122_s0 + $0x110] sm:$0xf] }
  0xfb   : > { %1810 = vmatpush.bf16.msrb.mxu0 %v6101_v21  ;;  %1853 = vmatpush.bf16.msrb.mxu1 %v6105_v23 }
  0xfc   : > { %1048 = vmatmul.bf16.gmra.mxu0 %v4126_v28  ;;  %1091 = vmatmul.bf16.gmra.mxu1 %v4130_v36 }
  0xfd   : > { %1134 = vmatmul.bf16.gmra.mxu2 %v4134_v3  ;;  %1177 = vmatmul.bf16.gmra.mxu3 %v4138_v38 }
  0xfe   : > { %1897 = vmatpush.bf16.msrb.mxu2 %v6129_v8  ;;  %1940 = vmatpush.bf16.msrb.mxu3 %v6131_v19  ;;  %v4143_v8 = vld [vmem:[%s8122_s0 + $0x120] sm:$0xf0]  ;;  %v4149_v19 = vld [vmem:[%s8122_s0 + $0x118] sm:$0xf] }
  0xff   : > { %1811 = vmatpush.bf16.msrb.mxu0 %v6119_v17  ;;  %1854 = vmatpush.bf16.msrb.mxu1 %v6123_v18  ;;  %v5142_v17 = vld [vmem:[%s8122_s0 + $0x11c] sm:$0xf0]  ;;  %v5140_v18 = vld [vmem:[%s8122_s0 + $0x114] sm:$0xf] }
 0x100   : > { %v743_v25 = vpop.f32.mrf.mxu2  ;;  %v786_v27 = vpop.f32.mrf.mxu3  ;;  %v4142_v42 = vor.u32 %v5142_v17, %v4141_v14  ;;  %v4146_v43 = vor.u32 %v5140_v18, %v4143_v8  ;;  %v5148_v18 = vld [vmem:[%s8122_s0 + $0x154] sm:$0xf]  ;;  %v4175_v8 = vld [vmem:[%s8122_s0 + $0x160] sm:$0xf0] }
 0x101   : > { %v744_v10 = vadd.f32 %v743_v25, %v701_v39  ;;  %v659_v30 = vpop.f32.mrf.mxu0  ;;  %v702_v12 = vpop.f32.mrf.mxu1 }
 0x102   : > { %v703_v21 = vadd.f32 %v702_v12, %v659_v30  ;;  %1898 = vmatpush.bf16.msrb.mxu2 %v6147_v4  ;;  %1941 = vmatpush.bf16.msrb.mxu3 %v6151_v6  ;;  %v4151_v4 = vld [vmem:[%s8122_s0 + $0x128] sm:$0xf0] }
 0x103   : > { %v787_v23 = vadd.f32 %v786_v27, %v744_v10  ;;  %1812 = vmatpush.bf16.msrb.mxu0 %v6137_v13  ;;  %1855 = vmatpush.bf16.msrb.mxu1 %v6141_v15  ;;  %v5143_v13 = vld [vmem:[%s8122_s0 + $0x124] sm:$0xf0]  ;;  %v5141_v15 = vld [vmem:[%s8122_s0 + $0x11c] sm:$0xf] }
 0x104   : > { %v4150_v47 = vor.u32 %v5143_v13, %v4149_v19  ;;  %v4154_v48 = vor.u32 %v5141_v15, %v4151_v4  ;;  %v4181_v19 = vld [vmem:[%s8122_s0 + $0x158] sm:$0xf]  ;;  %v5151_v13 = vld [vmem:[%s8122_s0 + $0x164] sm:$0xf0]  ;;  %v5149_v15 = vld [vmem:[%s8122_s0 + $0x15c] sm:$0xf] }
 0x105   : > { %v4183_v4 = vld [vmem:[%s8122_s0 + $0x168] sm:$0xf0] }
 0x106   : > { %1899 = vmatpush.bf16.msrb.mxu2 %v6167_v24  ;;  %1942 = vmatpush.bf16.msrb.mxu3 %v6171_v26 }
 0x107   : > { %1813 = vmatpush.bf16.msrb.mxu0 %v6157_v9  ;;  %1856 = vmatpush.bf16.msrb.mxu1 %v6161_v11  ;;  %v841_v9 = vmul.f32 %v787_v23, %v787_v23 }
 0x108   : > { %v745_v6 = vpop.f32.mrf.mxu2  ;;  %v788_v41 = vpop.f32.mrf.mxu3 }
 0x109   : > { %v746_v44 = vadd.f32 %v745_v6, %v703_v21  ;;  %v662_v45 = vpop.f32.mrf.mxu0  ;;  %v705_v46 = vpop.f32.mrf.mxu1  ;;  %v4173_v21 = vld [vmem:[%s8122_s0 + $0x150] sm:$0xf] }
 0x10a   : > { %v706_v49 = vadd.f32 %v705_v46, %v662_v45  ;;  %1900 = vmatpush.bf16.msrb.mxu2 %v6202_v33  ;;  %1943 = vmatpush.bf16.msrb.mxu3 %v6206_v40 }
 0x10b   : > { %v789_v24 = vadd.f32 %v788_v41, %v746_v44  ;;  %1814 = vmatpush.bf16.msrb.mxu0 %v6183_v2  ;;  %1857 = vmatpush.bf16.msrb.mxu1 %v6187_v22  ;;  %v4157_v2 = vld [vmem:[%s8122_s0 + $0x130] sm:$0xf]  ;;  %v5146_v22 = vld [vmem:[%s8122_s0 + $0x13c] sm:$0xf0]  ;;  %v4178_v44 = vor.u32 %v5148_v18, %v4175_v8 }
 0x10c   : > { %1053 = vmatmul.bf16.gmra.mxu0 %v4142_v42  ;;  %1096 = vmatmul.bf16.gmra.mxu1 %v4146_v43  ;;  %v4158_v32 = vor.u32 %v5146_v22, %v4157_v2  ;;  %v4189_v2 = vld [vmem:[%s8122_s0 + $0x170] sm:$0xf]  ;;  %v5154_v22 = vld [vmem:[%s8122_s0 + $0x17c] sm:$0xf0] }
 0x10d   : > { %v820_v11 = vadd.f32 %v789_v24, %v787_v23  ;;  %v842_v26 = vmul.f32 %v789_v24, %v789_v24  ;;  %1139 = vmatmul.bf16.gmra.mxu2 %v4150_v47  ;;  %1182 = vmatmul.bf16.gmra.mxu3 %v4154_v48  ;;  %v5150_v23 = vld [vmem:[%s8122_s0 + $0x15c] sm:$0xf0]  ;;  %v4182_v48 = vor.u32 %v5151_v13, %v4181_v19 }
 0x10e   : > { %v4174_v43 = vor.u32 %v5150_v23, %v4173_v21  ;;  %v4106_v21 = vld [vmem:[%s8122_s0 + $0x198] sm:$0x11] }
 0x10f   : > { %v854_v50 = vadd.f32 %v842_v26, %v841_v9  ;;  %v977_v19 = vunpack.c.l.b16 %v4106_v21  ;;  %v978_v13 = vunpack.c.h.b16 %v4106_v21 }
 0x110   : > { %v748_v51 = vpop.f32.mrf.mxu2  ;;  %v791_v53 = vpop.f32.mrf.mxu3 }
 0x111   : > { %v749_v54 = vadd.f32 %v748_v51, %v706_v49  ;;  %v664_v55 = vpop.f32.mrf.mxu0  ;;  %v707_v33 = vpop.f32.mrf.mxu1  ;;  %v4186_v49 = vor.u32 %v5149_v15, %v4183_v4 }
 0x112   : > { %v708_v56 = vadd.f32 %v707_v33, %v664_v55 }
 0x113   : > { %v792_v40 = vadd.f32 %v791_v53, %v749_v54 }
 0x115   : > { %v821_v57 = vadd.f32 %v820_v11, %v792_v40  ;;  %v843_v58 = vmul.f32 %v792_v40, %v792_v40 }
 0x117   : > { %v855_v7 = vadd.f32 %v854_v50, %v843_v58 }
 0x118   : > { %v750_v31 = vpop.f32.mrf.mxu2  ;;  %v793_v34 = vpop.f32.mrf.mxu3 }
 0x119   : > { %v751_v35 = vadd.f32 %v750_v31, %v708_v56  ;;  %v667_v52 = vpop.f32.mrf.mxu0  ;;  %v710_v0 = vpop.f32.mrf.mxu1 }
 0x11a   : > { %v711_v28 = vadd.f32 %v710_v0, %v667_v52 }
 0x11b   : > { %v794_v36 = vadd.f32 %v793_v34, %v751_v35 }
 0x11c   : > { %1058 = vmatmul.bf16.gmra.mxu0 %v4158_v32  ;;  %1101 = vmatmul.bf16.gmra.mxu1 %v4162_v20  ;;  %v4190_v32 = vor.u32 %v5154_v22, %v4189_v2  ;;  %v4194_v20 = vor.u32 %v5152_v59, %v4191_v60  ;;  %v4239_v59 = vld [vmem:[%s8122_s0 + $0x1a8] sm:$0xf]  ;;  %v5159_v60 = vld [vmem:[%s8122_s0 + $0x1b4] sm:$0xf0] }
 0x11d   : > { %v822_v37 = vadd.f32 %v821_v57, %v794_v36  ;;  %v844_v1 = vmul.f32 %v794_v36, %v794_v36  ;;  %1144 = vmatmul.bf16.gmra.mxu2 %v4166_v29  ;;  %1187 = vmatmul.bf16.gmra.mxu3 %v4170_v16  ;;  %v4198_v29 = vor.u32 %v5155_v62, %v4197_v61  ;;  %v5157_v61 = vld [vmem:[%s8122_s0 + $0x1ac] sm:$0xf]  ;;  %v4241_v62 = vld [vmem:[%s8122_s0 + $0x1b8] sm:$0xf0] }
 0x11e   : > { %v4202_v16 = vor.u32 %v5153_v63, %v4199_v5 }
 0x11f   : > { %v856_v3 = vadd.f32 %v855_v7, %v844_v1 }
 0x120   : > { %v753_v38 = vpop.f32.mrf.mxu2  ;;  %v796_v39 = vpop.f32.mrf.mxu3 }
 0x121   : > { %v754_v25 = vadd.f32 %v753_v38, %v711_v28  ;;  %v669_v27 = vpop.f32.mrf.mxu0  ;;  %v712_v10 = vpop.f32.mrf.mxu1 }
 0x122   : > { %v713_v30 = vadd.f32 %v712_v10, %v669_v27 }
 0x123   : > { %v797_v12 = vadd.f32 %v796_v39, %v754_v25 }
 0x125   : > { %v823_v14 = vadd.f32 %v822_v37, %v797_v12  ;;  %v845_v17 = vmul.f32 %v797_v12, %v797_v12 }
 0x127   : > { %v857_v6 = vadd.f32 %v856_v3, %v845_v17 }
 0x128   : > { %v755_v41 = vpop.f32.mrf.mxu2  ;;  %v798_v42 = vpop.f32.mrf.mxu3 }
 0x129   : > { %v756_v45 = vadd.f32 %v755_v41, %v713_v30  ;;  %v672_v46 = vpop.f32.mrf.mxu0  ;;  %v715_v47 = vpop.f32.mrf.mxu1  ;;  %v4105_v30 = vld [vmem:[%s8122_s0 + $0x190] sm:$0x11] }
 0x12a   : > { %v716_v24 = vadd.f32 %v715_v47, %v672_v46  ;;  %v976_v17 = vunpack.c.h.b16 %v4105_v30  ;;  %v1005_v46 = vpack.c.b16 %v977_v19, %v977_v19  ;;  %v1006_v47 = vpack.c.b16 %v978_v13, %v978_v13  ;;  %v5161_v19 = vld [vmem:[%s8122_s0 + $0x1cc] sm:$0xf]  ;;  %v4257_v13 = vld [vmem:[%s8122_s0 + $0x1d8] sm:$0xf0] }
 0x12b   : > { %v799_v9 = vadd.f32 %v798_v42, %v756_v45 }
 0x12c   : > { %1063 = vmatmul.bf16.gmra.mxu0 %v4174_v43  ;;  %1106 = vmatmul.bf16.gmra.mxu1 %v4178_v44  ;;  %v1004_v42 = vpack.c.b16 %v976_v17, %v976_v17  ;;  %v4255_v17 = vld [vmem:[%s8122_s0 + $0x1c8] sm:$0xf] }
 0x12d   : > { %v824_v11 = vadd.f32 %v823_v14, %v799_v9  ;;  %v846_v26 = vmul.f32 %v799_v9, %v799_v9  ;;  %1149 = vmatmul.bf16.gmra.mxu2 %v4182_v48  ;;  %1192 = vmatmul.bf16.gmra.mxu3 %v4186_v49  ;;  %v975_v14 = vunpack.c.l.b16 %v4105_v30  ;;  %v5162_v30 = vld [vmem:[%s8122_s0 + $0x1cc] sm:$0xf0] }
 0x12f   : > { %v858_v50 = vadd.f32 %v857_v6, %v846_v26  ;;  %v1003_v41 = vpack.c.b16 %v975_v14, %v975_v14  ;;  %v4249_v14 = vld [vmem:[%s8122_s0 + $0x1d0] sm:$0xf0] }
 0x130   : > { %v758_v51 = vpop.f32.mrf.mxu2  ;;  %v801_v53 = vpop.f32.mrf.mxu3 }
 0x131   : > { %v759_v54 = vadd.f32 %v758_v51, %v716_v24  ;;  %v674_v55 = vpop.f32.mrf.mxu0  ;;  %v717_v33 = vpop.f32.mrf.mxu1 }
 0x132   : > { %v718_v56 = vadd.f32 %v717_v33, %v674_v55 }
 0x133   : > { %v802_v40 = vadd.f32 %v801_v53, %v759_v54 }
 0x135   : > { %v825_v57 = vadd.f32 %v824_v11, %v802_v40  ;;  %v847_v58 = vmul.f32 %v802_v40, %v802_v40  ;;  %v5158_v40 = vld [vmem:[%s8122_s0 + $0x1ac] sm:$0xf0] }
 0x137   : > { %v859_v7 = vadd.f32 %v858_v50, %v847_v58  ;;  %v4233_v58 = vld [vmem:[%s8122_s0 + $0x1b0] sm:$0xf0] }
 0x138   : > { %v760_v31 = vpop.f32.mrf.mxu2  ;;  %v803_v34 = vpop.f32.mrf.mxu3 }
 0x139   : > { %v761_v35 = vadd.f32 %v760_v31, %v718_v56  ;;  %v677_v52 = vpop.f32.mrf.mxu0  ;;  %v720_v0 = vpop.f32.mrf.mxu1  ;;  %v4231_v56 = vld [vmem:[%s8122_s0 + $0x1a0] sm:$0xf] }
 0x13a   : > { %v721_v28 = vadd.f32 %v720_v0, %v677_v52  ;;  %v4232_v31 = vor.u32 %v5158_v40, %v4231_v56  ;;  %v4240_v52 = vor.u32 %v5159_v60, %v4239_v59  ;;  %v4244_v0 = vor.u32 %v5157_v61, %v4241_v62  ;;  %v4271_v56 = vld [vmem:[%s8122_s0 + $0x1e8] sm:$0xf]  ;;  %v5167_v40 = vld [vmem:[%s8122_s0 + $0x1f4] sm:$0xf0] }
 0x13b   : > { %v804_v36 = vadd.f32 %v803_v34, %v761_v35 }
 0x13c   : > { %1068 = vmatmul.bf16.gmra.mxu0 %v4190_v32  ;;  %1111 = vmatmul.bf16.gmra.mxu1 %v4194_v20 }
 0x13d   : > { %v826_v37 = vadd.f32 %v825_v57, %v804_v36  ;;  %v848_v1 = vmul.f32 %v804_v36, %v804_v36  ;;  %1154 = vmatmul.bf16.gmra.mxu2 %v4198_v29  ;;  %1197 = vmatmul.bf16.gmra.mxu3 %v4202_v16  ;;  %v5156_v57 = vld [vmem:[%s8122_s0 + $0x1a4] sm:$0xf] }
 0x13e   : > { %v4236_v34 = vor.u32 %v5156_v57, %v4233_v58 }
 0x13f   : > { %v860_v3 = vadd.f32 %v859_v7, %v848_v1 }
 0x140   : > { %v763_v38 = vpop.f32.mrf.mxu2  ;;  %v806_v39 = vpop.f32.mrf.mxu3 }
 0x141   : > { %v764_v25 = vadd.f32 %v763_v38, %v721_v28  ;;  %v679_v27 = vpop.f32.mrf.mxu0  ;;  %v722_v10 = vpop.f32.mrf.mxu1 }
 0x142   : > { %v723_v12 = vadd.f32 %v722_v10, %v679_v27  ;;  %v4247_v10 = vld [vmem:[%s8122_s0 + $0x1c0] sm:$0xf] }
 0x143   : > { %v807_v23 = vadd.f32 %v806_v39, %v764_v25 }
 0x145   : > { %v827_v18 = vadd.f32 %v826_v37, %v807_v23  ;;  %v849_v8 = vmul.f32 %v807_v23, %v807_v23 }
 0x147   : > { %v861_v15 = vadd.f32 %v860_v3, %v849_v8  ;;  %v5163_v8 = vld [vmem:[%s8122_s0 + $0x1d4] sm:$0xf0] }
 0x148   : > { %v765_v4 = vpop.f32.mrf.mxu2  ;;  %v808_v6 = vpop.f32.mrf.mxu3 }
 0x149   : > { %v766_v43 = vadd.f32 %v765_v4, %v723_v12  ;;  %v682_v44 = vpop.f32.mrf.mxu0  ;;  %v725_v45 = vpop.f32.mrf.mxu1  ;;  %v5160_v12 = vld [vmem:[%s8122_s0 + $0x1c4] sm:$0xf] }
 0x14a   : > { %v726_v48 = vadd.f32 %v725_v45, %v682_v44 }
 0x14b   : > { %v809_v49 = vadd.f32 %v808_v6, %v766_v43  ;;  %v4252_v43 = vor.u32 %v5160_v12, %v4249_v14  ;;  %v5171_v12 = vld [vmem:[%s8122_s0 + $0x214] sm:$0xf0] }
 0x14c   : > { %1073 = vmatmul.bf16.gmra.mxu0 %v1003_v41  ;;  %1116 = vmatmul.bf16.gmra.mxu1 %v1004_v42  ;;  %v4248_v42 = vor.u32 %v5162_v30, %v4247_v10  ;;  %v4281_v10 = vld [vmem:[%s8122_s0 + $0x210] sm:$0xf0]  ;;  %v4287_v30 = vld [vmem:[%s8122_s0 + $0x208] sm:$0xf] }
 0x14d   : > { %v828_v24 = vadd.f32 %v827_v18, %v809_v49  ;;  %v850_v9 = vmul.f32 %v809_v49, %v809_v49  ;;  %1159 = vmatmul.bf16.gmra.mxu2 %v1005_v46  ;;  %1202 = vmatmul.bf16.gmra.mxu3 %v1006_v47  ;;  %v4256_v46 = vor.u32 %v5163_v8, %v4255_v17 }
 0x14e   : > { %v4260_v47 = vor.u32 %v5161_v19, %v4257_v13 }
 0x14f   : > { %v862_v11 = vadd.f32 %v861_v15, %v850_v9 }
 0x150   : > { %v768_v26 = vpop.f32.mrf.mxu2  ;;  %v811_v50 = vpop.f32.mrf.mxu3 }
 0x151   : > { %v769_v51 = vadd.f32 %v768_v26, %v726_v48  ;;  %v684_v53 = vpop.f32.mrf.mxu0  ;;  %v727_v54 = vpop.f32.mrf.mxu1 }
 0x152   : > { %v728_v55 = vadd.f32 %v727_v54, %v684_v53  ;;  %v4263_v53 = vld [vmem:[%s8122_s0 + $0x1e0] sm:$0xf]  ;;  %v5166_v54 = vld [vmem:[%s8122_s0 + $0x1ec] sm:$0xf0] }
 0x153   : > { %v812_v33 = vadd.f32 %v811_v50, %v769_v51  ;;  %v4264_v59 = vor.u32 %v5166_v54, %v4263_v53  ;;  %v4295_v53 = vld [vmem:[%s8122_s0 + $0x220] sm:$0xf]  ;;  %v5174_v54 = vld [vmem:[%s8122_s0 + $0x22c] sm:$0xf0] }
 0x155   : > { %v829_v2 = vadd.f32 %v828_v24, %v812_v33  ;;  %v851_v22 = vmul.f32 %v812_v33, %v812_v33  ;;  %v4265_v33 = vld [vmem:[%s8122_s0 + $0x1f0] sm:$0xf0] }
 0x157   : > { %v863_v63 = vadd.f32 %v862_v11, %v851_v22  ;;  %v4273_v22 = vld [vmem:[%s8122_s0 + $0x1f8] sm:$0xf0] }
 0x158   : > { %v770_v5 = vpop.f32.mrf.mxu2  ;;  %v813_v7 = vpop.f32.mrf.mxu3 }
 0x159   : > { %v771_v32 = vadd.f32 %v770_v5, %v728_v55  ;;  %v687_v20 = vpop.f32.mrf.mxu0  ;;  %v730_v35 = vpop.f32.mrf.mxu1  ;;  %v5164_v55 = vld [vmem:[%s8122_s0 + $0x1e4] sm:$0xf]  ;;  %v4272_v5 = vor.u32 %v5167_v40, %v4271_v56  ;;  %v4297_v40 = vld [vmem:[%s8122_s0 + $0x230] sm:$0xf0] }
 0x15a   : > { %v731_v29 = vadd.f32 %v730_v35, %v687_v20  ;;  %v4268_v60 = vor.u32 %v5164_v55, %v4265_v33  ;;  %v5172_v56 = vld [vmem:[%s8122_s0 + $0x224] sm:$0xf] }
 0x15b   : > { %v814_v16 = vadd.f32 %v813_v7, %v771_v32 }
 0x15c   : > { %1429 = vmatmul.bf16.vlgmr.msra.gmra.mxu0 %v4232_v31  ;;  %1472 = vmatmul.bf16.vlgmr.msra.gmra.mxu1 %v4236_v34 }
 0x15d   : > { %v830_v28 = vadd.f32 %v829_v2, %v814_v16  ;;  %v852_v36 = vmul.f32 %v814_v16, %v814_v16  ;;  %1515 = vmatmul.bf16.vlgmr.msra.gmra.mxu2 %v4240_v52  ;;  %1558 = vmatmul.bf16.vlgmr.msra.gmra.mxu3 %v4244_v0  ;;  %v5165_v2 = vld [vmem:[%s8122_s0 + $0x1ec] sm:$0xf] }
 0x15e   : > { %v4276_v7 = vor.u32 %v5165_v2, %v4273_v22  ;;  %v4303_v2 = vld [vmem:[%s8122_s0 + $0x228] sm:$0xf]  ;;  %v5175_v22 = vld [vmem:[%s8122_s0 + $0x234] sm:$0xf0] }
 0x15f   : > { %v864_v37 = vadd.f32 %v863_v63, %v852_v36 }
 0x160   : > { %v773_v1 = vpop.f32.mrf.mxu2  ;;  %v816_v3 = vpop.f32.mrf.mxu3 }
 0x161   : > { %v774_v38 = vadd.f32 %v773_v1, %v731_v29  ;;  %v689_v39 = vpop.f32.mrf.mxu0  ;;  %v732_v25 = vpop.f32.mrf.mxu1 }
 0x163   : > { %v817_v27 = vadd.f32 %v816_v3, %v774_v38  ;;  %v4279_v3 = vld [vmem:[%s8122_s0 + $0x200] sm:$0xf]  ;;  %v5170_v38 = vld [vmem:[%s8122_s0 + $0x20c] sm:$0xf0] }
 0x164   : > { %v4280_v19 = vor.u32 %v5170_v38, %v4279_v3 }
 0x165   : > { %v832_v21 = vsel %vm831_vm0, %v817_v27, 0.0  ;;  %v853_v23 = vmul.f32 %v817_v27, %v817_v27  ;;  %v5168_v27 = vld [vmem:[%s8122_s0 + $0x204] sm:$0xf] }
 0x166   : > { %v6633_v18 = vadd.f32 %v832_v21, %v830_v28  ;;  %v5169_v21 = vld [vmem:[%s8122_s0 + $0x20c] sm:$0xf]  ;;  %v4284_v13 = vor.u32 %v5168_v27, %v4281_v10 }
 0x167   : > { %v865_v15 = vsel %vm831_vm0, %v853_v23, 0.0  ;;  %v4289_v23 = vld [vmem:[%s8122_s0 + $0x218] sm:$0xf0] }
 0x168   : > { %v6645_v4 = vadd.f32 %v865_v15, %v864_v37  ;;  %v775_v6 = vpop.f32.mrf.mxu2  ;;  %v818_v41 = vpop.f32.mrf.mxu3 }
 0x169   : > { %v1044_v44 = vpop.f32.mrf.mxu0  ;;  %v1087_v45 = vpop.f32.mrf.mxu1 }
 0x16a   : > { %v1088_v48 = vadd.f32 %v1087_v45, %v1044_v44 }
 0x16c   : > { %1434 = vmatmul.bf16.gmra.mxu0 %v4248_v42  ;;  %1477 = vmatmul.bf16.gmra.mxu1 %v4252_v43  ;;  %v4288_v42 = vor.u32 %v5171_v12, %v4287_v30  ;;  %v4292_v43 = vor.u32 %v5169_v21, %v4289_v23  ;;  %v5176_v30 = vld [vmem:[%s8122_s0 + $0x244] sm:$0xf]  ;;  %v4313_v12 = vld [vmem:[%s8122_s0 + $0x250] sm:$0xf0]  ;;  %v4319_v21 = vld [vmem:[%s8122_s0 + $0x248] sm:$0xf] }
 0x16d   : > { %1520 = vmatmul.bf16.gmra.mxu2 %v4256_v46  ;;  %1563 = vmatmul.bf16.gmra.mxu3 %v4260_v47  ;;  %v5179_v23 = vld [vmem:[%s8122_s0 + $0x254] sm:$0xf0] }
 0x170   : > { %v1130_v49 = vpop.f32.mrf.mxu2  ;;  %v1173_v24 = vpop.f32.mrf.mxu3 }
 0x171   : > { %v1131_v9 = vadd.f32 %v1130_v49, %v1088_v48  ;;  %v1046_v11 = vpop.f32.mrf.mxu0  ;;  %v1089_v26 = vpop.f32.mrf.mxu1 }
 0x172   : > { %v1090_v50 = vadd.f32 %v1089_v26, %v1046_v11 }
 0x173   : > { %v1174_v51 = vadd.f32 %v1173_v24, %v1131_v9 }
 0x175   : > { %v1227_v32 = vmul.f32 %v1174_v51, %v1174_v51 }
 0x178   : > { %v1132_v57 = vpop.f32.mrf.mxu2  ;;  %v1175_v58 = vpop.f32.mrf.mxu3 }
 0x179   : > { %v1133_v61 = vadd.f32 %v1132_v57, %v1090_v50  ;;  %v1049_v62 = vpop.f32.mrf.mxu0  ;;  %v1092_v63 = vpop.f32.mrf.mxu1  ;;  %v5173_v57 = vld [vmem:[%s8122_s0 + $0x22c] sm:$0xf] }
 0x17a   : > { %v1093_v31 = vadd.f32 %v1092_v63, %v1049_v62  ;;  %v4296_v62 = vor.u32 %v5174_v54, %v4295_v53  ;;  %v4300_v63 = vor.u32 %v5172_v56, %v4297_v40  ;;  %v4227_v53 = vld [vmem:[%s8122_s0 + $0x260] sm:$0x11] }
 0x17b   : > { %v1176_v34 = vadd.f32 %v1175_v58, %v1133_v61  ;;  %v4305_v58 = vld [vmem:[%s8122_s0 + $0x238] sm:$0xf0]  ;;  %v1361_v56 = vunpack.c.l.b16 %v4227_v53  ;;  %v1362_v40 = vunpack.c.h.b16 %v4227_v53 }
 0x17c   : > { %1439 = vmatmul.bf16.gmra.mxu0 %v4264_v59  ;;  %1482 = vmatmul.bf16.gmra.mxu1 %v4268_v60 }
 0x17d   : > { %v1207_v20 = vadd.f32 %v1176_v34, %v1174_v51  ;;  %v1228_v35 = vmul.f32 %v1176_v34, %v1176_v34  ;;  %1525 = vmatmul.bf16.gmra.mxu2 %v4272_v5  ;;  %1568 = vmatmul.bf16.gmra.mxu3 %v4276_v7  ;;  %v4304_v34 = vor.u32 %v5175_v22, %v4303_v2 }
 0x17f   : > { %v1240_v52 = vadd.f32 %v1228_v35, %v1227_v32  ;;  %v4308_v32 = vor.u32 %v5173_v57, %v4305_v58 }
 0x180   : > { %v1135_v0 = vpop.f32.mrf.mxu2  ;;  %v1178_v29 = vpop.f32.mrf.mxu3 }
 0x181   : > { %v1136_v16 = vadd.f32 %v1135_v0, %v1093_v31  ;;  %v1051_v28 = vpop.f32.mrf.mxu0  ;;  %v1094_v36 = vpop.f32.mrf.mxu1 }
 0x182   : > { %v1095_v37 = vadd.f32 %v1094_v36, %v1051_v28 }
 0x183   : > { %v1179_v1 = vadd.f32 %v1178_v29, %v1136_v16 }
 0x185   : > { %v1208_v39 = vadd.f32 %v1207_v20, %v1179_v1  ;;  %v1229_v25 = vmul.f32 %v1179_v1, %v1179_v1 }
 0x187   : > { %v1241_v14 = vadd.f32 %v1240_v52, %v1229_v25  ;;  %v5178_v25 = vld [vmem:[%s8122_s0 + $0x24c] sm:$0xf0] }
 0x188   : > { %v1137_v17 = vpop.f32.mrf.mxu2  ;;  %v1180_v8 = vpop.f32.mrf.mxu3 }
 0x189   : > { %v1138_v15 = vadd.f32 %v1137_v17, %v1095_v37  ;;  %v1054_v6 = vpop.f32.mrf.mxu0  ;;  %v1097_v41 = vpop.f32.mrf.mxu1  ;;  %v4321_v17 = vld [vmem:[%s8122_s0 + $0x258] sm:$0xf0] }
 0x18a   : > { %v1098_v44 = vadd.f32 %v1097_v41, %v1054_v6  ;;  %v4316_v6 = vor.u32 %v5176_v30, %v4313_v12  ;;  %v5180_v30 = vld [vmem:[%s8122_s0 + $0x274] sm:$0xf]  ;;  %v4355_v12 = vld [vmem:[%s8122_s0 + $0x280] sm:$0xf0] }
 0x18b   : > { %v1181_v45 = vadd.f32 %v1180_v8, %v1138_v15 }
 0x18c   : > { %1444 = vmatmul.bf16.gmra.mxu0 %v4280_v19  ;;  %1487 = vmatmul.bf16.gmra.mxu1 %v4284_v13 }
 0x18d   : > { %v1209_v46 = vadd.f32 %v1208_v39, %v1181_v45  ;;  %v1230_v47 = vmul.f32 %v1181_v45, %v1181_v45  ;;  %1530 = vmatmul.bf16.gmra.mxu2 %v4288_v42  ;;  %1573 = vmatmul.bf16.gmra.mxu3 %v4292_v43  ;;  %v4311_v39 = vld [vmem:[%s8122_s0 + $0x240] sm:$0xf] }
 0x18e   : > { %v4312_v15 = vor.u32 %v5178_v25, %v4311_v39  ;;  %v4353_v39 = vld [vmem:[%s8122_s0 + $0x270] sm:$0xf]  ;;  %v5182_v25 = vld [vmem:[%s8122_s0 + $0x27c] sm:$0xf0] }
 0x18f   : > { %v1242_v48 = vadd.f32 %v1241_v14, %v1230_v47  ;;  %v5177_v14 = vld [vmem:[%s8122_s0 + $0x24c] sm:$0xf] }
 0x190   : > { %v1140_v49 = vpop.f32.mrf.mxu2  ;;  %v1183_v24 = vpop.f32.mrf.mxu3  ;;  %v4324_v45 = vor.u32 %v5177_v14, %v4321_v17  ;;  %v5181_v14 = vld [vmem:[%s8122_s0 + $0x27c] sm:$0xf]  ;;  %v4363_v17 = vld [vmem:[%s8122_s0 + $0x288] sm:$0xf0] }
 0x191   : > { %v1141_v9 = vadd.f32 %v1140_v49, %v1098_v44  ;;  %v1056_v11 = vpop.f32.mrf.mxu0  ;;  %v1099_v26 = vpop.f32.mrf.mxu1  ;;  %v4320_v44 = vor.u32 %v5179_v23, %v4319_v21  ;;  %v4361_v21 = vld [vmem:[%s8122_s0 + $0x278] sm:$0xf]  ;;  %v5183_v23 = vld [vmem:[%s8122_s0 + $0x284] sm:$0xf0] }
 0x192   : > { %v1100_v50 = vadd.f32 %v1099_v26, %v1056_v11 }
 0x193   : > { %v1184_v51 = vadd.f32 %v1183_v24, %v1141_v9 }
 0x195   : > { %v1210_v55 = vadd.f32 %v1209_v46, %v1184_v51  ;;  %v1231_v33 = vmul.f32 %v1184_v51, %v1184_v51 }
 0x197   : > { %v1243_v59 = vadd.f32 %v1242_v48, %v1231_v33 }
 0x198   : > { %v1142_v60 = vpop.f32.mrf.mxu2  ;;  %v1185_v61 = vpop.f32.mrf.mxu3 }
 0x199   : > { %v1143_v5 = vadd.f32 %v1142_v60, %v1100_v50  ;;  %v1059_v7 = vpop.f32.mrf.mxu0  ;;  %v1102_v31 = vpop.f32.mrf.mxu1 }
 0x19a   : > { %v1103_v20 = vadd.f32 %v1102_v31, %v1059_v7 }
 0x19b   : > { %v1186_v35 = vadd.f32 %v1185_v61, %v1143_v5 }
 0x19c   : > { %1449 = vmatmul.bf16.gmra.mxu0 %v4296_v62  ;;  %1492 = vmatmul.bf16.gmra.mxu1 %v4300_v63  ;;  %v1389_v62 = vpack.c.b16 %v1361_v56, %v1361_v56  ;;  %v1390_v63 = vpack.c.b16 %v1362_v40, %v1362_v40  ;;  %v4369_v40 = vld [vmem:[%s8122_s0 + $0x290] sm:$0xf] }
 0x19d   : > { %v1211_v52 = vadd.f32 %v1210_v55, %v1186_v35  ;;  %v1232_v0 = vmul.f32 %v1186_v35, %v1186_v35  ;;  %1535 = vmatmul.bf16.gmra.mxu2 %v4304_v34  ;;  %1578 = vmatmul.bf16.gmra.mxu3 %v4308_v32  ;;  %v4228_v55 = vld [vmem:[%s8122_s0 + $0x268] sm:$0x11] }
 0x19e   : > { %v1363_v57 = vunpack.c.l.b16 %v4228_v55  ;;  %v1364_v58 = vunpack.c.h.b16 %v4228_v55 }
 0x19f   : > { %v1244_v29 = vadd.f32 %v1243_v59, %v1232_v0 }
 0x1a0   : > { %v1145_v16 = vpop.f32.mrf.mxu2  ;;  %v1188_v28 = vpop.f32.mrf.mxu3  ;;  %v1391_v34 = vpack.c.b16 %v1363_v57, %v1363_v57  ;;  %v1392_v32 = vpack.c.b16 %v1364_v58, %v1364_v58 }
 0x1a1   : > { %v1146_v36 = vadd.f32 %v1145_v16, %v1103_v20  ;;  %v1061_v37 = vpop.f32.mrf.mxu0  ;;  %v1104_v1 = vpop.f32.mrf.mxu1 }
 0x1a2   : > { %v1105_v3 = vadd.f32 %v1104_v1, %v1061_v37 }
 0x1a3   : > { %v1189_v38 = vadd.f32 %v1188_v28, %v1146_v36 }
 0x1a5   : > { %v1212_v27 = vadd.f32 %v1211_v52, %v1189_v38  ;;  %v1233_v10 = vmul.f32 %v1189_v38, %v1189_v38 }
 0x1a7   : > { %v1245_v8 = vadd.f32 %v1244_v29, %v1233_v10 }
 0x1a8   : > { %v1147_v19 = vpop.f32.mrf.mxu2  ;;  %v1190_v13 = vpop.f32.mrf.mxu3 }
 0x1a9   : > { %v1148_v41 = vadd.f32 %v1147_v19, %v1105_v3  ;;  %v1064_v42 = vpop.f32.mrf.mxu0  ;;  %v1107_v43 = vpop.f32.mrf.mxu1 }
 0x1aa   : > { %v1108_v46 = vadd.f32 %v1107_v43, %v1064_v42 }
 0x1ab   : > { %v1191_v47 = vadd.f32 %v1190_v13, %v1148_v41 }
 0x1ac   : > { %1454 = vmatmul.bf16.gmra.mxu0 %v4312_v15  ;;  %1497 = vmatmul.bf16.gmra.mxu1 %v4316_v6  ;;  %v4354_v15 = vor.u32 %v5182_v25, %v4353_v39  ;;  %v4358_v6 = vor.u32 %v5180_v30, %v4355_v12 }
 0x1ad   : > { %v1213_v48 = vadd.f32 %v1212_v27, %v1191_v47  ;;  %v1234_v49 = vmul.f32 %v1191_v47, %v1191_v47  ;;  %1540 = vmatmul.bf16.gmra.mxu2 %v4320_v44  ;;  %1583 = vmatmul.bf16.gmra.mxu3 %v4324_v45  ;;  %v4362_v44 = vor.u32 %v5183_v23, %v4361_v21 }
 0x1ae   : > { %v4366_v45 = vor.u32 %v5181_v14, %v4363_v17 }
 0x1af   : > { %v1246_v24 = vadd.f32 %v1245_v8, %v1234_v49 }
 0x1b0   : > { %v1150_v9 = vpop.f32.mrf.mxu2  ;;  %v1193_v11 = vpop.f32.mrf.mxu3 }
 0x1b1   : > { %v1151_v26 = vadd.f32 %v1150_v9, %v1108_v46  ;;  %v1066_v50 = vpop.f32.mrf.mxu0  ;;  %v1109_v51 = vpop.f32.mrf.mxu1  ;;  %v867_v9 = vrot.slane %v6645_v4, 4 }
 0x1b2   : > { %v1110_v54 = vadd.f32 %v1109_v51, %v1066_v50 }
 0x1b3   : > { %v1194_v33 = vadd.f32 %v1193_v11, %v1151_v26 }
 0x1b5   : > { %v1214_v2 = vadd.f32 %v1213_v48, %v1194_v33  ;;  %v1235_v22 = vmul.f32 %v1194_v33, %v1194_v33  ;;  %v834_v48 = vrot.slane %v6633_v18, 4  ;;  %v868_v33 = vadd.f32 %v867_v9, %v6645_v4  ;;  %v4371_v4 = vld [vmem:[%s8122_s0 + $0x2a0] sm:$0xf0]  ;;  %v4393_v9 = vld [vmem:[%s8122_s0 + $0x2b8] sm:$0xf] }
 0x1b7   : > { %v1247_v59 = vadd.f32 %v1246_v24, %v1235_v22  ;;  %v835_v51 = vadd.f32 %v834_v48, %v6633_v18  ;;  %v5184_v22 = vld [vmem:[%s8122_s0 + $0x294] sm:$0xf]  ;;  %v5190_v48 = vld [vmem:[%s8122_s0 + $0x2bc] sm:$0xf0] }
 0x1b8   : > { %v1152_v60 = vpop.f32.mrf.mxu2  ;;  %v1195_v61 = vpop.f32.mrf.mxu3 }
 0x1b9   : > { %v1153_v5 = vadd.f32 %v1152_v60, %v1110_v54  ;;  %v1069_v7 = vpop.f32.mrf.mxu0  ;;  %v1112_v31 = vpop.f32.mrf.mxu1  ;;  %v836_v57 = vrot.slane %v835_v51, 2 }
 0x1ba   : > { %v1113_v20 = vadd.f32 %v1112_v31, %v1069_v7 }
 0x1bb   : > { %v1196_v35 = vadd.f32 %v1195_v61, %v1153_v5  ;;  %v5187_v61 = vld [vmem:[%s8122_s0 + $0x2a4] sm:$0xf0]  ;;  %v869_v5 = vrot.slane %v868_v33, 2 }
 0x1bc   : > { %1459 = vmatmul.bf16.gmra.mxu0 %v1389_v62  ;;  %1502 = vmatmul.bf16.gmra.mxu1 %v1390_v63  ;;  %v5185_v62 = vld [vmem:[%s8122_s0 + $0x29c] sm:$0xf]  ;;  %v4379_v63 = vld [vmem:[%s8122_s0 + $0x2a8] sm:$0xf0] }
 0x1bd   : > { %v1215_v52 = vadd.f32 %v1214_v2, %v1196_v35  ;;  %v1236_v0 = vmul.f32 %v1196_v35, %v1196_v35  ;;  %1545 = vmatmul.bf16.gmra.mxu2 %v1391_v34  ;;  %1588 = vmatmul.bf16.gmra.mxu3 %v1392_v32  ;;  %v5186_v2 = vld [vmem:[%s8122_s0 + $0x29c] sm:$0xf0] }
 0x1be   : > { %v4370_v35 = vor.u32 %v5186_v2, %v4369_v40 }
 0x1bf   : > { %v1248_v29 = vadd.f32 %v1247_v59, %v1236_v0  ;;  %v4377_v59 = vld [vmem:[%s8122_s0 + $0x298] sm:$0xf] }
 0x1c0   : > { %v1155_v16 = vpop.f32.mrf.mxu2  ;;  %v1198_v28 = vpop.f32.mrf.mxu3 }
 0x1c1   : > { %v1156_v36 = vadd.f32 %v1155_v16, %v1113_v20  ;;  %v1071_v37 = vpop.f32.mrf.mxu0  ;;  %v1114_v1 = vpop.f32.mrf.mxu1  ;;  %v4378_v16 = vor.u32 %v5187_v61, %v4377_v59 }
 0x1c2   : > { %v1115_v3 = vadd.f32 %v1114_v1, %v1071_v37 }
 0x1c3   : > { %v1199_v38 = vadd.f32 %v1198_v28, %v1156_v36  ;;  %v4382_v28 = vor.u32 %v5185_v62, %v4379_v63  ;;  %v837_v36 = vadd.f32 %v836_v57, %v835_v51  ;;  %v4395_v51 = vld [vmem:[%s8122_s0 + $0x2c8] sm:$0xf0] }
 0x1c5   : > { %v1216_v27 = vadd.f32 %v1215_v52, %v1199_v38  ;;  %v1237_v10 = vmul.f32 %v1199_v38, %v1199_v38  ;;  %v4374_v52 = vor.u32 %v5184_v22, %v4371_v4  ;;  %v870_v38 = vadd.f32 %v869_v5, %v868_v33 }
 0x1c7   : > { %v1249_v8 = vadd.f32 %v1248_v29, %v1237_v10  ;;  %v871_v12 = vrot.slane %v870_v38, 1 }
 0x1c8   : > { %v1157_v19 = vpop.f32.mrf.mxu2  ;;  %v1200_v13 = vpop.f32.mrf.mxu3 }
 0x1c9   : > { %v1158_v41 = vadd.f32 %v1157_v19, %v1115_v3  ;;  %v1074_v42 = vpop.f32.mrf.mxu0  ;;  %v1117_v43 = vpop.f32.mrf.mxu1 }
 0x1ca   : > { %v1118_v46 = vadd.f32 %v1117_v43, %v1074_v42 }
 0x1cb   : > { %v1201_v47 = vadd.f32 %v1200_v13, %v1158_v41 }
 0x1cc   : > { %1815 = vmatmul.bf16.vlgmr.msrb.gmra.mxu0 %v4354_v15  ;;  %1858 = vmatmul.bf16.vlgmr.msrb.gmra.mxu1 %v4358_v6 }
 0x1cd   : > { %v1217_v49 = vadd.f32 %v1216_v27, %v1201_v47  ;;  %v1238_v24 = vmul.f32 %v1201_v47, %v1201_v47  ;;  %1901 = vmatmul.bf16.vlgmr.msrb.gmra.mxu2 %v4362_v44  ;;  %1944 = vmatmul.bf16.vlgmr.msrb.gmra.mxu3 %v4366_v45  ;;  %v838_v27 = vrot.slane %v837_v36, 1  ;;  %v872_v44 = vadd.f32 %v871_v12, %v870_v38  ;;  %v4385_v47 = vld [vmem:[%s8122_s0 + $0x2b0] sm:$0xf] }
 0x1cf   : > { %v1250_v11 = vadd.f32 %v1249_v8, %v1238_v24  ;;  %v839_v15 = vadd.f32 %v838_v27, %v837_v36  ;;  %v4387_v24 = vld [vmem:[%s8122_s0 + $0x2c0] sm:$0xf0]  ;;  %v5195_v36 = vld [vmem:[%s8122_s0 + $0x2e4] sm:$0xf0] }
 0x1d0   : > { %v1160_v26 = vpop.f32.mrf.mxu2  ;;  %v1203_v50 = vpop.f32.mrf.mxu3 }
 0x1d1   : > { %v1161_v53 = vadd.f32 %v1160_v26, %v1118_v46  ;;  %v1076_v54 = vpop.f32.mrf.mxu0  ;;  %v1119_v55 = vpop.f32.mrf.mxu1  ;;  %v5191_v26 = vld [vmem:[%s8122_s0 + $0x2c4] sm:$0xf0] }
 0x1d2   : > { %v4386_v55 = vor.u32 %v5190_v48, %v4385_v47  ;;  %v4394_v22 = vor.u32 %v5191_v26, %v4393_v9  ;;  %v4417_v47 = vld [vmem:[%s8122_s0 + $0x2f0] sm:$0xf]  ;;  %v5198_v48 = vld [vmem:[%s8122_s0 + $0x2fc] sm:$0xf0]  ;;  %v5196_v9 = vld [vmem:[%s8122_s0 + $0x2f4] sm:$0xf] }
 0x1d3   : > { %v1204_v56 = vadd.f32 %v1203_v50, %v1161_v53  ;;  %v5189_v50 = vld [vmem:[%s8122_s0 + $0x2bc] sm:$0xf]  ;;  %v4419_v26 = vld [vmem:[%s8122_s0 + $0x300] sm:$0xf0] }
 0x1d4   : > { %v4398_v57 = vor.u32 %v5189_v50, %v4395_v51  ;;  %v4425_v50 = vld [vmem:[%s8122_s0 + $0x2f8] sm:$0xf]  ;;  %v5199_v51 = vld [vmem:[%s8122_s0 + $0x304] sm:$0xf0] }
 0x1d5   : > { %v1218_v18 = vsel %vm831_vm0, %v1204_v56, 0.0  ;;  %v1239_v58 = vmul.f32 %v1204_v56, %v1204_v56 }
 0x1d6   : > { %v1219_v60 = vadd.f32 %v1218_v18, %v1217_v49  ;;  %v5188_v49 = vld [vmem:[%s8122_s0 + $0x2b4] sm:$0xf] }
 0x1d7   : > { %v1251_v7 = vsel %vm831_vm0, %v1239_v58, 0.0  ;;  %v4390_v33 = vor.u32 %v5188_v49, %v4387_v24 }
 0x1d8   : > { %v1220_v31 = vrot.slane %v1219_v60, 4  ;;  %v1252_v34 = vadd.f32 %v1251_v7, %v1250_v11  ;;  %v1162_v32 = vpop.f32.mrf.mxu2  ;;  %v1205_v20 = vpop.f32.mrf.mxu3 }
 0x1d9   : > { %v1430_v0 = vpop.f32.mrf.mxu0  ;;  %v1473_v29 = vpop.f32.mrf.mxu1  ;;  %v4401_v20 = vld [vmem:[%s8122_s0 + $0x2d0] sm:$0xf] }
 0x1da   : > { %v1221_v37 = vadd.f32 %v1220_v31, %v1219_v60  ;;  %v1253_v1 = vrot.slane %v1252_v34, 4  ;;  %v1474_v3 = vadd.f32 %v1473_v29, %v1430_v0  ;;  %v5192_v29 = vld [vmem:[%s8122_s0 + $0x2d4] sm:$0xf] }
 0x1dc   : > { %v1222_v39 = vrot.slane %v1221_v37, 2  ;;  %v1254_v25 = vadd.f32 %v1253_v1, %v1252_v34  ;;  %1820 = vmatmul.bf16.gmra.mxu0 %v4370_v35  ;;  %1863 = vmatmul.bf16.gmra.mxu1 %v4374_v52  ;;  %v5194_v35 = vld [vmem:[%s8122_s0 + $0x2dc] sm:$0xf0]  ;;  %v4411_v1 = vld [vmem:[%s8122_s0 + $0x2e8] sm:$0xf0] }
 0x1dd   : > { %1906 = vmatmul.bf16.gmra.mxu2 %v4378_v16  ;;  %1949 = vmatmul.bf16.gmra.mxu3 %v4382_v28  ;;  %v4403_v16 = vld [vmem:[%s8122_s0 + $0x2e0] sm:$0xf0]  ;;  %v4409_v28 = vld [vmem:[%s8122_s0 + $0x2d8] sm:$0xf] }
 0x1de   : > { %v1223_v10 = vadd.f32 %v1222_v39, %v1221_v37  ;;  %v1255_v30 = vrot.slane %v1254_v25, 2  ;;  %v5193_v37 = vld [vmem:[%s8122_s0 + $0x2dc] sm:$0xf]  ;;  %v4406_v27 = vor.u32 %v5192_v29, %v4403_v16 }
 0x1e0   : > { %v1224_v21 = vrot.slane %v1223_v10, 1  ;;  %v1256_v23 = vadd.f32 %v1255_v30, %v1254_v25  ;;  %v1516_v14 = vpop.f32.mrf.mxu2  ;;  %v1559_v17 = vpop.f32.mrf.mxu3  ;;  %v4402_v25 = vor.u32 %v5194_v35, %v4401_v20 }
 0x1e1   : > { %v1517_v8 = vadd.f32 %v1516_v14, %v1474_v3  ;;  %v1432_v19 = vpop.f32.mrf.mxu0  ;;  %v1475_v13 = vpop.f32.mrf.mxu1 }
 0x1e2   : > { %v1225_v6 = vadd.f32 %v1224_v21, %v1223_v10  ;;  %v1257_v41 = vrot.slane %v1256_v23, 1  ;;  %v1476_v42 = vadd.f32 %v1475_v13, %v1432_v19  ;;  %v4410_v21 = vor.u32 %v5195_v36, %v4409_v28  ;;  %v5200_v28 = vld [vmem:[%s8122_s0 + $0x314] sm:$0xf]  ;;  %v4435_v36 = vld [vmem:[%s8122_s0 + $0x320] sm:$0xf0] }
 0x1e3   : > { %v1560_v43 = vadd.f32 %v1559_v17, %v1517_v8 }
 0x1e4   : > { %v6803_v45 = vadd.f32 %v1225_v6, %v839_v15  ;;  %v1258_v46 = vadd.f32 %v1257_v41, %v1256_v23  ;;  %v4414_v23 = vor.u32 %v5193_v37, %v4411_v1  ;;  %v4441_v37 = vld [vmem:[%s8122_s0 + $0x318] sm:$0xf]  ;;  %v5203_v1 = vld [vmem:[%s8122_s0 + $0x324] sm:$0xf0] }
 0x1e5   : > { %v1613_v4 = vmul.f32 %v1560_v43, %v1560_v43 }
 0x1e6   : > { %v6820_v11 = vadd.f32 %v1258_v46, %v872_v44 }
 0x1e8   : > { %v1518_v53 = vpop.f32.mrf.mxu2  ;;  %v1561_v54 = vpop.f32.mrf.mxu3 }
 0x1e9   : > { %v1519_v56 = vadd.f32 %v1518_v53, %v1476_v42  ;;  %v1435_v40 = vpop.f32.mrf.mxu0  ;;  %v1478_v2 = vpop.f32.mrf.mxu1  ;;  %v5197_v53 = vld [vmem:[%s8122_s0 + $0x2fc] sm:$0xf] }
 0x1ea   : > { %v1479_v18 = vadd.f32 %v1478_v2, %v1435_v40  ;;  %v4418_v40 = vor.u32 %v5198_v48, %v4417_v47  ;;  %v4422_v2 = vor.u32 %v5196_v9, %v4419_v26  ;;  %v4349_v47 = vld [vmem:[%s8122_s0 + $0x330] sm:$0x11] }
 0x1eb   : > { %v1562_v58 = vadd.f32 %v1561_v54, %v1519_v56  ;;  %v4427_v54 = vld [vmem:[%s8122_s0 + $0x308] sm:$0xf0]  ;;  %v1747_v9 = vunpack.c.l.b16 %v4349_v47  ;;  %v1748_v26 = vunpack.c.h.b16 %v4349_v47 }
 0x1ec   : > { %1825 = vmatmul.bf16.gmra.mxu0 %v4386_v55  ;;  %1868 = vmatmul.bf16.gmra.mxu1 %v4390_v33 }
 0x1ed   : > { %v1593_v59 = vadd.f32 %v1562_v58, %v1560_v43  ;;  %v1614_v60 = vmul.f32 %v1562_v58, %v1562_v58  ;;  %1911 = vmatmul.bf16.gmra.mxu2 %v4394_v22  ;;  %1954 = vmatmul.bf16.gmra.mxu3 %v4398_v57  ;;  %v4426_v58 = vor.u32 %v5199_v51, %v4425_v50 }
 0x1ef   : > { %v1626_v61 = vadd.f32 %v1614_v60, %v1613_v4  ;;  %v4430_v4 = vor.u32 %v5197_v53, %v4427_v54 }
 0x1f0   : > { %v1521_v62 = vpop.f32.mrf.mxu2  ;;  %v1564_v63 = vpop.f32.mrf.mxu3 }
 0x1f1   : > { %v1522_v5 = vadd.f32 %v1521_v62, %v1479_v18  ;;  %v1437_v7 = vpop.f32.mrf.mxu0  ;;  %v1480_v31 = vpop.f32.mrf.mxu1 }
 0x1f2   : > { %v1481_v34 = vadd.f32 %v1480_v31, %v1437_v7 }
 0x1f3   : > { %v1565_v32 = vadd.f32 %v1564_v63, %v1522_v5 }
 0x1f5   : > { %v1594_v52 = vadd.f32 %v1593_v59, %v1565_v32  ;;  %v1615_v0 = vmul.f32 %v1565_v32, %v1565_v32 }
 0x1f7   : > { %v1627_v3 = vadd.f32 %v1626_v61, %v1615_v0  ;;  %v5202_v0 = vld [vmem:[%s8122_s0 + $0x31c] sm:$0xf0] }
 0x1f8   : > { %v1523_v38 = vpop.f32.mrf.mxu2  ;;  %v1566_v39 = vpop.f32.mrf.mxu3 }
 0x1f9   : > { %v1524_v10 = vadd.f32 %v1523_v38, %v1481_v34  ;;  %v1440_v30 = vpop.f32.mrf.mxu0  ;;  %v1483_v12 = vpop.f32.mrf.mxu1  ;;  %v4443_v38 = vld [vmem:[%s8122_s0 + $0x328] sm:$0xf0] }
 0x1fa   : > { %v1484_v14 = vadd.f32 %v1483_v12, %v1440_v30  ;;  %v4438_v30 = vor.u32 %v5200_v28, %v4435_v36 }
 0x1fb   : > { %v1567_v17 = vadd.f32 %v1566_v39, %v1524_v10 }
 0x1fc   : > { %1830 = vmatmul.bf16.gmra.mxu0 %v4402_v25  ;;  %1873 = vmatmul.bf16.gmra.mxu1 %v4406_v27 }
 0x1fd   : > { %v1595_v8 = vadd.f32 %v1594_v52, %v1567_v17  ;;  %v1616_v19 = vmul.f32 %v1567_v17, %v1567_v17  ;;  %1916 = vmatmul.bf16.gmra.mxu2 %v4410_v21  ;;  %1959 = vmatmul.bf16.gmra.mxu3 %v4414_v23  ;;  %v4433_v52 = vld [vmem:[%s8122_s0 + $0x310] sm:$0xf] }
 0x1fe   : > { %v4434_v10 = vor.u32 %v5202_v0, %v4433_v52 }
 0x1ff   : > { %v1628_v13 = vadd.f32 %v1627_v3, %v1616_v19  ;;  %v5201_v3 = vld [vmem:[%s8122_s0 + $0x31c] sm:$0xf] }
 0x200   : > { %v1526_v15 = vpop.f32.mrf.mxu2  ;;  %v1569_v6 = vpop.f32.mrf.mxu3  ;;  %v4446_v17 = vor.u32 %v5201_v3, %v4443_v38 }
 0x201   : > { %v1527_v41 = vadd.f32 %v1526_v15, %v1484_v14  ;;  %v1442_v42 = vpop.f32.mrf.mxu0  ;;  %v1485_v43 = vpop.f32.mrf.mxu1  ;;  %v4442_v14 = vor.u32 %v5203_v1, %v4441_v37 }
 0x202   : > { %v1486_v44 = vadd.f32 %v1485_v43, %v1442_v42 }
 0x203   : > { %v1570_v46 = vadd.f32 %v1569_v6, %v1527_v41 }
 0x205   : > { %v1596_v49 = vadd.f32 %v1595_v8, %v1570_v46  ;;  %v1617_v24 = vmul.f32 %v1570_v46, %v1570_v46 }
 0x207   : > { %v1629_v55 = vadd.f32 %v1628_v13, %v1617_v24 }
 0x208   : > { %v1528_v33 = vpop.f32.mrf.mxu2  ;;  %v1571_v56 = vpop.f32.mrf.mxu3 }
 0x209   : > { %v1529_v22 = vadd.f32 %v1528_v33, %v1486_v44  ;;  %v1445_v57 = vpop.f32.mrf.mxu0  ;;  %v1488_v18 = vpop.f32.mrf.mxu1 }
 0x20a   : > { %v1489_v59 = vadd.f32 %v1488_v18, %v1445_v57 }
 0x20b   : > { %v1572_v60 = vadd.f32 %v1571_v56, %v1529_v22 }
 0x20c   : > { %1835 = vmatmul.bf16.gmra.mxu0 %v4418_v40  ;;  %1878 = vmatmul.bf16.gmra.mxu1 %v4422_v2  ;;  %v1775_v40 = vpack.c.b16 %v1747_v9, %v1747_v9  ;;  %v1776_v2 = vpack.c.b16 %v1748_v26, %v1748_v26 }
 0x20d   : > { %v1597_v61 = vadd.f32 %v1596_v49, %v1572_v60  ;;  %v1618_v62 = vmul.f32 %v1572_v60, %v1572_v60  ;;  %1921 = vmatmul.bf16.gmra.mxu2 %v4426_v58  ;;  %1964 = vmatmul.bf16.gmra.mxu3 %v4430_v4  ;;  %v4350_v49 = vld [vmem:[%s8122_s0 + $0x338] sm:$0x11] }
 0x20e   : > { %v1749_v53 = vunpack.c.l.b16 %v4350_v49  ;;  %v1750_v54 = vunpack.c.h.b16 %v4350_v49 }
 0x20f   : > { %v1630_v63 = vadd.f32 %v1629_v55, %v1618_v62 }
 0x210   : > { %v1531_v5 = vpop.f32.mrf.mxu2  ;;  %v1574_v7 = vpop.f32.mrf.mxu3  ;;  %v1777_v58 = vpack.c.b16 %v1749_v53, %v1749_v53  ;;  %v1778_v4 = vpack.c.b16 %v1750_v54, %v1750_v54 }
 0x211   : > { %v1532_v31 = vadd.f32 %v1531_v5, %v1489_v59  ;;  %v1447_v34 = vpop.f32.mrf.mxu0  ;;  %v1490_v32 = vpop.f32.mrf.mxu1 }
 0x212   : > { %v1491_v20 = vadd.f32 %v1490_v32, %v1447_v34 }
 0x213   : > { %v1575_v35 = vadd.f32 %v1574_v7, %v1532_v31 }
 0x215   : > { %v1598_v29 = vadd.f32 %v1597_v61, %v1575_v35  ;;  %v1619_v16 = vmul.f32 %v1575_v35, %v1575_v35 }
 0x217   : > { %v1631_v39 = vadd.f32 %v1630_v63, %v1619_v16 }
 0x218   : > { %v1533_v25 = vpop.f32.mrf.mxu2  ;;  %v1576_v27 = vpop.f32.mrf.mxu3 }
 0x219   : > { %v1534_v12 = vadd.f32 %v1533_v25, %v1491_v20  ;;  %v1450_v21 = vpop.f32.mrf.mxu0  ;;  %v1493_v23 = vpop.f32.mrf.mxu1 }
 0x21a   : > { %v1494_v8 = vadd.f32 %v1493_v23, %v1450_v21 }
 0x21b   : > { %v1577_v19 = vadd.f32 %v1576_v27, %v1534_v12 }
 0x21c   : > { %1840 = vmatmul.bf16.gmra.mxu0 %v4434_v10  ;;  %1883 = vmatmul.bf16.gmra.mxu1 %v4438_v30 }
 0x21d   : > { %v1599_v13 = vadd.f32 %v1598_v29, %v1577_v19  ;;  %v1620_v15 = vmul.f32 %v1577_v19, %v1577_v19  ;;  %1926 = vmatmul.bf16.gmra.mxu2 %v4442_v14  ;;  %1969 = vmatmul.bf16.gmra.mxu3 %v4446_v17 }
 0x21f   : > { %v1632_v6 = vadd.f32 %v1631_v39, %v1620_v15 }
 0x220   : > { %v1536_v41 = vpop.f32.mrf.mxu2  ;;  %v1579_v42 = vpop.f32.mrf.mxu3 }
 0x221   : > { %v1537_v43 = vadd.f32 %v1536_v41, %v1494_v8  ;;  %v1452_v44 = vpop.f32.mrf.mxu0  ;;  %v1495_v46 = vpop.f32.mrf.mxu1 }
 0x222   : > { %v1496_v48 = vadd.f32 %v1495_v46, %v1452_v44 }
 0x223   : > { %v1580_v24 = vadd.f32 %v1579_v42, %v1537_v43 }
 0x225   : > { %v1600_v50 = vadd.f32 %v1599_v13, %v1580_v24  ;;  %v1621_v51 = vmul.f32 %v1580_v24, %v1580_v24 }
 0x227   : > { %v1633_v55 = vadd.f32 %v1632_v6, %v1621_v51 }
 0x228   : > { %v1538_v33 = vpop.f32.mrf.mxu2  ;;  %v1581_v56 = vpop.f32.mrf.mxu3 }
 0x229   : > { %v1539_v22 = vadd.f32 %v1538_v33, %v1496_v48  ;;  %v1455_v57 = vpop.f32.mrf.mxu0  ;;  %v1498_v18 = vpop.f32.mrf.mxu1 }
 0x22a   : > { %v1499_v59 = vadd.f32 %v1498_v18, %v1455_v57 }
 0x22b   : > { %v1582_v60 = vadd.f32 %v1581_v56, %v1539_v22 }
 0x22c   : > { %1845 = vmatmul.bf16.gmra.mxu0 %v1775_v40  ;;  %1888 = vmatmul.bf16.gmra.mxu1 %v1776_v2 }
 0x22d   : > { %v1601_v61 = vadd.f32 %v1600_v50, %v1582_v60  ;;  %v1622_v62 = vmul.f32 %v1582_v60, %v1582_v60  ;;  %1931 = vmatmul.bf16.gmra.mxu2 %v1777_v58  ;;  %1974 = vmatmul.bf16.gmra.mxu3 %v1778_v4 }
 0x22f   : > { %v1634_v63 = vadd.f32 %v1633_v55, %v1622_v62 }
 0x230   : > { %v1541_v5 = vpop.f32.mrf.mxu2  ;;  %v1584_v7 = vpop.f32.mrf.mxu3 }
 0x231   : > { %v1542_v31 = vadd.f32 %v1541_v5, %v1499_v59  ;;  %v1457_v34 = vpop.f32.mrf.mxu0  ;;  %v1500_v32 = vpop.f32.mrf.mxu1 }
 0x232   : > { %v1501_v20 = vadd.f32 %v1500_v32, %v1457_v34 }
 0x233   : > { %v1585_v35 = vadd.f32 %v1584_v7, %v1542_v31 }
 0x235   : > { %v1602_v52 = vadd.f32 %v1601_v61, %v1585_v35  ;;  %v1623_v0 = vmul.f32 %v1585_v35, %v1585_v35 }
 0x237   : > { %v1635_v29 = vadd.f32 %v1634_v63, %v1623_v0 }
 0x238   : > { %v1543_v16 = vpop.f32.mrf.mxu2  ;;  %v1586_v28 = vpop.f32.mrf.mxu3 }
 0x239   : > { %v1544_v36 = vadd.f32 %v1543_v16, %v1501_v20  ;;  %v1460_v37 = vpop.f32.mrf.mxu0  ;;  %v1503_v1 = vpop.f32.mrf.mxu1 }
 0x23a   : > { %v1504_v3 = vadd.f32 %v1503_v1, %v1460_v37 }
 0x23b   : > { %v1587_v38 = vadd.f32 %v1586_v28, %v1544_v36 }
 0x23d   : > { %v1603_v39 = vadd.f32 %v1602_v52, %v1587_v38  ;;  %v1624_v25 = vmul.f32 %v1587_v38, %v1587_v38 }
 0x23f   : > { %v1636_v27 = vadd.f32 %v1635_v29, %v1624_v25 }
 0x240   : > { %v1546_v10 = vpop.f32.mrf.mxu2  ;;  %v1589_v30 = vpop.f32.mrf.mxu3 }
 0x241   : > { %v1547_v12 = vadd.f32 %v1546_v10, %v1504_v3  ;;  %v1462_v21 = vpop.f32.mrf.mxu0  ;;  %v1505_v23 = vpop.f32.mrf.mxu1 }
 0x243   : > { %v1590_v14 = vadd.f32 %v1589_v30, %v1547_v12 }
 0x245   : > { %v1604_v17 = vsel %vm831_vm0, %v1590_v14, 0.0  ;;  %v1625_v8 = vmul.f32 %v1590_v14, %v1590_v14 }
 0x246   : > { %v1605_v19 = vadd.f32 %v1604_v17, %v1603_v39 }
 0x247   : > { %v1637_v13 = vsel %vm831_vm0, %v1625_v8, 0.0 }
 0x248   : > { %v1606_v15 = vrot.slane %v1605_v19, 4  ;;  %v1638_v6 = vadd.f32 %v1637_v13, %v1636_v27  ;;  %v1548_v41 = vpop.f32.mrf.mxu2  ;;  %v1591_v42 = vpop.f32.mrf.mxu3 }
 0x249   : > { %v1816_v43 = vpop.f32.mrf.mxu0  ;;  %v1859_v44 = vpop.f32.mrf.mxu1 }
 0x24a   : > { %v1607_v46 = vadd.f32 %v1606_v15, %v1605_v19  ;;  %v1639_v47 = vrot.slane %v1638_v6, 4  ;;  %v1860_v48 = vadd.f32 %v1859_v44, %v1816_v43 }
 0x24c   : > { %v1608_v49 = vrot.slane %v1607_v46, 2  ;;  %v1640_v24 = vadd.f32 %v1639_v47, %v1638_v6 }
 0x24e   : > { %v1609_v9 = vadd.f32 %v1608_v49, %v1607_v46  ;;  %v1641_v26 = vrot.slane %v1640_v24, 2 }
 0x250   : > { %v1610_v50 = vrot.slane %v1609_v9, 1  ;;  %v1642_v51 = vadd.f32 %v1641_v26, %v1640_v24  ;;  %v1902_v53 = vpop.f32.mrf.mxu2  ;;  %v1945_v54 = vpop.f32.mrf.mxu3 }
 0x251   : > { %v1903_v55 = vadd.f32 %v1902_v53, %v1860_v48  ;;  %v1818_v33 = vpop.f32.mrf.mxu0  ;;  %v1861_v56 = vpop.f32.mrf.mxu1 }
 0x252   : > { %v1611_v40 = vadd.f32 %v1610_v50, %v1609_v9  ;;  %v1643_v2 = vrot.slane %v1642_v51, 1  ;;  %v1862_v22 = vadd.f32 %v1861_v56, %v1818_v33 }
 0x253   : > { %v1946_v57 = vadd.f32 %v1945_v54, %v1903_v55 }
 0x254   : > { %v6912_v18 = vadd.f32 %v1611_v40, %v6803_v45  ;;  %v1644_v58 = vadd.f32 %v1643_v2, %v1642_v51 }
 0x255   : > { %v1999_v31 = vmul.f32 %v1946_v57, %v1946_v57 }
 0x256   : > { %v6915_v4 = vadd.f32 %v1644_v58, %v6820_v11 }
 0x258   : > { %v1904_v59 = vpop.f32.mrf.mxu2  ;;  %v1947_v60 = vpop.f32.mrf.mxu3 }
 0x259   : > { %v1905_v61 = vadd.f32 %v1904_v59, %v1862_v22  ;;  %v1821_v62 = vpop.f32.mrf.mxu0  ;;  %v1864_v63 = vpop.f32.mrf.mxu1 }
 0x25a   : > { %v1865_v5 = vadd.f32 %v1864_v63, %v1821_v62 }
 0x25b   : > { %v1948_v7 = vadd.f32 %v1947_v60, %v1905_v61 }
 0x25d   : > { %v1979_v34 = vadd.f32 %v1948_v7, %v1946_v57  ;;  %v2000_v32 = vmul.f32 %v1948_v7, %v1948_v7 }
 0x25f   : > { %v2012_v20 = vadd.f32 %v2000_v32, %v1999_v31 }
 0x260   : > { %v1907_v35 = vpop.f32.mrf.mxu2  ;;  %v1950_v52 = vpop.f32.mrf.mxu3 }
 0x261   : > { %v1908_v0 = vadd.f32 %v1907_v35, %v1865_v5  ;;  %v1823_v45 = vpop.f32.mrf.mxu0  ;;  %v1866_v29 = vpop.f32.mrf.mxu1 }
 0x262   : > { %v1867_v47 = vadd.f32 %v1866_v29, %v1823_v45 }
 0x263   : > { %v1951_v16 = vadd.f32 %v1950_v52, %v1908_v0 }
 0x265   : > { %v1980_v28 = vadd.f32 %v1979_v34, %v1951_v16  ;;  %v2001_v11 = vmul.f32 %v1951_v16, %v1951_v16 }
 0x267   : > { %v2013_v36 = vadd.f32 %v2012_v20, %v2001_v11 }
 0x268   : > { %v1909_v37 = vpop.f32.mrf.mxu2  ;;  %v1952_v1 = vpop.f32.mrf.mxu3 }
 0x269   : > { %v1826_v3 = vpop.f32.mrf.mxu0  ;;  %v1869_v38 = vpop.f32.mrf.mxu1  ;;  %v1910_v9 = vadd.f32 %v1909_v37, %v1867_v47 }
 0x26a   : > { %v1870_v48 = vadd.f32 %v1869_v38, %v1826_v3 }
 0x26b   : > { %v1953_v55 = vadd.f32 %v1952_v1, %v1910_v9 }
 0x26d   : > { %v2002_v59 = vmul.f32 %v1953_v55, %v1953_v55  ;;  %v1981_v5 = vadd.f32 %v1980_v28, %v1953_v55 }
 0x26f   : > { %v2014_v35 = vadd.f32 %v2013_v36, %v2002_v59 }
 0x270   : > { %v1912_v39 = vpop.f32.mrf.mxu2  ;;  %v1955_v25 = vpop.f32.mrf.mxu3 }
 0x271   : > { %v1828_v27 = vpop.f32.mrf.mxu0  ;;  %v1871_v10 = vpop.f32.mrf.mxu1  ;;  %v1913_v51 = vadd.f32 %v1912_v39, %v1870_v48 }
 0x272   : > { %v1872_v53 = vadd.f32 %v1871_v10, %v1828_v27 }
 0x273   : > { %v1956_v56 = vadd.f32 %v1955_v25, %v1913_v51 }
 0x275   : > { %v2003_v7 = vmul.f32 %v1956_v56, %v1956_v56  ;;  %v1982_v52 = vadd.f32 %v1981_v5, %v1956_v56 }
 0x277   : > { %v2015_v16 = vadd.f32 %v2014_v35, %v2003_v7  ;;  %v2032_v35 = vld [vmem:[#allocation2] sm:$0x1] }
 0x278   : > { %v1914_v30 = vpop.f32.mrf.mxu2  ;;  %v1957_v12 = vpop.f32.mrf.mxu3 }
 0x279   : > { %v1831_v21 = vpop.f32.mrf.mxu0  ;;  %v1874_v23 = vpop.f32.mrf.mxu1  ;;  %v1915_v33 = vadd.f32 %v1914_v30, %v1872_v53 }
 0x27a   : > { %v1875_v54 = vadd.f32 %v1874_v23, %v1831_v21 }
 0x27b   : > { %v1958_v60 = vadd.f32 %v1957_v12, %v1915_v33 }
 0x27d   : > { %v2004_v0 = vmul.f32 %v1958_v60, %v1958_v60  ;;  %v1983_v11 = vadd.f32 %v1982_v52, %v1958_v60 }
 0x27f   : > { %v2016_v27 = vadd.f32 %v2015_v16, %v2004_v0 }
 0x280   : > { %v1917_v14 = vpop.f32.mrf.mxu2  ;;  %v1960_v17 = vpop.f32.mrf.mxu3 }
 0x281   : > { %v1833_v8 = vpop.f32.mrf.mxu0  ;;  %v1876_v19 = vpop.f32.mrf.mxu1  ;;  %v1918_v40 = vadd.f32 %v1917_v14, %v1875_v54 }
 0x282   : > { %v1877_v2 = vadd.f32 %v1876_v19, %v1833_v8 }
 0x283   : > { %v1961_v31 = vadd.f32 %v1960_v17, %v1918_v40 }
 0x285   : > { %v2005_v37 = vmul.f32 %v1961_v31, %v1961_v31  ;;  %v1984_v30 = vadd.f32 %v1983_v11, %v1961_v31 }
 0x287   : > { %v2017_v36 = vadd.f32 %v2016_v27, %v2005_v37 }
 0x288   : > { %v1919_v13 = vpop.f32.mrf.mxu2  ;;  %v1962_v15 = vpop.f32.mrf.mxu3 }
 0x289   : > { %v1836_v6 = vpop.f32.mrf.mxu0  ;;  %v1879_v41 = vpop.f32.mrf.mxu1  ;;  %v1920_v63 = vadd.f32 %v1919_v13, %v1877_v2 }
 0x28a   : > { %v1880_v22 = vadd.f32 %v1879_v41, %v1836_v6 }
 0x28b   : > { %v1963_v45 = vadd.f32 %v1962_v15, %v1920_v63 }
 0x28d   : > { %v2006_v12 = vmul.f32 %v1963_v45, %v1963_v45  ;;  %v1985_v14 = vadd.f32 %v1984_v30, %v1963_v45  ;;  %v2035_v45 = vld [vmem:[#allocation3] sm:$0x1] }
 0x28f   : > { %v2018_v13 = vadd.f32 %v2017_v36, %v2006_v12 }
 0x290   : > { %v1922_v42 = vpop.f32.mrf.mxu2  ;;  %v1965_v43 = vpop.f32.mrf.mxu3 }
 0x291   : > { %v1838_v44 = vpop.f32.mrf.mxu0  ;;  %v1881_v46 = vpop.f32.mrf.mxu1  ;;  %v1923_v34 = vadd.f32 %v1922_v42, %v1880_v22 }
 0x292   : > { %v1882_v32 = vadd.f32 %v1881_v46, %v1838_v44 }
 0x293   : > { %v1966_v1 = vadd.f32 %v1965_v43, %v1923_v34 }
 0x295   : > { %v2007_v17 = vmul.f32 %v1966_v1, %v1966_v1  ;;  %v1986_v15 = vadd.f32 %v1985_v14, %v1966_v1 }
 0x297   : > { %v2019_v42 = vadd.f32 %v2018_v13, %v2007_v17 }
 0x298   : > { %v1924_v49 = vpop.f32.mrf.mxu2  ;;  %v1967_v24 = vpop.f32.mrf.mxu3 }
 0x299   : > { %v1841_v26 = vpop.f32.mrf.mxu0  ;;  %v1884_v50 = vpop.f32.mrf.mxu1  ;;  %v1925_v29 = vadd.f32 %v1924_v49, %v1882_v32 }
 0x29a   : > { %v1885_v20 = vadd.f32 %v1884_v50, %v1841_v26 }
 0x29b   : > { %v1968_v21 = vadd.f32 %v1967_v24, %v1925_v29 }
 0x29d   : > { %v2008_v6 = vmul.f32 %v1968_v21, %v1968_v21  ;;  %v1987_v43 = vadd.f32 %v1986_v15, %v1968_v21 }
 0x29f   : > { %v2020_v26 = vadd.f32 %v2019_v42, %v2008_v6 }
 0x2a0   : > { %v1927_v57 = vpop.f32.mrf.mxu2  ;;  %v1970_v58 = vpop.f32.mrf.mxu3 }
 0x2a1   : > { %v1843_v61 = vpop.f32.mrf.mxu0  ;;  %v1886_v62 = vpop.f32.mrf.mxu1  ;;  %v1928_v3 = vadd.f32 %v1927_v57, %v1885_v20 }
 0x2a2   : > { %v1887_v38 = vadd.f32 %v1886_v62, %v1843_v61 }
 0x2a3   : > { %v1971_v8 = vadd.f32 %v1970_v58, %v1928_v3 }
 0x2a5   : > { %v2009_v44 = vmul.f32 %v1971_v8, %v1971_v8  ;;  %v1988_v24 = vadd.f32 %v1987_v43, %v1971_v8 }
 0x2a7   : > { %v2021_v53 = vadd.f32 %v2020_v26, %v2009_v44 }
 0x2a8   : > { %v1929_v39 = vpop.f32.mrf.mxu2  ;;  %v1972_v25 = vpop.f32.mrf.mxu3 }
 0x2a9   : > { %v1846_v28 = vpop.f32.mrf.mxu0  ;;  %v1889_v10 = vpop.f32.mrf.mxu1  ;;  %v1930_v23 = vadd.f32 %v1929_v39, %v1887_v38 }
 0x2aa   : > { %v1890_v19 = vadd.f32 %v1889_v10, %v1846_v28 }
 0x2ab   : > { %v1973_v41 = vadd.f32 %v1972_v25, %v1930_v23 }
 0x2ad   : > { %v2010_v50 = vmul.f32 %v1973_v41, %v1973_v41  ;;  %v1989_v54 = vadd.f32 %v1988_v24, %v1973_v41 }
 0x2af   : > { %v2022_v56 = vadd.f32 %v2021_v53, %v2010_v50 }
 0x2b0   : > { %v1932_v46 = vpop.f32.mrf.mxu2  ;;  %v1975_v47 = vpop.f32.mrf.mxu3 }
 0x2b1   : > { %v1933_v48 = vadd.f32 %v1932_v46, %v1890_v19  ;;  %v1848_v49 = vpop.f32.mrf.mxu0  ;;  %v1891_v9 = vpop.f32.mrf.mxu1 }
 0x2b3   : > { %v1976_v51 = vadd.f32 %v1975_v47, %v1933_v48 }
 0x2b5   : > { %v1990_v55 = vsel %vm831_vm0, %v1976_v51, 0.0  ;;  %v2011_v33 = vmul.f32 %v1976_v51, %v1976_v51 }
 0x2b6   : > { %v1991_v40 = vadd.f32 %v1990_v55, %v1989_v54 }
 0x2b7   : > { %v2023_v2 = vsel %vm831_vm0, %v2011_v33, 0.0 }
 0x2b8   : > { %v1992_v22 = vrot.slane %v1991_v40, 4  ;;  %v2024_v57 = vadd.f32 %v2023_v2, %v2022_v56  ;;  %v1934_v58 = vpop.f32.mrf.mxu2  ;;  %v1977_v59 = vpop.f32.mrf.mxu3 }
 0x2ba   : > { %v1993_v60 = vadd.f32 %v1992_v22, %v1991_v40  ;;  %v2025_v61 = vrot.slane %v2024_v57, 4 }
 0x2bc   : > { %v1994_v62 = vrot.slane %v1993_v60, 2  ;;  %v2026_v63 = vadd.f32 %v2025_v61, %v2024_v57 }
 0x2be   : > { %v1995_v5 = vadd.f32 %v1994_v62, %v1993_v60  ;;  %v2027_v7 = vrot.slane %v2026_v63, 2 }
 0x2c0   : > { %v1996_v31 = vrot.slane %v1995_v5, 1  ;;  %v2028_v34 = vadd.f32 %v2027_v7, %v2026_v63 }
 0x2c2   : > { %v1997_v32 = vadd.f32 %v1996_v31, %v1995_v5  ;;  %v2029_v20 = vrot.slane %v2028_v34, 1 }
 0x2c4   : > { %v1998_v52 = vadd.f32 %v1997_v32, %v6912_v18  ;;  %v2030_v0 = vadd.f32 %v2029_v20, %v2028_v34 }
 0x2c6   : > { %v2031_v29 = vadd.f32 %v2030_v0, %v6915_v4  ;;  %v2033_v16 = vadd.f32 %v2032_v35, %v1998_v52 }
 0x2c8   : > { %2034 = vst [vmem:[#allocation2] sm:$0x1] %v2033_v16  ;;  %v2036_v11 = vadd.f32 %v2035_v45, %v2031_v29 }
 0x2ca   : > { %2037 = vst [vmem:[#allocation3] sm:$0x1] %v2036_v11 }
 0x2cb PF: > { %p2038_p6 = scmp.eq.s32.totalorder %s5381_s15, 1 }
 0x2cc   : > { %v2060_v21 = vld [vmem:[%s8124_s2] sm:$0x1] (%p2038_p6) }
 0x2cd   : > { %2042 = sbr.rel (!%p2038_p6) target bundleno = 753 (0x2f1), region = 48  ;;  %v2063_v14 = vld [vmem:[%s8125_s3] sm:$0x1] (%p2038_p6) }
 0x2cf   : > { %v2043_v37 = vld [vmem:[#allocation2] sm:$0x1] (%p2038_p6) }
 0x2d0   : > { %v2044_v3 = vmul.f32 (%p2038_p6), 0.0025510204, %v2043_v37 }
 0x2d1   : > { %v2045_v1 = vld [vmem:[#allocation3] sm:$0x1] (%p2038_p6) }
 0x2d2   : > { %v2046_v38 = vmul.f32 0.0025510204, %v2045_v1  ;;  %v2047_v39 = vmul.f32 %v2044_v3, %v2044_v3 }
 0x2d4   : > { %v2048_v25 = vsub.f32 %v2046_v38, %v2047_v39 }
 0x2d6   : > { %v2049_v27 = vadd.f32 1e-05, %v2048_v25 }
 0x2d8   : > { %5361 = vrsqrt.f32 %v2049_v27  ;;  %vm2056_vm1 = vweird.f32 %v2049_v27 }
 0x2de   : > { %v5362_v18 = vpop.eup %5361 }
 0x2df   : > { %v2051_v28 = vmul.f32 %v5362_v18, %v2049_v27  ;;  %vm2057_vm2 = vweird.f32 %v5362_v18 }
 0x2e0   : > { %vm2058_vm3 = vmor %vm2056_vm1, %vm2057_vm2 }
 0x2e1   : > { %v2052_v10 = vmul.f32 %v5362_v18, %v2051_v28 }
 0x2e3   : > { %v2053_v4 = vmul.f32 0.5, %v2052_v10 }
 0x2e5   : > { %v2054_v30 = vsub.f32 1.5, %v2053_v4 }
 0x2e7   : > { %v2055_v12 = vmul.f32 %v5362_v18, %v2054_v30 }
 0x2e9   : > { %v2059_v23 = vsel %vm2058_vm3, %v5362_v18, %v2055_v12 }
 0x2ea   : > { %v2061_v36 = vmul.f32 %v2060_v21, %v2059_v23 }
 0x2ec   : > { %2062 = vst [vmem:[#allocation4] sm:$0x1] %v2061_v36  ;;  %v2064_v17 = vmul.f32 %v2061_v36, %v2044_v3 }
 0x2ee   : > { %v2065_v8 = vsub.f32 %v2063_v14, %v2064_v17 }
 0x2f0   : > { %2066 = vst [vmem:[#allocation4 + $0x1] sm:$0x1] %v2065_v8 }
 0x2f1 PF: > { %p4448_p7 = scmp.ne.s32.totalorder %s5381_s15, 1 }
 0x2f3   : > { %2069 = sbr.rel (%p4448_p7) target bundleno = 1374 (0x55e), region = 52 }
 0x2f8   : > { %v8201_v19 = vld [vmem:[#allocation19_spill] sm:$0xff]  ;;  %v8202_v13 = vld [vmem:[#allocation20_spill] sm:$0xff]  ;;  %v8204_v41 = vld [vmem:[#allocation37_spill] sm:$0xff] }
 0x2f9   : > { %v6931_v15 = vor.u32 %v8202_v13, %v8201_v19  ;;  %v8203_v6 = vld [vmem:[#allocation36_spill] sm:$0xff]  ;;  %v8205_v43 = vld [vmem:[#allocation54_spill] sm:$0xff]  ;;  %v8206_v44 = vld [vmem:[#allocation55_spill] sm:$0xff] }
 0x2fa   : > { %v6935_v42 = vor.u32 %v8204_v41, %v8203_v6  ;;  %v6939_v46 = vor.u32 %v8206_v44, %v8205_v43  ;;  %v8207_v47 = vld [vmem:[#allocation72_spill] sm:$0xff]  ;;  %v8208_v48 = vld [vmem:[#allocation73_spill] sm:$0xff]  ;;  %v8210_v26 = vld [vmem:[#allocation18_spill] sm:$0xff] }
 0x2fb   : > { %v6943_v49 = vor.u32 %v8208_v48, %v8207_v47  ;;  %2424 = vmatpush.bf16.msra.mxu0 %v6931_v15  ;;  %v8209_v9 = vld [vmem:[#allocation17_spill] sm:$0xff]  ;;  %v8211_v50 = vld [vmem:[#allocation34_spill] sm:$0xff]  ;;  %v8212_v51 = vld [vmem:[#allocation35_spill] sm:$0xff] }
 0x2fc   : > { %2467 = vmatpush.bf16.msra.mxu1 %v6935_v42  ;;  %v6949_v24 = vor.u32 %v8210_v26, %v8209_v9  ;;  %v6953_v53 = vor.u32 %v8212_v51, %v8211_v50  ;;  %2510 = vmatpush.bf16.msra.mxu2 %v6939_v46  ;;  %v8213_v54 = vld [vmem:[#allocation52_spill] sm:$0xff]  ;;  %v8214_v55 = vld [vmem:[#allocation53_spill] sm:$0xff]  ;;  %v8215_v56 = vld [vmem:[#allocation70_spill] sm:$0xff] }
 0x2fd   : > { %2553 = vmatpush.bf16.msra.mxu3 %v6943_v49  ;;  %v6959_v33 = vor.u32 %v8214_v55, %v8213_v54  ;;  %v8216_v40 = vld [vmem:[#allocation71_spill] sm:$0xff]  ;;  %v8218_v57 = vld [vmem:[#allocation16_spill] sm:$0xff]  ;;  %v8220_v60 = vld [vmem:[#allocation33_spill] sm:$0xff] }
 0x2fe   : > { %v6963_v2 = vor.u32 %v8216_v40, %v8215_v56  ;;  %v8217_v22 = vld [vmem:[#allocation15_spill] sm:$0xff]  ;;  %v8219_v59 = vld [vmem:[#allocation32_spill] sm:$0xff]  ;;  %v8221_v62 = vld [vmem:[#allocation50_spill] sm:$0xff] }
 0x2ff   : > { %2425 = vmatpush.bf16.msra.mxu0 %v6949_v24  ;;  %v6969_v58 = vor.u32 %v8218_v57, %v8217_v22  ;;  %v6973_v61 = vor.u32 %v8220_v60, %v8219_v59  ;;  %v8222_v63 = vld [vmem:[#allocation51_spill] sm:$0xff]  ;;  %v8223_v7 = vld [vmem:[#allocation68_spill] sm:$0xff]  ;;  %v8224_v31 = vld [vmem:[#allocation69_spill] sm:$0xff] }
 0x300   : > { %2468 = vmatpush.bf16.msra.mxu1 %v6953_v53  ;;  %2511 = vmatpush.bf16.msra.mxu2 %v6959_v33  ;;  %v6979_v5 = vor.u32 %v8222_v63, %v8221_v62  ;;  %v6983_v34 = vor.u32 %v8224_v31, %v8223_v7  ;;  %v8225_v32 = vld [vmem:[#allocation13_spill] sm:$0xff]  ;;  %v8226_v20 = vld [vmem:[#allocation14_spill] sm:$0xff]  ;;  %v8228_v0 = vld [vmem:[#allocation31_spill] sm:$0xff] }
 0x301   : > { %2554 = vmatpush.bf16.msra.mxu3 %v6963_v2  ;;  %v6989_v35 = vor.u32 %v8226_v20, %v8225_v32  ;;  %v8227_v52 = vld [vmem:[#allocation30_spill] sm:$0xff]  ;;  %v8229_v29 = vld [vmem:[#allocation48_spill] sm:$0xff]  ;;  %v8230_v16 = vld [vmem:[#allocation49_spill] sm:$0xff] }
 0x302   : > { %v6993_v45 = vor.u32 %v8228_v0, %v8227_v52  ;;  %v6999_v11 = vor.u32 %v8230_v16, %v8229_v29  ;;  %v8231_v37 = vld [vmem:[#allocation66_spill] sm:$0xff]  ;;  %v8232_v1 = vld [vmem:[#allocation67_spill] sm:$0xff]  ;;  %v8234_v39 = vld [vmem:[#allocation12_spill] sm:$0xff] }
 0x303   : > { %2426 = vmatpush.bf16.msra.mxu0 %v6969_v58  ;;  %v7003_v3 = vor.u32 %v8232_v1, %v8231_v37  ;;  %v8233_v38 = vld [vmem:[#allocation11_spill] sm:$0xff]  ;;  %v8235_v27 = vld [vmem:[#allocation28_spill] sm:$0xff]  ;;  %v8236_v18 = vld [vmem:[#allocation29_spill] sm:$0xff] }
 0x304   : > { %2469 = vmatpush.bf16.msra.mxu1 %v6973_v61  ;;  %2512 = vmatpush.bf16.msra.mxu2 %v6979_v5  ;;  %v7009_v25 = vor.u32 %v8234_v39, %v8233_v38  ;;  %v7013_v28 = vor.u32 %v8236_v18, %v8235_v27  ;;  %v8237_v10 = vld [vmem:[#allocation46_spill] sm:$0xff]  ;;  %v8238_v4 = vld [vmem:[#allocation47_spill] sm:$0xff]  ;;  %v8239_v12 = vld [vmem:[#allocation64_spill] sm:$0xff] }
 0x305   : > { %2555 = vmatpush.bf16.msra.mxu3 %v6983_v34  ;;  %v7019_v30 = vor.u32 %v8238_v4, %v8237_v10  ;;  %v8240_v21 = vld [vmem:[#allocation65_spill] sm:$0xff]  ;;  %v8242_v14 = vld [vmem:[#allocation10_spill] sm:$0xff]  ;;  %v8244_v19 = vld [vmem:[#allocation27_spill] sm:$0xff] }
 0x306   : > { %v7023_v23 = vor.u32 %v8240_v21, %v8239_v12  ;;  %v8241_v36 = vld [vmem:[#allocation9_spill] sm:$0xff]  ;;  %v8243_v8 = vld [vmem:[#allocation26_spill] sm:$0xff]  ;;  %v8245_v6 = vld [vmem:[#allocation44_spill] sm:$0xff] }
 0x307   : > { %2427 = vmatpush.bf16.msra.mxu0 %v6989_v35  ;;  %v7029_v17 = vor.u32 %v8242_v14, %v8241_v36  ;;  %v7033_v13 = vor.u32 %v8244_v19, %v8243_v8  ;;  %v8246_v41 = vld [vmem:[#allocation45_spill] sm:$0xff]  ;;  %v8247_v44 = vld [vmem:[#allocation62_spill] sm:$0xff]  ;;  %v8248_v47 = vld [vmem:[#allocation63_spill] sm:$0xff] }
 0x308   : > { %2470 = vmatpush.bf16.msra.mxu1 %v6993_v45  ;;  %2513 = vmatpush.bf16.msra.mxu2 %v6999_v11  ;;  %v7039_v43 = vor.u32 %v8246_v41, %v8245_v6  ;;  %v7043_v48 = vor.u32 %v8248_v47, %v8247_v44  ;;  %v8249_v9 = vld [vmem:[#allocation7_spill] sm:$0xff]  ;;  %v8250_v26 = vld [vmem:[#allocation8_spill] sm:$0xff]  ;;  %v8252_v54 = vld [vmem:[#allocation25_spill] sm:$0xff] }
 0x309   : > { %2556 = vmatpush.bf16.msra.mxu3 %v7003_v3  ;;  %v7049_v50 = vor.u32 %v8250_v26, %v8249_v9  ;;  %v8251_v51 = vld [vmem:[#allocation24_spill] sm:$0xff]  ;;  %v8253_v56 = vld [vmem:[#allocation42_spill] sm:$0xff]  ;;  %v8254_v40 = vld [vmem:[#allocation43_spill] sm:$0xff] }
 0x30a   : > { %v7053_v55 = vor.u32 %v8252_v54, %v8251_v51  ;;  %v7059_v22 = vor.u32 %v8254_v40, %v8253_v56  ;;  %v8255_v57 = vld [vmem:[#allocation60_spill] sm:$0xff]  ;;  %v8256_v59 = vld [vmem:[#allocation61_spill] sm:$0xff]  ;;  %v5207_v63 = vld [vmem:[%s8122_s0 + $0xc] sm:$0xf0] }
 0x30b   : > { %2428 = vmatpush.bf16.msra.mxu0 %v7009_v25  ;;  %v7063_v60 = vor.u32 %v8256_v59, %v8255_v57  ;;  %v4451_v62 = vld [vmem:[%s8122_s0] sm:$0xf]  ;;  %v8257_v7 = vld [vmem:[#allocation5_spill] sm:$0xff]  ;;  %v8258_v31 = vld [vmem:[#allocation6_spill] sm:$0xff] }
 0x30c   : > { %2471 = vmatpush.bf16.msra.mxu1 %v7013_v28  ;;  %2514 = vmatpush.bf16.msra.mxu2 %v7019_v30  ;;  %v7075_v32 = vor.u32 %v8258_v31, %v8257_v7  ;;  %v8259_v20 = vld [vmem:[#allocation21_spill] sm:$0xff]  ;;  %v8260_v52 = vld [vmem:[#allocation22_spill] sm:$0xff]  ;;  %v4453_v16 = vld [vmem:[%s8122_s0 + $0x10] sm:$0xf0]  ;;  %v4452_v36 = vor.u32 %v5207_v63, %v4451_v62 }
 0x30d   : > { %2557 = vmatpush.bf16.msra.mxu3 %v7023_v23  ;;  %v7079_v0 = vor.u32 %v8260_v52, %v8259_v20  ;;  %v5205_v29 = vld [vmem:[%s8122_s0 + $0x4] sm:$0xf]  ;;  %v4459_v37 = vld [vmem:[%s8122_s0 + $0x8] sm:$0xf]  ;;  %v8261_v1 = vld [vmem:[#allocation38_spill] sm:$0xff] }
 0x30e   : > { %v8262_v38 = vld [vmem:[#allocation40_spill] sm:$0xff]  ;;  %v8264_v18 = vld [vmem:[#allocation58_spill] sm:$0xff]  ;;  %v5208_v4 = vld [vmem:[%s8122_s0 + $0x14] sm:$0xf0]  ;;  %v4456_v14 = vor.u32 %v5205_v29, %v4453_v16 }
 0x30f   : > { %2429 = vmatpush.bf16.msra.mxu0 %v7029_v17  ;;  %v7094_v39 = vor.u32 %v8262_v38, %v8261_v1  ;;  %v8263_v27 = vld [vmem:[#allocation56_spill] sm:$0xff]  ;;  %v5206_v12 = vld [vmem:[%s8122_s0 + $0xc] sm:$0xf]  ;;  %v4460_v8 = vor.u32 %v5208_v4, %v4459_v37  ;;  %v5211_v41 = vld [vmem:[%s8122_s0 + $0x2c] sm:$0xf0] }
 0x310   : > { %2472 = vmatpush.bf16.msra.mxu1 %v7033_v13  ;;  %2515 = vmatpush.bf16.msra.mxu2 %v7039_v43  ;;  %v7098_v10 = vor.u32 %v8264_v18, %v8263_v27  ;;  %v4461_v21 = vld [vmem:[%s8122_s0 + $0x18] sm:$0xf0]  ;;  %v4467_v6 = vld [vmem:[%s8122_s0 + $0x20] sm:$0xf]  ;;  %v5209_v44 = vld [vmem:[%s8122_s0 + $0x24] sm:$0xf] }
 0x311   : > { %2558 = vmatpush.bf16.msra.mxu3 %v7043_v48  ;;  %v4464_v19 = vor.u32 %v5206_v12, %v4461_v21  ;;  %v4469_v47 = vld [vmem:[%s8122_s0 + $0x30] sm:$0xf0]  ;;  %v4475_v9 = vld [vmem:[%s8122_s0 + $0x28] sm:$0xf]  ;;  %v5212_v26 = vld [vmem:[%s8122_s0 + $0x34] sm:$0xf0]  ;;  %v4468_v56 = vor.u32 %v5211_v41, %v4467_v6 }
 0x312   : > { %v5210_v51 = vld [vmem:[%s8122_s0 + $0x2c] sm:$0xf]  ;;  %v4477_v54 = vld [vmem:[%s8122_s0 + $0x38] sm:$0xf0]  ;;  %v4472_v40 = vor.u32 %v5209_v44, %v4469_v47  ;;  %v4476_v57 = vor.u32 %v5212_v26, %v4475_v9  ;;  %v4483_v62 = vld [vmem:[%s8122_s0 + $0x40] sm:$0xf] }
 0x313   : > { %2430 = vmatpush.bf16.msra.mxu0 %v7049_v50  ;;  %v4480_v59 = vor.u32 %v5210_v51, %v4477_v54  ;;  %v5215_v63 = vld [vmem:[%s8122_s0 + $0x4c] sm:$0xf0]  ;;  %v5213_v7 = vld [vmem:[%s8122_s0 + $0x44] sm:$0xf]  ;;  %v4485_v31 = vld [vmem:[%s8122_s0 + $0x50] sm:$0xf0] }
 0x314   : > { %2473 = vmatpush.bf16.msra.mxu1 %v7053_v55  ;;  %2516 = vmatpush.bf16.msra.mxu2 %v7059_v22  ;;  %v4491_v20 = vld [vmem:[%s8122_s0 + $0x48] sm:$0xf]  ;;  %v5216_v52 = vld [vmem:[%s8122_s0 + $0x54] sm:$0xf0]  ;;  %v5214_v29 = vld [vmem:[%s8122_s0 + $0x4c] sm:$0xf]  ;;  %v4484_v37 = vor.u32 %v5215_v63, %v4483_v62  ;;  %v4488_v1 = vor.u32 %v5213_v7, %v4485_v31 }
 0x315   : > { %2559 = vmatpush.bf16.msra.mxu3 %v7063_v60  ;;  %v4493_v16 = vld [vmem:[%s8122_s0 + $0x58] sm:$0xf0]  ;;  %v4492_v38 = vor.u32 %v5216_v52, %v4491_v20  ;;  %v4499_v18 = vld [vmem:[%s8122_s0 + $0x60] sm:$0xf]  ;;  %v5219_v4 = vld [vmem:[%s8122_s0 + $0x6c] sm:$0xf0] }
 0x316   : > { %v4496_v27 = vor.u32 %v5214_v29, %v4493_v16  ;;  %v5217_v12 = vld [vmem:[%s8122_s0 + $0x64] sm:$0xf]  ;;  %v4501_v21 = vld [vmem:[%s8122_s0 + $0x70] sm:$0xf0]  ;;  %v4500_v6 = vor.u32 %v5219_v4, %v4499_v18  ;;  %v4515_v9 = vld [vmem:[%s8122_s0 + $0x80] sm:$0xf] }
 0x317   : > { %2431 = vmatpush.bf16.msra.mxu0 %v7075_v32  ;;  %v4504_v41 = vor.u32 %v5217_v12, %v4501_v21  ;;  %v5223_v26 = vld [vmem:[%s8122_s0 + $0x8c] sm:$0xf0]  ;;  %v5221_v51 = vld [vmem:[%s8122_s0 + $0x84] sm:$0xf]  ;;  %v4517_v54 = vld [vmem:[%s8122_s0 + $0x90] sm:$0xf0] }
 0x318   : > { %2474 = vmatpush.bf16.msra.mxu1 %v7079_v0  ;;  %2517 = vmatpush.bf16.msra.mxu2 %v7094_v39  ;;  %v4516_v62 = vor.u32 %v5223_v26, %v4515_v9  ;;  %v4520_v63 = vor.u32 %v5221_v51, %v4517_v54  ;;  %v4531_v20 = vld [vmem:[%s8122_s0 + $0xa0] sm:$0xf]  ;;  %v5227_v52 = vld [vmem:[%s8122_s0 + $0xac] sm:$0xf0]  ;;  %v5225_v29 = vld [vmem:[%s8122_s0 + $0xa4] sm:$0xf] }
 0x319   : > { %2560 = vmatpush.bf16.msra.mxu3 %v7098_v10  ;;  %v4533_v16 = vld [vmem:[%s8122_s0 + $0xb0] sm:$0xf0]  ;;  %v4532_v18 = vor.u32 %v5227_v52, %v4531_v20  ;;  %v4701_v51 = vld [vmem:[%s8122_s0 + $0xd0] sm:$0xf]  ;;  %v5231_v54 = vld [vmem:[%s8122_s0 + $0xdc] sm:$0xf0] }
 0x31a   : > { %2432 = vmatmul.bf16.vlgmr.msra.gmra.mxu0 %v4452_v36  ;;  %v4507_v36 = vld [vmem:[%s8122_s0 + $0x68] sm:$0xf]  ;;  %v4536_v4 = vor.u32 %v5225_v29, %v4533_v16  ;;  %v4717_v29 = vld [vmem:[%s8122_s0 + $0xf0] sm:$0xf] }
 0x31b   : > { %2475 = vmatmul.bf16.vlgmr.msra.gmra.mxu1 %v4456_v14  ;;  %2518 = vmatmul.bf16.vlgmr.msra.gmra.mxu2 %v4460_v8  ;;  %v5220_v14 = vld [vmem:[%s8122_s0 + $0x74] sm:$0xf0]  ;;  %v5218_v8 = vld [vmem:[%s8122_s0 + $0x6c] sm:$0xf] }
 0x31c   : > { %2871 = vmatpush.bf16.msrb.mxu2 %v6939_v46  ;;  %2561 = vmatmul.bf16.vlgmr.msra.gmra.mxu3 %v4464_v19  ;;  %v4509_v19 = vld [vmem:[%s8122_s0 + $0x78] sm:$0xf0]  ;;  %v4508_v44 = vor.u32 %v5220_v14, %v4507_v36  ;;  %v2096_v36 = vld [vmem:[%s8122_s0 + $0xc0] sm:$0x11]  ;;  %v2097_v14 = vld [vmem:[%s8122_s0 + $0xc8] sm:$0x11] }
 0x31d   : > { %2914 = vmatpush.bf16.msrb.mxu3 %v6943_v49  ;;  %2785 = vmatpush.bf16.msrb.mxu0 %v6931_v15  ;;  %v4512_v47 = vor.u32 %v5218_v8, %v4509_v19  ;;  %v2172_v8 = vunpack.c.l.b16 %v2096_v36  ;;  %v2173_v19 = vunpack.c.h.b16 %v2096_v36 }
 0x31e   : > { %2828 = vmatpush.bf16.msrb.mxu1 %v6935_v42 }
 0x320   : > { %2872 = vmatpush.bf16.msrb.mxu2 %v6959_v33 }
 0x321   : > { %2915 = vmatpush.bf16.msrb.mxu3 %v6963_v2  ;;  %2786 = vmatpush.bf16.msrb.mxu0 %v6949_v24 }
 0x322   : > { %2829 = vmatpush.bf16.msrb.mxu1 %v6953_v53 }
 0x324   : > { %2873 = vmatpush.bf16.msrb.mxu2 %v6979_v5 }
 0x325   : > { %2916 = vmatpush.bf16.msrb.mxu3 %v6983_v34  ;;  %2787 = vmatpush.bf16.msrb.mxu0 %v6969_v58 }
 0x326   : > { %2830 = vmatpush.bf16.msrb.mxu1 %v6973_v61 }
 0x328   : > { %2874 = vmatpush.bf16.msrb.mxu2 %v6999_v11 }
 0x329   : > { %2917 = vmatpush.bf16.msrb.mxu3 %v7003_v3  ;;  %2788 = vmatpush.bf16.msrb.mxu0 %v6989_v35 }
 0x32a   : > { %2831 = vmatpush.bf16.msrb.mxu1 %v6993_v45  ;;  %2437 = vmatmul.bf16.gmra.mxu0 %v4468_v56  ;;  %v4523_v56 = vld [vmem:[%s8122_s0 + $0x88] sm:$0xf] }
 0x32b   : > { %2480 = vmatmul.bf16.gmra.mxu1 %v4472_v40  ;;  %2523 = vmatmul.bf16.gmra.mxu2 %v4476_v57  ;;  %v5224_v40 = vld [vmem:[%s8122_s0 + $0x94] sm:$0xf0]  ;;  %v5222_v57 = vld [vmem:[%s8122_s0 + $0x8c] sm:$0xf] }
 0x32c   : > { %2875 = vmatpush.bf16.msrb.mxu2 %v7019_v30  ;;  %2566 = vmatmul.bf16.gmra.mxu3 %v4480_v59  ;;  %v4525_v59 = vld [vmem:[%s8122_s0 + $0x98] sm:$0xf0]  ;;  %v4524_v7 = vor.u32 %v5224_v40, %v4523_v56  ;;  %v5229_v56 = vld [vmem:[%s8122_s0 + $0xd4] sm:$0xf]  ;;  %v4703_v40 = vld [vmem:[%s8122_s0 + $0xe0] sm:$0xf0] }
 0x32d   : > { %2918 = vmatpush.bf16.msrb.mxu3 %v7023_v23  ;;  %2789 = vmatpush.bf16.msrb.mxu0 %v7009_v25  ;;  %v4528_v31 = vor.u32 %v5222_v57, %v4525_v59  ;;  %v4709_v57 = vld [vmem:[%s8122_s0 + $0xd8] sm:$0xf]  ;;  %v5232_v59 = vld [vmem:[%s8122_s0 + $0xe4] sm:$0xf0] }
 0x32e   : > { %2832 = vmatpush.bf16.msrb.mxu1 %v7013_v28  ;;  %v4710_v20 = vor.u32 %v5232_v59, %v4709_v57 }
 0x330   : > { %2876 = vmatpush.bf16.msrb.mxu2 %v7039_v43 }
 0x331   : > { %2919 = vmatpush.bf16.msrb.mxu3 %v7043_v48  ;;  %2790 = vmatpush.bf16.msrb.mxu0 %v7029_v17 }
 0x332   : > { %2833 = vmatpush.bf16.msrb.mxu1 %v7033_v13 }
 0x334   : > { %2877 = vmatpush.bf16.msrb.mxu2 %v7059_v22 }
 0x335   : > { %2920 = vmatpush.bf16.msrb.mxu3 %v7063_v60  ;;  %2791 = vmatpush.bf16.msrb.mxu0 %v7049_v50 }
 0x336   : > { %2834 = vmatpush.bf16.msrb.mxu1 %v7053_v55 }
 0x338   : > { %2878 = vmatpush.bf16.msrb.mxu2 %v7094_v39 }
 0x339   : > { %2921 = vmatpush.bf16.msrb.mxu3 %v7098_v10  ;;  %2792 = vmatpush.bf16.msrb.mxu0 %v7075_v32 }
 0x33a   : > { %2835 = vmatpush.bf16.msrb.mxu1 %v7079_v0  ;;  %2442 = vmatmul.bf16.gmra.mxu0 %v4484_v37  ;;  %v4539_v37 = vld [vmem:[%s8122_s0 + $0xa8] sm:$0xf] }
 0x33b   : > { %2485 = vmatmul.bf16.gmra.mxu1 %v4488_v1  ;;  %2528 = vmatmul.bf16.gmra.mxu2 %v4492_v38  ;;  %v5228_v1 = vld [vmem:[%s8122_s0 + $0xb4] sm:$0xf0]  ;;  %v5226_v38 = vld [vmem:[%s8122_s0 + $0xac] sm:$0xf] }
 0x33c   : > { %3243 = vmatpush.bf16.msra.mxu2 %v6939_v46  ;;  %2571 = vmatmul.bf16.gmra.mxu3 %v4496_v27  ;;  %v4541_v27 = vld [vmem:[%s8122_s0 + $0xb8] sm:$0xf0]  ;;  %v4540_v12 = vor.u32 %v5228_v1, %v4539_v37 }
 0x33d   : > { %3286 = vmatpush.bf16.msra.mxu3 %v6943_v49  ;;  %3157 = vmatpush.bf16.msra.mxu0 %v6931_v15  ;;  %v4544_v21 = vor.u32 %v5226_v38, %v4541_v27 }
 0x33e   : > { %3200 = vmatpush.bf16.msra.mxu1 %v6935_v42 }
 0x340   : > { %3244 = vmatpush.bf16.msra.mxu2 %v6959_v33 }
 0x341   : > { %3287 = vmatpush.bf16.msra.mxu3 %v6963_v2  ;;  %3158 = vmatpush.bf16.msra.mxu0 %v6949_v24 }
 0x342   : > { %3201 = vmatpush.bf16.msra.mxu1 %v6953_v53 }
 0x344   : > { %3245 = vmatpush.bf16.msra.mxu2 %v6979_v5 }
 0x345   : > { %3288 = vmatpush.bf16.msra.mxu3 %v6983_v34  ;;  %3159 = vmatpush.bf16.msra.mxu0 %v6969_v58 }
 0x346   : > { %3202 = vmatpush.bf16.msra.mxu1 %v6973_v61 }
 0x348   : > { %3246 = vmatpush.bf16.msra.mxu2 %v6999_v11 }
 0x349   : > { %3289 = vmatpush.bf16.msra.mxu3 %v7003_v3  ;;  %3160 = vmatpush.bf16.msra.mxu0 %v6989_v35 }
 0x34a   : > { %3203 = vmatpush.bf16.msra.mxu1 %v6993_v45  ;;  %2447 = vmatmul.bf16.gmra.mxu0 %v4500_v6  ;;  %v2174_v6 = vunpack.c.l.b16 %v2097_v14 }
 0x34b   : > { %2490 = vmatmul.bf16.gmra.mxu1 %v4504_v41  ;;  %2533 = vmatmul.bf16.gmra.mxu2 %v4508_v44  ;;  %v2175_v41 = vunpack.c.h.b16 %v2097_v14  ;;  %v2200_v44 = vpack.c.b16 %v2172_v8, %v2172_v8 }
 0x34c   : > { %3247 = vmatpush.bf16.msra.mxu2 %v7019_v30  ;;  %2576 = vmatmul.bf16.gmra.mxu3 %v4512_v47  ;;  %v2201_v47 = vpack.c.b16 %v2173_v19, %v2173_v19  ;;  %v2202_v9 = vpack.c.b16 %v2174_v6, %v2174_v6 }
 0x34d   : > { %3290 = vmatpush.bf16.msra.mxu3 %v7023_v23  ;;  %3161 = vmatpush.bf16.msra.mxu0 %v7009_v25  ;;  %v2203_v26 = vpack.c.b16 %v2175_v41, %v2175_v41 }
 0x34e   : > { %3204 = vmatpush.bf16.msra.mxu1 %v7013_v28 }
 0x350   : > { %3248 = vmatpush.bf16.msra.mxu2 %v7039_v43 }
 0x351   : > { %3291 = vmatpush.bf16.msra.mxu3 %v7043_v48  ;;  %3162 = vmatpush.bf16.msra.mxu0 %v7029_v17 }
 0x352   : > { %3205 = vmatpush.bf16.msra.mxu1 %v7033_v13 }
 0x354   : > { %3249 = vmatpush.bf16.msra.mxu2 %v7059_v22 }
 0x355   : > { %3292 = vmatpush.bf16.msra.mxu3 %v7063_v60  ;;  %3163 = vmatpush.bf16.msra.mxu0 %v7049_v50 }
 0x356   : > { %3206 = vmatpush.bf16.msra.mxu1 %v7053_v55 }
 0x358   : > { %3250 = vmatpush.bf16.msra.mxu2 %v7094_v39 }
 0x359   : > { %3293 = vmatpush.bf16.msra.mxu3 %v7098_v10  ;;  %3164 = vmatpush.bf16.msra.mxu0 %v7075_v32 }
 0x35a   : > { %3207 = vmatpush.bf16.msra.mxu1 %v7079_v0  ;;  %2452 = vmatmul.bf16.gmra.mxu0 %v4516_v62  ;;  %v5230_v62 = vld [vmem:[%s8122_s0 + $0xdc] sm:$0xf] }
 0x35b   : > { %2495 = vmatmul.bf16.gmra.mxu1 %v4520_v63  ;;  %2538 = vmatmul.bf16.gmra.mxu2 %v4524_v7  ;;  %v4711_v63 = vld [vmem:[%s8122_s0 + $0xe8] sm:$0xf0]  ;;  %v4702_v7 = vor.u32 %v5231_v54, %v4701_v51  ;;  %v4757_v51 = vld [vmem:[%s8122_s0 + $0x138] sm:$0xf]  ;;  %v5244_v54 = vld [vmem:[%s8122_s0 + $0x144] sm:$0xf0] }
 0x35c   : > { %2581 = vmatmul.bf16.gmra.mxu3 %v4528_v31  ;;  %v4706_v31 = vor.u32 %v5229_v56, %v4703_v40  ;;  %v4714_v52 = vor.u32 %v5230_v62, %v4711_v63  ;;  %v5242_v56 = vld [vmem:[%s8122_s0 + $0x13c] sm:$0xf]  ;;  %v4759_v40 = vld [vmem:[%s8122_s0 + $0x148] sm:$0xf0] }
 0x36a   : > { %2457 = vmatmul.bf16.gmra.mxu0 %v4532_v18 }
 0x36b   : > { %2500 = vmatmul.bf16.gmra.mxu1 %v4536_v4  ;;  %2543 = vmatmul.bf16.gmra.mxu2 %v4540_v12 }
 0x36c   : > { %2586 = vmatmul.bf16.gmra.mxu3 %v4544_v21 }
 0x37a   : > { %2462 = vmatmul.bf16.gmra.mxu0 %v2200_v44 }
 0x37b   : > { %2505 = vmatmul.bf16.gmra.mxu1 %v2201_v47  ;;  %2548 = vmatmul.bf16.gmra.mxu2 %v2202_v9 }
 0x37c   : > { %2591 = vmatmul.bf16.gmra.mxu3 %v2203_v26 }
 0x38a   : > { %2793 = vmatmul.bf16.vlgmr.msrb.gmra.mxu0 %v4702_v7 }
 0x38b   : > { %2836 = vmatmul.bf16.vlgmr.msrb.gmra.mxu1 %v4706_v31  ;;  %2879 = vmatmul.bf16.vlgmr.msrb.gmra.mxu2 %v4710_v20 }
 0x38c   : > { %2922 = vmatmul.bf16.vlgmr.msrb.gmra.mxu3 %v4714_v52  ;;  %3615 = vmatpush.bf16.msrb.mxu2 %v6939_v46  ;;  %v5235_v46 = vld [vmem:[%s8122_s0 + $0xfc] sm:$0xf0]  ;;  %v4758_v52 = vor.u32 %v5244_v54, %v4757_v51 }
 0x38d   : > { %3658 = vmatpush.bf16.msrb.mxu3 %v6943_v49  ;;  %3529 = vmatpush.bf16.msrb.mxu0 %v6931_v15  ;;  %v5233_v15 = vld [vmem:[%s8122_s0 + $0xf4] sm:$0xf]  ;;  %v4725_v49 = vld [vmem:[%s8122_s0 + $0xf8] sm:$0xf] }
 0x38e   : > { %3572 = vmatpush.bf16.msrb.mxu1 %v6935_v42  ;;  %v4719_v42 = vld [vmem:[%s8122_s0 + $0x100] sm:$0xf0] }
 0x38f   : > { %v4722_v16 = vor.u32 %v5233_v15, %v4719_v42 }
 0x390   : > { %3616 = vmatpush.bf16.msrb.mxu2 %v6959_v33  ;;  %v4727_v33 = vld [vmem:[%s8122_s0 + $0x108] sm:$0xf0] }
 0x391   : > { %3659 = vmatpush.bf16.msrb.mxu3 %v6963_v2  ;;  %3530 = vmatpush.bf16.msrb.mxu0 %v6949_v24  ;;  %v5236_v24 = vld [vmem:[%s8122_s0 + $0x104] sm:$0xf0]  ;;  %v4718_v2 = vor.u32 %v5235_v46, %v4717_v29  ;;  %v4762_v29 = vor.u32 %v5242_v56, %v4759_v40 }
 0x392   : > { %3573 = vmatpush.bf16.msrb.mxu1 %v6953_v53  ;;  %v5234_v53 = vld [vmem:[%s8122_s0 + $0xfc] sm:$0xf]  ;;  %v4726_v38 = vor.u32 %v5236_v24, %v4725_v49 }
 0x393   : > { %v4730_v27 = vor.u32 %v5234_v53, %v4727_v33 }
 0x394   : > { %3617 = vmatpush.bf16.msrb.mxu2 %v6979_v5 }
 0x395   : > { %3660 = vmatpush.bf16.msrb.mxu3 %v6983_v34  ;;  %3531 = vmatpush.bf16.msrb.mxu0 %v6969_v58 }
 0x396   : > { %3574 = vmatpush.bf16.msrb.mxu1 %v6973_v61 }
 0x397   : > { %v2433_v37 = vpop.f32.mrf.mxu0 }
 0x398   : > { %v2476_v1 = vpop.f32.mrf.mxu1  ;;  %3618 = vmatpush.bf16.msrb.mxu2 %v6999_v11 }
 0x399   : > { %v2477_v18 = vadd.f32 %v2476_v1, %v2433_v37  ;;  %3661 = vmatpush.bf16.msrb.mxu3 %v7003_v3  ;;  %3532 = vmatpush.bf16.msrb.mxu0 %v6989_v35  ;;  %v4733_v3 = vld [vmem:[%s8122_s0 + $0x110] sm:$0xf]  ;;  %v5247_v1 = vld [vmem:[%s8122_s0 + $0x15c] sm:$0xf0] }
 0x39a   : > { %3575 = vmatpush.bf16.msrb.mxu1 %v6993_v45  ;;  %2798 = vmatmul.bf16.gmra.mxu0 %v4718_v2  ;;  %v4765_v37 = vld [vmem:[%s8122_s0 + $0x150] sm:$0xf] }
 0x39b   : > { %2841 = vmatmul.bf16.gmra.mxu1 %v4722_v16  ;;  %2884 = vmatmul.bf16.gmra.mxu2 %v4726_v38  ;;  %v5245_v38 = vld [vmem:[%s8122_s0 + $0x154] sm:$0xf] }
 0x39c   : > { %2927 = vmatmul.bf16.gmra.mxu3 %v4730_v27  ;;  %3619 = vmatpush.bf16.msrb.mxu2 %v7019_v30  ;;  %v4735_v30 = vld [vmem:[%s8122_s0 + $0x120] sm:$0xf0] }
 0x39d   : > { %3662 = vmatpush.bf16.msrb.mxu3 %v7023_v23  ;;  %3533 = vmatpush.bf16.msrb.mxu0 %v7009_v25  ;;  %v5239_v25 = vld [vmem:[%s8122_s0 + $0x11c] sm:$0xf0]  ;;  %v4741_v23 = vld [vmem:[%s8122_s0 + $0x118] sm:$0xf]  ;;  %v4767_v27 = vld [vmem:[%s8122_s0 + $0x160] sm:$0xf0] }
 0x39e   : > { %3576 = vmatpush.bf16.msrb.mxu1 %v7013_v28  ;;  %v2519_v58 = vpop.f32.mrf.mxu2  ;;  %v5237_v28 = vld [vmem:[%s8122_s0 + $0x114] sm:$0xf]  ;;  %v4734_v12 = vor.u32 %v5239_v25, %v4733_v3  ;;  %v4770_v3 = vor.u32 %v5245_v38, %v4767_v27 }
 0x39f   : > { %v2562_v61 = vpop.f32.mrf.mxu3  ;;  %v2520_v5 = vadd.f32 %v2519_v58, %v2477_v18  ;;  %v2435_v34 = vpop.f32.mrf.mxu0  ;;  %v4738_v21 = vor.u32 %v5237_v28, %v4735_v30  ;;  %v4773_v18 = vld [vmem:[%s8122_s0 + $0x158] sm:$0xf]  ;;  %v5248_v58 = vld [vmem:[%s8122_s0 + $0x164] sm:$0xf0] }
 0x3a0   : > { %v2478_v11 = vpop.f32.mrf.mxu1  ;;  %3620 = vmatpush.bf16.msrb.mxu2 %v7039_v43  ;;  %v4743_v43 = vld [vmem:[%s8122_s0 + $0x128] sm:$0xf0] }
 0x3a1   : > { %v2479_v35 = vadd.f32 %v2478_v11, %v2435_v34  ;;  %3663 = vmatpush.bf16.msrb.mxu3 %v7043_v48  ;;  %v7373_v45 = vadd.f32 %v2562_v61, %v2520_v5  ;;  %3534 = vmatpush.bf16.msrb.mxu0 %v7029_v17  ;;  %v5240_v17 = vld [vmem:[%s8122_s0 + $0x124] sm:$0xf0]  ;;  %v5246_v61 = vld [vmem:[%s8122_s0 + $0x15c] sm:$0xf]  ;;  %v4775_v5 = vld [vmem:[%s8122_s0 + $0x168] sm:$0xf0] }
 0x3a2   : > { %3577 = vmatpush.bf16.msrb.mxu1 %v7033_v13  ;;  %v5238_v13 = vld [vmem:[%s8122_s0 + $0x11c] sm:$0xf]  ;;  %v4742_v19 = vor.u32 %v5240_v17, %v4741_v23  ;;  %v4774_v23 = vor.u32 %v5248_v58, %v4773_v18  ;;  %v4778_v17 = vor.u32 %v5246_v61, %v4775_v5 }
 0x3a3   : > { %v4746_v6 = vor.u32 %v5238_v13, %v4743_v43 }
 0x3a4   : > { %3621 = vmatpush.bf16.msrb.mxu2 %v7059_v22 }
 0x3a5   : > { %3664 = vmatpush.bf16.msrb.mxu3 %v7063_v60  ;;  %3535 = vmatpush.bf16.msrb.mxu0 %v7049_v50 }
 0x3a6   : > { %3578 = vmatpush.bf16.msrb.mxu1 %v7053_v55  ;;  %v2521_v48 = vpop.f32.mrf.mxu2 }
 0x3a7   : > { %v2564_v4 = vpop.f32.mrf.mxu3  ;;  %v2522_v36 = vadd.f32 %v2521_v48, %v2479_v35  ;;  %v2438_v14 = vpop.f32.mrf.mxu0  ;;  %v4766_v35 = vor.u32 %v5247_v1, %v4765_v37 }
 0x3a8   : > { %v2481_v8 = vpop.f32.mrf.mxu1  ;;  %3622 = vmatpush.bf16.msrb.mxu2 %v7094_v39  ;;  %v4749_v39 = vld [vmem:[%s8122_s0 + $0x130] sm:$0xf] }
 0x3a9   : > { %v2482_v41 = vadd.f32 %v2481_v8, %v2438_v14  ;;  %3665 = vmatpush.bf16.msrb.mxu3 %v7098_v10  ;;  %v7407_v22 = vadd.f32 %v2564_v4, %v2522_v36  ;;  %3536 = vmatpush.bf16.msrb.mxu0 %v7075_v32  ;;  %v5243_v32 = vld [vmem:[%s8122_s0 + $0x13c] sm:$0xf0]  ;;  %v4751_v10 = vld [vmem:[%s8122_s0 + $0x140] sm:$0xf0] }
 0x3aa   : > { %3579 = vmatpush.bf16.msrb.mxu1 %v7079_v0  ;;  %2803 = vmatmul.bf16.gmra.mxu0 %v4734_v12  ;;  %v5241_v0 = vld [vmem:[%s8122_s0 + $0x134] sm:$0xf]  ;;  %v4750_v62 = vor.u32 %v5243_v32, %v4749_v39 }
 0x3ab   : > { %2846 = vmatmul.bf16.gmra.mxu1 %v4738_v21  ;;  %2889 = vmatmul.bf16.gmra.mxu2 %v4742_v19  ;;  %v4754_v63 = vor.u32 %v5241_v0, %v4751_v10  ;;  %v4781_v19 = vld [vmem:[%s8122_s0 + $0x170] sm:$0xf] }
 0x3ac   : > { %2932 = vmatmul.bf16.gmra.mxu3 %v4746_v6  ;;  %v5251_v6 = vld [vmem:[%s8122_s0 + $0x17c] sm:$0xf0] }
 0x3ad   : > { %v4782_v32 = vor.u32 %v5251_v6, %v4781_v19  ;;  %v4833_v19 = vld [vmem:[%s8122_s0 + $0x1b8] sm:$0xf0] }
 0x3ae   : > { %v2524_v50 = vpop.f32.mrf.mxu2 }
 0x3af   : > { %v2567_v55 = vpop.f32.mrf.mxu3  ;;  %v2525_v60 = vadd.f32 %v2524_v50, %v2482_v41  ;;  %v2440_v44 = vpop.f32.mrf.mxu0  ;;  %v5249_v41 = vld [vmem:[%s8122_s0 + $0x174] sm:$0xf]  ;;  %v4783_v50 = vld [vmem:[%s8122_s0 + $0x180] sm:$0xf0] }
 0x3b0   : > { %v2483_v47 = vpop.f32.mrf.mxu1  ;;  %v4786_v0 = vor.u32 %v5249_v41, %v4783_v50 }
 0x3b1   : > { %v2484_v9 = vadd.f32 %v2483_v47, %v2440_v44  ;;  %v7411_v26 = vadd.f32 %v2567_v55, %v2525_v60  ;;  %v4789_v55 = vld [vmem:[%s8122_s0 + $0x178] sm:$0xf]  ;;  %v5252_v60 = vld [vmem:[%s8122_s0 + $0x184] sm:$0xf0]  ;;  %v5250_v44 = vld [vmem:[%s8122_s0 + $0x17c] sm:$0xf] }
 0x3b2   : > { %v4791_v47 = vld [vmem:[%s8122_s0 + $0x188] sm:$0xf0]  ;;  %v4790_v56 = vor.u32 %v5252_v60, %v4789_v55 }
 0x3b3   : > { %v4794_v40 = vor.u32 %v5250_v44, %v4791_v47 }
 0x3b6   : > { %v2526_v57 = vpop.f32.mrf.mxu2 }
 0x3b7   : > { %v2569_v59 = vpop.f32.mrf.mxu3  ;;  %v2527_v7 = vadd.f32 %v2526_v57, %v2484_v9  ;;  %v2443_v31 = vpop.f32.mrf.mxu0 }
 0x3b8   : > { %v2486_v20 = vpop.f32.mrf.mxu1 }
 0x3b9   : > { %v2487_v46 = vadd.f32 %v2486_v20, %v2443_v31  ;;  %v7437_v15 = vadd.f32 %v2569_v59, %v2527_v7 }
 0x3ba   : > { %2808 = vmatmul.bf16.gmra.mxu0 %v4750_v62 }
 0x3bb   : > { %2851 = vmatmul.bf16.gmra.mxu1 %v4754_v63  ;;  %2894 = vmatmul.bf16.gmra.mxu2 %v4758_v52  ;;  %v4697_v52 = vld [vmem:[%s8122_s0 + $0x190] sm:$0x11] }
 0x3bc   : > { %2937 = vmatmul.bf16.gmra.mxu3 %v4762_v29 }
 0x3be   : > { %v2529_v42 = vpop.f32.mrf.mxu2 }
 0x3bf   : > { %v2572_v49 = vpop.f32.mrf.mxu3  ;;  %v2530_v24 = vadd.f32 %v2529_v42, %v2487_v46  ;;  %v2445_v53 = vpop.f32.mrf.mxu0  ;;  %v4698_v46 = vld [vmem:[%s8122_s0 + $0x198] sm:$0x11] }
 0x3c0   : > { %v2488_v33 = vpop.f32.mrf.mxu1 }
 0x3c1   : > { %v2489_v2 = vadd.f32 %v2488_v33, %v2445_v53  ;;  %v7439_v16 = vadd.f32 %v2572_v49, %v2530_v24  ;;  %v2725_v49 = vunpack.c.l.b16 %v4697_v52  ;;  %v2726_v24 = vunpack.c.h.b16 %v4697_v52  ;;  %v5260_v52 = vld [vmem:[%s8122_s0 + $0x1d4] sm:$0xf0] }
 0x3c2   : > { %v2727_v53 = vunpack.c.l.b16 %v4698_v46  ;;  %v2728_v33 = vunpack.c.h.b16 %v4698_v46  ;;  %v4849_v46 = vld [vmem:[%s8122_s0 + $0x1d8] sm:$0xf0] }
 0x3c3   : > { %v2753_v1 = vpack.c.b16 %v2725_v49, %v2725_v49  ;;  %v2754_v38 = vpack.c.b16 %v2726_v24, %v2726_v24 }
 0x3c4   : > { %v2755_v61 = vpack.c.b16 %v2727_v53, %v2727_v53  ;;  %v2756_v5 = vpack.c.b16 %v2728_v33, %v2728_v33 }
 0x3c6   : > { %v2531_v34 = vpop.f32.mrf.mxu2 }
 0x3c7   : > { %v2574_v11 = vpop.f32.mrf.mxu3  ;;  %v2532_v25 = vadd.f32 %v2531_v34, %v2489_v2  ;;  %v2448_v28 = vpop.f32.mrf.mxu0 }
 0x3c8   : > { %v2491_v30 = vpop.f32.mrf.mxu1 }
 0x3c9   : > { %v2492_v13 = vadd.f32 %v2491_v30, %v2448_v28  ;;  %v7465_v43 = vadd.f32 %v2574_v11, %v2532_v25 }
 0x3ca   : > { %2813 = vmatmul.bf16.gmra.mxu0 %v4766_v35 }
 0x3cb   : > { %2856 = vmatmul.bf16.gmra.mxu1 %v4770_v3  ;;  %2899 = vmatmul.bf16.gmra.mxu2 %v4774_v23 }
 0x3cc   : > { %2942 = vmatmul.bf16.gmra.mxu3 %v4778_v17 }
 0x3ce   : > { %v2534_v48 = vpop.f32.mrf.mxu2 }
 0x3cf   : > { %v2577_v4 = vpop.f32.mrf.mxu3  ;;  %v2535_v12 = vadd.f32 %v2534_v48, %v2492_v13  ;;  %v2450_v21 = vpop.f32.mrf.mxu0  ;;  %v4823_v13 = vld [vmem:[%s8122_s0 + $0x1a0] sm:$0xf]  ;;  %v5255_v48 = vld [vmem:[%s8122_s0 + $0x1ac] sm:$0xf0] }
 0x3d0   : > { %v2493_v36 = vpop.f32.mrf.mxu1  ;;  %v4824_v50 = vor.u32 %v5255_v48, %v4823_v13  ;;  %v5263_v13 = vld [vmem:[%s8122_s0 + $0x1ec] sm:$0xf0] }
 0x3d1   : > { %v2494_v14 = vadd.f32 %v2493_v36, %v2450_v21  ;;  %v7467_v8 = vadd.f32 %v2577_v4, %v2535_v12  ;;  %v5253_v4 = vld [vmem:[%s8122_s0 + $0x1a4] sm:$0xf]  ;;  %v4825_v12 = vld [vmem:[%s8122_s0 + $0x1b0] sm:$0xf0]  ;;  %v4831_v21 = vld [vmem:[%s8122_s0 + $0x1a8] sm:$0xf] }
 0x3d2   : > { %v5256_v36 = vld [vmem:[%s8122_s0 + $0x1b4] sm:$0xf0]  ;;  %v4828_v55 = vor.u32 %v5253_v4, %v4825_v12  ;;  %v5261_v4 = vld [vmem:[%s8122_s0 + $0x1e4] sm:$0xf]  ;;  %v4863_v12 = vld [vmem:[%s8122_s0 + $0x1e8] sm:$0xf] }
 0x3d6   : > { %v2536_v9 = vpop.f32.mrf.mxu2 }
 0x3d7   : > { %v2579_v39 = vpop.f32.mrf.mxu3  ;;  %v2537_v10 = vadd.f32 %v2536_v9, %v2494_v14  ;;  %v2453_v51 = vpop.f32.mrf.mxu0  ;;  %v5254_v14 = vld [vmem:[%s8122_s0 + $0x1ac] sm:$0xf]  ;;  %v4832_v9 = vor.u32 %v5256_v36, %v4831_v21  ;;  %v5264_v21 = vld [vmem:[%s8122_s0 + $0x1f4] sm:$0xf0] }
 0x3d8   : > { %v2496_v54 = vpop.f32.mrf.mxu1  ;;  %v5262_v36 = vld [vmem:[%s8122_s0 + $0x1ec] sm:$0xf] }
 0x3d9   : > { %v2497_v57 = vadd.f32 %v2496_v54, %v2453_v51  ;;  %v7493_v59 = vadd.f32 %v2579_v39, %v2537_v10  ;;  %v4836_v39 = vor.u32 %v5254_v14, %v4833_v19  ;;  %v4865_v14 = vld [vmem:[%s8122_s0 + $0x1f8] sm:$0xf0] }
 0x3da   : > { %2818 = vmatmul.bf16.gmra.mxu0 %v4782_v32 }
 0x3db   : > { %2861 = vmatmul.bf16.gmra.mxu1 %v4786_v0  ;;  %2904 = vmatmul.bf16.gmra.mxu2 %v4790_v56 }
 0x3dc   : > { %2947 = vmatmul.bf16.gmra.mxu3 %v4794_v40 }
 0x3de   : > { %v2539_v62 = vpop.f32.mrf.mxu2 }
 0x3df   : > { %v2582_v63 = vpop.f32.mrf.mxu3  ;;  %v2540_v7 = vadd.f32 %v2539_v62, %v2497_v57  ;;  %v2455_v31 = vpop.f32.mrf.mxu0  ;;  %v4839_v62 = vld [vmem:[%s8122_s0 + $0x1c0] sm:$0xf] }
 0x3e0   : > { %v2498_v20 = vpop.f32.mrf.mxu1 }
 0x3e1   : > { %v2499_v29 = vadd.f32 %v2498_v20, %v2455_v31  ;;  %v7501_v42 = vadd.f32 %v2582_v63, %v2540_v7  ;;  %v5259_v63 = vld [vmem:[%s8122_s0 + $0x1cc] sm:$0xf0]  ;;  %v5257_v7 = vld [vmem:[%s8122_s0 + $0x1c4] sm:$0xf]  ;;  %v4841_v31 = vld [vmem:[%s8122_s0 + $0x1d0] sm:$0xf0] }
 0x3e2   : > { %v4847_v20 = vld [vmem:[%s8122_s0 + $0x1c8] sm:$0xf]  ;;  %v4840_v53 = vor.u32 %v5259_v63, %v4839_v62  ;;  %v4844_v33 = vor.u32 %v5257_v7, %v4841_v31 }
 0x3e6   : > { %v2541_v2 = vpop.f32.mrf.mxu2 }
 0x3e7   : > { %v2584_v37 = vpop.f32.mrf.mxu3  ;;  %v2542_v27 = vadd.f32 %v2541_v2, %v2499_v29  ;;  %v2458_v18 = vpop.f32.mrf.mxu0  ;;  %v5258_v29 = vld [vmem:[%s8122_s0 + $0x1cc] sm:$0xf] }
 0x3e8   : > { %v2501_v58 = vpop.f32.mrf.mxu1 }
 0x3e9   : > { %v2502_v34 = vadd.f32 %v2501_v58, %v2458_v18  ;;  %v7503_v11 = vadd.f32 %v2584_v37, %v2542_v27  ;;  %v7559_v18 = vld [vmem:[#allocation4] ss:$0 sm:$0xff] }
 0x3ea   : > { %2823 = vmatmul.bf16.gmra.mxu0 %v2753_v1  ;;  %v4848_v1 = vor.u32 %v5260_v52, %v4847_v20 }
 0x3eb   : > { %2866 = vmatmul.bf16.gmra.mxu1 %v2754_v38  ;;  %2909 = vmatmul.bf16.gmra.mxu2 %v2755_v61  ;;  %v4852_v38 = vor.u32 %v5258_v29, %v4849_v46 }
 0x3ec   : > { %2952 = vmatmul.bf16.gmra.mxu3 %v2756_v5 }
 0x3ee   : > { %v2544_v35 = vpop.f32.mrf.mxu2 }
 0x3ef   : > { %v2587_v3 = vpop.f32.mrf.mxu3  ;;  %v2545_v25 = vadd.f32 %v2544_v35, %v2502_v34  ;;  %v2460_v28 = vpop.f32.mrf.mxu0 }
 0x3f0   : > { %v2503_v30 = vpop.f32.mrf.mxu1 }
 0x3f1   : > { %v2504_v23 = vadd.f32 %v2503_v30, %v2460_v28  ;;  %v7505_v17 = vadd.f32 %v2587_v3, %v2545_v25  ;;  %v2597_v25 = vmul.f32 %v7559_v18, %v7373_v45  ;;  %v7563_v28 = vld [vmem:[#allocation4 + $0x1] ss:$0 sm:$0xff]  ;;  %v4857_v45 = vld [vmem:[%s8122_s0 + $0x1f0] sm:$0xf0] }
 0x3f3   : > { %v7591_v19 = vadd.f32 %v7563_v28, %v2597_v25 }
 0x3f6   : > { %v2546_v6 = vpop.f32.mrf.mxu2 }
 0x3f7   : > { %v2589_v41 = vpop.f32.mrf.mxu3  ;;  %v2547_v60 = vadd.f32 %v2546_v6, %v2504_v23  ;;  %v2463_v44 = vpop.f32.mrf.mxu0  ;;  %v4855_v23 = vld [vmem:[%s8122_s0 + $0x1e0] sm:$0xf] }
 0x3f8   : > { %v2506_v47 = vpop.f32.mrf.mxu1 }
 0x3f9   : > { %v2507_v32 = vadd.f32 %v2506_v47, %v2463_v44  ;;  %v7531_v0 = vadd.f32 %v2589_v41, %v2547_v60  ;;  %v4860_v60 = vor.u32 %v5261_v4, %v4857_v45 }
 0x3fa   : > { %3165 = vmatmul.bf16.vlgmr.msra.gmra.mxu0 %v4824_v50 }
 0x3fb   : > { %3208 = vmatmul.bf16.vlgmr.msra.gmra.mxu1 %v4828_v55  ;;  %3251 = vmatmul.bf16.vlgmr.msra.gmra.mxu2 %v4832_v9  ;;  %v4856_v55 = vor.u32 %v5263_v13, %v4855_v23 }
 0x3fc   : > { %3294 = vmatmul.bf16.vlgmr.msra.gmra.mxu3 %v4836_v39 }
 0x3fe   : > { %v2549_v10 = vpop.f32.mrf.mxu2 }
 0x3ff   : > { %v2592_v51 = vpop.f32.mrf.mxu3  ;;  %v2550_v54 = vadd.f32 %v2549_v10, %v2507_v32  ;;  %v2465_v56 = vpop.f32.mrf.mxu0  ;;  %v4864_v32 = vor.u32 %v5264_v21, %v4863_v12  ;;  %v4868_v10 = vor.u32 %v5262_v36, %v4865_v14  ;;  %v2600_v21 = vmul.f32 %v7559_v18, %v7437_v15 }
 0x400   : > { %v2508_v40 = vpop.f32.mrf.mxu1 }
 0x401   : > { %v7533_v57 = vadd.f32 %v2592_v51, %v2550_v54  ;;  %v2598_v54 = vmul.f32 %v7559_v18, %v7407_v22 }
 0x403   : > { %v7602_v62 = vadd.f32 %v7563_v28, %v2598_v54  ;;  %v4887_v54 = vld [vmem:[%s8122_s0 + $0x220] sm:$0xf] }
 0x406   : > { %v2551_v49 = vpop.f32.mrf.mxu2 }
 0x407   : > { %v2594_v24 = vpop.f32.mrf.mxu3  ;;  %v2794_v2 = vpop.f32.mrf.mxu0  ;;  %v2599_v49 = vmul.f32 %v7559_v18, %v7411_v26  ;;  %v4879_v26 = vld [vmem:[%s8122_s0 + $0x208] sm:$0xf] }
 0x408   : > { %v2837_v37 = vpop.f32.mrf.mxu1 }
 0x409   : > { %v2838_v27 = vadd.f32 %v2837_v37, %v2794_v2  ;;  %v5265_v37 = vld [vmem:[%s8122_s0 + $0x204] sm:$0xf] }
 0x40a   : > { %3170 = vmatmul.bf16.gmra.mxu0 %v4840_v53  ;;  %v4871_v53 = vld [vmem:[%s8122_s0 + $0x200] sm:$0xf] }
 0x40b   : > { %3213 = vmatmul.bf16.gmra.mxu1 %v4844_v33  ;;  %3256 = vmatmul.bf16.gmra.mxu2 %v4848_v1  ;;  %v5267_v33 = vld [vmem:[%s8122_s0 + $0x20c] sm:$0xf0]  ;;  %v4873_v1 = vld [vmem:[%s8122_s0 + $0x210] sm:$0xf0] }
 0x40c   : > { %3299 = vmatmul.bf16.gmra.mxu3 %v4852_v38  ;;  %v5268_v38 = vld [vmem:[%s8122_s0 + $0x214] sm:$0xf0]  ;;  %v4876_v25 = vor.u32 %v5265_v37, %v4873_v1 }
 0x40d   : > { %v4880_v4 = vor.u32 %v5268_v38, %v4879_v26 }
 0x40e   : > { %v2880_v58 = vpop.f32.mrf.mxu2 }
 0x40f   : > { %v2923_v61 = vpop.f32.mrf.mxu3  ;;  %v2881_v5 = vadd.f32 %v2880_v58, %v2838_v27  ;;  %v2796_v34 = vpop.f32.mrf.mxu0  ;;  %v5266_v27 = vld [vmem:[%s8122_s0 + $0x20c] sm:$0xf]  ;;  %v4881_v58 = vld [vmem:[%s8122_s0 + $0x218] sm:$0xf0] }
 0x410   : > { %v2839_v35 = vpop.f32.mrf.mxu1  ;;  %v4884_v45 = vor.u32 %v5266_v27, %v4881_v58 }
 0x411   : > { %v2840_v3 = vadd.f32 %v2839_v35, %v2796_v34  ;;  %v2924_v30 = vadd.f32 %v2923_v61, %v2881_v5  ;;  %v7637_v61 = vadd.f32 %v7563_v28, %v2599_v49 }
 0x413   : > { %v2957_v48 = vmul.f32 %v7559_v18, %v2924_v30 }
 0x415   : > { %v7594_v6 = vadd.f32 %v7563_v28, %v2957_v48 }
 0x416   : > { %v2882_v41 = vpop.f32.mrf.mxu2 }
 0x417   : > { %v2925_v50 = vpop.f32.mrf.mxu3  ;;  %v2983_v44 = vmax.f32 %v7591_v19, %v7594_v6  ;;  %v2883_v47 = vadd.f32 %v2882_v41, %v2840_v3  ;;  %v2799_v9 = vpop.f32.mrf.mxu0  ;;  %v4872_v3 = vor.u32 %v5267_v33, %v4871_v53  ;;  %v7648_v41 = vadd.f32 %v7563_v28, %v2600_v21 }
 0x418   : > { %v2842_v39 = vpop.f32.mrf.mxu1 }
 0x419   : > { %v2843_v51 = vadd.f32 %v2842_v39, %v2799_v9  ;;  %v2926_v56 = vadd.f32 %v2925_v50, %v2883_v47 }
 0x41a   : > { %3175 = vmatmul.bf16.gmra.mxu0 %v4856_v55 }
 0x41b   : > { %3218 = vmatmul.bf16.gmra.mxu1 %v4860_v60  ;;  %v2958_v40 = vmul.f32 %v7559_v18, %v2926_v56  ;;  %3261 = vmatmul.bf16.gmra.mxu2 %v4864_v32  ;;  %v5271_v56 = vld [vmem:[%s8122_s0 + $0x22c] sm:$0xf0] }
 0x41c   : > { %3304 = vmatmul.bf16.gmra.mxu3 %v4868_v10  ;;  %v2601_v10 = vmul.f32 %v7559_v18, %v7439_v16  ;;  %v4895_v16 = vld [vmem:[%s8122_s0 + $0x228] sm:$0xf]  ;;  %v4888_v33 = vor.u32 %v5271_v56, %v4887_v54  ;;  %v4913_v54 = vld [vmem:[%s8122_s0 + $0x258] sm:$0xf0] }
 0x41d   : > { %v7605_v63 = vadd.f32 %v7563_v28, %v2958_v40 }
 0x41e   : > { %v2885_v7 = vpop.f32.mrf.mxu2 }
 0x41f   : > { %v2928_v31 = vpop.f32.mrf.mxu3  ;;  %v2984_v20 = vmax.f32 %v7602_v62, %v7605_v63  ;;  %v2886_v52 = vadd.f32 %v2885_v7, %v2843_v51  ;;  %v2801_v22 = vpop.f32.mrf.mxu0  ;;  %v5269_v7 = vld [vmem:[%s8122_s0 + $0x224] sm:$0xf]  ;;  %v5289_v62 = vld [vmem:[%s8122_s0 + $0x2d4] sm:$0xf] }
 0x420   : > { %v2844_v29 = vpop.f32.mrf.mxu1  ;;  %v4995_v63 = vld [vmem:[%s8122_s0 + $0x2e0] sm:$0xf0] }
 0x421   : > { %v2845_v46 = vadd.f32 %v2844_v29, %v2801_v22  ;;  %v2929_v24 = vadd.f32 %v2928_v31, %v2886_v52  ;;  %v4889_v31 = vld [vmem:[%s8122_s0 + $0x230] sm:$0xf0]  ;;  %v5272_v52 = vld [vmem:[%s8122_s0 + $0x234] sm:$0xf0]  ;;  %v5270_v22 = vld [vmem:[%s8122_s0 + $0x22c] sm:$0xf] }
 0x422   : > { %v4897_v29 = vld [vmem:[%s8122_s0 + $0x238] sm:$0xf0]  ;;  %v4896_v27 = vor.u32 %v5272_v52, %v4895_v16 }
 0x423   : > { %v2959_v2 = vmul.f32 %v7559_v18, %v2929_v24  ;;  %v4900_v58 = vor.u32 %v5270_v22, %v4897_v29 }
 0x425   : > { %v7640_v5 = vadd.f32 %v7563_v28, %v2959_v2  ;;  %v4892_v2 = vor.u32 %v5269_v7, %v4889_v31 }
 0x426   : > { %v2887_v34 = vpop.f32.mrf.mxu2 }
 0x427   : > { %v2930_v35 = vpop.f32.mrf.mxu3  ;;  %v2985_v30 = vmax.f32 %v7637_v61, %v7640_v5  ;;  %v2888_v23 = vadd.f32 %v2887_v34, %v2845_v46  ;;  %v2804_v13 = vpop.f32.mrf.mxu0  ;;  %v7683_v46 = vadd.f32 %v7563_v28, %v2601_v10  ;;  %v5276_v10 = vld [vmem:[%s8122_s0 + $0x254] sm:$0xf0] }
 0x428   : > { %v2847_v48 = vpop.f32.mrf.mxu1 }
 0x429   : > { %v2848_v12 = vadd.f32 %v2847_v48, %v2804_v13  ;;  %v2931_v36 = vadd.f32 %v2930_v35, %v2888_v23  ;;  %v2602_v35 = vmul.f32 %v7559_v18, %v7465_v43 }
 0x42a   : > { %3180 = vmatmul.bf16.gmra.mxu0 %v4872_v3 }
 0x42b   : > { %3223 = vmatmul.bf16.gmra.mxu1 %v4876_v25  ;;  %v2960_v14 = vmul.f32 %v7559_v18, %v2931_v36  ;;  %3266 = vmatmul.bf16.gmra.mxu2 %v4880_v4  ;;  %v7694_v23 = vadd.f32 %v7563_v28, %v2602_v35 }
 0x42c   : > { %3309 = vmatmul.bf16.gmra.mxu3 %v4884_v45 }
 0x42d   : > { %v7651_v50 = vadd.f32 %v7563_v28, %v2960_v14  ;;  %v2603_v14 = vmul.f32 %v7559_v18, %v7467_v8  ;;  %v4911_v8 = vld [vmem:[%s8122_s0 + $0x248] sm:$0xf] }
 0x42e   : > { %v2890_v55 = vpop.f32.mrf.mxu2 }
 0x42f   : > { %v2933_v60 = vpop.f32.mrf.mxu3  ;;  %v2986_v47 = vmax.f32 %v7648_v41, %v7651_v50  ;;  %v2891_v9 = vadd.f32 %v2890_v55, %v2848_v12  ;;  %v2806_v15 = vpop.f32.mrf.mxu0  ;;  %v7729_v56 = vadd.f32 %v7563_v28, %v2603_v14  ;;  %v5293_v41 = vld [vmem:[%s8122_s0 + $0x2f4] sm:$0xf]  ;;  %v5011_v50 = vld [vmem:[%s8122_s0 + $0x300] sm:$0xf0] }
 0x430   : > { %v2849_v39 = vpop.f32.mrf.mxu1 }
 0x431   : > { %v2850_v32 = vadd.f32 %v2849_v39, %v2806_v15  ;;  %v2934_v51 = vadd.f32 %v2933_v60, %v2891_v9  ;;  %v4903_v60 = vld [vmem:[%s8122_s0 + $0x240] sm:$0xf]  ;;  %v5275_v9 = vld [vmem:[%s8122_s0 + $0x24c] sm:$0xf0]  ;;  %v5273_v39 = vld [vmem:[%s8122_s0 + $0x244] sm:$0xf] }
 0x432   : > { %v4904_v16 = vor.u32 %v5275_v9, %v4903_v60 }
 0x433   : > { %v2961_v40 = vmul.f32 %v7559_v18, %v2934_v51  ;;  %v5274_v51 = vld [vmem:[%s8122_s0 + $0x24c] sm:$0xf] }
 0x435   : > { %v7686_v49 = vadd.f32 %v7563_v28, %v2961_v40 }
 0x436   : > { %v2892_v24 = vpop.f32.mrf.mxu2 }
 0x437   : > { %v2935_v53 = vpop.f32.mrf.mxu3  ;;  %v2987_v37 = vmax.f32 %v7683_v46, %v7686_v49  ;;  %v2893_v1 = vadd.f32 %v2892_v24, %v2850_v32  ;;  %v2809_v26 = vpop.f32.mrf.mxu0  ;;  %v4905_v32 = vld [vmem:[%s8122_s0 + $0x250] sm:$0xf0] }
 0x438   : > { %v2852_v38 = vpop.f32.mrf.mxu1  ;;  %v4908_v52 = vor.u32 %v5273_v39, %v4905_v32 }
 0x439   : > { %v2853_v34 = vadd.f32 %v2852_v38, %v2809_v26  ;;  %v2936_v3 = vadd.f32 %v2935_v53, %v2893_v1  ;;  %v2604_v26 = vmul.f32 %v7559_v18, %v7493_v59 }
 0x43a   : > { %3185 = vmatmul.bf16.gmra.mxu0 %v4888_v33  ;;  %v4912_v33 = vor.u32 %v5276_v10, %v4911_v8 }
 0x43b   : > { %3228 = vmatmul.bf16.gmra.mxu1 %v4892_v2  ;;  %v2962_v25 = vmul.f32 %v7559_v18, %v2936_v3  ;;  %3271 = vmatmul.bf16.gmra.mxu2 %v4896_v27  ;;  %v4916_v2 = vor.u32 %v5274_v51, %v4913_v54 }
 0x43c   : > { %3314 = vmatmul.bf16.gmra.mxu3 %v4900_v58  ;;  %v7740_v58 = vadd.f32 %v7563_v28, %v2604_v26 }
 0x43d   : > { %v7697_v13 = vadd.f32 %v7563_v28, %v2962_v25 }
 0x43e   : > { %v2895_v48 = vpop.f32.mrf.mxu2 }
 0x43f   : > { %v2938_v4 = vpop.f32.mrf.mxu3  ;;  %v2988_v45 = vmax.f32 %v7694_v23, %v7697_v13  ;;  %v2896_v12 = vadd.f32 %v2895_v48, %v2853_v34  ;;  %v2811_v43 = vpop.f32.mrf.mxu0  ;;  %v5297_v23 = vld [vmem:[%s8122_s0 + $0x314] sm:$0xf]  ;;  %v5027_v13 = vld [vmem:[%s8122_s0 + $0x320] sm:$0xf0] }
 0x440   : > { %v2854_v21 = vpop.f32.mrf.mxu1 }
 0x441   : > { %v2855_v36 = vadd.f32 %v2854_v21, %v2811_v43  ;;  %v2939_v55 = vadd.f32 %v2938_v4, %v2896_v12  ;;  %v4819_v12 = vld [vmem:[%s8122_s0 + $0x260] sm:$0x11]  ;;  %v4820_v21 = vld [vmem:[%s8122_s0 + $0x268] sm:$0x11] }
 0x442   : > { %v3098_v60 = vunpack.c.h.b16 %v4819_v12  ;;  %v3100_v39 = vunpack.c.h.b16 %v4820_v21 }
 0x443   : > { %v2963_v15 = vmul.f32 %v7559_v18, %v2939_v55  ;;  %v3097_v55 = vunpack.c.l.b16 %v4819_v12  ;;  %v2607_v12 = vmul.f32 %v7559_v18, %v7505_v17  ;;  %v4953_v17 = vld [vmem:[%s8122_s0 + $0x278] sm:$0xf] }
 0x445   : > { %v7732_v40 = vadd.f32 %v7563_v28, %v2963_v15  ;;  %v3099_v15 = vunpack.c.l.b16 %v4820_v21  ;;  %v3125_v54 = vpack.c.b16 %v3097_v55, %v3097_v55  ;;  %v4945_v21 = vld [vmem:[%s8122_s0 + $0x270] sm:$0xf]  ;;  %v5277_v55 = vld [vmem:[%s8122_s0 + $0x274] sm:$0xf] }
 0x446   : > { %v2897_v7 = vpop.f32.mrf.mxu2 }
 0x447   : > { %v2940_v31 = vpop.f32.mrf.mxu3  ;;  %v2989_v22 = vmax.f32 %v7729_v56, %v7732_v40  ;;  %v2898_v29 = vadd.f32 %v2897_v7, %v2855_v36  ;;  %v2814_v24 = vpop.f32.mrf.mxu0  ;;  %v2605_v36 = vmul.f32 %v7559_v18, %v7501_v42  ;;  %v3126_v7 = vpack.c.b16 %v3098_v60, %v3098_v60  ;;  %v4947_v60 = vld [vmem:[%s8122_s0 + $0x280] sm:$0xf0] }
 0x448   : > { %v2857_v53 = vpop.f32.mrf.mxu1 }
 0x449   : > { %v2858_v1 = vadd.f32 %v2857_v53, %v2814_v24  ;;  %v2941_v38 = vadd.f32 %v2940_v31, %v2898_v29  ;;  %v7757_v32 = vadd.f32 %v7563_v28, %v2605_v36  ;;  %v3127_v29 = vpack.c.b16 %v3099_v15, %v3099_v15  ;;  %v5279_v36 = vld [vmem:[%s8122_s0 + $0x27c] sm:$0xf0]  ;;  %v5278_v15 = vld [vmem:[%s8122_s0 + $0x27c] sm:$0xf] }
 0x44a   : > { %3190 = vmatmul.bf16.gmra.mxu0 %v4904_v16  ;;  %v3128_v24 = vpack.c.b16 %v3100_v39, %v3100_v39  ;;  %v4955_v39 = vld [vmem:[%s8122_s0 + $0x288] sm:$0xf0] }
 0x44b   : > { %3233 = vmatmul.bf16.gmra.mxu1 %v4908_v52  ;;  %v2964_v27 = vmul.f32 %v7559_v18, %v2941_v38  ;;  %3276 = vmatmul.bf16.gmra.mxu2 %v4912_v33  ;;  %v2606_v33 = vmul.f32 %v7559_v18, %v7503_v11 }
 0x44c   : > { %3319 = vmatmul.bf16.gmra.mxu3 %v4916_v2 }
 0x44d   : > { %v7743_v34 = vadd.f32 %v7563_v28, %v2964_v27  ;;  %v7768_v26 = vadd.f32 %v7563_v28, %v2606_v33 }
 0x44e   : > { %v2900_v35 = vpop.f32.mrf.mxu2 }
 0x44f   : > { %v2943_v3 = vpop.f32.mrf.mxu3  ;;  %v2990_v25 = vmax.f32 %v7740_v58, %v7743_v34  ;;  %v2901_v48 = vadd.f32 %v2900_v35, %v2858_v1  ;;  %v2816_v59 = vpop.f32.mrf.mxu0 }
 0x450   : > { %v2859_v4 = vpop.f32.mrf.mxu1 }
 0x451   : > { %v2860_v43 = vadd.f32 %v2859_v4, %v2816_v59  ;;  %v2944_v14 = vadd.f32 %v2943_v3, %v2901_v48 }
 0x453   : > { %v2965_v9 = vmul.f32 %v7559_v18, %v2944_v14 }
 0x455   : > { %v7760_v8 = vadd.f32 %v7563_v28, %v2965_v9  ;;  %v5280_v9 = vld [vmem:[%s8122_s0 + $0x284] sm:$0xf0] }
 0x456   : > { %v2902_v10 = vpop.f32.mrf.mxu2  ;;  %v4954_v33 = vor.u32 %v5280_v9, %v4953_v17  ;;  %v5283_v17 = vld [vmem:[%s8122_s0 + $0x29c] sm:$0xf0] }
 0x457   : > { %v2945_v51 = vpop.f32.mrf.mxu3  ;;  %v2991_v42 = vmax.f32 %v7757_v32, %v7760_v8  ;;  %v2903_v31 = vadd.f32 %v2902_v10, %v2860_v43  ;;  %v2819_v16 = vpop.f32.mrf.mxu0  ;;  %v7803_v10 = vadd.f32 %v7563_v28, %v2607_v12 }
 0x458   : > { %v2862_v52 = vpop.f32.mrf.mxu1 }
 0x459   : > { %v2863_v53 = vadd.f32 %v2862_v52, %v2819_v16  ;;  %v2946_v2 = vadd.f32 %v2945_v51, %v2903_v31  ;;  %v4946_v31 = vor.u32 %v5279_v36, %v4945_v21  ;;  %v4950_v16 = vor.u32 %v5277_v55, %v4947_v60  ;;  %v4961_v60 = vld [vmem:[%s8122_s0 + $0x290] sm:$0xf] }
 0x45a   : > { %3195 = vmatmul.bf16.gmra.mxu0 %v3125_v54 }
 0x45b   : > { %3238 = vmatmul.bf16.gmra.mxu1 %v3126_v7  ;;  %v2966_v1 = vmul.f32 %v7559_v18, %v2946_v2  ;;  %3281 = vmatmul.bf16.gmra.mxu2 %v3127_v29  ;;  %v4958_v2 = vor.u32 %v5278_v15, %v4955_v39  ;;  %v5281_v15 = vld [vmem:[%s8122_s0 + $0x294] sm:$0xf]  ;;  %v4963_v39 = vld [vmem:[%s8122_s0 + $0x2a0] sm:$0xf0] }
 0x45c   : > { %3324 = vmatmul.bf16.gmra.mxu3 %v3128_v24 }
 0x45d   : > { %v7771_v38 = vadd.f32 %v7563_v28, %v2966_v1 }
 0x45e   : > { %v2905_v27 = vpop.f32.mrf.mxu2 }
 0x45f   : > { %v2948_v35 = vpop.f32.mrf.mxu3  ;;  %v2992_v3 = vmax.f32 %v7768_v26, %v7771_v38  ;;  %v2906_v48 = vadd.f32 %v2905_v27, %v2863_v53  ;;  %v2821_v11 = vpop.f32.mrf.mxu0  ;;  %v2608_v27 = vmul.f32 %v7559_v18, %v7531_v0 }
 0x460   : > { %v2864_v59 = vpop.f32.mrf.mxu1 }
 0x461   : > { %v2865_v4 = vadd.f32 %v2864_v59, %v2821_v11  ;;  %v2949_v43 = vadd.f32 %v2948_v35, %v2906_v48  ;;  %v7814_v11 = vadd.f32 %v7563_v28, %v2608_v27 }
 0x463   : > { %v2967_v14 = vmul.f32 %v7559_v18, %v2949_v43 }
 0x465   : > { %v7806_v51 = vadd.f32 %v7563_v28, %v2967_v14  ;;  %v2609_v14 = vmul.f32 %v7559_v18, %v7533_v57  ;;  %v4969_v57 = vld [vmem:[%s8122_s0 + $0x298] sm:$0xf] }
 0x466   : > { %v2907_v54 = vpop.f32.mrf.mxu2 }
 0x467   : > { %v2950_v7 = vpop.f32.mrf.mxu3  ;;  %v2993_v52 = vmax.f32 %v7803_v10, %v7806_v51  ;;  %v2908_v29 = vadd.f32 %v2907_v54, %v2865_v4  ;;  %v2824_v24 = vpop.f32.mrf.mxu0  ;;  %v5284_v54 = vld [vmem:[%s8122_s0 + $0x2a4] sm:$0xf0] }
 0x468   : > { %v2867_v53 = vpop.f32.mrf.mxu1 }
 0x469   : > { %v2868_v1 = vadd.f32 %v2867_v53, %v2824_v24  ;;  %v2951_v35 = vadd.f32 %v2950_v7, %v2908_v29  ;;  %v5282_v7 = vld [vmem:[%s8122_s0 + $0x29c] sm:$0xf] }
 0x46a   : > { %3537 = vmatmul.bf16.vlgmr.msrb.gmra.mxu0 %v4946_v31  ;;  %v4971_v31 = vld [vmem:[%s8122_s0 + $0x2a8] sm:$0xf0] }
 0x46b   : > { %3580 = vmatmul.bf16.vlgmr.msrb.gmra.mxu1 %v4950_v16  ;;  %v2968_v48 = vmul.f32 %v7559_v18, %v2951_v35  ;;  %3623 = vmatmul.bf16.vlgmr.msrb.gmra.mxu2 %v4954_v33  ;;  %v7849_v16 = vadd.f32 %v7563_v28, %v2609_v14  ;;  %v4962_v33 = vor.u32 %v5283_v17, %v4961_v60  ;;  %v4977_v17 = vld [vmem:[%s8122_s0 + $0x2b0] sm:$0xf] }
 0x46c   : > { %3666 = vmatmul.bf16.vlgmr.msrb.gmra.mxu3 %v4958_v2  ;;  %v4966_v2 = vor.u32 %v5281_v15, %v4963_v39  ;;  %v5287_v15 = vld [vmem:[%s8122_s0 + $0x2bc] sm:$0xf0] }
 0x46d   : > { %v7817_v59 = vadd.f32 %v7563_v28, %v2968_v48  ;;  %v4970_v48 = vor.u32 %v5284_v54, %v4969_v57  ;;  %v5285_v57 = vld [vmem:[%s8122_s0 + $0x2b4] sm:$0xf]  ;;  %v4979_v54 = vld [vmem:[%s8122_s0 + $0x2c0] sm:$0xf0] }
 0x46e   : > { %v2910_v4 = vpop.f32.mrf.mxu2 }
 0x46f   : > { %v2953_v12 = vpop.f32.mrf.mxu3  ;;  %v2994_v43 = vmax.f32 %v7814_v11, %v7817_v59  ;;  %v2911_v21 = vadd.f32 %v2910_v4, %v2868_v1  ;;  %v2826_v0 = vpop.f32.mrf.mxu0  ;;  %v4974_v4 = vor.u32 %v5282_v7, %v4971_v31  ;;  %v4985_v7 = vld [vmem:[%s8122_s0 + $0x2b8] sm:$0xf]  ;;  %v5288_v31 = vld [vmem:[%s8122_s0 + $0x2c4] sm:$0xf0] }
 0x470   : > { %v2869_v36 = vpop.f32.mrf.mxu1 }
 0x471   : > { %v2954_v55 = vadd.f32 %v2953_v12, %v2911_v21 }
 0x473   : > { %v2969_v9 = vmul.f32 %v7559_v18, %v2954_v55 }
 0x475   : > { %v7852_v29 = vadd.f32 %v7563_v28, %v2969_v9 }
 0x476   : > { %v2912_v24 = vpop.f32.mrf.mxu2 }
 0x477   : > { %v2955_v53 = vpop.f32.mrf.mxu3  ;;  %v2995_v1 = vmax.f32 %v7849_v16, %v7852_v29  ;;  %v3166_v27 = vpop.f32.mrf.mxu0  ;;  %v5286_v24 = vld [vmem:[%s8122_s0 + $0x2bc] sm:$0xf] }
 0x478   : > { %v3209_v35 = vpop.f32.mrf.mxu1  ;;  %v4987_v53 = vld [vmem:[%s8122_s0 + $0x2c8] sm:$0xf0] }
 0x479   : > { %v3210_v12 = vadd.f32 %v3209_v35, %v3166_v27  ;;  %v4978_v35 = vor.u32 %v5287_v15, %v4977_v17 }
 0x47a   : > { %3542 = vmatmul.bf16.gmra.mxu0 %v4962_v33 }
 0x47b   : > { %3585 = vmatmul.bf16.gmra.mxu1 %v4966_v2  ;;  %3628 = vmatmul.bf16.gmra.mxu2 %v4970_v48  ;;  %v4982_v48 = vor.u32 %v5285_v57, %v4979_v54 }
 0x47c   : > { %3671 = vmatmul.bf16.gmra.mxu3 %v4974_v4 }
 0x47e   : > { %v3252_v21 = vpop.f32.mrf.mxu2 }
 0x47f   : > { %v3295_v0 = vpop.f32.mrf.mxu3  ;;  %v3253_v36 = vadd.f32 %v3252_v21, %v3210_v12  ;;  %v3168_v14 = vpop.f32.mrf.mxu0 }
 0x480   : > { %v3211_v55 = vpop.f32.mrf.mxu1 }
 0x481   : > { %v3212_v9 = vadd.f32 %v3211_v55, %v3168_v14  ;;  %v3296_v60 = vadd.f32 %v3295_v0, %v3253_v36  ;;  %v4986_v36 = vor.u32 %v5288_v31, %v4985_v7  ;;  %v4990_v14 = vor.u32 %v5286_v24, %v4987_v53  ;;  %v4993_v31 = vld [vmem:[%s8122_s0 + $0x2d0] sm:$0xf]  ;;  %v5291_v24 = vld [vmem:[%s8122_s0 + $0x2dc] sm:$0xf0] }
 0x483   : > { %v3329_v39 = vmul.f32 %v7559_v18, %v3296_v60 }
 0x485   : > { %v3342_v33 = vadd.f32 %v7563_v28, %v3329_v39 }
 0x486   : > { %v3254_v2 = vpop.f32.mrf.mxu2 }
 0x487   : > { %v3297_v27 = vpop.f32.mrf.mxu3  ;;  %v7885_v4 = vmax.f32 %v2983_v44, %v3342_v33  ;;  %v3255_v12 = vadd.f32 %v3254_v2, %v3212_v9  ;;  %v3171_v21 = vpop.f32.mrf.mxu0  ;;  %v5292_v33 = vld [vmem:[%s8122_s0 + $0x2e4] sm:$0xf0]  ;;  %v5290_v2 = vld [vmem:[%s8122_s0 + $0x2dc] sm:$0xf] }
 0x488   : > { %v3214_v0 = vpop.f32.mrf.mxu1 }
 0x489   : > { %v3215_v55 = vadd.f32 %v3214_v0, %v3171_v21  ;;  %v3298_v60 = vadd.f32 %v3297_v27, %v3255_v12  ;;  %v5003_v27 = vld [vmem:[%s8122_s0 + $0x2e8] sm:$0xf0]  ;;  %v4994_v21 = vor.u32 %v5291_v24, %v4993_v31  ;;  %v4998_v0 = vor.u32 %v5289_v62, %v4995_v63  ;;  %v5295_v62 = vld [vmem:[%s8122_s0 + $0x2fc] sm:$0xf0] }
 0x48a   : > { %3547 = vmatmul.bf16.gmra.mxu0 %v4978_v35 }
 0x48b   : > { %3590 = vmatmul.bf16.gmra.mxu1 %v4982_v48  ;;  %v3330_v39 = vmul.f32 %v7559_v18, %v3298_v60  ;;  %3633 = vmatmul.bf16.gmra.mxu2 %v4986_v36 }
 0x48c   : > { %3676 = vmatmul.bf16.gmra.mxu3 %v4990_v14 }
 0x48d   : > { %v3343_v17 = vadd.f32 %v7563_v28, %v3330_v39 }
 0x48e   : > { %v3257_v15 = vpop.f32.mrf.mxu2 }
 0x48f   : > { %v3300_v57 = vpop.f32.mrf.mxu3  ;;  %v7892_v19 = vmax.f32 %v2984_v20, %v3343_v17  ;;  %v3258_v6 = vadd.f32 %v3257_v15, %v3215_v55  ;;  %v3173_v44 = vpop.f32.mrf.mxu0  ;;  %v5001_v20 = vld [vmem:[%s8122_s0 + $0x2d8] sm:$0xf]  ;;  %v5006_v17 = vor.u32 %v5290_v2, %v5003_v27  ;;  %v5019_v2 = vld [vmem:[%s8122_s0 + $0x308] sm:$0xf0] }
 0x490   : > { %v3216_v9 = vpop.f32.mrf.mxu1  ;;  %v5002_v39 = vor.u32 %v5292_v33, %v5001_v20  ;;  %v5296_v20 = vld [vmem:[%s8122_s0 + $0x304] sm:$0xf0]  ;;  %v5294_v33 = vld [vmem:[%s8122_s0 + $0x2fc] sm:$0xf] }
 0x491   : > { %v3217_v54 = vadd.f32 %v3216_v9, %v3173_v44  ;;  %v3301_v7 = vadd.f32 %v3300_v57, %v3258_v6 }
 0x493   : > { %v3331_v53 = vmul.f32 %v7559_v18, %v3301_v7 }
 0x495   : > { %v3344_v35 = vadd.f32 %v7563_v28, %v3331_v53  ;;  %v5009_v53 = vld [vmem:[%s8122_s0 + $0x2f0] sm:$0xf] }
 0x496   : > { %v3259_v48 = vpop.f32.mrf.mxu2 }
 0x497   : > { %v3302_v12 = vpop.f32.mrf.mxu3  ;;  %v7923_v36 = vmax.f32 %v2985_v30, %v3344_v35  ;;  %v3260_v14 = vadd.f32 %v3259_v48, %v3217_v54  ;;  %v3176_v55 = vpop.f32.mrf.mxu0 }
 0x498   : > { %v3219_v60 = vpop.f32.mrf.mxu1 }
 0x499   : > { %v3220_v15 = vadd.f32 %v3219_v60, %v3176_v55  ;;  %v3303_v57 = vadd.f32 %v3302_v12, %v3260_v14  ;;  %v5010_v12 = vor.u32 %v5295_v62, %v5009_v53  ;;  %v5300_v62 = vld [vmem:[%s8122_s0 + $0x324] sm:$0xf0] }
 0x49a   : > { %3552 = vmatmul.bf16.gmra.mxu0 %v4994_v21  ;;  %v5014_v21 = vor.u32 %v5293_v41, %v5011_v50  ;;  %v5035_v41 = vld [vmem:[%s8122_s0 + $0x328] sm:$0xf0] }
 0x49b   : > { %3595 = vmatmul.bf16.gmra.mxu1 %v4998_v0  ;;  %v3332_v6 = vmul.f32 %v7559_v18, %v3303_v57  ;;  %3638 = vmatmul.bf16.gmra.mxu2 %v5002_v39 }
 0x49c   : > { %3681 = vmatmul.bf16.gmra.mxu3 %v5006_v17  ;;  %v5022_v17 = vor.u32 %v5294_v33, %v5019_v2  ;;  %v5030_v2 = vor.u32 %v5297_v23, %v5027_v13 }
 0x49d   : > { %v3345_v44 = vadd.f32 %v7563_v28, %v3332_v6 }
 0x49e   : > { %v3262_v9 = vpop.f32.mrf.mxu2 }
 0x49f   : > { %v3305_v7 = vpop.f32.mrf.mxu3  ;;  %v7930_v61 = vmax.f32 %v2986_v47, %v3345_v44  ;;  %v3263_v5 = vadd.f32 %v3262_v9, %v3220_v15  ;;  %v3178_v30 = vpop.f32.mrf.mxu0  ;;  %v5017_v47 = vld [vmem:[%s8122_s0 + $0x2f8] sm:$0xf] }
 0x4a0   : > { %v3221_v54 = vpop.f32.mrf.mxu1  ;;  %v5018_v39 = vor.u32 %v5296_v20, %v5017_v47 }
 0x4a1   : > { %v3222_v31 = vadd.f32 %v3221_v54, %v3178_v30  ;;  %v3306_v24 = vadd.f32 %v3305_v7, %v3263_v5 }
 0x4a3   : > { %v3333_v63 = vmul.f32 %v7559_v18, %v3306_v24  ;;  %v5299_v24 = vld [vmem:[%s8122_s0 + $0x31c] sm:$0xf0] }
 0x4a5   : > { %v3346_v27 = vadd.f32 %v7563_v28, %v3333_v63  ;;  %v5298_v63 = vld [vmem:[%s8122_s0 + $0x31c] sm:$0xf] }
 0x4a6   : > { %v3264_v35 = vpop.f32.mrf.mxu2 }
 0x4a7   : > { %v3307_v48 = vpop.f32.mrf.mxu3  ;;  %v7961_v0 = vmax.f32 %v2987_v37, %v3346_v27  ;;  %v3265_v14 = vadd.f32 %v3264_v35, %v3222_v31  ;;  %v3181_v55 = vpop.f32.mrf.mxu0  ;;  %v5025_v31 = vld [vmem:[%s8122_s0 + $0x310] sm:$0xf] }
 0x4a8   : > { %v3224_v60 = vpop.f32.mrf.mxu1  ;;  %v5026_v33 = vor.u32 %v5299_v24, %v5025_v31 }
 0x4a9   : > { %v3225_v15 = vadd.f32 %v3224_v60, %v3181_v55  ;;  %v3308_v57 = vadd.f32 %v3307_v48, %v3265_v14  ;;  %v5038_v14 = vor.u32 %v5298_v63, %v5035_v41 }
 0x4aa   : > { %3557 = vmatmul.bf16.gmra.mxu0 %v5010_v12 }
 0x4ab   : > { %3600 = vmatmul.bf16.gmra.mxu1 %v5014_v21  ;;  %v3334_v6 = vmul.f32 %v7559_v18, %v3308_v57  ;;  %3643 = vmatmul.bf16.gmra.mxu2 %v5018_v39 }
 0x4ac   : > { %3686 = vmatmul.bf16.gmra.mxu3 %v5022_v17 }
 0x4ad   : > { %v3347_v44 = vadd.f32 %v7563_v28, %v3334_v6 }
 0x4ae   : > { %v3267_v9 = vpop.f32.mrf.mxu2 }
 0x4af   : > { %v3310_v7 = vpop.f32.mrf.mxu3  ;;  %v7968_v46 = vmax.f32 %v2988_v45, %v3347_v44  ;;  %v3268_v49 = vadd.f32 %v3267_v9, %v3225_v15  ;;  %v3183_v37 = vpop.f32.mrf.mxu0  ;;  %v5033_v45 = vld [vmem:[%s8122_s0 + $0x318] sm:$0xf]  ;;  %v4941_v44 = vld [vmem:[%s8122_s0 + $0x330] sm:$0x11] }
 0x4b0   : > { %v3226_v5 = vpop.f32.mrf.mxu1  ;;  %v5034_v21 = vor.u32 %v5300_v62, %v5033_v45 }
 0x4b1   : > { %v3227_v30 = vadd.f32 %v3226_v5, %v3183_v37  ;;  %v3311_v54 = vadd.f32 %v3310_v7, %v3268_v49  ;;  %v4942_v7 = vld [vmem:[%s8122_s0 + $0x338] sm:$0x11]  ;;  %v3469_v37 = vunpack.c.l.b16 %v4941_v44  ;;  %v3470_v5 = vunpack.c.h.b16 %v4941_v44 }
 0x4b2   : > { %v3471_v58 = vunpack.c.l.b16 %v4942_v7  ;;  %v3472_v34 = vunpack.c.h.b16 %v4942_v7 }
 0x4b3   : > { %v3335_v53 = vmul.f32 %v7559_v18, %v3311_v54  ;;  %v3497_v24 = vpack.c.b16 %v3469_v37, %v3469_v37 }
 0x4b4   : > { %v3499_v63 = vpack.c.b16 %v3471_v58, %v3471_v58  ;;  %v3500_v41 = vpack.c.b16 %v3472_v34, %v3472_v34 }
 0x4b5   : > { %v3348_v50 = vadd.f32 %v7563_v28, %v3335_v53  ;;  %v3498_v53 = vpack.c.b16 %v3470_v5, %v3470_v5 }
 0x4b6   : > { %v3269_v47 = vpop.f32.mrf.mxu2 }
 0x4b7   : > { %v3312_v20 = vpop.f32.mrf.mxu3  ;;  %v7999_v27 = vmax.f32 %v2989_v22, %v3348_v50  ;;  %v3270_v35 = vadd.f32 %v3269_v47, %v3227_v30  ;;  %v3186_v48 = vpop.f32.mrf.mxu0 }
 0x4b8   : > { %v3229_v12 = vpop.f32.mrf.mxu1 }
 0x4b9   : > { %v3230_v55 = vadd.f32 %v3229_v12, %v3186_v48  ;;  %v3313_v60 = vadd.f32 %v3312_v20, %v3270_v35 }
 0x4ba   : > { %3562 = vmatmul.bf16.gmra.mxu0 %v5026_v33 }
 0x4bb   : > { %3605 = vmatmul.bf16.gmra.mxu1 %v5030_v2  ;;  %v3336_v39 = vmul.f32 %v7559_v18, %v3313_v60  ;;  %3648 = vmatmul.bf16.gmra.mxu2 %v5034_v21 }
 0x4bc   : > { %3691 = vmatmul.bf16.gmra.mxu3 %v5038_v14 }
 0x4bd   : > { %v3349_v17 = vadd.f32 %v7563_v28, %v3336_v39 }
 0x4be   : > { %v3272_v15 = vpop.f32.mrf.mxu2 }
 0x4bf   : > { %v3315_v57 = vpop.f32.mrf.mxu3  ;;  %v8006_v56 = vmax.f32 %v2990_v25, %v3349_v17  ;;  %v3273_v40 = vadd.f32 %v3272_v15, %v3230_v55  ;;  %v3188_v22 = vpop.f32.mrf.mxu0 }
 0x4c0   : > { %v3231_v6 = vpop.f32.mrf.mxu1 }
 0x4c1   : > { %v3232_v9 = vadd.f32 %v3231_v6, %v3188_v22  ;;  %v3316_v49 = vadd.f32 %v3315_v57, %v3273_v40 }
 0x4c3   : > { %v3337_v30 = vmul.f32 %v7559_v18, %v3316_v49 }
 0x4c5   : > { %v3350_v25 = vadd.f32 %v7563_v28, %v3337_v30 }
 0x4c6   : > { %v3274_v54 = vpop.f32.mrf.mxu2 }
 0x4c7   : > { %v3317_v31 = vpop.f32.mrf.mxu3  ;;  %v8019_v23 = vmax.f32 %v2991_v42, %v3350_v25  ;;  %v3275_v13 = vadd.f32 %v3274_v54, %v3232_v9  ;;  %v3191_v45 = vpop.f32.mrf.mxu0 }
 0x4c8   : > { %v3234_v62 = vpop.f32.mrf.mxu1 }
 0x4c9   : > { %v3235_v50 = vadd.f32 %v3234_v62, %v3191_v45  ;;  %v3318_v47 = vadd.f32 %v3317_v31, %v3275_v13 }
 0x4ca   : > { %3567 = vmatmul.bf16.gmra.mxu0 %v3497_v24 }
 0x4cb   : > { %3610 = vmatmul.bf16.gmra.mxu1 %v3498_v53  ;;  %v3338_v20 = vmul.f32 %v7559_v18, %v3318_v47  ;;  %3653 = vmatmul.bf16.gmra.mxu2 %v3499_v63 }
 0x4cc   : > { %3696 = vmatmul.bf16.gmra.mxu3 %v3500_v41 }
 0x4cd   : > { %v3351_v33 = vadd.f32 %v7563_v28, %v3338_v20 }
 0x4ce   : > { %v3277_v2 = vpop.f32.mrf.mxu2 }
 0x4cf   : > { %v3320_v35 = vpop.f32.mrf.mxu3  ;;  %v8026_v32 = vmax.f32 %v2992_v3, %v3351_v33  ;;  %v3278_v8 = vadd.f32 %v3277_v2, %v3235_v50  ;;  %v3193_v42 = vpop.f32.mrf.mxu0 }
 0x4d0   : > { %v3236_v48 = vpop.f32.mrf.mxu1 }
 0x4d1   : > { %v3237_v12 = vadd.f32 %v3236_v48, %v3193_v42  ;;  %v3321_v21 = vadd.f32 %v3320_v35, %v3278_v8 }
 0x4d3   : > { %v3339_v14 = vmul.f32 %v7559_v18, %v3321_v21 }
 0x4d5   : > { %v3352_v55 = vadd.f32 %v7563_v28, %v3339_v14 }
 0x4d6   : > { %v3279_v60 = vpop.f32.mrf.mxu2 }
 0x4d7   : > { %v3322_v39 = vpop.f32.mrf.mxu3  ;;  %v8033_v17 = vmax.f32 %v2993_v52, %v3352_v55  ;;  %v3280_v15 = vadd.f32 %v3279_v60, %v3237_v12  ;;  %v3196_v26 = vpop.f32.mrf.mxu0 }
 0x4d8   : > { %v3239_v38 = vpop.f32.mrf.mxu1 }
 0x4d9   : > { %v3240_v3 = vadd.f32 %v3239_v38, %v3196_v26  ;;  %v3323_v57 = vadd.f32 %v3322_v39, %v3280_v15 }
 0x4db   : > { %v3340_v40 = vmul.f32 %v7559_v18, %v3323_v57  ;;  %v8061_v57 = vld [vmem:[#allocation4 + $0x1] ss:$0 sm:$0xff] }
 0x4dd   : > { %v3353_v22 = vadd.f32 %v7563_v28, %v3340_v40 }
 0x4de   : > { %v3282_v6 = vpop.f32.mrf.mxu2 }
 0x4df   : > { %v3325_v44 = vpop.f32.mrf.mxu3  ;;  %v8040_v9 = vmax.f32 %v2994_v43, %v3353_v22  ;;  %v3283_v7 = vadd.f32 %v3282_v6, %v3240_v3  ;;  %v3198_v10 = vpop.f32.mrf.mxu0 }
 0x4e0   : > { %v3241_v51 = vpop.f32.mrf.mxu1 }
 0x4e1   : > { %v3326_v52 = vadd.f32 %v3325_v44, %v3283_v7 }
 0x4e3   : > { %v3341_v49 = vmul.f32 %v7559_v18, %v3326_v52 }
 0x4e5   : > { %v3354_v37 = vadd.f32 %v7563_v28, %v3341_v49 }
 0x4e6   : > { %v3284_v5 = vpop.f32.mrf.mxu2 }
 0x4e7   : > { %v3327_v30 = vpop.f32.mrf.mxu3  ;;  %v8047_v58 = vmax.f32 %v2995_v1, %v3354_v37  ;;  %v3538_v34 = vpop.f32.mrf.mxu0 }
 0x4e8   : > { %v3581_v25 = vpop.f32.mrf.mxu1 }
 0x4e9   : > { %v3582_v11 = vadd.f32 %v3581_v25, %v3538_v34 }
 0x4ee   : > { %v3624_v59 = vpop.f32.mrf.mxu2 }
 0x4ef   : > { %v3667_v43 = vpop.f32.mrf.mxu3  ;;  %v3625_v54 = vadd.f32 %v3624_v59, %v3582_v11  ;;  %v3540_v31 = vpop.f32.mrf.mxu0 }
 0x4f0   : > { %v3583_v24 = vpop.f32.mrf.mxu1 }
 0x4f1   : > { %v3668_v53 = vadd.f32 %v3667_v43, %v3625_v54  ;;  %v3584_v45 = vadd.f32 %v3583_v24, %v3540_v31 }
 0x4f3   : > { %v3701_v13 = vmul.f32 %v7559_v18, %v3668_v53 }
 0x4f5   : > { %v3714_v16 = vadd.f32 %v7563_v28, %v3701_v13 }
 0x4f6   : > { %v3626_v62 = vpop.f32.mrf.mxu2 }
 0x4f7   : > { %v3669_v63 = vpop.f32.mrf.mxu3  ;;  %v3627_v41 = vadd.f32 %v3626_v62, %v3584_v45  ;;  %v3543_v50 = vpop.f32.mrf.mxu0  ;;  %v3727_v33 = vmax.f32 %v7885_v4, %v3714_v16 }
 0x4f8   : > { %v3586_v47 = vpop.f32.mrf.mxu1 }
 0x4f9   : > { %v3670_v29 = vadd.f32 %v3669_v63, %v3627_v41  ;;  %v3587_v20 = vadd.f32 %v3586_v47, %v3543_v50  ;;  %v3740_v14 = vmax.f32 %v3727_v33, 0.0 }
 0x4fb   : > { %v3702_v1 = vmul.f32 %v7559_v18, %v3670_v29  ;;  %v8058_v18 = vld [vmem:[#allocation4] ss:$0 sm:$0xff] }
 0x4fd   : > { %v3715_v2 = vadd.f32 %v7563_v28, %v3702_v1 }
 0x4fe   : > { %v3629_v35 = vpop.f32.mrf.mxu2 }
 0x4ff   : > { %v3672_v8 = vpop.f32.mrf.mxu3  ;;  %v3728_v42 = vmax.f32 %v7892_v19, %v3715_v2  ;;  %v3630_v48 = vadd.f32 %v3629_v35, %v3587_v20  ;;  %v3545_v12 = vpop.f32.mrf.mxu0 }
 0x500   : > { %v3588_v21 = vpop.f32.mrf.mxu1 }
 0x501   : > { %v3741_v55 = vmax.f32 %v3728_v42, 0.0  ;;  %v3673_v60 = vadd.f32 %v3672_v8, %v3630_v48  ;;  %v3589_v28 = vadd.f32 %v3588_v21, %v3545_v12 }
 0x503   : > { %v5304_v39 = vpack.c.bf16 %v3741_v55, %v3740_v14  ;;  %v3703_v4 = vmul.f32 %v8058_v18, %v3673_v60 }
 0x505   : > { %5305 = vst [vmem:[%s8126_s4] sm:$0xff] %v5304_v39   ;;  %v3716_v40 = vadd.f32 %v8061_v57, %v3703_v4 }
 0x506   : > { %v3631_v15 = vpop.f32.mrf.mxu2 }
 0x507   : > { %v3674_v26 = vpop.f32.mrf.mxu3  ;;  %v3632_v38 = vadd.f32 %v3631_v15, %v3589_v28  ;;  %v3548_v19 = vpop.f32.mrf.mxu0  ;;  %v3729_v7 = vmax.f32 %v7923_v36, %v3716_v40 }
 0x508   : > { %v3591_v3 = vpop.f32.mrf.mxu1 }
 0x509   : > { %v3675_v22 = vadd.f32 %v3674_v26, %v3632_v38  ;;  %v3592_v44 = vadd.f32 %v3591_v3, %v3548_v19  ;;  %v3742_v34 = vmax.f32 %v3729_v7, 0.0 }
 0x50b   : > { %v3704_v6 = vmul.f32 %v8058_v18, %v3675_v22 }
 0x50d   : > { %v3717_v10 = vadd.f32 %v8061_v57, %v3704_v6 }
 0x50e   : > { %v3634_v51 = vpop.f32.mrf.mxu2 }
 0x50f   : > { %v3677_v52 = vpop.f32.mrf.mxu3  ;;  %v3730_v49 = vmax.f32 %v7930_v61, %v3717_v10  ;;  %v3635_v37 = vadd.f32 %v3634_v51, %v3592_v44  ;;  %v3550_v5 = vpop.f32.mrf.mxu0 }
 0x510   : > { %v3593_v30 = vpop.f32.mrf.mxu1 }
 0x511   : > { %v3743_v25 = vmax.f32 %v3730_v49, 0.0  ;;  %v3678_v11 = vadd.f32 %v3677_v52, %v3635_v37  ;;  %v3594_v36 = vadd.f32 %v3593_v30, %v3550_v5 }
 0x513   : > { %v5309_v59 = vpack.c.bf16 %v3743_v25, %v3742_v34  ;;  %v3705_v43 = vmul.f32 %v8058_v18, %v3678_v11 }
 0x515   : > { %5331 = vst [vmem:[%s8126_s4 + $0x8] sm:$0xff] %v5309_v59   ;;  %v3718_v61 = vadd.f32 %v8061_v57, %v3705_v43 }
 0x516   : > { %v3636_v54 = vpop.f32.mrf.mxu2 }
 0x517   : > { %v3679_v31 = vpop.f32.mrf.mxu3  ;;  %v3637_v24 = vadd.f32 %v3636_v54, %v3594_v36  ;;  %v3553_v53 = vpop.f32.mrf.mxu0  ;;  %v3731_v41 = vmax.f32 %v7961_v0, %v3718_v61 }
 0x518   : > { %v3596_v13 = vpop.f32.mrf.mxu1 }
 0x519   : > { %v3680_v45 = vadd.f32 %v3679_v31, %v3637_v24  ;;  %v3597_v63 = vadd.f32 %v3596_v13, %v3553_v53  ;;  %v3744_v2 = vmax.f32 %v3731_v41, 0.0 }
 0x51b   : > { %v3706_v62 = vmul.f32 %v8058_v18, %v3680_v45 }
 0x51d   : > { %v3719_v50 = vadd.f32 %v8061_v57, %v3706_v62 }
 0x51e   : > { %v3639_v47 = vpop.f32.mrf.mxu2 }
 0x51f   : > { %v3682_v16 = vpop.f32.mrf.mxu3  ;;  %v3732_v29 = vmax.f32 %v7968_v46, %v3719_v50  ;;  %v3640_v1 = vadd.f32 %v3639_v47, %v3597_v63  ;;  %v3555_v20 = vpop.f32.mrf.mxu0 }
 0x520   : > { %v3598_v33 = vpop.f32.mrf.mxu1 }
 0x521   : > { %v3745_v35 = vmax.f32 %v3732_v29, 0.0  ;;  %v3683_v8 = vadd.f32 %v3682_v16, %v3640_v1  ;;  %v3599_v0 = vadd.f32 %v3598_v33, %v3555_v20 }
 0x523   : > { %v5314_v42 = vpack.c.bf16 %v3745_v35, %v3744_v2  ;;  %v3707_v48 = vmul.f32 %v8058_v18, %v3683_v8 }
 0x525   : > { %5332 = vst [vmem:[%s8126_s4 + $0x10] sm:$0xff] %v5314_v42   ;;  %v3720_v46 = vadd.f32 %v8061_v57, %v3707_v48 }
 0x526   : > { %v3641_v12 = vpop.f32.mrf.mxu2 }
 0x527   : > { %v3684_v21 = vpop.f32.mrf.mxu3  ;;  %v3642_v14 = vadd.f32 %v3641_v12, %v3599_v0  ;;  %v3558_v55 = vpop.f32.mrf.mxu0  ;;  %v3733_v15 = vmax.f32 %v7999_v27, %v3720_v46 }
 0x528   : > { %v3601_v60 = vpop.f32.mrf.mxu1 }
 0x529   : > { %v3685_v39 = vadd.f32 %v3684_v21, %v3642_v14  ;;  %v3602_v28 = vadd.f32 %v3601_v60, %v3558_v55  ;;  %v3746_v44 = vmax.f32 %v3733_v15, 0.0 }
 0x52b   : > { %v3708_v4 = vmul.f32 %v8058_v18, %v3685_v39 }
 0x52d   : > { %v3721_v26 = vadd.f32 %v8061_v57, %v3708_v4 }
 0x52e   : > { %v3644_v38 = vpop.f32.mrf.mxu2 }
 0x52f   : > { %v3687_v19 = vpop.f32.mrf.mxu3  ;;  %v3734_v3 = vmax.f32 %v8006_v56, %v3721_v26  ;;  %v3645_v40 = vadd.f32 %v3644_v38, %v3602_v28  ;;  %v3560_v22 = vpop.f32.mrf.mxu0 }
 0x530   : > { %v3603_v6 = vpop.f32.mrf.mxu1 }
 0x531   : > { %v3747_v7 = vmax.f32 %v3734_v3, 0.0  ;;  %v3688_v10 = vadd.f32 %v3687_v19, %v3645_v40  ;;  %v3604_v27 = vadd.f32 %v3603_v6, %v3560_v22 }
 0x533   : > { %v5319_v51 = vpack.c.bf16 %v3747_v7, %v3746_v44  ;;  %v3709_v52 = vmul.f32 %v8058_v18, %v3688_v10 }
 0x535   : > { %5333 = vst [vmem:[%s8126_s4 + $0x18] sm:$0xff] %v5319_v51   ;;  %v3722_v56 = vadd.f32 %v8061_v57, %v3709_v52 }
 0x536   : > { %v3646_v49 = vpop.f32.mrf.mxu2 }
 0x537   : > { %v3689_v37 = vpop.f32.mrf.mxu3  ;;  %v3647_v5 = vadd.f32 %v3646_v49, %v3604_v27  ;;  %v3563_v30 = vpop.f32.mrf.mxu0  ;;  %v3735_v43 = vmax.f32 %v8019_v23, %v3722_v56 }
 0x538   : > { %v3606_v34 = vpop.f32.mrf.mxu1 }
 0x539   : > { %v3690_v25 = vadd.f32 %v3689_v37, %v3647_v5  ;;  %v3607_v59 = vadd.f32 %v3606_v34, %v3563_v30  ;;  %v3748_v45 = vmax.f32 %v3735_v43, 0.0 }
 0x53b   : > { %v3710_v11 = vmul.f32 %v8058_v18, %v3690_v25 }
 0x53d   : > { %v3723_v36 = vadd.f32 %v8061_v57, %v3710_v11 }
 0x53e   : > { %v3649_v54 = vpop.f32.mrf.mxu2 }
 0x53f   : > { %v3692_v31 = vpop.f32.mrf.mxu3  ;;  %v3736_v24 = vmax.f32 %v8026_v32, %v3723_v36  ;;  %v3650_v53 = vadd.f32 %v3649_v54, %v3607_v59  ;;  %v3565_v13 = vpop.f32.mrf.mxu0 }
 0x540   : > { %v3608_v61 = vpop.f32.mrf.mxu1 }
 0x541   : > { %v3749_v62 = vmax.f32 %v3736_v24, 0.0  ;;  %v3693_v63 = vadd.f32 %v3692_v31, %v3650_v53  ;;  %v3609_v23 = vadd.f32 %v3608_v61, %v3565_v13 }
 0x543   : > { %v5324_v41 = vpack.c.bf16 %v3749_v62, %v3748_v45  ;;  %v3711_v50 = vmul.f32 %v8058_v18, %v3693_v63 }
 0x545   : > { %5334 = vst [vmem:[%s8126_s4 + $0x20] sm:$0xff] %v5324_v41   ;;  %v3724_v32 = vadd.f32 %v8061_v57, %v3711_v50 }
 0x546   : > { %v3651_v47 = vpop.f32.mrf.mxu2 }
 0x547   : > { %v3694_v16 = vpop.f32.mrf.mxu3  ;;  %v3652_v29 = vadd.f32 %v3651_v47, %v3609_v23  ;;  %v3568_v1 = vpop.f32.mrf.mxu0  ;;  %v3737_v8 = vmax.f32 %v8033_v17, %v3724_v32 }
 0x548   : > { %v3611_v20 = vpop.f32.mrf.mxu1 }
 0x549   : > { %v3695_v33 = vadd.f32 %v3694_v16, %v3652_v29  ;;  %v3612_v35 = vadd.f32 %v3611_v20, %v3568_v1  ;;  %v3750_v60 = vmax.f32 %v3737_v8, 0.0 }
 0x54b   : > { %v3712_v2 = vmul.f32 %v8058_v18, %v3695_v33 }
 0x54d   : > { %v3725_v42 = vadd.f32 %v8061_v57, %v3712_v2 }
 0x54e   : > { %v3654_v48 = vpop.f32.mrf.mxu2 }
 0x54f   : > { %v3697_v0 = vpop.f32.mrf.mxu3  ;;  %v3738_v12 = vmax.f32 %v8040_v9, %v3725_v42  ;;  %v3655_v21 = vadd.f32 %v3654_v48, %v3612_v35  ;;  %v3570_v14 = vpop.f32.mrf.mxu0 }
 0x550   : > { %v3613_v55 = vpop.f32.mrf.mxu1 }
 0x551   : > { %v3751_v46 = vmax.f32 %v3738_v12, 0.0  ;;  %v3698_v39 = vadd.f32 %v3697_v0, %v3655_v21 }
 0x553   : > { %v5329_v4 = vpack.c.bf16 %v3751_v46, %v3750_v60  ;;  %v3713_v28 = vmul.f32 %v8058_v18, %v3698_v39 }
 0x555   : > { %5335 = vst [vmem:[%s8126_s4 + $0x28] sm:$0xff] %v5329_v4   ;;  %v3726_v17 = vadd.f32 %v8061_v57, %v3713_v28 }
 0x556   : > { %v3656_v15 = vpop.f32.mrf.mxu2 }
 0x557   : > { %v3699_v26 = vpop.f32.mrf.mxu3  ;;  %v3739_v38 = vmax.f32 %v8047_v58, %v3726_v17 }
 0x559   : > { %v3752_v9 = vmax.f32 %v3739_v38, 0.0 }
 0x55b   : > { %v3765_v19 = vpack.c.bf16 %v3752_v9, %v3752_v9 }
 0x55d   : > { %3778 = vst [vmem:[%s8126_s4 + $0x30] sm:$0x1] %v3765_v19 }
 0x55e PF: > { %s14_s17 = sadd.s32 1, %s5389_s17   ;;  %s8265_s15 = smov %s5385_s16 }
 0x55f   : > { %p11_p8 = scmp.ge.s32.totalorder %s14_s17, 4   ;;  %s8266_s16 = smov %s8268_s18 }
 0x561   :  { %13 = sbr.rel (!%p11_p8) target bundleno = 2 (0x2), region = 88 }

// kernel: cnn_forward.5
= control target key start
LH: loop header
LB: loop body
LE: loop exit
PB: predicated region body
PF: predicated region fallthrough
CT: control target
= control target key end

     0   :  { %s7158_s0 = inlined_call_operand.vmem [shape: bf16[2,6272], index: 0, kind: input, shape index: {}]   ;;  %s7159_s1 = inlined_call_operand.vmem [shape: bf16[6272,128], index: 1, kind: input, shape index: {}]   ;;  %s7160_s2 = inlined_call_operand.vmem [shape: f32[1,128], index: 2, kind: input, shape index: {}]   ;;  %s7161_s3 = inlined_call_operand.hbm [shape: f32[2,128], index: 3, kind: output, shape index: {}]  }
   0x1   :  { %v5503_v0 = vld [vmem:[%s7159_s1 + $0x38] sm:$0xff]  ;;  %v5502_v4 = vld [vmem:[%s7159_s1 + $0x30] sm:$0xff]  ;;  %v5501_v8 = vld [vmem:[%s7159_s1 + $0x28] sm:$0xff] }
   0x2   :  { %v5519_v1 = vld [vmem:[%s7159_s1 + $0xb8] sm:$0xff]  ;;  %3274 = vmatpush.bf16.msra.mxu0 %v5503_v0  ;;  %v5518_v5 = vld [vmem:[%s7159_s1 + $0xb0] sm:$0xff]  ;;  %v5517_v9 = vld [vmem:[%s7159_s1 + $0xa8] sm:$0xff] }
   0x3   :  { %v5511_v2 = vld [vmem:[%s7159_s1 + $0x78] sm:$0xff]  ;;  %3300 = vmatpush.bf16.msra.mxu2 %v5519_v1  ;;  %v5510_v6 = vld [vmem:[%s7159_s1 + $0x70] sm:$0xff]  ;;  %v5509_v10 = vld [vmem:[%s7159_s1 + $0x68] sm:$0xff] }
   0x4   :  { %v5527_v3 = vld [vmem:[%s7159_s1 + $0xf8] sm:$0xff]  ;;  %3287 = vmatpush.bf16.msra.mxu1 %v5511_v2  ;;  %v5526_v7 = vld [vmem:[%s7159_s1 + $0xf0] sm:$0xff]  ;;  %v5525_v11 = vld [vmem:[%s7159_s1 + $0xe8] sm:$0xff] }
   0x5   :  { %3313 = vmatpush.bf16.msra.mxu3 %v5527_v3  ;;  %v5500_v12 = vld [vmem:[%s7159_s1 + $0x20] sm:$0xff]  ;;  %v5499_v16 = vld [vmem:[%s7159_s1 + $0x18] sm:$0xff]  ;;  %v5498_v21 = vld [vmem:[%s7159_s1 + $0x10] sm:$0xff] }
   0x6   :  { %3275 = vmatpush.bf16.msra.mxu0 %v5502_v4  ;;  %v5516_v13 = vld [vmem:[%s7159_s1 + $0xa0] sm:$0xff]  ;;  %v5515_v17 = vld [vmem:[%s7159_s1 + $0x98] sm:$0xff]  ;;  %v5514_v22 = vld [vmem:[%s7159_s1 + $0x90] sm:$0xff] }
   0x7   :  { %3301 = vmatpush.bf16.msra.mxu2 %v5518_v5  ;;  %v5508_v14 = vld [vmem:[%s7159_s1 + $0x60] sm:$0xff]  ;;  %v5507_v18 = vld [vmem:[%s7159_s1 + $0x58] sm:$0xff]  ;;  %v5506_v23 = vld [vmem:[%s7159_s1 + $0x50] sm:$0xff] }
   0x8   :  { %3288 = vmatpush.bf16.msra.mxu1 %v5510_v6  ;;  %v5524_v15 = vld [vmem:[%s7159_s1 + $0xe0] sm:$0xff]  ;;  %v5523_v19 = vld [vmem:[%s7159_s1 + $0xd8] sm:$0xff]  ;;  %v5522_v24 = vld [vmem:[%s7159_s1 + $0xd0] sm:$0xff] }
   0x9   :  { %3314 = vmatpush.bf16.msra.mxu3 %v5526_v7  ;;  %v15_v20 = vld [vmem:[%s7158_s0] sm:$0xff] }
   0xa   :  { %3276 = vmatpush.bf16.msra.mxu0 %v5501_v8  ;;  %811 = vst [vmem:[#allocation1] ss:$9 sm:$0xff] %v15_v20 }
   0xb   :  { %3302 = vmatpush.bf16.msra.mxu2 %v5517_v9 }
   0xc   :  { %3289 = vmatpush.bf16.msra.mxu1 %v5509_v10 }
   0xd   :  { %3315 = vmatpush.bf16.msra.mxu3 %v5525_v11 }
   0xe   :  { %3277 = vmatpush.bf16.msra.mxu0 %v5500_v12 }
   0xf   :  { %3303 = vmatpush.bf16.msra.mxu2 %v5516_v13 }
  0x10   :  { %3290 = vmatpush.bf16.msra.mxu1 %v5508_v14 }
  0x11   :  { %3316 = vmatpush.bf16.msra.mxu3 %v5524_v15 }
  0x12   :  { %3278 = vmatpush.bf16.msra.mxu0 %v5499_v16 }
  0x13   :  { %3304 = vmatpush.bf16.msra.mxu2 %v5515_v17 }
  0x14   :  { %3291 = vmatpush.bf16.msra.mxu1 %v5507_v18 }
  0x15   :  { %3317 = vmatpush.bf16.msra.mxu3 %v5523_v19 }
  0x16   :  { %8 = vsyncpa [#allocation3], 0  ;;  %3279 = vmatpush.bf16.msra.mxu0 %v5498_v21  ;;  %v5497_v25 = vld [vmem:[%s7159_s1 + $0x8] sm:$0xff]  ;;  %v5496_v29 = vld [vmem:[%s7159_s1] sm:$0xff]  ;;  %s3919_s15 = sshll.u32 %s7161_s3, 4  ;;  %s3920_s15 = int_to_ptr.hbm [resolvable:$true] %s3919_s15 }
  0x17   :  { %3305 = vmatpush.bf16.msra.mxu2 %v5514_v22  ;;  %v5513_v26 = vld [vmem:[%s7159_s1 + $0x88] sm:$0xff]  ;;  %v5512_v30 = vld [vmem:[%s7159_s1 + $0x80] sm:$0xff]  ;;  %v5535_v31 = vld [vmem:[%s7159_s1 + $0x138] sm:$0xff] }
  0x18   :  { %3292 = vmatpush.bf16.msra.mxu1 %v5506_v23  ;;  %v5505_v27 = vld [vmem:[%s7159_s1 + $0x48] sm:$0xff]  ;;  %v5551_v32 = vld [vmem:[%s7159_s1 + $0x1b8] sm:$0xff]  ;;  %v5504_v33 = vld [vmem:[%s7159_s1 + $0x40] sm:$0xff] }
  0x19   :  { %3318 = vmatpush.bf16.msra.mxu3 %v5522_v24  ;;  %v5521_v28 = vld [vmem:[%s7159_s1 + $0xc8] sm:$0xff]  ;;  %v5520_v34 = vld [vmem:[%s7159_s1 + $0xc0] sm:$0xff]  ;;  %v5543_v35 = vld [vmem:[%s7159_s1 + $0x178] sm:$0xff] }
  0x1a   :  { %3280 = vmatpush.bf16.msra.mxu0 %v5497_v25  ;;  %v5559_v36 = vld [vmem:[%s7159_s1 + $0x1f8] sm:$0xff]  ;;  %v5534_v37 = vld [vmem:[%s7159_s1 + $0x130] sm:$0xff]  ;;  %v812_v40 = vld [vmem:[#allocation1] sm:$0xff] }
  0x1b   :  { %3306 = vmatpush.bf16.msra.mxu2 %v5513_v26  ;;  %v5550_v38 = vld [vmem:[%s7159_s1 + $0x1b0] sm:$0xff]  ;;  %v815_v43 = vld [vmem:[#allocation1 + $0x1b] sm:$0xff]  ;;  %v5533_v45 = vld [vmem:[%s7159_s1 + $0x128] sm:$0xff] }
  0x1c   :  { %3293 = vmatpush.bf16.msra.mxu1 %v5505_v27  ;;  %v814_v39 = vld [vmem:[#allocation1 + $0x12] sm:$0xff]  ;;  %v813_v44 = vld [vmem:[#allocation1 + $0x9] sm:$0xff]  ;;  %v6070_v49 = vld [vmem:[#allocation1 + $0x3f] sm:$0xff] }
  0x1d   :  { %3319 = vmatpush.bf16.msra.mxu3 %v5521_v28  ;;  %v5542_v41 = vld [vmem:[%s7159_s1 + $0x170] sm:$0xff]  ;;  %v5549_v46 = vld [vmem:[%s7159_s1 + $0x1a8] sm:$0xff]  ;;  %v5532_v54 = vld [vmem:[%s7159_s1 + $0x120] sm:$0xff] }
  0x1e   :  { %3281 = vmatpush.bf16.msra.mxu0 %v5496_v29  ;;  %v5558_v42 = vld [vmem:[%s7159_s1 + $0x1f0] sm:$0xff]  ;;  %v6068_v48 = vld [vmem:[#allocation1 + $0x24] sm:$0xff]  ;;  %v5531_v58 = vld [vmem:[%s7159_s1 + $0x118] sm:$0xff] }
  0x1f   :  { %3307 = vmatpush.bf16.msra.mxu2 %v5512_v30  ;;  %v6066_v47 = vld [vmem:[#allocation1 + $0x36] sm:$0xff]  ;;  %v16_v50 = vld [vmem:[%s7158_s0 + $0x8] sm:$0xff]  ;;  %v5548_v55 = vld [vmem:[%s7159_s1 + $0x1a0] sm:$0xff] }
  0x20   :  { %3294 = vmatpush.bf16.msra.mxu1 %v5504_v33  ;;  %v6075_v51 = vld [vmem:[#allocation1 + $0x2d] sm:$0xff]  ;;  %v5540_v56 = vld [vmem:[%s7159_s1 + $0x160] sm:$0xff]  ;;  %v5547_v59 = vld [vmem:[%s7159_s1 + $0x198] sm:$0xff] }
  0x21   :  { %3320 = vmatpush.bf16.msra.mxu3 %v5520_v34  ;;  %3282 = vmatmul.bf16.vlgmr.msra.gmra.mxu0 %v812_v40  ;;  %v5541_v52 = vld [vmem:[%s7159_s1 + $0x168] sm:$0xff]  ;;  %821 = vst [vmem:[#allocation1] ss:$9 sm:$0xff] %v16_v50  ;;  %v5556_v57 = vld [vmem:[%s7159_s1 + $0x1e0] sm:$0xff]  ;;  %v5539_v60 = vld [vmem:[%s7159_s1 + $0x158] sm:$0xff] }
  0x22   :  { %3326 = vmatpush.bf16.msrb.mxu0 %v5535_v31  ;;  %3308 = vmatmul.bf16.vlgmr.msra.gmra.mxu2 %v814_v39  ;;  %v5557_v53 = vld [vmem:[%s7159_s1 + $0x1e8] sm:$0xff]  ;;  %v5555_v61 = vld [vmem:[%s7159_s1 + $0x1d8] sm:$0xff]  ;;  %v5530_v62 = vld [vmem:[%s7159_s1 + $0x110] sm:$0xff] }
  0x23   :  { %3352 = vmatpush.bf16.msrb.mxu2 %v5551_v32  ;;  %3295 = vmatmul.bf16.vlgmr.msra.gmra.mxu1 %v813_v44  ;;  %v5546_v63 = vld [vmem:[%s7159_s1 + $0x190] sm:$0xff]  ;;  %v5529_v2 = vld [vmem:[%s7159_s1 + $0x108] sm:$0xff]  ;;  %v5528_v6 = vld [vmem:[%s7159_s1 + $0x100] sm:$0xff] }
  0x24   :  { %3339 = vmatpush.bf16.msrb.mxu1 %v5543_v35  ;;  %3321 = vmatmul.bf16.vlgmr.msra.gmra.mxu3 %v815_v43  ;;  %v5538_v0 = vld [vmem:[%s7159_s1 + $0x150] sm:$0xff]  ;;  %v5545_v3 = vld [vmem:[%s7159_s1 + $0x188] sm:$0xff]  ;;  %v5544_v7 = vld [vmem:[%s7159_s1 + $0x180] sm:$0xff] }
  0x25   :  { %3365 = vmatpush.bf16.msrb.mxu3 %v5559_v36  ;;  %v5554_v1 = vld [vmem:[%s7159_s1 + $0x1d0] sm:$0xff]  ;;  %v5537_v4 = vld [vmem:[%s7159_s1 + $0x148] sm:$0xff]  ;;  %v5567_v8 = vld [vmem:[%s7159_s1 + $0x238] sm:$0xff] }
  0x26   :  { %3327 = vmatpush.bf16.msrb.mxu0 %v5534_v37  ;;  %v5553_v5 = vld [vmem:[%s7159_s1 + $0x1c8] sm:$0xff]  ;;  %v5583_v9 = vld [vmem:[%s7159_s1 + $0x2b8] sm:$0xff]  ;;  %v5536_v10 = vld [vmem:[%s7159_s1 + $0x140] sm:$0xff] }
  0x27   :  { %3353 = vmatpush.bf16.msrb.mxu2 %v5550_v38  ;;  %v5552_v11 = vld [vmem:[%s7159_s1 + $0x1c0] sm:$0xff]  ;;  %v5575_v12 = vld [vmem:[%s7159_s1 + $0x278] sm:$0xff]  ;;  %v5566_v14 = vld [vmem:[%s7159_s1 + $0x230] sm:$0xff] }
  0x28   :  { %3340 = vmatpush.bf16.msrb.mxu1 %v5542_v41  ;;  %v5591_v13 = vld [vmem:[%s7159_s1 + $0x2f8] sm:$0xff]  ;;  %v5582_v15 = vld [vmem:[%s7159_s1 + $0x2b0] sm:$0xff]  ;;  %v5565_v18 = vld [vmem:[%s7159_s1 + $0x228] sm:$0xff] }
  0x29   :  { %3366 = vmatpush.bf16.msrb.mxu3 %v5558_v42  ;;  %v5574_v16 = vld [vmem:[%s7159_s1 + $0x270] sm:$0xff]  ;;  %v5581_v19 = vld [vmem:[%s7159_s1 + $0x2a8] sm:$0xff]  ;;  %v5564_v22 = vld [vmem:[%s7159_s1 + $0x220] sm:$0xff] }
  0x2a   :  { %3328 = vmatpush.bf16.msrb.mxu0 %v5533_v45  ;;  %v5590_v17 = vld [vmem:[%s7159_s1 + $0x2f0] sm:$0xff]  ;;  %v5573_v20 = vld [vmem:[%s7159_s1 + $0x268] sm:$0xff]  ;;  %v5580_v23 = vld [vmem:[%s7159_s1 + $0x2a0] sm:$0xff] }
  0x2b   :  { %3354 = vmatpush.bf16.msrb.mxu2 %v5549_v46  ;;  %v5589_v21 = vld [vmem:[%s7159_s1 + $0x2e8] sm:$0xff]  ;;  %v5572_v24 = vld [vmem:[%s7159_s1 + $0x260] sm:$0xff]  ;;  %v5563_v26 = vld [vmem:[%s7159_s1 + $0x218] sm:$0xff] }
  0x2c   :  { %3341 = vmatpush.bf16.msrb.mxu1 %v5541_v52  ;;  %v5588_v25 = vld [vmem:[%s7159_s1 + $0x2e0] sm:$0xff]  ;;  %v5579_v27 = vld [vmem:[%s7159_s1 + $0x298] sm:$0xff]  ;;  %v5562_v30 = vld [vmem:[%s7159_s1 + $0x210] sm:$0xff] }
  0x2d   :  { %3367 = vmatpush.bf16.msrb.mxu3 %v5557_v53  ;;  %v5571_v28 = vld [vmem:[%s7159_s1 + $0x258] sm:$0xff]  ;;  %v5578_v31 = vld [vmem:[%s7159_s1 + $0x290] sm:$0xff]  ;;  %v5561_v34 = vld [vmem:[%s7159_s1 + $0x208] sm:$0xff] }
  0x2e   :  { %3329 = vmatpush.bf16.msrb.mxu0 %v5532_v54  ;;  %v5587_v29 = vld [vmem:[%s7159_s1 + $0x2d8] sm:$0xff]  ;;  %v5570_v32 = vld [vmem:[%s7159_s1 + $0x250] sm:$0xff]  ;;  %v5577_v35 = vld [vmem:[%s7159_s1 + $0x288] sm:$0xff] }
  0x2f   :  { %3355 = vmatpush.bf16.msrb.mxu2 %v5548_v55  ;;  %v5586_v33 = vld [vmem:[%s7159_s1 + $0x2d0] sm:$0xff]  ;;  %v5569_v36 = vld [vmem:[%s7159_s1 + $0x248] sm:$0xff]  ;;  %v5560_v38 = vld [vmem:[%s7159_s1 + $0x200] sm:$0xff] }
  0x30   :  { %3342 = vmatpush.bf16.msrb.mxu1 %v5540_v56  ;;  %v5585_v37 = vld [vmem:[%s7159_s1 + $0x2c8] sm:$0xff]  ;;  %v5576_v39 = vld [vmem:[%s7159_s1 + $0x280] sm:$0xff]  ;;  %v5599_v40 = vld [vmem:[%s7159_s1 + $0x338] sm:$0xff] }
  0x31   :  { %3368 = vmatpush.bf16.msrb.mxu3 %v5556_v57  ;;  %v5615_v41 = vld [vmem:[%s7159_s1 + $0x3b8] sm:$0xff]  ;;  %v5568_v42 = vld [vmem:[%s7159_s1 + $0x240] sm:$0xff]  ;;  %v5598_v50 = vld [vmem:[%s7159_s1 + $0x330] sm:$0xff] }
  0x32   :  { %3330 = vmatpush.bf16.msrb.mxu0 %v5531_v58  ;;  %v5584_v43 = vld [vmem:[%s7159_s1 + $0x2c0] sm:$0xff]  ;;  %v5607_v44 = vld [vmem:[%s7159_s1 + $0x378] sm:$0xff]  ;;  %v5606_v52 = vld [vmem:[%s7159_s1 + $0x370] sm:$0xff] }
  0x33   :  { %3356 = vmatpush.bf16.msrb.mxu2 %v5547_v59  ;;  %v822_v45 = vld [vmem:[#allocation1] sm:$0xff]  ;;  %v824_v46 = vld [vmem:[#allocation1 + $0x12] sm:$0xff]  ;;  %v5597_v54 = vld [vmem:[%s7159_s1 + $0x328] sm:$0xff] }
  0x34   :  { %3343 = vmatpush.bf16.msrb.mxu1 %v5539_v60  ;;  %v5622_v53 = vld [vmem:[%s7159_s1 + $0x3f0] sm:$0xff]  ;;  %v5613_v55 = vld [vmem:[%s7159_s1 + $0x3a8] sm:$0xff]  ;;  %v5596_v58 = vld [vmem:[%s7159_s1 + $0x320] sm:$0xff] }
  0x35   :  { %3369 = vmatpush.bf16.msrb.mxu3 %v5555_v61  ;;  %v5605_v56 = vld [vmem:[%s7159_s1 + $0x368] sm:$0xff]  ;;  %v5612_v59 = vld [vmem:[%s7159_s1 + $0x3a0] sm:$0xff] }
  0x36   :  { %3331 = vmatpush.bf16.msrb.mxu0 %v5530_v62  ;;  %v5621_v57 = vld [vmem:[%s7159_s1 + $0x3e8] sm:$0xff]  ;;  %v5604_v60 = vld [vmem:[%s7159_s1 + $0x360] sm:$0xff]  ;;  %v5595_v62 = vld [vmem:[%s7159_s1 + $0x318] sm:$0xff] }
  0x37   :  { %3357 = vmatpush.bf16.msrb.mxu2 %v5546_v63  ;;  %v5620_v61 = vld [vmem:[%s7159_s1 + $0x3e0] sm:$0xff]  ;;  %v5611_v63 = vld [vmem:[%s7159_s1 + $0x398] sm:$0xff] }
  0x38   :  { %3344 = vmatpush.bf16.msrb.mxu1 %v5538_v0  ;;  %v5603_v0 = vld [vmem:[%s7159_s1 + $0x358] sm:$0xff] }
  0x39   :  { %3370 = vmatpush.bf16.msrb.mxu3 %v5554_v1  ;;  %v5619_v1 = vld [vmem:[%s7159_s1 + $0x3d8] sm:$0xff] }
  0x3a   :  { %3332 = vmatpush.bf16.msrb.mxu0 %v5529_v2  ;;  %v5594_v2 = vld [vmem:[%s7159_s1 + $0x310] sm:$0xff] }
  0x3b   :  { %3358 = vmatpush.bf16.msrb.mxu2 %v5545_v3  ;;  %v5610_v3 = vld [vmem:[%s7159_s1 + $0x390] sm:$0xff] }
  0x3c   :  { %3345 = vmatpush.bf16.msrb.mxu1 %v5537_v4  ;;  %v5602_v4 = vld [vmem:[%s7159_s1 + $0x350] sm:$0xff] }
  0x3d   :  { %3371 = vmatpush.bf16.msrb.mxu3 %v5553_v5  ;;  %v5618_v5 = vld [vmem:[%s7159_s1 + $0x3d0] sm:$0xff] }
  0x3e   :  { %3333 = vmatpush.bf16.msrb.mxu0 %v5528_v6  ;;  %v5593_v6 = vld [vmem:[%s7159_s1 + $0x308] sm:$0xff] }
  0x3f   :  { %3359 = vmatpush.bf16.msrb.mxu2 %v5544_v7  ;;  %v5609_v7 = vld [vmem:[%s7159_s1 + $0x388] sm:$0xff] }
  0x40   :  { %3346 = vmatpush.bf16.msrb.mxu1 %v5536_v10  ;;  %v827_v10 = vld [vmem:[#allocation1 + $0x2d] sm:$0xff] }
  0x41   :  { %3372 = vmatpush.bf16.msrb.mxu3 %v5552_v11  ;;  %3334 = vmatmul.bf16.vlgmr.msrb.gmra.mxu0 %v6068_v48  ;;  %v823_v48 = vld [vmem:[#allocation1 + $0x9] sm:$0xff]  ;;  %v829_v11 = vld [vmem:[#allocation1 + $0x3f] sm:$0xff] }
  0x42   :  { %3378 = vmatpush.bf16.msra.mxu0 %v5567_v8  ;;  %3360 = vmatmul.bf16.vlgmr.msrb.gmra.mxu2 %v6066_v47  ;;  %v5623_v47 = vld [vmem:[%s7159_s1 + $0x3f8] sm:$0xff]  ;;  %v826_v8 = vld [vmem:[#allocation1 + $0x24] sm:$0xff] }
  0x43   :  { %3404 = vmatpush.bf16.msra.mxu2 %v5583_v9  ;;  %3347 = vmatmul.bf16.vlgmr.msrb.gmra.mxu1 %v6075_v51  ;;  %v5614_v51 = vld [vmem:[%s7159_s1 + $0x3b0] sm:$0xff] }
  0x44   :  { %3391 = vmatpush.bf16.msra.mxu1 %v5575_v12  ;;  %3373 = vmatmul.bf16.vlgmr.msrb.gmra.mxu3 %v6070_v49  ;;  %v825_v49 = vld [vmem:[#allocation1 + $0x1b] sm:$0xff]  ;;  %v17_v12 = vld [vmem:[%s7158_s0 + $0x10] sm:$0xff] }
  0x45   :  { %3417 = vmatpush.bf16.msra.mxu3 %v5591_v13  ;;  %v828_v9 = vld [vmem:[#allocation1 + $0x36] sm:$0xff]  ;;  %v5601_v13 = vld [vmem:[%s7159_s1 + $0x348] sm:$0xff] }
  0x46   :  { %3379 = vmatpush.bf16.msra.mxu0 %v5566_v14  ;;  %831 = vst [vmem:[#allocation1] ss:$9 sm:$0xff] %v17_v12  ;;  %v5617_v14 = vld [vmem:[%s7159_s1 + $0x3c8] sm:$0xff]  ;;  %v5675_v12 = vld [vmem:[%s7159_s1 + $0x598] sm:$0xff] }
  0x47   :  { %3405 = vmatpush.bf16.msra.mxu2 %v5582_v15  ;;  %v5592_v15 = vld [vmem:[%s7159_s1 + $0x300] sm:$0xff] }
  0x48   :  { %3392 = vmatpush.bf16.msra.mxu1 %v5574_v16  ;;  %v5608_v16 = vld [vmem:[%s7159_s1 + $0x380] sm:$0xff] }
  0x49   :  { %3418 = vmatpush.bf16.msra.mxu3 %v5590_v17  ;;  %v5631_v17 = vld [vmem:[%s7159_s1 + $0x438] sm:$0xff] }
  0x4a   :  { %3380 = vmatpush.bf16.msra.mxu0 %v5565_v18  ;;  %v5647_v18 = vld [vmem:[%s7159_s1 + $0x4b8] sm:$0xff] }
  0x4b   :  { %3406 = vmatpush.bf16.msra.mxu2 %v5581_v19  ;;  %v5600_v19 = vld [vmem:[%s7159_s1 + $0x340] sm:$0xff] }
  0x4c   :  { %3393 = vmatpush.bf16.msra.mxu1 %v5573_v20  ;;  %v5616_v20 = vld [vmem:[%s7159_s1 + $0x3c0] sm:$0xff] }
  0x4d   :  { %3419 = vmatpush.bf16.msra.mxu3 %v5589_v21  ;;  %v5639_v21 = vld [vmem:[%s7159_s1 + $0x478] sm:$0xff] }
  0x4e   :  { %3381 = vmatpush.bf16.msra.mxu0 %v5564_v22  ;;  %v5655_v22 = vld [vmem:[%s7159_s1 + $0x4f8] sm:$0xff] }
  0x4f   :  { %3407 = vmatpush.bf16.msra.mxu2 %v5580_v23  ;;  %v5630_v23 = vld [vmem:[%s7159_s1 + $0x430] sm:$0xff] }
  0x50   :  { %3394 = vmatpush.bf16.msra.mxu1 %v5572_v24  ;;  %v5646_v24 = vld [vmem:[%s7159_s1 + $0x4b0] sm:$0xff] }
  0x51   :  { %3420 = vmatpush.bf16.msra.mxu3 %v5588_v25  ;;  %v5638_v25 = vld [vmem:[%s7159_s1 + $0x470] sm:$0xff] }
  0x52   :  { %3382 = vmatpush.bf16.msra.mxu0 %v5563_v26  ;;  %v5654_v26 = vld [vmem:[%s7159_s1 + $0x4f0] sm:$0xff] }
  0x53   :  { %3408 = vmatpush.bf16.msra.mxu2 %v5579_v27  ;;  %v5629_v27 = vld [vmem:[%s7159_s1 + $0x428] sm:$0xff] }
  0x54   :  { %3395 = vmatpush.bf16.msra.mxu1 %v5571_v28  ;;  %v5645_v28 = vld [vmem:[%s7159_s1 + $0x4a8] sm:$0xff] }
  0x55   :  { %3421 = vmatpush.bf16.msra.mxu3 %v5587_v29  ;;  %v5637_v29 = vld [vmem:[%s7159_s1 + $0x468] sm:$0xff] }
  0x56   :  { %3383 = vmatpush.bf16.msra.mxu0 %v5562_v30  ;;  %v5653_v30 = vld [vmem:[%s7159_s1 + $0x4e8] sm:$0xff] }
  0x57   :  { %3409 = vmatpush.bf16.msra.mxu2 %v5578_v31  ;;  %v5628_v31 = vld [vmem:[%s7159_s1 + $0x420] sm:$0xff] }
  0x58   :  { %3396 = vmatpush.bf16.msra.mxu1 %v5570_v32  ;;  %v5644_v32 = vld [vmem:[%s7159_s1 + $0x4a0] sm:$0xff] }
  0x59   :  { %3422 = vmatpush.bf16.msra.mxu3 %v5586_v33  ;;  %v5636_v33 = vld [vmem:[%s7159_s1 + $0x460] sm:$0xff] }
  0x5a   :  { %3384 = vmatpush.bf16.msra.mxu0 %v5561_v34  ;;  %v5652_v34 = vld [vmem:[%s7159_s1 + $0x4e0] sm:$0xff] }
  0x5b   :  { %3410 = vmatpush.bf16.msra.mxu2 %v5577_v35  ;;  %v5627_v35 = vld [vmem:[%s7159_s1 + $0x418] sm:$0xff] }
  0x5c   :  { %3397 = vmatpush.bf16.msra.mxu1 %v5569_v36  ;;  %v5643_v36 = vld [vmem:[%s7159_s1 + $0x498] sm:$0xff] }
  0x5d   :  { %3423 = vmatpush.bf16.msra.mxu3 %v5585_v37  ;;  %v5635_v37 = vld [vmem:[%s7159_s1 + $0x458] sm:$0xff] }
  0x5e   :  { %3385 = vmatpush.bf16.msra.mxu0 %v5560_v38  ;;  %v5651_v38 = vld [vmem:[%s7159_s1 + $0x4d8] sm:$0xff] }
  0x5f   :  { %3411 = vmatpush.bf16.msra.mxu2 %v5576_v39  ;;  %v5626_v39 = vld [vmem:[%s7159_s1 + $0x410] sm:$0xff] }
  0x60   :  { %3398 = vmatpush.bf16.msra.mxu1 %v5568_v42  ;;  %v5650_v42 = vld [vmem:[%s7159_s1 + $0x4d0] sm:$0xff] }
  0x61   :  { %3424 = vmatpush.bf16.msra.mxu3 %v5584_v43  ;;  %3386 = vmatmul.bf16.vlgmr.msra.gmra.mxu0 %v822_v45  ;;  %v5625_v43 = vld [vmem:[%s7159_s1 + $0x408] sm:$0xff] }
  0x62   :  { %3430 = vmatpush.bf16.msrb.mxu0 %v5599_v40  ;;  %3412 = vmatmul.bf16.vlgmr.msra.gmra.mxu2 %v824_v46  ;;  %v5642_v40 = vld [vmem:[%s7159_s1 + $0x490] sm:$0xff]  ;;  %v5633_v45 = vld [vmem:[%s7159_s1 + $0x448] sm:$0xff] }
  0x63   :  { %3456 = vmatpush.bf16.msrb.mxu2 %v5615_v41  ;;  %3399 = vmatmul.bf16.vlgmr.msra.gmra.mxu1 %v823_v48  ;;  %v5634_v41 = vld [vmem:[%s7159_s1 + $0x450] sm:$0xff]  ;;  %v5649_v46 = vld [vmem:[%s7159_s1 + $0x4c8] sm:$0xff]  ;;  %v5640_v48 = vld [vmem:[%s7159_s1 + $0x480] sm:$0xff] }
  0x64   :  { %3443 = vmatpush.bf16.msrb.mxu1 %v5607_v44  ;;  %3425 = vmatmul.bf16.vlgmr.msra.gmra.mxu3 %v825_v49  ;;  %v5641_v44 = vld [vmem:[%s7159_s1 + $0x488] sm:$0xff]  ;;  %v5663_v49 = vld [vmem:[%s7159_s1 + $0x538] sm:$0xff] }
  0x65   :  { %3469 = vmatpush.bf16.msrb.mxu3 %v5623_v47  ;;  %v5624_v47 = vld [vmem:[%s7159_s1 + $0x400] sm:$0xff] }
  0x66   :  { %3431 = vmatpush.bf16.msrb.mxu0 %v5598_v50  ;;  %v5679_v50 = vld [vmem:[%s7159_s1 + $0x5b8] sm:$0xff] }
  0x67   :  { %3457 = vmatpush.bf16.msrb.mxu2 %v5614_v51  ;;  %v5632_v51 = vld [vmem:[%s7159_s1 + $0x440] sm:$0xff] }
  0x68   :  { %3444 = vmatpush.bf16.msrb.mxu1 %v5606_v52  ;;  %v5648_v52 = vld [vmem:[%s7159_s1 + $0x4c0] sm:$0xff] }
  0x69   :  { %3470 = vmatpush.bf16.msrb.mxu3 %v5622_v53  ;;  %v5671_v53 = vld [vmem:[%s7159_s1 + $0x578] sm:$0xff] }
  0x6a   :  { %3432 = vmatpush.bf16.msrb.mxu0 %v5597_v54  ;;  %v832_v54 = vld [vmem:[#allocation1] sm:$0xff] }
  0x6b   :  { %3458 = vmatpush.bf16.msrb.mxu2 %v5613_v55  ;;  %v834_v55 = vld [vmem:[#allocation1 + $0x12] sm:$0xff] }
  0x6c   :  { %3445 = vmatpush.bf16.msrb.mxu1 %v5605_v56  ;;  %v5687_v56 = vld [vmem:[%s7159_s1 + $0x5f8] sm:$0xff] }
  0x6d   :  { %3471 = vmatpush.bf16.msrb.mxu3 %v5621_v57  ;;  %v833_v57 = vld [vmem:[#allocation1 + $0x9] sm:$0xff] }
  0x6e   :  { %3433 = vmatpush.bf16.msrb.mxu0 %v5596_v58  ;;  %v835_v58 = vld [vmem:[#allocation1 + $0x1b] sm:$0xff] }
  0x6f   :  { %3459 = vmatpush.bf16.msrb.mxu2 %v5612_v59  ;;  %v5662_v59 = vld [vmem:[%s7159_s1 + $0x530] sm:$0xff] }
  0x70   :  { %3446 = vmatpush.bf16.msrb.mxu1 %v5604_v60  ;;  %v5678_v60 = vld [vmem:[%s7159_s1 + $0x5b0] sm:$0xff] }
  0x71   :  { %3472 = vmatpush.bf16.msrb.mxu3 %v5620_v61  ;;  %v5670_v61 = vld [vmem:[%s7159_s1 + $0x570] sm:$0xff] }
  0x72   :  { %3434 = vmatpush.bf16.msrb.mxu0 %v5595_v62  ;;  %v5686_v62 = vld [vmem:[%s7159_s1 + $0x5f0] sm:$0xff] }
  0x73   :  { %3460 = vmatpush.bf16.msrb.mxu2 %v5611_v63  ;;  %v5661_v63 = vld [vmem:[%s7159_s1 + $0x528] sm:$0xff] }
  0x74   :  { %3447 = vmatpush.bf16.msrb.mxu1 %v5603_v0  ;;  %v5677_v0 = vld [vmem:[%s7159_s1 + $0x5a8] sm:$0xff] }
  0x75   :  { %3473 = vmatpush.bf16.msrb.mxu3 %v5619_v1  ;;  %v5669_v1 = vld [vmem:[%s7159_s1 + $0x568] sm:$0xff] }
  0x76   :  { %3435 = vmatpush.bf16.msrb.mxu0 %v5594_v2  ;;  %v5685_v2 = vld [vmem:[%s7159_s1 + $0x5e8] sm:$0xff] }
  0x77   :  { %3461 = vmatpush.bf16.msrb.mxu2 %v5610_v3  ;;  %v5889_v3 = vld [vmem:[%s7160_s2] ss:$0 sm:$0xff] }
  0x78   :  { %3448 = vmatpush.bf16.msrb.mxu1 %v5602_v4  ;;  %v5660_v4 = vld [vmem:[%s7159_s1 + $0x520] sm:$0xff] }
  0x79   :  { %3474 = vmatpush.bf16.msrb.mxu3 %v5618_v5  ;;  %v5676_v5 = vld [vmem:[%s7159_s1 + $0x5a0] sm:$0xff] }
  0x7a   :  { %3436 = vmatpush.bf16.msrb.mxu0 %v5593_v6 }
  0x7b   :  { %3462 = vmatpush.bf16.msrb.mxu2 %v5609_v7  ;;  %v5668_v7 = vld [vmem:[%s7159_s1 + $0x560] sm:$0xff] }
  0x7c   :  { %3449 = vmatpush.bf16.msrb.mxu1 %v5601_v13 }
  0x7d   :  { %3475 = vmatpush.bf16.msrb.mxu3 %v5617_v14  ;;  %v5667_v14 = vld [vmem:[%s7159_s1 + $0x558] sm:$0xff] }
  0x7e   :  { %3437 = vmatpush.bf16.msrb.mxu0 %v5592_v15  ;;  %v5683_v15 = vld [vmem:[%s7159_s1 + $0x5d8] sm:$0xff] }
  0x7f   :  { %3463 = vmatpush.bf16.msrb.mxu2 %v5608_v16 }
  0x80   :  { %3450 = vmatpush.bf16.msrb.mxu1 %v5600_v19 }
  0x81   :  { %3476 = vmatpush.bf16.msrb.mxu3 %v5616_v20  ;;  %3438 = vmatmul.bf16.vlgmr.msrb.gmra.mxu0 %v826_v8  ;;  %v5684_v8 = vld [vmem:[%s7159_s1 + $0x5e0] sm:$0xff] }
  0x82   :  { %3482 = vmatpush.bf16.msra.mxu0 %v5631_v17  ;;  %3464 = vmatmul.bf16.vlgmr.msrb.gmra.mxu2 %v828_v9  ;;  %v5658_v17 = vld [vmem:[%s7159_s1 + $0x510] sm:$0xff] }
  0x83   :  { %3508 = vmatpush.bf16.msra.mxu2 %v5647_v18  ;;  %3451 = vmatmul.bf16.vlgmr.msrb.gmra.mxu1 %v827_v10  ;;  %v5674_v18 = vld [vmem:[%s7159_s1 + $0x590] sm:$0xff] }
  0x84   :  { %3495 = vmatpush.bf16.msra.mxu1 %v5639_v21  ;;  %3477 = vmatmul.bf16.vlgmr.msrb.gmra.mxu3 %v829_v11  ;;  %v5659_v11 = vld [vmem:[%s7159_s1 + $0x518] sm:$0xff] }
  0x85   :  { %3521 = vmatpush.bf16.msra.mxu3 %v5655_v22  ;;  %v5666_v22 = vld [vmem:[%s7159_s1 + $0x550] sm:$0xff] }
  0x86   :  { %3483 = vmatpush.bf16.msra.mxu0 %v5630_v23  ;;  %v5682_v23 = vld [vmem:[%s7159_s1 + $0x5d0] sm:$0xff] }
  0x87   :  { %3509 = vmatpush.bf16.msra.mxu2 %v5646_v24  ;;  %v5657_v24 = vld [vmem:[%s7159_s1 + $0x508] sm:$0xff] }
  0x88   :  { %3496 = vmatpush.bf16.msra.mxu1 %v5638_v25 }
  0x89   :  { %3522 = vmatpush.bf16.msra.mxu3 %v5654_v26  ;;  %v5673_v26 = vld [vmem:[%s7159_s1 + $0x588] sm:$0xff] }
  0x8a   :  { %3484 = vmatpush.bf16.msra.mxu0 %v5629_v27  ;;  %v836_v27 = vld [vmem:[#allocation1 + $0x24] sm:$0xff] }
  0x8b   :  { %3510 = vmatpush.bf16.msra.mxu2 %v5645_v28  ;;  %v838_v28 = vld [vmem:[#allocation1 + $0x36] sm:$0xff] }
  0x8c   :  { %3497 = vmatpush.bf16.msra.mxu1 %v5637_v29 }
  0x8d   :  { %3523 = vmatpush.bf16.msra.mxu3 %v5653_v30  ;;  %v837_v30 = vld [vmem:[#allocation1 + $0x2d] sm:$0xff] }
  0x8e   :  { %3485 = vmatpush.bf16.msra.mxu0 %v5628_v31  ;;  %v839_v31 = vld [vmem:[#allocation1 + $0x3f] sm:$0xff] }
  0x8f   :  { %3511 = vmatpush.bf16.msra.mxu2 %v5644_v32  ;;  %v18_v32 = vld [vmem:[%s7158_s0 + $0x18] sm:$0xff] }
  0x90   :  { %3498 = vmatpush.bf16.msra.mxu1 %v5636_v33  ;;  %841 = vst [vmem:[#allocation1] ss:$9 sm:$0xff] %v18_v32  ;;  %v5665_v33 = vld [vmem:[%s7159_s1 + $0x548] sm:$0xff]  ;;  %v5750_v32 = vld [vmem:[%s7159_s1 + $0x7f0] sm:$0xff] }
  0x91   :  { %3524 = vmatpush.bf16.msra.mxu3 %v5652_v34  ;;  %v5681_v34 = vld [vmem:[%s7159_s1 + $0x5c8] sm:$0xff] }
  0x92   :  { %3486 = vmatpush.bf16.msra.mxu0 %v5627_v35 }
  0x93   :  { %3512 = vmatpush.bf16.msra.mxu2 %v5643_v36  ;;  %v5656_v36 = vld [vmem:[%s7159_s1 + $0x500] sm:$0xff] }
  0x94   :  { %3499 = vmatpush.bf16.msra.mxu1 %v5635_v37  ;;  %v5672_v37 = vld [vmem:[%s7159_s1 + $0x580] sm:$0xff] }
  0x95   :  { %3525 = vmatpush.bf16.msra.mxu3 %v5651_v38  ;;  %v5695_v38 = vld [vmem:[%s7159_s1 + $0x638] sm:$0xff] }
  0x96   :  { %3487 = vmatpush.bf16.msra.mxu0 %v5626_v39  ;;  %v5711_v39 = vld [vmem:[%s7159_s1 + $0x6b8] sm:$0xff] }
  0x97   :  { %3513 = vmatpush.bf16.msra.mxu2 %v5642_v40 }
  0x98   :  { %3500 = vmatpush.bf16.msra.mxu1 %v5634_v41  ;;  %v5664_v41 = vld [vmem:[%s7159_s1 + $0x540] sm:$0xff] }
  0x99   :  { %3526 = vmatpush.bf16.msra.mxu3 %v5650_v42  ;;  %v5680_v42 = vld [vmem:[%s7159_s1 + $0x5c0] sm:$0xff] }
  0x9a   :  { %3488 = vmatpush.bf16.msra.mxu0 %v5625_v43  ;;  %v5703_v43 = vld [vmem:[%s7159_s1 + $0x678] sm:$0xff] }
  0x9b   :  { %3514 = vmatpush.bf16.msra.mxu2 %v5641_v44  ;;  %v5719_v44 = vld [vmem:[%s7159_s1 + $0x6f8] sm:$0xff] }
  0x9c   :  { %3501 = vmatpush.bf16.msra.mxu1 %v5633_v45  ;;  %v5694_v45 = vld [vmem:[%s7159_s1 + $0x630] sm:$0xff] }
  0x9d   :  { %3527 = vmatpush.bf16.msra.mxu3 %v5649_v46  ;;  %v5710_v46 = vld [vmem:[%s7159_s1 + $0x6b0] sm:$0xff] }
  0x9e   :  { %3489 = vmatpush.bf16.msra.mxu0 %v5624_v47  ;;  %v3283_v6 = vpop.f32.mrf.mxu0  ;;  %v5702_v47 = vld [vmem:[%s7159_s1 + $0x670] sm:$0xff] }
  0x9f   :  { %3515 = vmatpush.bf16.msra.mxu2 %v5640_v48  ;;  %v3284_v9 = vadd.f32 %v5889_v3, %v3283_v6  ;;  %v5718_v48 = vld [vmem:[%s7159_s1 + $0x6f0] sm:$0xff] }
  0xa0   :  { %3502 = vmatpush.bf16.msra.mxu1 %v5632_v51  ;;  %v3296_v10 = vpop.f32.mrf.mxu1  ;;  %v5701_v51 = vld [vmem:[%s7159_s1 + $0x668] sm:$0xff]  ;;  %v5690_v3 = vld [vmem:[%s7159_s1 + $0x610] sm:$0xff] }
  0xa1   :  { %3528 = vmatpush.bf16.msra.mxu3 %v5648_v52  ;;  %3490 = vmatmul.bf16.vlgmr.msra.gmra.mxu0 %v832_v54  ;;  %v3297_v13 = vadd.f32 %v3296_v10, %v3284_v9  ;;  %v5717_v52 = vld [vmem:[%s7159_s1 + $0x6e8] sm:$0xff]  ;;  %v5708_v54 = vld [vmem:[%s7159_s1 + $0x6a0] sm:$0xff]  ;;  %v5714_v9 = vld [vmem:[%s7159_s1 + $0x6d0] sm:$0xff] }
  0xa2   :  { %3534 = vmatpush.bf16.msrb.mxu0 %v5663_v49  ;;  %3516 = vmatmul.bf16.vlgmr.msra.gmra.mxu2 %v834_v55  ;;  %v5693_v49 = vld [vmem:[%s7159_s1 + $0x628] sm:$0xff] }
  0xa3   :  { %3560 = vmatpush.bf16.msrb.mxu2 %v5679_v50  ;;  %3503 = vmatmul.bf16.vlgmr.msra.gmra.mxu1 %v833_v57  ;;  %v5709_v50 = vld [vmem:[%s7159_s1 + $0x6a8] sm:$0xff]  ;;  %v5700_v57 = vld [vmem:[%s7159_s1 + $0x660] sm:$0xff] }
  0xa4   :  { %3547 = vmatpush.bf16.msrb.mxu1 %v5671_v53  ;;  %3529 = vmatmul.bf16.vlgmr.msra.gmra.mxu3 %v835_v58  ;;  %v5692_v53 = vld [vmem:[%s7159_s1 + $0x620] sm:$0xff] }
  0xa5   :  { %3573 = vmatpush.bf16.msrb.mxu3 %v5687_v56  ;;  %v3309_v16 = vpop.f32.mrf.mxu2  ;;  %v5716_v58 = vld [vmem:[%s7159_s1 + $0x6e0] sm:$0xff] }
  0xa6   :  { %3535 = vmatpush.bf16.msrb.mxu0 %v5662_v59  ;;  %v3310_v19 = vadd.f32 %v3309_v16, %v3297_v13  ;;  %v3285_v21 = vpop.f32.mrf.mxu0  ;;  %v5697_v13 = vld [vmem:[%s7159_s1 + $0x648] sm:$0xff]  ;;  %v5688_v16 = vld [vmem:[%s7159_s1 + $0x600] sm:$0xff] }
  0xa7   :  { %3561 = vmatpush.bf16.msrb.mxu2 %v5678_v60  ;;  %v3322_v20 = vpop.f32.mrf.mxu3  ;;  %v5696_v21 = vld [vmem:[%s7159_s1 + $0x640] sm:$0xff] }
  0xa8   :  { %3548 = vmatpush.bf16.msrb.mxu1 %v5670_v61  ;;  %v3323_v25 = vadd.f32 %v3322_v20, %v3310_v19  ;;  %v3298_v29 = vpop.f32.mrf.mxu1  ;;  %v5691_v61 = vld [vmem:[%s7159_s1 + $0x618] sm:$0xff] }
  0xa9   :  { %3574 = vmatpush.bf16.msrb.mxu3 %v5686_v62  ;;  %v5707_v62 = vld [vmem:[%s7159_s1 + $0x698] sm:$0xff]  ;;  %v5726_v29 = vld [vmem:[%s7159_s1 + $0x730] sm:$0xff] }
  0xaa   :  { %3536 = vmatpush.bf16.msrb.mxu0 %v5661_v63  ;;  %v5699_v63 = vld [vmem:[%s7159_s1 + $0x658] sm:$0xff] }
  0xab   :  { %3562 = vmatpush.bf16.msrb.mxu2 %v5677_v0  ;;  %v5715_v0 = vld [vmem:[%s7159_s1 + $0x6d8] sm:$0xff] }
  0xac   :  { %3549 = vmatpush.bf16.msrb.mxu1 %v5669_v1  ;;  %v5727_v19 = vld [vmem:[%s7159_s1 + $0x738] sm:$0xff] }
  0xad   :  { %3575 = vmatpush.bf16.msrb.mxu3 %v5685_v2  ;;  %v3311_v35 = vpop.f32.mrf.mxu2  ;;  %v5743_v20 = vld [vmem:[%s7159_s1 + $0x7b8] sm:$0xff] }
  0xae   :  { %3537 = vmatpush.bf16.msrb.mxu0 %v5660_v4  ;;  %v5706_v4 = vld [vmem:[%s7159_s1 + $0x690] sm:$0xff]  ;;  %v5733_v35 = vld [vmem:[%s7159_s1 + $0x768] sm:$0xff] }
  0xaf   :  { %3563 = vmatpush.bf16.msrb.mxu2 %v5676_v5  ;;  %v3324_v40 = vpop.f32.mrf.mxu3 }
  0xb0   :  { %3550 = vmatpush.bf16.msrb.mxu1 %v5668_v7  ;;  %v5740_v40 = vld [vmem:[%s7159_s1 + $0x7a0] sm:$0xff] }
  0xb1   :  { %3576 = vmatpush.bf16.msrb.mxu3 %v5684_v8  ;;  %v5698_v8 = vld [vmem:[%s7159_s1 + $0x650] sm:$0xff] }
  0xb2   :  { %3538 = vmatpush.bf16.msrb.mxu0 %v5659_v11  ;;  %v5689_v11 = vld [vmem:[%s7159_s1 + $0x608] sm:$0xff] }
  0xb3   :  { %3564 = vmatpush.bf16.msrb.mxu2 %v5675_v12  ;;  %v5705_v12 = vld [vmem:[%s7159_s1 + $0x688] sm:$0xff] }
  0xb4   :  { %3551 = vmatpush.bf16.msrb.mxu1 %v5667_v14  ;;  %v5713_v14 = vld [vmem:[%s7159_s1 + $0x6c8] sm:$0xff] }
  0xb5   :  { %3577 = vmatpush.bf16.msrb.mxu3 %v5683_v15 }
  0xb6   :  { %3539 = vmatpush.bf16.msrb.mxu0 %v5658_v17  ;;  %v5704_v17 = vld [vmem:[%s7159_s1 + $0x680] sm:$0xff] }
  0xb7   :  { %3565 = vmatpush.bf16.msrb.mxu2 %v5674_v18 }
  0xb8   :  { %3552 = vmatpush.bf16.msrb.mxu1 %v5666_v22  ;;  %v5712_v22 = vld [vmem:[%s7159_s1 + $0x6c0] sm:$0xff] }
  0xb9   :  { %3578 = vmatpush.bf16.msrb.mxu3 %v5682_v23  ;;  %v5735_v23 = vld [vmem:[%s7159_s1 + $0x778] sm:$0xff] }
  0xba   :  { %3540 = vmatpush.bf16.msrb.mxu0 %v5657_v24  ;;  %v842_v24 = vld [vmem:[#allocation1] sm:$0xff] }
  0xbb   :  { %3566 = vmatpush.bf16.msrb.mxu2 %v5673_v26  ;;  %v5751_v26 = vld [vmem:[%s7159_s1 + $0x7f8] sm:$0xff] }
  0xbc   :  { %3553 = vmatpush.bf16.msrb.mxu1 %v5665_v33  ;;  %v5725_v33 = vld [vmem:[%s7159_s1 + $0x728] sm:$0xff] }
  0xbd   :  { %3579 = vmatpush.bf16.msrb.mxu3 %v5681_v34  ;;  %v5741_v34 = vld [vmem:[%s7159_s1 + $0x7a8] sm:$0xff] }
  0xbe   :  { %3541 = vmatpush.bf16.msrb.mxu0 %v5656_v36  ;;  %v3335_v55 = vpop.f32.mrf.mxu0  ;;  %v5749_v36 = vld [vmem:[%s7159_s1 + $0x7e8] sm:$0xff] }
  0xbf   :  { %3567 = vmatpush.bf16.msrb.mxu2 %v5672_v37  ;;  %v3336_v56 = vadd.f32 %v3335_v55, %v3323_v25  ;;  %v844_v25 = vld [vmem:[#allocation1 + $0x12] sm:$0xff] }
  0xc0   :  { %3554 = vmatpush.bf16.msrb.mxu1 %v5664_v41  ;;  %v3348_v59 = vpop.f32.mrf.mxu1  ;;  %v5738_v55 = vld [vmem:[%s7159_s1 + $0x790] sm:$0xff] }
  0xc1   :  { %3580 = vmatpush.bf16.msrb.mxu3 %v5680_v42  ;;  %3542 = vmatmul.bf16.vlgmr.msrb.gmra.mxu0 %v836_v27  ;;  %v3349_v60 = vadd.f32 %v3348_v59, %v3336_v56  ;;  %v843_v27 = vld [vmem:[#allocation1 + $0x9] sm:$0xff] }
  0xc2   :  { %3586 = vmatpush.bf16.msra.mxu0 %v5695_v38  ;;  %3568 = vmatmul.bf16.vlgmr.msrb.gmra.mxu2 %v838_v28  ;;  %v845_v28 = vld [vmem:[#allocation1 + $0x1b] sm:$0xff]  ;;  %v5721_v59 = vld [vmem:[%s7159_s1 + $0x708] sm:$0xff] }
  0xc3   :  { %3612 = vmatpush.bf16.msra.mxu2 %v5711_v39  ;;  %3555 = vmatmul.bf16.vlgmr.msrb.gmra.mxu1 %v837_v30  ;;  %v5742_v30 = vld [vmem:[%s7159_s1 + $0x7b0] sm:$0xff]  ;;  %v5724_v39 = vld [vmem:[%s7159_s1 + $0x720] sm:$0xff] }
  0xc4   :  { %3599 = vmatpush.bf16.msra.mxu1 %v5703_v43  ;;  %3581 = vmatmul.bf16.vlgmr.msrb.gmra.mxu3 %v839_v31  ;;  %v5734_v31 = vld [vmem:[%s7159_s1 + $0x770] sm:$0xff]  ;;  %v5732_v43 = vld [vmem:[%s7159_s1 + $0x760] sm:$0xff] }
  0xc5   :  { %3625 = vmatpush.bf16.msra.mxu3 %v5719_v44  ;;  %v3361_v1 = vpop.f32.mrf.mxu2  ;;  %v5748_v44 = vld [vmem:[%s7159_s1 + $0x7e0] sm:$0xff] }
  0xc6   :  { %3587 = vmatpush.bf16.msra.mxu0 %v5694_v45  ;;  %v3362_v2 = vadd.f32 %v3361_v1, %v3349_v60  ;;  %v3337_v6 = vpop.f32.mrf.mxu0  ;;  %v5723_v45 = vld [vmem:[%s7159_s1 + $0x718] sm:$0xff]  ;;  %v5737_v60 = vld [vmem:[%s7159_s1 + $0x788] sm:$0xff] }
  0xc7   :  { %3613 = vmatpush.bf16.msra.mxu2 %v5710_v46  ;;  %v3374_v5 = vpop.f32.mrf.mxu3  ;;  %v5739_v46 = vld [vmem:[%s7159_s1 + $0x798] sm:$0xff]  ;;  %v5720_v6 = vld [vmem:[%s7159_s1 + $0x700] sm:$0xff] }
  0xc8   :  { %3600 = vmatpush.bf16.msra.mxu1 %v5702_v47  ;;  %v3375_v7 = vadd.f32 %v3374_v5, %v3362_v2  ;;  %v3350_v10 = vpop.f32.mrf.mxu1  ;;  %v19_v2 = vld [vmem:[%s7158_s0 + $0x20] sm:$0xff] }
  0xc9   :  { %3626 = vmatpush.bf16.msra.mxu3 %v5718_v48  ;;  %v5728_v10 = vld [vmem:[%s7159_s1 + $0x740] sm:$0xff] }
  0xca   :  { %3588 = vmatpush.bf16.msra.mxu0 %v5693_v49  ;;  %v5731_v49 = vld [vmem:[%s7159_s1 + $0x758] sm:$0xff] }
  0xcb   :  { %3614 = vmatpush.bf16.msra.mxu2 %v5709_v50  ;;  %v5747_v50 = vld [vmem:[%s7159_s1 + $0x7d8] sm:$0xff] }
  0xcc   :  { %3601 = vmatpush.bf16.msra.mxu1 %v5701_v51 }
  0xcd   :  { %3627 = vmatpush.bf16.msra.mxu3 %v5717_v52  ;;  %v3363_v15 = vpop.f32.mrf.mxu2 }
  0xce   :  { %3589 = vmatpush.bf16.msra.mxu0 %v5692_v53  ;;  %v5774_v15 = vld [vmem:[%s7159_s1 + $0x8b0] sm:$0xff] }
  0xcf   :  { %3615 = vmatpush.bf16.msra.mxu2 %v5708_v54  ;;  %v3376_v18 = vpop.f32.mrf.mxu3  ;;  %v5722_v54 = vld [vmem:[%s7159_s1 + $0x710] sm:$0xff] }
  0xd0   :  { %3602 = vmatpush.bf16.msra.mxu1 %v5700_v57  ;;  %v5730_v57 = vld [vmem:[%s7159_s1 + $0x750] sm:$0xff]  ;;  %v5757_v18 = vld [vmem:[%s7159_s1 + $0x828] sm:$0xff] }
  0xd1   :  { %3628 = vmatpush.bf16.msra.mxu3 %v5716_v58  ;;  %v5746_v58 = vld [vmem:[%s7159_s1 + $0x7d0] sm:$0xff] }
  0xd2   :  { %3590 = vmatpush.bf16.msra.mxu0 %v5691_v61  ;;  %v846_v61 = vld [vmem:[#allocation1 + $0x24] sm:$0xff] }
  0xd3   :  { %3616 = vmatpush.bf16.msra.mxu2 %v5707_v62  ;;  %v848_v62 = vld [vmem:[#allocation1 + $0x36] sm:$0xff] }
  0xd4   :  { %3603 = vmatpush.bf16.msra.mxu1 %v5699_v63  ;;  %v847_v63 = vld [vmem:[#allocation1 + $0x2d] sm:$0xff] }
  0xd5   :  { %3629 = vmatpush.bf16.msra.mxu3 %v5715_v0  ;;  %v849_v0 = vld [vmem:[#allocation1 + $0x3f] sm:$0xff] }
  0xd6   :  { %3591 = vmatpush.bf16.msra.mxu0 %v5690_v3  ;;  %851 = vst [vmem:[#allocation1] ss:$9 sm:$0xff] %v19_v2  ;;  %v5729_v3 = vld [vmem:[%s7159_s1 + $0x748] sm:$0xff] }
  0xd7   :  { %3617 = vmatpush.bf16.msra.mxu2 %v5706_v4  ;;  %v5745_v4 = vld [vmem:[%s7159_s1 + $0x7c8] sm:$0xff] }
  0xd8   :  { %3604 = vmatpush.bf16.msra.mxu1 %v5698_v8  ;;  %v5759_v8 = vld [vmem:[%s7159_s1 + $0x838] sm:$0xff]  ;;  %v5789_v2 = vld [vmem:[%s7159_s1 + $0x928] sm:$0xff] }
  0xd9   :  { %3630 = vmatpush.bf16.msra.mxu3 %v5714_v9  ;;  %v5775_v9 = vld [vmem:[%s7159_s1 + $0x8b8] sm:$0xff] }
  0xda   :  { %3592 = vmatpush.bf16.msra.mxu0 %v5689_v11  ;;  %v5744_v11 = vld [vmem:[%s7159_s1 + $0x7c0] sm:$0xff] }
  0xdb   :  { %3618 = vmatpush.bf16.msra.mxu2 %v5705_v12  ;;  %v5767_v12 = vld [vmem:[%s7159_s1 + $0x878] sm:$0xff] }
  0xdc   :  { %3605 = vmatpush.bf16.msra.mxu1 %v5697_v13  ;;  %v5783_v13 = vld [vmem:[%s7159_s1 + $0x8f8] sm:$0xff] }
  0xdd   :  { %3631 = vmatpush.bf16.msra.mxu3 %v5713_v14  ;;  %v5758_v14 = vld [vmem:[%s7159_s1 + $0x830] sm:$0xff] }
  0xde   :  { %3593 = vmatpush.bf16.msra.mxu0 %v5688_v16  ;;  %v3387_v37 = vpop.f32.mrf.mxu0  ;;  %v5766_v16 = vld [vmem:[%s7159_s1 + $0x870] sm:$0xff] }
  0xdf   :  { %3619 = vmatpush.bf16.msra.mxu2 %v5704_v17  ;;  %v3388_v38 = vadd.f32 %v3387_v37, %v3375_v7  ;;  %v5736_v7 = vld [vmem:[%s7159_s1 + $0x780] sm:$0xff]  ;;  %v5782_v17 = vld [vmem:[%s7159_s1 + $0x8f0] sm:$0xff] }
  0xe0   :  { %3606 = vmatpush.bf16.msra.mxu1 %v5696_v21  ;;  %v3400_v41 = vpop.f32.mrf.mxu1  ;;  %v5781_v21 = vld [vmem:[%s7159_s1 + $0x8e8] sm:$0xff] }
  0xe1   :  { %3632 = vmatpush.bf16.msra.mxu3 %v5712_v22  ;;  %3594 = vmatmul.bf16.vlgmr.msra.gmra.mxu0 %v842_v24  ;;  %v3401_v42 = vadd.f32 %v3400_v41, %v3388_v38  ;;  %v5756_v24 = vld [vmem:[%s7159_s1 + $0x820] sm:$0xff] }
  0xe2   :  { %3638 = vmatpush.bf16.msrb.mxu0 %v5727_v19  ;;  %3620 = vmatmul.bf16.vlgmr.msra.gmra.mxu2 %v844_v25  ;;  %v5773_v19 = vld [vmem:[%s7159_s1 + $0x8a8] sm:$0xff]  ;;  %v5772_v25 = vld [vmem:[%s7159_s1 + $0x8a0] sm:$0xff] }
  0xe3   :  { %3664 = vmatpush.bf16.msrb.mxu2 %v5743_v20  ;;  %3607 = vmatmul.bf16.vlgmr.msra.gmra.mxu1 %v843_v27  ;;  %v5765_v20 = vld [vmem:[%s7159_s1 + $0x868] sm:$0xff] }
  0xe4   :  { %3651 = vmatpush.bf16.msrb.mxu1 %v5735_v23  ;;  %3633 = vmatmul.bf16.vlgmr.msra.gmra.mxu3 %v845_v28  ;;  %v5764_v28 = vld [vmem:[%s7159_s1 + $0x860] sm:$0xff] }
  0xe5   :  { %3677 = vmatpush.bf16.msrb.mxu3 %v5751_v26  ;;  %v3413_v47 = vpop.f32.mrf.mxu2 }
  0xe6   :  { %3639 = vmatpush.bf16.msrb.mxu0 %v5726_v29  ;;  %v3414_v48 = vadd.f32 %v3413_v47, %v3401_v42  ;;  %v3389_v52 = vpop.f32.mrf.mxu0  ;;  %v5780_v29 = vld [vmem:[%s7159_s1 + $0x8e0] sm:$0xff]  ;;  %v5762_v42 = vld [vmem:[%s7159_s1 + $0x850] sm:$0xff]  ;;  %v5761_v47 = vld [vmem:[%s7159_s1 + $0x848] sm:$0xff] }
  0xe7   :  { %3665 = vmatpush.bf16.msrb.mxu2 %v5742_v30  ;;  %v3426_v51 = vpop.f32.mrf.mxu3  ;;  %v5755_v30 = vld [vmem:[%s7159_s1 + $0x818] sm:$0xff] }
  0xe8   :  { %3652 = vmatpush.bf16.msrb.mxu1 %v5734_v31  ;;  %v6696_v53 = vadd.f32 %v3426_v51, %v3414_v48  ;;  %v3402_v56 = vpop.f32.mrf.mxu1  ;;  %v5771_v31 = vld [vmem:[%s7159_s1 + $0x898] sm:$0xff]  ;;  %v5777_v48 = vld [vmem:[%s7159_s1 + $0x8c8] sm:$0xff]  ;;  %v5768_v51 = vld [vmem:[%s7159_s1 + $0x880] sm:$0xff] }
  0xe9   :  { %3678 = vmatpush.bf16.msrb.mxu3 %v5750_v32  ;;  %v5791_v52 = vld [vmem:[%s7159_s1 + $0x938] sm:$0xff] }
  0xea   :  { %3640 = vmatpush.bf16.msrb.mxu0 %v5725_v33  ;;  %v5799_v56 = vld [vmem:[%s7159_s1 + $0x978] sm:$0xff] }
  0xeb   :  { %3666 = vmatpush.bf16.msrb.mxu2 %v5741_v34  ;;  %v5763_v34 = vld [vmem:[%s7159_s1 + $0x858] sm:$0xff] }
  0xec   :  { %3653 = vmatpush.bf16.msrb.mxu1 %v5733_v35  ;;  %v5779_v35 = vld [vmem:[%s7159_s1 + $0x8d8] sm:$0xff] }
  0xed   :  { %3679 = vmatpush.bf16.msrb.mxu3 %v5749_v36  ;;  %v3415_v1 = vpop.f32.mrf.mxu2 }
  0xee   :  { %3641 = vmatpush.bf16.msrb.mxu0 %v5724_v39  ;;  %v5754_v39 = vld [vmem:[%s7159_s1 + $0x810] sm:$0xff] }
  0xef   :  { %3667 = vmatpush.bf16.msrb.mxu2 %v5740_v40  ;;  %v3428_v5 = vpop.f32.mrf.mxu3  ;;  %v5770_v40 = vld [vmem:[%s7159_s1 + $0x890] sm:$0xff] }
  0xf0   :  { %3654 = vmatpush.bf16.msrb.mxu1 %v5732_v43  ;;  %v5778_v43 = vld [vmem:[%s7159_s1 + $0x8d0] sm:$0xff]  ;;  %v5813_v5 = vld [vmem:[%s7159_s1 + $0x9e8] sm:$0xff] }
  0xf1   :  { %3680 = vmatpush.bf16.msrb.mxu3 %v5748_v44  ;;  %v5753_v44 = vld [vmem:[%s7159_s1 + $0x808] sm:$0xff]  ;;  %v5814_v1 = vld [vmem:[%s7159_s1 + $0x9f0] sm:$0xff] }
  0xf2   :  { %3642 = vmatpush.bf16.msrb.mxu0 %v5723_v45  ;;  %v5769_v45 = vld [vmem:[%s7159_s1 + $0x888] sm:$0xff] }
  0xf3   :  { %3668 = vmatpush.bf16.msrb.mxu2 %v5739_v46 }
  0xf4   :  { %3655 = vmatpush.bf16.msrb.mxu1 %v5731_v49 }
  0xf5   :  { %3681 = vmatpush.bf16.msrb.mxu3 %v5747_v50  ;;  %v5752_v50 = vld [vmem:[%s7159_s1 + $0x800] sm:$0xff] }
  0xf6   :  { %3643 = vmatpush.bf16.msrb.mxu0 %v5722_v54  ;;  %v5760_v54 = vld [vmem:[%s7159_s1 + $0x840] sm:$0xff] }
  0xf7   :  { %3669 = vmatpush.bf16.msrb.mxu2 %v5738_v55  ;;  %v5776_v55 = vld [vmem:[%s7159_s1 + $0x8c0] sm:$0xff] }
  0xf8   :  { %3656 = vmatpush.bf16.msrb.mxu1 %v5730_v57  ;;  %v852_v57 = vld [vmem:[#allocation1] sm:$0xff] }
  0xf9   :  { %3682 = vmatpush.bf16.msrb.mxu3 %v5746_v58  ;;  %v854_v58 = vld [vmem:[#allocation1 + $0x12] sm:$0xff] }
  0xfa   :  { %3644 = vmatpush.bf16.msrb.mxu0 %v5721_v59  ;;  %v5815_v59 = vld [vmem:[%s7159_s1 + $0x9f8] sm:$0xff] }
  0xfb   :  { %3670 = vmatpush.bf16.msrb.mxu2 %v5737_v60  ;;  %v853_v60 = vld [vmem:[#allocation1 + $0x9] sm:$0xff] }
  0xfc   :  { %3657 = vmatpush.bf16.msrb.mxu1 %v5729_v3  ;;  %v5805_v3 = vld [vmem:[%s7159_s1 + $0x9a8] sm:$0xff] }
  0xfd   :  { %3683 = vmatpush.bf16.msrb.mxu3 %v5745_v4  ;;  %v5797_v4 = vld [vmem:[%s7159_s1 + $0x968] sm:$0xff] }
  0xfe   :  { %3645 = vmatpush.bf16.msrb.mxu0 %v5720_v6  ;;  %v3439_v22 = vpop.f32.mrf.mxu0 }
  0xff   :  { %3671 = vmatpush.bf16.msrb.mxu2 %v5736_v7  ;;  %v3440_v23 = vadd.f32 %v3439_v22, %v6696_v53  ;;  %v5807_v53 = vld [vmem:[%s7159_s1 + $0x9b8] sm:$0xff] }
 0x100   :  { %3658 = vmatpush.bf16.msrb.mxu1 %v5728_v10  ;;  %v3452_v26 = vpop.f32.mrf.mxu1 }
 0x101   :  { %3684 = vmatpush.bf16.msrb.mxu3 %v5744_v11  ;;  %3646 = vmatmul.bf16.vlgmr.msrb.gmra.mxu0 %v846_v61  ;;  %v3453_v27 = vadd.f32 %v3452_v26, %v3440_v23  ;;  %v855_v61 = vld [vmem:[#allocation1 + $0x1b] sm:$0xff]  ;;  %v5786_v23 = vld [vmem:[%s7159_s1 + $0x910] sm:$0xff] }
 0x102   :  { %3690 = vmatpush.bf16.msra.mxu0 %v5759_v8  ;;  %3672 = vmatmul.bf16.vlgmr.msrb.gmra.mxu2 %v848_v62  ;;  %v5790_v62 = vld [vmem:[%s7159_s1 + $0x930] sm:$0xff]  ;;  %v5788_v8 = vld [vmem:[%s7159_s1 + $0x920] sm:$0xff] }
 0x103   :  { %3716 = vmatpush.bf16.msra.mxu2 %v5775_v9  ;;  %3659 = vmatmul.bf16.vlgmr.msrb.gmra.mxu1 %v847_v63  ;;  %v5806_v63 = vld [vmem:[%s7159_s1 + $0x9b0] sm:$0xff]  ;;  %v5804_v9 = vld [vmem:[%s7159_s1 + $0x9a0] sm:$0xff] }
 0x104   :  { %3703 = vmatpush.bf16.msra.mxu1 %v5767_v12  ;;  %3685 = vmatmul.bf16.vlgmr.msrb.gmra.mxu3 %v849_v0  ;;  %v5798_v0 = vld [vmem:[%s7159_s1 + $0x970] sm:$0xff]  ;;  %v5796_v12 = vld [vmem:[%s7159_s1 + $0x960] sm:$0xff] }
 0x105   :  { %3729 = vmatpush.bf16.msra.mxu3 %v5783_v13  ;;  %v3465_v32 = vpop.f32.mrf.mxu2  ;;  %v5812_v13 = vld [vmem:[%s7159_s1 + $0x9e0] sm:$0xff]  ;;  %v5794_v26 = vld [vmem:[%s7159_s1 + $0x950] sm:$0xff] }
 0x106   :  { %3691 = vmatpush.bf16.msra.mxu0 %v5758_v14  ;;  %v3466_v33 = vadd.f32 %v3465_v32, %v3453_v27  ;;  %v3441_v37 = vpop.f32.mrf.mxu0  ;;  %v5787_v14 = vld [vmem:[%s7159_s1 + $0x918] sm:$0xff]  ;;  %v5810_v27 = vld [vmem:[%s7159_s1 + $0x9d0] sm:$0xff] }
 0x107   :  { %3717 = vmatpush.bf16.msra.mxu2 %v5774_v15  ;;  %v3478_v36 = vpop.f32.mrf.mxu3  ;;  %v5803_v15 = vld [vmem:[%s7159_s1 + $0x998] sm:$0xff]  ;;  %v857_v32 = vld [vmem:[#allocation1 + $0x2d] sm:$0xff] }
 0x108   :  { %3704 = vmatpush.bf16.msra.mxu1 %v5766_v16  ;;  %v3479_v38 = vadd.f32 %v3478_v36, %v3466_v33  ;;  %v3454_v41 = vpop.f32.mrf.mxu1  ;;  %v859_v33 = vld [vmem:[#allocation1 + $0x3f] sm:$0xff]  ;;  %v5793_v36 = vld [vmem:[%s7159_s1 + $0x948] sm:$0xff] }
 0x109   :  { %3730 = vmatpush.bf16.msra.mxu3 %v5782_v17  ;;  %v5809_v37 = vld [vmem:[%s7159_s1 + $0x9c8] sm:$0xff]  ;;  %v5823_v41 = vld [vmem:[%s7159_s1 + $0xa38] sm:$0xff] }
 0x10a   :  { %3692 = vmatpush.bf16.msra.mxu0 %v5757_v18  ;;  %v5795_v18 = vld [vmem:[%s7159_s1 + $0x958] sm:$0xff] }
 0x10b   :  { %3718 = vmatpush.bf16.msra.mxu2 %v5773_v19  ;;  %v5811_v19 = vld [vmem:[%s7159_s1 + $0x9d8] sm:$0xff] }
 0x10c   :  { %3705 = vmatpush.bf16.msra.mxu1 %v5765_v20 }
 0x10d   :  { %3731 = vmatpush.bf16.msra.mxu3 %v5781_v21  ;;  %v3467_v46 = vpop.f32.mrf.mxu2 }
 0x10e   :  { %3693 = vmatpush.bf16.msra.mxu0 %v5756_v24  ;;  %v5802_v24 = vld [vmem:[%s7159_s1 + $0x990] sm:$0xff]  ;;  %v5847_v46 = vld [vmem:[%s7159_s1 + $0xaf8] sm:$0xff] }
 0x10f   :  { %3719 = vmatpush.bf16.msra.mxu2 %v5772_v25  ;;  %v3480_v49 = vpop.f32.mrf.mxu3 }
 0x110   :  { %3706 = vmatpush.bf16.msra.mxu1 %v5764_v28  ;;  %v5785_v28 = vld [vmem:[%s7159_s1 + $0x908] sm:$0xff]  ;;  %v5830_v49 = vld [vmem:[%s7159_s1 + $0xa70] sm:$0xff] }
 0x111   :  { %3732 = vmatpush.bf16.msra.mxu3 %v5780_v29  ;;  %v5801_v29 = vld [vmem:[%s7159_s1 + $0x988] sm:$0xff] }
 0x112   :  { %3694 = vmatpush.bf16.msra.mxu0 %v5755_v30  ;;  %v856_v30 = vld [vmem:[#allocation1 + $0x24] sm:$0xff] }
 0x113   :  { %3720 = vmatpush.bf16.msra.mxu2 %v5771_v31  ;;  %v858_v31 = vld [vmem:[#allocation1 + $0x36] sm:$0xff] }
 0x114   :  { %3707 = vmatpush.bf16.msra.mxu1 %v5763_v34 }
 0x115   :  { %3733 = vmatpush.bf16.msra.mxu3 %v5779_v35  ;;  %v20_v35 = vld [vmem:[%s7158_s0 + $0x28] sm:$0xff] }
 0x116   :  { %3695 = vmatpush.bf16.msra.mxu0 %v5754_v39  ;;  %861 = vst [vmem:[#allocation1] ss:$9 sm:$0xff] %v20_v35  ;;  %v5784_v39 = vld [vmem:[%s7159_s1 + $0x900] sm:$0xff]  ;;  %v5853_v35 = vld [vmem:[%s7159_s1 + $0xb28] sm:$0xff] }
 0x117   :  { %3721 = vmatpush.bf16.msra.mxu2 %v5770_v40  ;;  %v5800_v40 = vld [vmem:[%s7159_s1 + $0x980] sm:$0xff] }
 0x118   :  { %3708 = vmatpush.bf16.msra.mxu1 %v5762_v42  ;;  %v5839_v42 = vld [vmem:[%s7159_s1 + $0xab8] sm:$0xff] }
 0x119   :  { %3734 = vmatpush.bf16.msra.mxu3 %v5778_v43  ;;  %v5792_v43 = vld [vmem:[%s7159_s1 + $0x940] sm:$0xff] }
 0x11a   :  { %3696 = vmatpush.bf16.msra.mxu0 %v5753_v44  ;;  %v5808_v44 = vld [vmem:[%s7159_s1 + $0x9c0] sm:$0xff] }
 0x11b   :  { %3722 = vmatpush.bf16.msra.mxu2 %v5769_v45  ;;  %v5831_v45 = vld [vmem:[%s7159_s1 + $0xa78] sm:$0xff] }
 0x11c   :  { %3709 = vmatpush.bf16.msra.mxu1 %v5761_v47  ;;  %v5822_v47 = vld [vmem:[%s7159_s1 + $0xa30] sm:$0xff] }
 0x11d   :  { %3735 = vmatpush.bf16.msra.mxu3 %v5777_v48  ;;  %v5838_v48 = vld [vmem:[%s7159_s1 + $0xab0] sm:$0xff] }
 0x11e   :  { %3697 = vmatpush.bf16.msra.mxu0 %v5752_v50  ;;  %v3491_v6 = vpop.f32.mrf.mxu0  ;;  %v5846_v50 = vld [vmem:[%s7159_s1 + $0xaf0] sm:$0xff] }
 0x11f   :  { %3723 = vmatpush.bf16.msra.mxu2 %v5768_v51  ;;  %v3492_v7 = vadd.f32 %v3491_v6, %v3479_v38  ;;  %v5821_v51 = vld [vmem:[%s7159_s1 + $0xa28] sm:$0xff] }
 0x120   :  { %3710 = vmatpush.bf16.msra.mxu1 %v5760_v54  ;;  %v3504_v10 = vpop.f32.mrf.mxu1  ;;  %v5845_v54 = vld [vmem:[%s7159_s1 + $0xae8] sm:$0xff] }
 0x121   :  { %3736 = vmatpush.bf16.msra.mxu3 %v5776_v55  ;;  %3698 = vmatmul.bf16.vlgmr.msra.gmra.mxu0 %v852_v57  ;;  %v3505_v11 = vadd.f32 %v3504_v10, %v3492_v7  ;;  %v5820_v57 = vld [vmem:[%s7159_s1 + $0xa20] sm:$0xff] }
 0x122   :  { %3742 = vmatpush.bf16.msrb.mxu0 %v5791_v52  ;;  %3724 = vmatmul.bf16.vlgmr.msra.gmra.mxu2 %v854_v58  ;;  %v5837_v52 = vld [vmem:[%s7159_s1 + $0xaa8] sm:$0xff]  ;;  %v5836_v58 = vld [vmem:[%s7159_s1 + $0xaa0] sm:$0xff] }
 0x123   :  { %3768 = vmatpush.bf16.msrb.mxu2 %v5807_v53  ;;  %3711 = vmatmul.bf16.vlgmr.msra.gmra.mxu1 %v853_v60  ;;  %v5829_v53 = vld [vmem:[%s7159_s1 + $0xa68] sm:$0xff] }
 0x124   :  { %3755 = vmatpush.bf16.msrb.mxu1 %v5799_v56  ;;  %3737 = vmatmul.bf16.vlgmr.msra.gmra.mxu3 %v855_v61  ;;  %v5828_v61 = vld [vmem:[%s7159_s1 + $0xa60] sm:$0xff] }
 0x125   :  { %3781 = vmatpush.bf16.msrb.mxu3 %v5815_v59  ;;  %v3517_v16 = vpop.f32.mrf.mxu2 }
 0x126   :  { %3743 = vmatpush.bf16.msrb.mxu0 %v5790_v62  ;;  %v3518_v17 = vadd.f32 %v3517_v16, %v3505_v11  ;;  %v3493_v21 = vpop.f32.mrf.mxu0  ;;  %v5844_v62 = vld [vmem:[%s7159_s1 + $0xae0] sm:$0xff]  ;;  %v5826_v11 = vld [vmem:[%s7159_s1 + $0xa50] sm:$0xff]  ;;  %v5825_v16 = vld [vmem:[%s7159_s1 + $0xa48] sm:$0xff] }
 0x127   :  { %3769 = vmatpush.bf16.msrb.mxu2 %v5806_v63  ;;  %v3530_v20 = vpop.f32.mrf.mxu3  ;;  %v5819_v63 = vld [vmem:[%s7159_s1 + $0xa18] sm:$0xff] }
 0x128   :  { %3756 = vmatpush.bf16.msrb.mxu1 %v5798_v0  ;;  %v6894_v22 = vadd.f32 %v3530_v20, %v3518_v17  ;;  %v3506_v25 = vpop.f32.mrf.mxu1  ;;  %v5835_v0 = vld [vmem:[%s7159_s1 + $0xa98] sm:$0xff]  ;;  %v5841_v17 = vld [vmem:[%s7159_s1 + $0xac8] sm:$0xff]  ;;  %v5832_v20 = vld [vmem:[%s7159_s1 + $0xa80] sm:$0xff] }
 0x129   :  { %3782 = vmatpush.bf16.msrb.mxu3 %v5814_v1  ;;  %v5855_v21 = vld [vmem:[%s7159_s1 + $0xb38] sm:$0xff] }
 0x12a   :  { %3744 = vmatpush.bf16.msrb.mxu0 %v5789_v2  ;;  %v5863_v25 = vld [vmem:[%s7159_s1 + $0xb78] sm:$0xff] }
 0x12b   :  { %3770 = vmatpush.bf16.msrb.mxu2 %v5805_v3  ;;  %v5827_v3 = vld [vmem:[%s7159_s1 + $0xa58] sm:$0xff] }
 0x12c   :  { %3757 = vmatpush.bf16.msrb.mxu1 %v5797_v4  ;;  %v5843_v4 = vld [vmem:[%s7159_s1 + $0xad8] sm:$0xff] }
 0x12d   :  { %3783 = vmatpush.bf16.msrb.mxu3 %v5813_v5  ;;  %v3519_v34 = vpop.f32.mrf.mxu2 }
 0x12e   :  { %3745 = vmatpush.bf16.msrb.mxu0 %v5788_v8  ;;  %v5818_v8 = vld [vmem:[%s7159_s1 + $0xa10] sm:$0xff] }
 0x12f   :  { %3771 = vmatpush.bf16.msrb.mxu2 %v5804_v9  ;;  %v3532_v38 = vpop.f32.mrf.mxu3  ;;  %v5834_v9 = vld [vmem:[%s7159_s1 + $0xa90] sm:$0xff] }
 0x130   :  { %3758 = vmatpush.bf16.msrb.mxu1 %v5796_v12  ;;  %v5842_v12 = vld [vmem:[%s7159_s1 + $0xad0] sm:$0xff]  ;;  %v5877_v38 = vld [vmem:[%s7159_s1 + $0xbe8] sm:$0xff] }
 0x131   :  { %3784 = vmatpush.bf16.msrb.mxu3 %v5812_v13  ;;  %v5817_v13 = vld [vmem:[%s7159_s1 + $0xa08] sm:$0xff]  ;;  %v5878_v34 = vld [vmem:[%s7159_s1 + $0xbf0] sm:$0xff] }
 0x132   :  { %3746 = vmatpush.bf16.msrb.mxu0 %v5787_v14  ;;  %v5833_v14 = vld [vmem:[%s7159_s1 + $0xa88] sm:$0xff] }
 0x133   :  { %3772 = vmatpush.bf16.msrb.mxu2 %v5803_v15 }
 0x134   :  { %3759 = vmatpush.bf16.msrb.mxu1 %v5795_v18 }
 0x135   :  { %3785 = vmatpush.bf16.msrb.mxu3 %v5811_v19  ;;  %v5816_v19 = vld [vmem:[%s7159_s1 + $0xa00] sm:$0xff] }
 0x136   :  { %3747 = vmatpush.bf16.msrb.mxu0 %v5786_v23  ;;  %v5824_v23 = vld [vmem:[%s7159_s1 + $0xa40] sm:$0xff] }
 0x137   :  { %3773 = vmatpush.bf16.msrb.mxu2 %v5802_v24  ;;  %v5840_v24 = vld [vmem:[%s7159_s1 + $0xac0] sm:$0xff] }
 0x138   :  { %3760 = vmatpush.bf16.msrb.mxu1 %v5794_v26  ;;  %v862_v26 = vld [vmem:[#allocation1] sm:$0xff] }
 0x139   :  { %3786 = vmatpush.bf16.msrb.mxu3 %v5810_v27  ;;  %v864_v27 = vld [vmem:[#allocation1 + $0x12] sm:$0xff] }
 0x13a   :  { %3748 = vmatpush.bf16.msrb.mxu0 %v5785_v28  ;;  %v5879_v28 = vld [vmem:[%s7159_s1 + $0xbf8] sm:$0xff] }
 0x13b   :  { %3774 = vmatpush.bf16.msrb.mxu2 %v5801_v29  ;;  %v863_v29 = vld [vmem:[#allocation1 + $0x9] sm:$0xff] }
 0x13c   :  { %3761 = vmatpush.bf16.msrb.mxu1 %v5793_v36  ;;  %v5869_v36 = vld [vmem:[%s7159_s1 + $0xba8] sm:$0xff] }
 0x13d   :  { %3787 = vmatpush.bf16.msrb.mxu3 %v5809_v37  ;;  %v5861_v37 = vld [vmem:[%s7159_s1 + $0xb68] sm:$0xff] }
 0x13e   :  { %3749 = vmatpush.bf16.msrb.mxu0 %v5784_v39  ;;  %v3543_v55 = vpop.f32.mrf.mxu0 }
 0x13f   :  { %3775 = vmatpush.bf16.msrb.mxu2 %v5800_v40  ;;  %v3544_v56 = vadd.f32 %v3543_v55, %v6894_v22  ;;  %v5871_v22 = vld [vmem:[%s7159_s1 + $0xbb8] sm:$0xff] }
 0x140   :  { %3762 = vmatpush.bf16.msrb.mxu1 %v5792_v43  ;;  %v3556_v59 = vpop.f32.mrf.mxu1 }
 0x141   :  { %3788 = vmatpush.bf16.msrb.mxu3 %v5808_v44  ;;  %3750 = vmatmul.bf16.vlgmr.msrb.gmra.mxu0 %v856_v30  ;;  %v3557_v60 = vadd.f32 %v3556_v59, %v3544_v56  ;;  %v865_v30 = vld [vmem:[#allocation1 + $0x1b] sm:$0xff]  ;;  %v5850_v56 = vld [vmem:[%s7159_s1 + $0xb10] sm:$0xff] }
 0x142   :  { %3794 = vmatpush.bf16.msra.mxu0 %v5823_v41  ;;  %3776 = vmatmul.bf16.vlgmr.msrb.gmra.mxu2 %v858_v31  ;;  %v5854_v31 = vld [vmem:[%s7159_s1 + $0xb30] sm:$0xff]  ;;  %v5852_v41 = vld [vmem:[%s7159_s1 + $0xb20] sm:$0xff] }
 0x143   :  { %3820 = vmatpush.bf16.msra.mxu2 %v5839_v42  ;;  %3763 = vmatmul.bf16.vlgmr.msrb.gmra.mxu1 %v857_v32  ;;  %v5870_v32 = vld [vmem:[%s7159_s1 + $0xbb0] sm:$0xff]  ;;  %v5868_v42 = vld [vmem:[%s7159_s1 + $0xba0] sm:$0xff] }
 0x144   :  { %3807 = vmatpush.bf16.msra.mxu1 %v5831_v45  ;;  %3789 = vmatmul.bf16.vlgmr.msrb.gmra.mxu3 %v859_v33  ;;  %v5862_v33 = vld [vmem:[%s7159_s1 + $0xb70] sm:$0xff]  ;;  %v5860_v45 = vld [vmem:[%s7159_s1 + $0xb60] sm:$0xff] }
 0x145   :  { %3833 = vmatpush.bf16.msra.mxu3 %v5847_v46  ;;  %v3569_v1 = vpop.f32.mrf.mxu2  ;;  %v5876_v46 = vld [vmem:[%s7159_s1 + $0xbe0] sm:$0xff]  ;;  %v5858_v59 = vld [vmem:[%s7159_s1 + $0xb50] sm:$0xff] }
 0x146   :  { %3795 = vmatpush.bf16.msra.mxu0 %v5822_v47  ;;  %v3570_v2 = vadd.f32 %v3569_v1, %v3557_v60  ;;  %v3545_v6 = vpop.f32.mrf.mxu0  ;;  %v5851_v47 = vld [vmem:[%s7159_s1 + $0xb18] sm:$0xff]  ;;  %v5874_v60 = vld [vmem:[%s7159_s1 + $0xbd0] sm:$0xff] }
 0x147   :  { %3821 = vmatpush.bf16.msra.mxu2 %v5838_v48  ;;  %v3582_v5 = vpop.f32.mrf.mxu3  ;;  %v5867_v48 = vld [vmem:[%s7159_s1 + $0xb98] sm:$0xff]  ;;  %v867_v1 = vld [vmem:[#allocation1 + $0x2d] sm:$0xff] }
 0x148   :  { %3808 = vmatpush.bf16.msra.mxu1 %v5830_v49  ;;  %v3583_v7 = vadd.f32 %v3582_v5, %v3570_v2  ;;  %v3558_v10 = vpop.f32.mrf.mxu1  ;;  %v869_v2 = vld [vmem:[#allocation1 + $0x3f] sm:$0xff]  ;;  %v5857_v5 = vld [vmem:[%s7159_s1 + $0xb48] sm:$0xff] }
 0x149   :  { %3834 = vmatpush.bf16.msra.mxu3 %v5846_v50  ;;  %v5873_v6 = vld [vmem:[%s7159_s1 + $0xbc8] sm:$0xff]  ;;  %v5887_v10 = vld [vmem:[%s7159_s1 + $0xc38] sm:$0xff] }
 0x14a   :  { %3796 = vmatpush.bf16.msra.mxu0 %v5821_v51  ;;  %v5859_v51 = vld [vmem:[%s7159_s1 + $0xb58] sm:$0xff] }
 0x14b   :  { %3822 = vmatpush.bf16.msra.mxu2 %v5837_v52  ;;  %v5875_v52 = vld [vmem:[%s7159_s1 + $0xbd8] sm:$0xff] }
 0x14c   :  { %3809 = vmatpush.bf16.msra.mxu1 %v5829_v53 }
 0x14d   :  { %3835 = vmatpush.bf16.msra.mxu3 %v5845_v54  ;;  %v3571_v15 = vpop.f32.mrf.mxu2 }
 0x14e   :  { %3797 = vmatpush.bf16.msra.mxu0 %v5820_v57  ;;  %v5866_v57 = vld [vmem:[%s7159_s1 + $0xb90] sm:$0xff] }
 0x14f   :  { %3823 = vmatpush.bf16.msra.mxu2 %v5836_v58  ;;  %v3584_v18 = vpop.f32.mrf.mxu3 }
 0x150   :  { %3810 = vmatpush.bf16.msra.mxu1 %v5828_v61  ;;  %v5849_v61 = vld [vmem:[%s7159_s1 + $0xb08] sm:$0xff] }
 0x151   :  { %3836 = vmatpush.bf16.msra.mxu3 %v5844_v62  ;;  %v5865_v62 = vld [vmem:[%s7159_s1 + $0xb88] sm:$0xff] }
 0x152   :  { %3798 = vmatpush.bf16.msra.mxu0 %v5819_v63  ;;  %v866_v63 = vld [vmem:[#allocation1 + $0x24] sm:$0xff] }
 0x153   :  { %3824 = vmatpush.bf16.msra.mxu2 %v5835_v0  ;;  %v868_v0 = vld [vmem:[#allocation1 + $0x36] sm:$0xff] }
 0x154   :  { %3811 = vmatpush.bf16.msra.mxu1 %v5827_v3 }
 0x155   :  { %3837 = vmatpush.bf16.msra.mxu3 %v5843_v4  ;;  %v21_v4 = vld [vmem:[%s7158_s0 + $0x30] sm:$0x1] }
 0x156   :  { %3799 = vmatpush.bf16.msra.mxu0 %v5818_v8  ;;  %871 = vst [vmem:[#allocation1] ss:$9 sm:$0xff] %v21_v4  ;;  %v5848_v8 = vld [vmem:[%s7159_s1 + $0xb00] sm:$0xff] }
 0x157   :  { %3825 = vmatpush.bf16.msra.mxu2 %v5834_v9  ;;  %v5864_v9 = vld [vmem:[%s7159_s1 + $0xb80] sm:$0xff] }
 0x158   :  { %3812 = vmatpush.bf16.msra.mxu1 %v5826_v11  ;;  %v5856_v11 = vld [vmem:[%s7159_s1 + $0xb40] sm:$0xff] }
 0x159   :  { %3838 = vmatpush.bf16.msra.mxu3 %v5842_v12  ;;  %v5872_v12 = vld [vmem:[%s7159_s1 + $0xbc0] sm:$0xff] }
 0x15a   :  { %3800 = vmatpush.bf16.msra.mxu0 %v5817_v13  ;;  %v5886_v13 = vld [vmem:[%s7159_s1 + $0xc30] sm:$0xff] }
 0x15b   :  { %3826 = vmatpush.bf16.msra.mxu2 %v5833_v14  ;;  %v5885_v14 = vld [vmem:[%s7159_s1 + $0xc28] sm:$0xff] }
 0x15c   :  { %3813 = vmatpush.bf16.msra.mxu1 %v5825_v16 }
 0x15d   :  { %3839 = vmatpush.bf16.msra.mxu3 %v5841_v17  ;;  %v5884_v17 = vld [vmem:[%s7159_s1 + $0xc20] sm:$0xff] }
 0x15e   :  { %3801 = vmatpush.bf16.msra.mxu0 %v5816_v19  ;;  %v3595_v39 = vpop.f32.mrf.mxu0 }
 0x15f   :  { %3827 = vmatpush.bf16.msra.mxu2 %v5832_v20  ;;  %v3596_v40 = vadd.f32 %v3595_v39, %v3583_v7  ;;  %v5883_v20 = vld [vmem:[%s7159_s1 + $0xc18] sm:$0xff] }
 0x160   :  { %3814 = vmatpush.bf16.msra.mxu1 %v5824_v23  ;;  %v3608_v43 = vpop.f32.mrf.mxu1 }
 0x161   :  { %3840 = vmatpush.bf16.msra.mxu3 %v5840_v24  ;;  %3802 = vmatmul.bf16.vlgmr.msra.gmra.mxu0 %v862_v26  ;;  %v3609_v44 = vadd.f32 %v3608_v43, %v3596_v40  ;;  %v5882_v26 = vld [vmem:[%s7159_s1 + $0xc10] sm:$0xff] }
 0x162   :  { %3846 = vmatpush.bf16.msrb.mxu0 %v5855_v21  ;;  %3828 = vmatmul.bf16.vlgmr.msra.gmra.mxu2 %v864_v27 }
 0x163   :  { %3872 = vmatpush.bf16.msrb.mxu2 %v5871_v22  ;;  %3815 = vmatmul.bf16.vlgmr.msra.gmra.mxu1 %v863_v29 }
 0x164   :  { %3859 = vmatpush.bf16.msrb.mxu1 %v5863_v25  ;;  %3841 = vmatmul.bf16.vlgmr.msra.gmra.mxu3 %v865_v30 }
 0x165   :  { %3885 = vmatpush.bf16.msrb.mxu3 %v5879_v28  ;;  %v3621_v49 = vpop.f32.mrf.mxu2  ;;  %v5881_v28 = vld [vmem:[%s7159_s1 + $0xc08] sm:$0xff] }
 0x166   :  { %3847 = vmatpush.bf16.msrb.mxu0 %v5854_v31  ;;  %v3622_v50 = vadd.f32 %v3621_v49, %v3609_v44  ;;  %v3597_v54 = vpop.f32.mrf.mxu0  ;;  %v5880_v31 = vld [vmem:[%s7159_s1 + $0xc00] sm:$0xff]  ;;  %s5916_s1 = smov [#allocation2]  }
 0x167   :  { %3873 = vmatpush.bf16.msrb.mxu2 %v5870_v32  ;;  %v3634_v53 = vpop.f32.mrf.mxu3  ;;  %v872_v32 = vld [vmem:[#allocation1] sm:$0xff]  ;;  %s3917_s12 = sshll.u32 %s5916_s1, 4  ;;  %s3918_s12 = int_to_ptr.vmem [resolvable:$true] %s3917_s12 }
 0x168   :  { %3860 = vmatpush.bf16.msrb.mxu1 %v5862_v33  ;;  %v3635_v55 = vadd.f32 %v3634_v53, %v3622_v50  ;;  %v3610_v58 = vpop.f32.mrf.mxu1 }
 0x169   :  { %3886 = vmatpush.bf16.msrb.mxu3 %v5878_v34 }
 0x16a   :  { %3848 = vmatpush.bf16.msrb.mxu0 %v5853_v35 }
 0x16b   :  { %3874 = vmatpush.bf16.msrb.mxu2 %v5869_v36 }
 0x16c   :  { %3861 = vmatpush.bf16.msrb.mxu1 %v5861_v37 }
 0x16d   :  { %3887 = vmatpush.bf16.msrb.mxu3 %v5877_v38  ;;  %v3623_v3 = vpop.f32.mrf.mxu2 }
 0x16e   :  { %3849 = vmatpush.bf16.msrb.mxu0 %v5852_v41 }
 0x16f   :  { %3875 = vmatpush.bf16.msrb.mxu2 %v5868_v42  ;;  %v3636_v7 = vpop.f32.mrf.mxu3 }
 0x170   :  { %3862 = vmatpush.bf16.msrb.mxu1 %v5860_v45 }
 0x171   :  { %3888 = vmatpush.bf16.msrb.mxu3 %v5876_v46 }
 0x172   :  { %3850 = vmatpush.bf16.msrb.mxu0 %v5851_v47 }
 0x173   :  { %3876 = vmatpush.bf16.msrb.mxu2 %v5867_v48 }
 0x174   :  { %3863 = vmatpush.bf16.msrb.mxu1 %v5859_v51 }
 0x175   :  { %3889 = vmatpush.bf16.msrb.mxu3 %v5875_v52 }
 0x176   :  { %3851 = vmatpush.bf16.msrb.mxu0 %v5850_v56 }
 0x177   :  { %3877 = vmatpush.bf16.msrb.mxu2 %v5866_v57 }
 0x178   :  { %3864 = vmatpush.bf16.msrb.mxu1 %v5858_v59 }
 0x179   :  { %3890 = vmatpush.bf16.msrb.mxu3 %v5874_v60 }
 0x17a   :  { %3852 = vmatpush.bf16.msrb.mxu0 %v5849_v61 }
 0x17b   :  { %3878 = vmatpush.bf16.msrb.mxu2 %v5865_v62 }
 0x17c   :  { %3865 = vmatpush.bf16.msrb.mxu1 %v5857_v5 }
 0x17d   :  { %3891 = vmatpush.bf16.msrb.mxu3 %v5873_v6 }
 0x17e   :  { %3853 = vmatpush.bf16.msrb.mxu0 %v5848_v8  ;;  %v3647_v15 = vpop.f32.mrf.mxu0 }
 0x17f   :  { %3879 = vmatpush.bf16.msrb.mxu2 %v5864_v9  ;;  %v3648_v16 = vadd.f32 %v3647_v15, %v3635_v55 }
 0x180   :  { %3866 = vmatpush.bf16.msrb.mxu1 %v5856_v11  ;;  %v3660_v18 = vpop.f32.mrf.mxu1 }
 0x181   :  { %3892 = vmatpush.bf16.msrb.mxu3 %v5872_v12  ;;  %3854 = vmatmul.bf16.vlgmr.msrb.gmra.mxu0 %v866_v63  ;;  %v3661_v19 = vadd.f32 %v3660_v18, %v3648_v16 }
 0x182   :  { %3898 = vmatpush.bf16.msra.mxu0 %v5887_v10  ;;  %3880 = vmatmul.bf16.vlgmr.msrb.gmra.mxu2 %v868_v0 }
 0x183   :  { %3867 = vmatmul.bf16.vlgmr.msrb.gmra.mxu1 %v867_v1 }
 0x184   :  { %3893 = vmatmul.bf16.vlgmr.msrb.gmra.mxu3 %v869_v2 }
 0x185   :  { %v3673_v21 = vpop.f32.mrf.mxu2 }
 0x186   :  { %3899 = vmatpush.bf16.msra.mxu0 %v5886_v13  ;;  %v3674_v22 = vadd.f32 %v3673_v21, %v3661_v19  ;;  %v3649_v24 = vpop.f32.mrf.mxu0 }
 0x187   :  { %v3686_v23 = vpop.f32.mrf.mxu3 }
 0x188   :  { %v3687_v25 = vadd.f32 %v3686_v23, %v3674_v22  ;;  %v3662_v27 = vpop.f32.mrf.mxu1 }
 0x18a   :  { %3900 = vmatpush.bf16.msra.mxu0 %v5885_v14 }
 0x18d   :  { %v3675_v29 = vpop.f32.mrf.mxu2 }
 0x18e   :  { %3901 = vmatpush.bf16.msra.mxu0 %v5884_v17 }
 0x18f   :  { %v3688_v30 = vpop.f32.mrf.mxu3 }
 0x192   :  { %3902 = vmatpush.bf16.msra.mxu0 %v5883_v20 }
 0x196   :  { %3903 = vmatpush.bf16.msra.mxu0 %v5882_v26 }
 0x19a   :  { %3904 = vmatpush.bf16.msra.mxu0 %v5881_v28 }
 0x19e   :  { %3905 = vmatpush.bf16.msra.mxu0 %v5880_v31  ;;  %v3699_v33 = vpop.f32.mrf.mxu0 }
 0x19f   :  { %v3700_v34 = vadd.f32 %v3699_v33, %v3687_v25 }
 0x1a0   :  { %v3712_v35 = vpop.f32.mrf.mxu1 }
 0x1a1   :  { %3906 = vmatmul.bf16.vlgmr.msra.gmra.mxu0 %v872_v32  ;;  %v3713_v36 = vadd.f32 %v3712_v35, %v3700_v34 }
 0x1a5   :  { %v3725_v37 = vpop.f32.mrf.mxu2 }
 0x1a6   :  { %v3726_v38 = vadd.f32 %v3725_v37, %v3713_v36  ;;  %v3701_v40 = vpop.f32.mrf.mxu0 }
 0x1a7   :  { %v3738_v39 = vpop.f32.mrf.mxu3 }
 0x1a8   :  { %v3739_v41 = vadd.f32 %v3738_v39, %v3726_v38  ;;  %v3714_v42 = vpop.f32.mrf.mxu1 }
 0x1ad   :  { %v3727_v43 = vpop.f32.mrf.mxu2 }
 0x1af   :  { %v3740_v44 = vpop.f32.mrf.mxu3 }
 0x1be   :  { %v3751_v45 = vpop.f32.mrf.mxu0 }
 0x1bf   :  { %v3752_v46 = vadd.f32 %v3751_v45, %v3739_v41 }
 0x1c0   :  { %v3764_v47 = vpop.f32.mrf.mxu1 }
 0x1c1   :  { %v3765_v48 = vadd.f32 %v3764_v47, %v3752_v46 }
 0x1c5   :  { %v3777_v49 = vpop.f32.mrf.mxu2 }
 0x1c6   :  { %v3778_v50 = vadd.f32 %v3777_v49, %v3765_v48  ;;  %v3753_v52 = vpop.f32.mrf.mxu0 }
 0x1c7   :  { %v3790_v51 = vpop.f32.mrf.mxu3 }
 0x1c8   :  { %v3791_v53 = vadd.f32 %v3790_v51, %v3778_v50  ;;  %v3766_v54 = vpop.f32.mrf.mxu1 }
 0x1cd   :  { %v3779_v55 = vpop.f32.mrf.mxu2 }
 0x1cf   :  { %v3792_v56 = vpop.f32.mrf.mxu3 }
 0x1de   :  { %v3803_v57 = vpop.f32.mrf.mxu0 }
 0x1df   :  { %v3804_v4 = vadd.f32 %v3803_v57, %v3791_v53 }
 0x1e0   :  { %v3816_v58 = vpop.f32.mrf.mxu1 }
 0x1e1   :  { %v3817_v8 = vadd.f32 %v3816_v58, %v3804_v4 }
 0x1e5   :  { %v3829_v59 = vpop.f32.mrf.mxu2 }
 0x1e6   :  { %v3805_v61 = vpop.f32.mrf.mxu0  ;;  %v3830_v9 = vadd.f32 %v3829_v59, %v3817_v8 }
 0x1e7   :  { %v3842_v60 = vpop.f32.mrf.mxu3 }
 0x1e8   :  { %v3818_v62 = vpop.f32.mrf.mxu1  ;;  %v3843_v12 = vadd.f32 %v3842_v60, %v3830_v9 }
 0x1ed   :  { %v3831_v63 = vpop.f32.mrf.mxu2 }
 0x1ef   :  { %v3844_v0 = vpop.f32.mrf.mxu3 }
 0x1fe   :  { %v3855_v1 = vpop.f32.mrf.mxu0 }
 0x1ff   :  { %v3856_v13 = vadd.f32 %v3855_v1, %v3843_v12 }
 0x200   :  { %v3868_v2 = vpop.f32.mrf.mxu1 }
 0x201   :  { %v3869_v14 = vadd.f32 %v3868_v2, %v3856_v13 }
 0x205   :  { %v3881_v3 = vpop.f32.mrf.mxu2 }
 0x206   :  { %v3857_v6 = vpop.f32.mrf.mxu0  ;;  %v3882_v15 = vadd.f32 %v3881_v3, %v3869_v14 }
 0x207   :  { %v3894_v5 = vpop.f32.mrf.mxu3 }
 0x208   :  { %v3870_v7 = vpop.f32.mrf.mxu1  ;;  %v3895_v16 = vadd.f32 %v3894_v5, %v3882_v15 }
 0x20d   :  { %v3883_v10 = vpop.f32.mrf.mxu2 }
 0x20f   :  { %v3896_v11 = vpop.f32.mrf.mxu3 }
 0x21e   :  { %v3907_v17 = vpop.f32.mrf.mxu0 }
 0x21f   :  { %v3908_v18 = vadd.f32 %v3907_v17, %v3895_v16 }
 0x221   :  { %3911 = vst [vmem:[#allocation2] sm:$0x3] %v3908_v18 }
 0x222   :  { %3922 = dma.vmem_to_hbm [thread:$0]  %s3918_s12, 32, %s3920_s15, [#allocation3]  }
 0x226   :  { %v3909_v19 = vpop.f32.mrf.mxu0 }
 0x227   :  { %5914 = dma.done.wait [#allocation3], 32  }
 0x228   :  { %5915 = vsyncadd [#allocation3], 4294967264 }
 0x229   :  { %3927 = vsyncpa [#allocation3], 1 }

</bundles_post_ra>
